<compile_context>
chip_gen: v5e
topology: v5e:2x2
jax: 0.10.0
libtpu: 0.0.40
codegen_flags: <defaults>
</compile_context>

<pallas_src>
import functools
import math

import jax
import jax.numpy as jnp
from jax import lax
from jax.experimental import pallas as pl
from jax.experimental.pallas import tpu as pltpu


_VMEM_LIMIT = 48 * 1024 * 1024   # below physical VMEM on v5e / v6e / v7x


def _band_height(H):
    """Output rows per grid step: prefer 8 (sublane-aligned) and a divisor of H."""
    return 8 if H % 8 == 0 else math.gcd(H, 8)


# ----------------------------------------------------------------------------
# Pallas kernels
# ----------------------------------------------------------------------------

def _conv_bias_act_kernel(x_ref, w_ref, b_ref, o_ref, *, KH, KW, dh, dw, TH, act):
    # x_ref: (1, Hp, Wp, Cin)  padded input image for one batch element (VMEM resident)
    # w_ref: (KH, KW, Cin, Cout) bf16 weights with BN scale folded in
    # b_ref: (1, Cout)  f32 folded BN bias
    # o_ref: (1, TH, W, Cout)  one band of TH output rows
    r = pl.program_id(1)
    h0 = pl.multiple_of(r * TH, TH)
    W = o_ref.shape[2]
    Cout = o_ref.shape[3]
    M = TH * W
    acc = jnp.zeros((M, Cout), jnp.float32)
    for kh in range(KH):                      # statically unrolled taps
        for kw in range(KW):
            sl = x_ref[0, pl.ds(h0 + kh * dh, TH), pl.ds(kw * dw, W), :]   # (TH, W, Cin)
            lhs = sl.reshape(M, sl.shape[-1]).astype(jnp.bfloat16)
            acc = acc + jnp.dot(lhs, w_ref[kh, kw],
                                preferred_element_type=jnp.float32)        # (M, Cout)
    y = acc + b_ref[...]
    if act == 'relu':
        y = jnp.maximum(y, 0.0)
    o_ref[0] = y.reshape(TH, W, Cout).astype(o_ref.dtype)


def _residual_tail_kernel(y1_ref, x_ref, w2_ref, b2_ref, upw_ref, s3_ref, b3_ref,
                          o_ref, *, KH, KW, TH, act):
    # Fused: 3x3 conv(y1)+bias+act  +  1x1 conv(x)  ->  BN -> act
    r = pl.program_id(1)
    h0 = pl.multiple_of(r * TH, TH)
    W = o_ref.shape[2]
    Cout = o_ref.shape[3]
    M = TH * W
    acc = jnp.zeros((M, Cout), jnp.float32)
    for kh in range(KH):
        for kw in range(KW):
            sl = y1_ref[0, pl.ds(h0 + kh, TH), pl.ds(kw, W), :]            # (TH, W, Cmid)
            lhs = sl.reshape(M, sl.shape[-1]).astype(jnp.bfloat16)
            acc = acc + jnp.dot(lhs, w2_ref[kh, kw],
                                preferred_element_type=jnp.float32)
    y2 = acc + b2_ref[...]
    if act == 'relu':
        y2 = jnp.maximum(y2, 0.0)
    xs = x_ref[0, pl.ds(h0, TH), :, :]                                     # (TH, W, Cin)
    up = jnp.dot(xs.reshape(M, xs.shape[-1]).astype(jnp.bfloat16), upw_ref[...],
                 preferred_element_type=jnp.float32)                       # (M, Cout)
    y = (up + y2) * s3_ref[...] + b3_ref[...]
    if act == 'relu':
        y = jnp.maximum(y, 0.0)
    o_ref[0] = y.reshape(TH, W, Cout).astype(o_ref.dtype)


def _bn_act_kernel(x_ref, s_ref, b_ref, o_ref, *, act):
    y = x_ref[...] * s_ref[...] + b_ref[...]
    if act == 'relu':
        y = jnp.maximum(y, 0.0)
    o_ref[...] = y.astype(o_ref.dtype)


def _sum6_bn_act_kernel(x1, x2, x3, x4, x5, x6, s_ref, b_ref, o_ref, *, act):
    y = (x1[...] + x2[...]) + (x3[...] + x4[...]) + (x5[...] + x6[...])
    y = y * s_ref[...] + b_ref[...]
    if act == 'relu':
        y = jnp.maximum(y, 0.0)
    o_ref[...] = y.astype(o_ref.dtype)


# ----------------------------------------------------------------------------
# Pallas wrappers
# ----------------------------------------------------------------------------

def conv_bn_act_pallas(x, w, scale, bias, *, dilation=(1, 1), act='relu'):
    """Conv2d (stride 1, 'same' padding, dilation) + folded BN + activation."""
    B, H, W, Cin = x.shape
    KH, KW, _, Cout = w.shape
    dh, dw = dilation
    ph = (KH - 1) // 2 * dh
    pw = (KW - 1) // 2 * dw
    xp = jnp.pad(x, ((0, 0), (ph, ph), (pw, pw), (0, 0))) if (ph or pw) else x
    Hp, Wp = H + 2 * ph, W + 2 * pw
    TH = _band_height(H)
    wf = (w * scale.reshape(1, 1, 1, Cout)).astype(jnp.bfloat16)   # fold BN scale
    kernel = functools.partial(_conv_bias_act_kernel,
                               KH=KH, KW=KW, dh=dh, dw=dw, TH=TH, act=act)
    return pl.pallas_call(
        kernel,
        out_shape=jax.ShapeDtypeStruct((B, H, W, Cout), jnp.float32),
        grid=(B, H // TH),
        in_specs=[
            pl.BlockSpec((1, Hp, Wp, Cin), lambda b, r: (b, 0, 0, 0)),
            pl.BlockSpec((KH, KW, Cin, Cout), lambda b, r: (0, 0, 0, 0)),
            pl.BlockSpec((1, Cout), lambda b, r: (0, 0)),
        ],
        out_specs=pl.BlockSpec((1, TH, W, Cout), lambda b, r: (b, r, 0, 0)),
        compiler_params=pltpu.CompilerParams(
            dimension_semantics=("parallel", "parallel"),
            vmem_limit_bytes=_VMEM_LIMIT),
    )(xp, wf, bias.reshape(1, Cout).astype(jnp.float32))


def residual_tail_pallas(y1, x, w2, s2, b2, up_w, s3, b3, *, act='relu'):
    """Fused residual tail: ConvBNAct3x3(y1) + Conv1x1(x) -> BN -> act."""
    B, H, W, Cmid = y1.shape
    KH, KW, _, Cout = w2.shape
    Cin = x.shape[-1]
    ph, pw = (KH - 1) // 2, (KW - 1) // 2
    y1p = jnp.pad(y1, ((0, 0), (ph, ph), (pw, pw), (0, 0)))
    Hp, Wp = H + 2 * ph, W + 2 * pw
    TH = _band_height(H)
    w2f = (w2 * s2.reshape(1, 1, 1, Cout)).astype(jnp.bfloat16)
    upwf = up_w.reshape(Cin, Cout).astype(jnp.bfloat16)
    kernel = functools.partial(_residual_tail_kernel, KH=KH, KW=KW, TH=TH, act=act)
    return pl.pallas_call(
        kernel,
        out_shape=jax.ShapeDtypeStruct((B, H, W, Cout), jnp.float32),
        grid=(B, H // TH),
        in_specs=[
            pl.BlockSpec((1, Hp, Wp, Cmid), lambda b, r: (b, 0, 0, 0)),
            pl.BlockSpec((1, H, W, Cin), lambda b, r: (b, 0, 0, 0)),
            pl.BlockSpec((KH, KW, Cmid, Cout), lambda b, r: (0, 0, 0, 0)),
            pl.BlockSpec((1, Cout), lambda b, r: (0, 0)),
            pl.BlockSpec((Cin, Cout), lambda b, r: (0, 0)),
            pl.BlockSpec((1, Cout), lambda b, r: (0, 0)),
            pl.BlockSpec((1, Cout), lambda b, r: (0, 0)),
        ],
        out_specs=pl.BlockSpec((1, TH, W, Cout), lambda b, r: (b, r, 0, 0)),
        compiler_params=pltpu.CompilerParams(
            dimension_semantics=("parallel", "parallel"),
            vmem_limit_bytes=_VMEM_LIMIT),
    )(y1p, x, w2f, b2.reshape(1, Cout), upwf, s3.reshape(1, Cout), b3.reshape(1, Cout))


def bn_act_pallas(x, scale, bias, *, act='relu'):
    """Per-channel affine + activation on lane-dense (B, H, W*C) row bands."""
    B, H, W, C = x.shape
    TH = _band_height(H)
    WC = W * C
    xr = x.reshape(B, H, WC)
    st = jnp.tile(scale, W).reshape(1, 1, WC)
    bt = jnp.tile(bias, W).reshape(1, 1, WC)
    kernel = functools.partial(_bn_act_kernel, act=act)
    out = pl.pallas_call(
        kernel,
        out_shape=jax.ShapeDtypeStruct((B, H, WC), jnp.float32),
        grid=(B, H // TH),
        in_specs=[
            pl.BlockSpec((1, TH, WC), lambda b, r: (b, r, 0)),
            pl.BlockSpec((1, 1, WC), lambda b, r: (0, 0, 0)),
            pl.BlockSpec((1, 1, WC), lambda b, r: (0, 0, 0)),
        ],
        out_specs=pl.BlockSpec((1, TH, WC), lambda b, r: (b, r, 0)),
        compiler_params=pltpu.CompilerParams(
            dimension_semantics=("parallel", "parallel"),
            vmem_limit_bytes=_VMEM_LIMIT),
    )(xr, st, bt)
    return out.reshape(B, H, W, C)


def sum6_bn_act_pallas(xs, scale, bias, *, act='relu'):
    """Sum of 6 branch outputs + per-channel affine + activation (lane-dense)."""
    B, H, W, C = xs[0].shape
    TH = _band_height(H)
    WC = W * C
    xrs = [x.reshape(B, H, WC) for x in xs]
    st = jnp.tile(scale, W).reshape(1, 1, WC)
    bt = jnp.tile(bias, W).reshape(1, 1, WC)
    img = pl.BlockSpec((1, TH, WC), lambda b, r: (b, r, 0))
    vec = pl.BlockSpec((1, 1, WC), lambda b, r: (0, 0, 0))
    kernel = functools.partial(_sum6_bn_act_kernel, act=act)
    out = pl.pallas_call(
        kernel,
        out_shape=jax.ShapeDtypeStruct((B, H, WC), jnp.float32),
        grid=(B, H // TH),
        in_specs=[img] * 6 + [vec, vec],
        out_specs=img,
        compiler_params=pltpu.CompilerParams(
            dimension_semantics=("parallel", "parallel"),
            vmem_limit_bytes=_VMEM_LIMIT),
    )(*xrs, st, bt)
    return out.reshape(B, H, W, C)


# ----------------------------------------------------------------------------
# Pure-JAX reference ops (mirror the bf16-operand / f32-accumulation math)
# ----------------------------------------------------------------------------

def conv_bn_act_ref(x, w, scale, bias, *, dilation=(1, 1), act='relu'):
    KH, KW = w.shape[0], w.shape[1]
    dh, dw = dilation
    ph = (KH - 1) // 2 * dh
    pw = (KW - 1) // 2 * dw
    wf = (w * scale.reshape(1, 1, 1, -1)).astype(jnp.bfloat16)
    y = lax.conv_general_dilated(
        x.astype(jnp.bfloat16), wf, window_strides=(1, 1),
        padding=[(ph, ph), (pw, pw)], rhs_dilation=(dh, dw),
        dimension_numbers=('NHWC', 'HWIO', 'NHWC'),
        preferred_element_type=jnp.float32)
    y = y + bias.reshape(1, 1, 1, -1)
    return jnp.maximum(y, 0.0) if act == 'relu' else y


def residual_tail_ref(y1, x, w2, s2, b2, up_w, s3, b3, *, act='relu'):
    y2 = conv_bn_act_ref(y1, w2, s2, b2, dilation=(1, 1), act=act)
    up = lax.conv_general_dilated(
        x.astype(jnp.bfloat16), up_w.astype(jnp.bfloat16), window_strides=(1, 1),
        padding=[(0, 0), (0, 0)], dimension_numbers=('NHWC', 'HWIO', 'NHWC'),
        preferred_element_type=jnp.float32)
    y = (up + y2) * s3.reshape(1, 1, 1, -1) + b3.reshape(1, 1, 1, -1)
    return jnp.maximum(y, 0.0) if act == 'relu' else y


def bn_act_ref(x, s, b, *, act='relu'):
    y = x * s.reshape(1, 1, 1, -1) + b.reshape(1, 1, 1, -1)
    return jnp.maximum(y, 0.0) if act == 'relu' else y


def sum6_bn_act_ref(xs, s, b, *, act='relu'):
    total = xs[0]
    for t in xs[1:]:
        total = total + t
    return bn_act_ref(total, s, b, act=act)


PALLAS_OPS = dict(conv=conv_bn_act_pallas, res_tail=residual_tail_pallas,
                  bn=bn_act_pallas, sum6=sum6_bn_act_pallas)
REF_OPS = dict(conv=conv_bn_act_ref, res_tail=residual_tail_ref,
               bn=bn_act_ref, sum6=sum6_bn_act_ref)


# ----------------------------------------------------------------------------
# Parameter initialization (deterministic, synthetic)
# ----------------------------------------------------------------------------

def fold_bn(gamma, beta, mean, var, eps=1e-5):
    scale = gamma / jnp.sqrt(var + eps)
    bias = beta - mean * scale
    return scale, bias


def init_bn(key, c):
    k1, k2, k3, k4 = jax.random.split(key, 4)
    gamma = 1.0 + 0.1 * jax.random.normal(k1, (c,), jnp.float32)
    beta = 0.1 * jax.random.normal(k2, (c,), jnp.float32)
    mean = 0.1 * jax.random.normal(k3, (c,), jnp.float32)
    var = 0.5 + jax.random.uniform(k4, (c,), jnp.float32)
    return fold_bn(gamma, beta, mean, var)


def init_conv(key, cin, cout, kh, kw):
    fan_in = cin * kh * kw
    return jax.random.normal(key, (kh, kw, cin, cout), jnp.float32) / jnp.sqrt(fan_in)


def init_cba(key, cin, cout, kh, kw):
    kconv, kbn = jax.random.split(key)
    s, b = init_bn(kbn, cout)
    return {'w': init_conv(kconv, cin, cout, kh, kw), 's': s, 'b': b}


def init_widescope(key, cin, cout):
    k1, k2, k3 = jax.random.split(key, 3)
    return [init_cba(k1, cin, cout, 3, 3),
            init_cba(k2, cout, cout, 3, 3),
            init_cba(k3, cout, cout, 3, 3)]


def init_midscope(key, cin, cout):
    k1, k2 = jax.random.split(key)
    return [init_cba(k1, cin, cout, 3, 3), init_cba(k2, cout, cout, 3, 3)]


def init_residual(key, cin, cout):
    k1, k2, k3, k4 = jax.random.split(key, 4)
    return {'up_w': init_conv(k1, cin, cout, 1, 1),
            'c1': init_cba(k2, cin, cout, 3, 3),
            'c2': init_cba(k3, cout, cout, 3, 3),
            'bn': init_bn(k4, cout)}


def init_separated(key, cin, cout, fs):
    k1, k2 = jax.random.split(key)
    return [init_cba(k1, cin, cout, 1, fs), init_cba(k2, cout, cout, fs, 1)]


def init_duck(key, cin, cout, filter_size=7):
    ks = jax.random.split(key, 11)
    return {
        'in_bn': init_bn(ks[0], cin),
        'b1': init_widescope(ks[1], cin, cout),
        'b2': init_midscope(ks[2], cin, cout),
        'b3': init_residual(ks[3], cin, cout),
        'b4': [init_residual(ks[4], cin, cout), init_residual(ks[5], cout, cout)],
        'b5': [init_residual(ks[6], cin, cout), init_residual(ks[7], cout, cout),
               init_residual(ks[8], cout, cout)],
        'b6': init_separated(ks[9], cin, cout, filter_size),
        'out_bn': init_bn(ks[10], cout),
    }


# ----------------------------------------------------------------------------
# DUCK forward (branch composition; shared by Pallas and reference paths)
# ----------------------------------------------------------------------------

def _cba(ops, x, p, dilation, act):
    return ops['conv'](x, p['w'], p['s'], p['b'], dilation=dilation, act=act)


def _widescope(ops, x, ps, act):
    x = _cba(ops, x, ps[0], (1, 1), act)
    x = _cba(ops, x, ps[1], (2, 2), act)
    x = _cba(ops, x, ps[2], (3, 3), act)
    return x


def _midscope(ops, x, ps, act):
    x = _cba(ops, x, ps[0], (1, 1), act)
    x = _cba(ops, x, ps[1], (2, 2), act)
    return x


def _residual(ops, x, p, act):
    y1 = _cba(ops, x, p['c1'], (1, 1), act)
    s3, b3 = p['bn']
    return ops['res_tail'](y1, x, p['c2']['w'], p['c2']['s'], p['c2']['b'],
                           p['up_w'], s3, b3, act=act)


def _separated(ops, x, ps, act):
    x = _cba(ops, x, ps[0], (1, 1), act)
    x = _cba(ops, x, ps[1], (1, 1), act)
    return x


def duck_forward(x_nchw, params, act='relu', ops=PALLAS_OPS):
    x = jnp.transpose(x_nchw, (0, 2, 3, 1))            # NCHW -> NHWC
    s_in, b_in = params['in_bn']
    x = ops['bn'](x, s_in, b_in, act=act)
    x1 = _widescope(ops, x, params['b1'], act)
    x2 = _midscope(ops, x, params['b2'], act)
    x3 = _residual(ops, x, params['b3'], act)
    x4 = x
    for p in params['b4']:
        x4 = _residual(ops, x4, p, act)
    x5 = x
    for p in params['b5']:
        x5 = _residual(ops, x5, p, act)
    x6 = _separated(ops, x, params['b6'], act)
    s_out, b_out = params['out_bn']
    y = ops['sum6']([x1, x2, x3, x4, x5, x6], s_out, b_out, act=act)
    return jnp.transpose(y, (0, 3, 1, 2))               # NHWC -> NCHW


# ----------------------------------------------------------------------------
# Main
# ----------------------------------------------------------------------------

if __name__ == "__main__":
    key = jax.random.PRNGKey(0)
    pkey, xkey = jax.random.split(key)

    B, Cin, Cout, H, W = 2, 4, 8, 16, 16
    params = init_duck(pkey, Cin, Cout, filter_size=7)
    x = jax.random.normal(xkey, (B, Cin, H, W), jnp.float32)   # NCHW like PyTorch

    duck_pallas = jax.jit(lambda xx, pp: duck_forward(xx, pp, act='relu', ops=PALLAS_OPS))
    out = jax.block_until_ready(duck_pallas(x, params))

    ref = duck_forward(x, params, act='relu', ops=REF_OPS)

    assert out.shape == (B, Cout, H, W), out.shape
    assert bool(jnp.all(jnp.isfinite(out)))
    assert bool(jnp.allclose(out, ref, atol=2e-2, rtol=2e-2)), "Pallas vs reference mismatch"

    print("KERNEL_OK")
</pallas_src>

<mosaic_0001>
module attributes {stable_mosaic.version = 11 : i64} {
  func.func @_bn_act_kernel(%arg0: i32, %arg1: i32, %arg2: memref<1x8x64xf32, #tpu.memory_space<vmem>>, %arg3: memref<1x1x64xf32, #tpu.memory_space<vmem>>, %arg4: memref<1x1x64xf32, #tpu.memory_space<vmem>>, %arg5: memref<1x8x64xf32, #tpu.memory_space<vmem>>) attributes {dimension_semantics = [#tpu.dimension_semantics<parallel>, #tpu.dimension_semantics<parallel>], iteration_bounds = array<i64: 2, 2>, scalar_prefetch = 0 : i64, scratch_operands = 0 : i64, tpu.core_type = #tpu.core_type<tc>, window_params = [{transform_indices = @transform_0, window_bounds = array<i64: 1, 8, 64>}, {pipeline_mode = #tpu.pipeline_mode<synchronous>, transform_indices = @transform_1, window_bounds = array<i64: 1, 1, 64>}, {pipeline_mode = #tpu.pipeline_mode<synchronous>, transform_indices = @transform_2, window_bounds = array<i64: 1, 1, 64>}, {transform_indices = @transform_3, window_bounds = array<i64: 1, 8, 64>}]} {
    %c0 = arith.constant 0 : index
    %c0_0 = arith.constant 0 : index
    %c0_1 = arith.constant 0 : index
    %0 = vector.load %arg2[%c0, %c0_0, %c0_1] : memref<1x8x64xf32, #tpu.memory_space<vmem>>, vector<1x8x64xf32>
    %c0_2 = arith.constant 0 : index
    %c0_3 = arith.constant 0 : index
    %c0_4 = arith.constant 0 : index
    %1 = vector.load %arg3[%c0_2, %c0_3, %c0_4] : memref<1x1x64xf32, #tpu.memory_space<vmem>>, vector<1x1x64xf32>
    %2 = vector.broadcast %1 : vector<1x1x64xf32> to vector<1x8x64xf32>
    %3 = arith.mulf %0, %2 : vector<1x8x64xf32>
    %c0_5 = arith.constant 0 : index
    %c0_6 = arith.constant 0 : index
    %c0_7 = arith.constant 0 : index
    %4 = vector.load %arg4[%c0_5, %c0_6, %c0_7] : memref<1x1x64xf32, #tpu.memory_space<vmem>>, vector<1x1x64xf32>
    %5 = vector.broadcast %4 : vector<1x1x64xf32> to vector<1x8x64xf32>
    %6 = arith.addf %3, %5 : vector<1x8x64xf32>
    %cst = arith.constant 0.000000e+00 : f32
    %7 = vector.broadcast %cst : f32 to vector<1x8x64xf32>
    %8 = arith.maximumf %6, %7 : vector<1x8x64xf32>
    %c0_8 = arith.constant 0 : index
    %c0_9 = arith.constant 0 : index
    %c0_10 = arith.constant 0 : index
    %9 = vector.load %arg5[%c0_8, %c0_9, %c0_10] : memref<1x8x64xf32, #tpu.memory_space<vmem>>, vector<1x8x64xf32>
    tpu.vector_store %arg5[%c0_8, %c0_9, %c0_10], %8 {strides = array<i32>} : memref<1x8x64xf32, #tpu.memory_space<vmem>>, vector<1x8x64xf32>,
    return
  }
  func.func @transform_0(%arg0: i32, %arg1: i32) -> (i32, i32, i32) {
    %c0_i32 = arith.constant 0 : i32
    %c0_i32_0 = arith.constant 0 : i32
    return %arg0, %arg1, %c0_i32 : i32, i32, i32
  }
  func.func @transform_1(%arg0: i32, %arg1: i32) -> (i32, i32, i32) {
    %c0_i32 = arith.constant 0 : i32
    %c0_i32_0 = arith.constant 0 : i32
    %c0_i32_1 = arith.constant 0 : i32
    %c0_i32_2 = arith.constant 0 : i32
    return %c0_i32, %c0_i32_0, %c0_i32_1 : i32, i32, i32
  }
  func.func @transform_2(%arg0: i32, %arg1: i32) -> (i32, i32, i32) {
    %c0_i32 = arith.constant 0 : i32
    %c0_i32_0 = arith.constant 0 : i32
    %c0_i32_1 = arith.constant 0 : i32
    %c0_i32_2 = arith.constant 0 : i32
    return %c0_i32, %c0_i32_0, %c0_i32_1 : i32, i32, i32
  }
  func.func @transform_3(%arg0: i32, %arg1: i32) -> (i32, i32, i32) {
    %c0_i32 = arith.constant 0 : i32
    %c0_i32_0 = arith.constant 0 : i32
    return %arg0, %arg1, %c0_i32 : i32, i32, i32
  }
}

module attributes {stable_mosaic.version = 11 : i64} {
  func.func @_conv_bias_act_kernel(%arg0: i32, %arg1: i32, %arg2: memref<1x18x18x4xf32, #tpu.memory_space<vmem>>, %arg3: memref<3x3x4x8xbf16, #tpu.memory_space<vmem>>, %arg4: memref<1x8xf32, #tpu.memory_space<vmem>>, %arg5: memref<1x8x16x8xf32, #tpu.memory_space<vmem>>) attributes {dimension_semantics = [#tpu.dimension_semantics<parallel>, #tpu.dimension_semantics<parallel>], iteration_bounds = array<i64: 2, 2>, scalar_prefetch = 0 : i64, scratch_operands = 0 : i64, tpu.core_type = #tpu.core_type<tc>, window_params = [{transform_indices = @transform_0, window_bounds = array<i64: 1, 18, 18, 4>}, {pipeline_mode = #tpu.pipeline_mode<synchronous>, transform_indices = @transform_1, window_bounds = array<i64: 3, 3, 4, 8>}, {pipeline_mode = #tpu.pipeline_mode<synchronous>, transform_indices = @transform_2, window_bounds = array<i64: 1, 8>}, {transform_indices = @transform_3, window_bounds = array<i64: 1, 8, 16, 8>}]} {
    %c8_i32 = arith.constant 8 : i32
    %0 = arith.muli %arg1, %c8_i32 : i32
    %1 = tpu.assume_multiple %0, 8 : i32
    %cst = arith.constant 0.000000e+00 : f32
    %2 = vector.broadcast %cst : f32 to vector<128x8xf32>
    %c0_i32 = arith.constant 0 : i32
    %3 = arith.addi %1, %c0_i32 : i32
    %c0 = arith.constant 0 : index
    %4 = arith.index_cast %3 : i32 to index
    %c0_0 = arith.constant 0 : index
    %c0_1 = arith.constant 0 : index
    %5 = vector.load %arg2[%c0, %4, %c0_0, %c0_1] : memref<1x18x18x4xf32, #tpu.memory_space<vmem>>, vector<1x8x16x4xf32>
    %6 = vector.shape_cast %5 : vector<1x8x16x4xf32> to vector<8x16x4xf32>
    %7 = vector.shape_cast %6 : vector<8x16x4xf32> to vector<128x4xf32>
    %8 = arith.truncf %7 : vector<128x4xf32> to vector<128x4xbf16>
    %c0_2 = arith.constant 0 : index
    %c0_3 = arith.constant 0 : index
    %c0_4 = arith.constant 0 : index
    %c0_5 = arith.constant 0 : index
    %9 = vector.load %arg3[%c0_2, %c0_3, %c0_4, %c0_5] : memref<3x3x4x8xbf16, #tpu.memory_space<vmem>>, vector<1x1x4x8xbf16>
    %10 = vector.shape_cast %9 : vector<1x1x4x8xbf16> to vector<4x8xbf16>
    %cst_6 = arith.constant dense<0.000000e+00> : vector<128x8xf32>
    %11 = tpu.matmul %8, %10, %cst_6 {dimension_numbers = #tpu.dot_dimension_numbers<[1], [0], [0], [1], [0, 0, 1, 1], [], []>} : vector<128x4xbf16>, vector<4x8xbf16>, vector<128x8xf32> -> vector<128x8xf32>
    %12 = arith.addf %2, %11 : vector<128x8xf32>
    %c0_i32_7 = arith.constant 0 : i32
    %13 = arith.addi %1, %c0_i32_7 : i32
    %c0_8 = arith.constant 0 : index
    %14 = arith.index_cast %13 : i32 to index
    %c1 = arith.constant 1 : index
    %c0_9 = arith.constant 0 : index
    %15 = vector.load %arg2[%c0_8, %14, %c1, %c0_9] : memref<1x18x18x4xf32, #tpu.memory_space<vmem>>, vector<1x8x16x4xf32>
    %16 = vector.shape_cast %15 : vector<1x8x16x4xf32> to vector<8x16x4xf32>
    %17 = vector.shape_cast %16 : vector<8x16x4xf32> to vector<128x4xf32>
    %18 = arith.truncf %17 : vector<128x4xf32> to vector<128x4xbf16>
    %c0_10 = arith.constant 0 : index
    %c1_11 = arith.constant 1 : index
    %c0_12 = arith.constant 0 : index
    %c0_13 = arith.constant 0 : index
    %19 = vector.load %arg3[%c0_10, %c1_11, %c0_12, %c0_13] : memref<3x3x4x8xbf16, #tpu.memory_space<vmem>>, vector<1x1x4x8xbf16>
    %20 = vector.shape_cast %19 : vector<1x1x4x8xbf16> to vector<4x8xbf16>
    %cst_14 = arith.constant dense<0.000000e+00> : vector<128x8xf32>
    %21 = tpu.matmul %18, %20, %cst_14 {dimension_numbers = #tpu.dot_dimension_numbers<[1], [0], [0], [1], [0, 0, 1, 1], [], []>} : vector<128x4xbf16>, vector<4x8xbf16>, vector<128x8xf32> -> vector<128x8xf32>
    %22 = arith.addf %12, %21 : vector<128x8xf32>
    %c0_i32_15 = arith.constant 0 : i32
    %23 = arith.addi %1, %c0_i32_15 : i32
    %c0_16 = arith.constant 0 : index
    %24 = arith.index_cast %23 : i32 to index
    %c2 = arith.constant 2 : index
    %c0_17 = arith.constant 0 : index
    %25 = vector.load %arg2[%c0_16, %24, %c2, %c0_17] : memref<1x18x18x4xf32, #tpu.memory_space<vmem>>, vector<1x8x16x4xf32>
    %26 = vector.shape_cast %25 : vector<1x8x16x4xf32> to vector<8x16x4xf32>
    %27 = vector.shape_cast %26 : vector<8x16x4xf32> to vector<128x4xf32>
    %28 = arith.truncf %27 : vector<128x4xf32> to vector<128x4xbf16>
    %c0_18 = arith.constant 0 : index
    %c2_19 = arith.constant 2 : index
    %c0_20 = arith.constant 0 : index
    %c0_21 = arith.constant 0 : index
    %29 = vector.load %arg3[%c0_18, %c2_19, %c0_20, %c0_21] : memref<3x3x4x8xbf16, #tpu.memory_space<vmem>>, vector<1x1x4x8xbf16>
    %30 = vector.shape_cast %29 : vector<1x1x4x8xbf16> to vector<4x8xbf16>
    %cst_22 = arith.constant dense<0.000000e+00> : vector<128x8xf32>
    %31 = tpu.matmul %28, %30, %cst_22 {dimension_numbers = #tpu.dot_dimension_numbers<[1], [0], [0], [1], [0, 0, 1, 1], [], []>} : vector<128x4xbf16>, vector<4x8xbf16>, vector<128x8xf32> -> vector<128x8xf32>
    %32 = arith.addf %22, %31 : vector<128x8xf32>
    %c1_i32 = arith.constant 1 : i32
    %33 = arith.addi %1, %c1_i32 : i32
    %c0_23 = arith.constant 0 : index
    %34 = arith.index_cast %33 : i32 to index
    %c0_24 = arith.constant 0 : index
    %c0_25 = arith.constant 0 : index
    %35 = vector.load %arg2[%c0_23, %34, %c0_24, %c0_25] : memref<1x18x18x4xf32, #tpu.memory_space<vmem>>, vector<1x8x16x4xf32>
    %36 = vector.shape_cast %35 : vector<1x8x16x4xf32> to vector<8x16x4xf32>
    %37 = vector.shape_cast %36 : vector<8x16x4xf32> to vector<128x4xf32>
    %38 = arith.truncf %37 : vector<128x4xf32> to vector<128x4xbf16>
    %c1_26 = arith.constant 1 : index
    %c0_27 = arith.constant 0 : index
    %c0_28 = arith.constant 0 : index
    %c0_29 = arith.constant 0 : index
    %39 = vector.load %arg3[%c1_26, %c0_27, %c0_28, %c0_29] : memref<3x3x4x8xbf16, #tpu.memory_space<vmem>>, vector<1x1x4x8xbf16>
    %40 = vector.shape_cast %39 : vector<1x1x4x8xbf16> to vector<4x8xbf16>
    %cst_30 = arith.constant dense<0.000000e+00> : vector<128x8xf32>
    %41 = tpu.matmul %38, %40, %cst_30 {dimension_numbers = #tpu.dot_dimension_numbers<[1], [0], [0], [1], [0, 0, 1, 1], [], []>} : vector<128x4xbf16>, vector<4x8xbf16>, vector<128x8xf32> -> vector<128x8xf32>
    %42 = arith.addf %32, %41 : vector<128x8xf32>
    %c1_i32_31 = arith.constant 1 : i32
    %43 = arith.addi %1, %c1_i32_31 : i32
    %c0_32 = arith.constant 0 : index
    %44 = arith.index_cast %43 : i32 to index
    %c1_33 = arith.constant 1 : index
    %c0_34 = arith.constant 0 : index
    %45 = vector.load %arg2[%c0_32, %44, %c1_33, %c0_34] : memref<1x18x18x4xf32, #tpu.memory_space<vmem>>, vector<1x8x16x4xf32>
    %46 = vector.shape_cast %45 : vector<1x8x16x4xf32> to vector<8x16x4xf32>
    %47 = vector.shape_cast %46 : vector<8x16x4xf32> to vector<128x4xf32>
    %48 = arith.truncf %47 : vector<128x4xf32> to vector<128x4xbf16>
    %c1_35 = arith.constant 1 : index
    %c1_36 = arith.constant 1 : index
    %c0_37 = arith.constant 0 : index
    %c0_38 = arith.constant 0 : index
    %49 = vector.load %arg3[%c1_35, %c1_36, %c0_37, %c0_38] : memref<3x3x4x8xbf16, #tpu.memory_space<vmem>>, vector<1x1x4x8xbf16>
    %50 = vector.shape_cast %49 : vector<1x1x4x8xbf16> to vector<4x8xbf16>
    %cst_39 = arith.constant dense<0.000000e+00> : vector<128x8xf32>
    %51 = tpu.matmul %48, %50, %cst_39 {dimension_numbers = #tpu.dot_dimension_numbers<[1], [0], [0], [1], [0, 0, 1, 1], [], []>} : vector<128x4xbf16>, vector<4x8xbf16>, vector<128x8xf32> -> vector<128x8xf32>
    %52 = arith.addf %42, %51 : vector<128x8xf32>
    %c1_i32_40 = arith.constant 1 : i32
    %53 = arith.addi %1, %c1_i32_40 : i32
    %c0_41 = arith.constant 0 : index
    %54 = arith.index_cast %53 : i32 to index
    %c2_42 = arith.constant 2 : index
    %c0_43 = arith.constant 0 : index
    %55 = vector.load %arg2[%c0_41, %54, %c2_42, %c0_43] : memref<1x18x18x4xf32, #tpu.memory_space<vmem>>, vector<1x8x16x4xf32>
    %56 = vector.shape_cast %55 : vector<1x8x16x4xf32> to vector<8x16x4xf32>
    %57 = vector.shape_cast %56 : vector<8x16x4xf32> to vector<128x4xf32>
    %58 = arith.truncf %57 : vector<128x4xf32> to vector<128x4xbf16>
    %c1_44 = arith.constant 1 : index
    %c2_45 = arith.constant 2 : index
    %c0_46 = arith.constant 0 : index
    %c0_47 = arith.constant 0 : index
    %59 = vector.load %arg3[%c1_44, %c2_45, %c0_46, %c0_47] : memref<3x3x4x8xbf16, #tpu.memory_space<vmem>>, vector<1x1x4x8xbf16>
    %60 = vector.shape_cast %59 : vector<1x1x4x8xbf16> to vector<4x8xbf16>
    %cst_48 = arith.constant dense<0.000000e+00> : vector<128x8xf32>
    %61 = tpu.matmul %58, %60, %cst_48 {dimension_numbers = #tpu.dot_dimension_numbers<[1], [0], [0], [1], [0, 0, 1, 1], [], []>} : vector<128x4xbf16>, vector<4x8xbf16>, vector<128x8xf32> -> vector<128x8xf32>
    %62 = arith.addf %52, %61 : vector<128x8xf32>
    %c2_i32 = arith.constant 2 : i32
    %63 = arith.addi %1, %c2_i32 : i32
    %c0_49 = arith.constant 0 : index
    %64 = arith.index_cast %63 : i32 to index
    %c0_50 = arith.constant 0 : index
    %c0_51 = arith.constant 0 : index
    %65 = vector.load %arg2[%c0_49, %64, %c0_50, %c0_51] : memref<1x18x18x4xf32, #tpu.memory_space<vmem>>, vector<1x8x16x4xf32>
    %66 = vector.shape_cast %65 : vector<1x8x16x4xf32> to vector<8x16x4xf32>
    %67 = vector.shape_cast %66 : vector<8x16x4xf32> to vector<128x4xf32>
    %68 = arith.truncf %67 : vector<128x4xf32> to vector<128x4xbf16>
    %c2_52 = arith.constant 2 : index
    %c0_53 = arith.constant 0 : index
    %c0_54 = arith.constant 0 : index
    %c0_55 = arith.constant 0 : index
    %69 = vector.load %arg3[%c2_52, %c0_53, %c0_54, %c0_55] : memref<3x3x4x8xbf16, #tpu.memory_space<vmem>>, vector<1x1x4x8xbf16>
    %70 = vector.shape_cast %69 : vector<1x1x4x8xbf16> to vector<4x8xbf16>
    %cst_56 = arith.constant dense<0.000000e+00> : vector<128x8xf32>
    %71 = tpu.matmul %68, %70, %cst_56 {dimension_numbers = #tpu.dot_dimension_numbers<[1], [0], [0], [1], [0, 0, 1, 1], [], []>} : vector<128x4xbf16>, vector<4x8xbf16>, vector<128x8xf32> -> vector<128x8xf32>
    %72 = arith.addf %62, %71 : vector<128x8xf32>
    %c2_i32_57 = arith.constant 2 : i32
    %73 = arith.addi %1, %c2_i32_57 : i32
    %c0_58 = arith.constant 0 : index
    %74 = arith.index_cast %73 : i32 to index
    %c1_59 = arith.constant 1 : index
    %c0_60 = arith.constant 0 : index
    %75 = vector.load %arg2[%c0_58, %74, %c1_59, %c0_60] : memref<1x18x18x4xf32, #tpu.memory_space<vmem>>, vector<1x8x16x4xf32>
    %76 = vector.shape_cast %75 : vector<1x8x16x4xf32> to vector<8x16x4xf32>
    %77 = vector.shape_cast %76 : vector<8x16x4xf32> to vector<128x4xf32>
    %78 = arith.truncf %77 : vector<128x4xf32> to vector<128x4xbf16>
    %c2_61 = arith.constant 2 : index
    %c1_62 = arith.constant 1 : index
    %c0_63 = arith.constant 0 : index
    %c0_64 = arith.constant 0 : index
    %79 = vector.load %arg3[%c2_61, %c1_62, %c0_63, %c0_64] : memref<3x3x4x8xbf16, #tpu.memory_space<vmem>>, vector<1x1x4x8xbf16>
    %80 = vector.shape_cast %79 : vector<1x1x4x8xbf16> to vector<4x8xbf16>
    %cst_65 = arith.constant dense<0.000000e+00> : vector<128x8xf32>
    %81 = tpu.matmul %78, %80, %cst_65 {dimension_numbers = #tpu.dot_dimension_numbers<[1], [0], [0], [1], [0, 0, 1, 1], [], []>} : vector<128x4xbf16>, vector<4x8xbf16>, vector<128x8xf32> -> vector<128x8xf32>
    %82 = arith.addf %72, %81 : vector<128x8xf32>
    %c2_i32_66 = arith.constant 2 : i32
    %83 = arith.addi %1, %c2_i32_66 : i32
    %c0_67 = arith.constant 0 : index
    %84 = arith.index_cast %83 : i32 to index
    %c2_68 = arith.constant 2 : index
    %c0_69 = arith.constant 0 : index
    %85 = vector.load %arg2[%c0_67, %84, %c2_68, %c0_69] : memref<1x18x18x4xf32, #tpu.memory_space<vmem>>, vector<1x8x16x4xf32>
    %86 = vector.shape_cast %85 : vector<1x8x16x4xf32> to vector<8x16x4xf32>
    %87 = vector.shape_cast %86 : vector<8x16x4xf32> to vector<128x4xf32>
    %88 = arith.truncf %87 : vector<128x4xf32> to vector<128x4xbf16>
    %c2_70 = arith.constant 2 : index
    %c2_71 = arith.constant 2 : index
    %c0_72 = arith.constant 0 : index
    %c0_73 = arith.constant 0 : index
    %89 = vector.load %arg3[%c2_70, %c2_71, %c0_72, %c0_73] : memref<3x3x4x8xbf16, #tpu.memory_space<vmem>>, vector<1x1x4x8xbf16>
    %90 = vector.shape_cast %89 : vector<1x1x4x8xbf16> to vector<4x8xbf16>
    %cst_74 = arith.constant dense<0.000000e+00> : vector<128x8xf32>
    %91 = tpu.matmul %88, %90, %cst_74 {dimension_numbers = #tpu.dot_dimension_numbers<[1], [0], [0], [1], [0, 0, 1, 1], [], []>} : vector<128x4xbf16>, vector<4x8xbf16>, vector<128x8xf32> -> vector<128x8xf32>
    %92 = arith.addf %82, %91 : vector<128x8xf32>
    %c0_75 = arith.constant 0 : index
    %c0_76 = arith.constant 0 : index
    %93 = vector.load %arg4[%c0_75, %c0_76] : memref<1x8xf32, #tpu.memory_space<vmem>>, vector<1x8xf32>
    %94 = vector.broadcast %93 : vector<1x8xf32> to vector<128x8xf32>
    %95 = arith.addf %92, %94 : vector<128x8xf32>
    %cst_77 = arith.constant 0.000000e+00 : f32
    %96 = vector.broadcast %cst_77 : f32 to vector<128x8xf32>
    %97 = arith.maximumf %95, %96 : vector<128x8xf32>
    %98 = vector.shape_cast %97 : vector<128x8xf32> to vector<8x16x8xf32>
    %c0_78 = arith.constant 0 : index
    %c0_79 = arith.constant 0 : index
    %c0_80 = arith.constant 0 : index
    %c0_81 = arith.constant 0 : index
    %99 = vector.load %arg5[%c0_78, %c0_79, %c0_80, %c0_81] : memref<1x8x16x8xf32, #tpu.memory_space<vmem>>, vector<1x8x16x8xf32>
    %100 = vector.shape_cast %99 : vector<1x8x16x8xf32> to vector<8x16x8xf32>
    %101 = vector.shape_cast %98 : vector<8x16x8xf32> to vector<1x8x16x8xf32>
    tpu.vector_store %arg5[%c0_78, %c0_79, %c0_80, %c0_81], %101 {strides = array<i32>} : memref<1x8x16x8xf32, #tpu.memory_space<vmem>>, vector<1x8x16x8xf32>,
    return
  }
  func.func @transform_0(%arg0: i32, %arg1: i32) -> (i32, i32, i32, i32) {
    %c0_i32 = arith.constant 0 : i32
    %c0_i32_0 = arith.constant 0 : i32
    %c0_i32_1 = arith.constant 0 : i32
    %c0_i32_2 = arith.constant 0 : i32
    return %arg0, %c0_i32, %c0_i32_0, %c0_i32_1 : i32, i32, i32, i32
  }
  func.func @transform_1(%arg0: i32, %arg1: i32) -> (i32, i32, i32, i32) {
    %c0_i32 = arith.constant 0 : i32
    %c0_i32_0 = arith.constant 0 : i32
    %c0_i32_1 = arith.constant 0 : i32
    %c0_i32_2 = arith.constant 0 : i32
    %c0_i32_3 = arith.constant 0 : i32
    return %c0_i32, %c0_i32_0, %c0_i32_1, %c0_i32_2 : i32, i32, i32, i32
  }
  func.func @transform_2(%arg0: i32, %arg1: i32) -> (i32, i32) {
    %c0_i32 = arith.constant 0 : i32
    %c0_i32_0 = arith.constant 0 : i32
    %c0_i32_1 = arith.constant 0 : i32
    return %c0_i32, %c0_i32_0 : i32, i32
  }
  func.func @transform_3(%arg0: i32, %arg1: i32) -> (i32, i32, i32, i32) {
    %c0_i32 = arith.constant 0 : i32
    %c0_i32_0 = arith.constant 0 : i32
    %c0_i32_1 = arith.constant 0 : i32
    return %arg0, %arg1, %c0_i32, %c0_i32_0 : i32, i32, i32, i32
  }
}

module attributes {stable_mosaic.version = 11 : i64} {
  func.func @_residual_tail_kernel(%arg0: i32, %arg1: i32, %arg2: memref<1x18x18x8xf32, #tpu.memory_space<vmem>>, %arg3: memref<1x16x16x4xf32, #tpu.memory_space<vmem>>, %arg4: memref<3x3x8x8xbf16, #tpu.memory_space<vmem>>, %arg5: memref<1x8xf32, #tpu.memory_space<vmem>>, %arg6: memref<4x8xbf16, #tpu.memory_space<vmem>>, %arg7: memref<1x8xf32, #tpu.memory_space<vmem>>, %arg8: memref<1x8xf32, #tpu.memory_space<vmem>>, %arg9: memref<1x8x16x8xf32, #tpu.memory_space<vmem>>) attributes {dimension_semantics = [#tpu.dimension_semantics<parallel>, #tpu.dimension_semantics<parallel>], iteration_bounds = array<i64: 2, 2>, scalar_prefetch = 0 : i64, scratch_operands = 0 : i64, tpu.core_type = #tpu.core_type<tc>, window_params = [{transform_indices = @transform_0, window_bounds = array<i64: 1, 18, 18, 8>}, {transform_indices = @transform_1, window_bounds = array<i64: 1, 16, 16, 4>}, {pipeline_mode = #tpu.pipeline_mode<synchronous>, transform_indices = @transform_2, window_bounds = array<i64: 3, 3, 8, 8>}, {pipeline_mode = #tpu.pipeline_mode<synchronous>, transform_indices = @transform_3, window_bounds = array<i64: 1, 8>}, {pipeline_mode = #tpu.pipeline_mode<synchronous>, transform_indices = @transform_4, window_bounds = array<i64: 4, 8>}, {pipeline_mode = #tpu.pipeline_mode<synchronous>, transform_indices = @transform_5, window_bounds = array<i64: 1, 8>}, {pipeline_mode = #tpu.pipeline_mode<synchronous>, transform_indices = @transform_6, window_bounds = array<i64: 1, 8>}, {transform_indices = @transform_7, window_bounds = array<i64: 1, 8, 16, 8>}]} {
    %c8_i32 = arith.constant 8 : i32
    %0 = arith.muli %arg1, %c8_i32 : i32
    %1 = tpu.assume_multiple %0, 8 : i32
    %cst = arith.constant 0.000000e+00 : f32
    %2 = vector.broadcast %cst : f32 to vector<128x8xf32>
    %c0_i32 = arith.constant 0 : i32
    %3 = arith.addi %1, %c0_i32 : i32
    %c0 = arith.constant 0 : index
    %4 = arith.index_cast %3 : i32 to index
    %c0_0 = arith.constant 0 : index
    %c0_1 = arith.constant 0 : index
    %5 = vector.load %arg2[%c0, %4, %c0_0, %c0_1] : memref<1x18x18x8xf32, #tpu.memory_space<vmem>>, vector<1x8x16x8xf32>
    %6 = vector.shape_cast %5 : vector<1x8x16x8xf32> to vector<8x16x8xf32>
    %7 = vector.shape_cast %6 : vector<8x16x8xf32> to vector<128x8xf32>
    %8 = arith.truncf %7 : vector<128x8xf32> to vector<128x8xbf16>
    %c0_2 = arith.constant 0 : index
    %c0_3 = arith.constant 0 : index
    %c0_4 = arith.constant 0 : index
    %c0_5 = arith.constant 0 : index
    %9 = vector.load %arg4[%c0_2, %c0_3, %c0_4, %c0_5] : memref<3x3x8x8xbf16, #tpu.memory_space<vmem>>, vector<1x1x8x8xbf16>
    %10 = vector.shape_cast %9 : vector<1x1x8x8xbf16> to vector<8x8xbf16>
    %cst_6 = arith.constant dense<0.000000e+00> : vector<128x8xf32>
    %11 = tpu.matmul %8, %10, %cst_6 {dimension_numbers = #tpu.dot_dimension_numbers<[1], [0], [0], [1], [0, 0, 1, 1], [], []>} : vector<128x8xbf16>, vector<8x8xbf16>, vector<128x8xf32> -> vector<128x8xf32>
    %12 = arith.addf %2, %11 : vector<128x8xf32>
    %c0_i32_7 = arith.constant 0 : i32
    %13 = arith.addi %1, %c0_i32_7 : i32
    %c0_8 = arith.constant 0 : index
    %14 = arith.index_cast %13 : i32 to index
    %c1 = arith.constant 1 : index
    %c0_9 = arith.constant 0 : index
    %15 = vector.load %arg2[%c0_8, %14, %c1, %c0_9] : memref<1x18x18x8xf32, #tpu.memory_space<vmem>>, vector<1x8x16x8xf32>
    %16 = vector.shape_cast %15 : vector<1x8x16x8xf32> to vector<8x16x8xf32>
    %17 = vector.shape_cast %16 : vector<8x16x8xf32> to vector<128x8xf32>
    %18 = arith.truncf %17 : vector<128x8xf32> to vector<128x8xbf16>
    %c0_10 = arith.constant 0 : index
    %c1_11 = arith.constant 1 : index
    %c0_12 = arith.constant 0 : index
    %c0_13 = arith.constant 0 : index
    %19 = vector.load %arg4[%c0_10, %c1_11, %c0_12, %c0_13] : memref<3x3x8x8xbf16, #tpu.memory_space<vmem>>, vector<1x1x8x8xbf16>
    %20 = vector.shape_cast %19 : vector<1x1x8x8xbf16> to vector<8x8xbf16>
    %cst_14 = arith.constant dense<0.000000e+00> : vector<128x8xf32>
    %21 = tpu.matmul %18, %20, %cst_14 {dimension_numbers = #tpu.dot_dimension_numbers<[1], [0], [0], [1], [0, 0, 1, 1], [], []>} : vector<128x8xbf16>, vector<8x8xbf16>, vector<128x8xf32> -> vector<128x8xf32>
    %22 = arith.addf %12, %21 : vector<128x8xf32>
    %c0_i32_15 = arith.constant 0 : i32
    %23 = arith.addi %1, %c0_i32_15 : i32
    %c0_16 = arith.constant 0 : index
    %24 = arith.index_cast %23 : i32 to index
    %c2 = arith.constant 2 : index
    %c0_17 = arith.constant 0 : index
    %25 = vector.load %arg2[%c0_16, %24, %c2, %c0_17] : memref<1x18x18x8xf32, #tpu.memory_space<vmem>>, vector<1x8x16x8xf32>
    %26 = vector.shape_cast %25 : vector<1x8x16x8xf32> to vector<8x16x8xf32>
    %27 = vector.shape_cast %26 : vector<8x16x8xf32> to vector<128x8xf32>
    %28 = arith.truncf %27 : vector<128x8xf32> to vector<128x8xbf16>
    %c0_18 = arith.constant 0 : index
    %c2_19 = arith.constant 2 : index
    %c0_20 = arith.constant 0 : index
    %c0_21 = arith.constant 0 : index
    %29 = vector.load %arg4[%c0_18, %c2_19, %c0_20, %c0_21] : memref<3x3x8x8xbf16, #tpu.memory_space<vmem>>, vector<1x1x8x8xbf16>
    %30 = vector.shape_cast %29 : vector<1x1x8x8xbf16> to vector<8x8xbf16>
    %cst_22 = arith.constant dense<0.000000e+00> : vector<128x8xf32>
    %31 = tpu.matmul %28, %30, %cst_22 {dimension_numbers = #tpu.dot_dimension_numbers<[1], [0], [0], [1], [0, 0, 1, 1], [], []>} : vector<128x8xbf16>, vector<8x8xbf16>, vector<128x8xf32> -> vector<128x8xf32>
    %32 = arith.addf %22, %31 : vector<128x8xf32>
    %c1_i32 = arith.constant 1 : i32
    %33 = arith.addi %1, %c1_i32 : i32
    %c0_23 = arith.constant 0 : index
    %34 = arith.index_cast %33 : i32 to index
    %c0_24 = arith.constant 0 : index
    %c0_25 = arith.constant 0 : index
    %35 = vector.load %arg2[%c0_23, %34, %c0_24, %c0_25] : memref<1x18x18x8xf32, #tpu.memory_space<vmem>>, vector<1x8x16x8xf32>
    %36 = vector.shape_cast %35 : vector<1x8x16x8xf32> to vector<8x16x8xf32>
    %37 = vector.shape_cast %36 : vector<8x16x8xf32> to vector<128x8xf32>
    %38 = arith.truncf %37 : vector<128x8xf32> to vector<128x8xbf16>
    %c1_26 = arith.constant 1 : index
    %c0_27 = arith.constant 0 : index
    %c0_28 = arith.constant 0 : index
    %c0_29 = arith.constant 0 : index
    %39 = vector.load %arg4[%c1_26, %c0_27, %c0_28, %c0_29] : memref<3x3x8x8xbf16, #tpu.memory_space<vmem>>, vector<1x1x8x8xbf16>
    %40 = vector.shape_cast %39 : vector<1x1x8x8xbf16> to vector<8x8xbf16>
    %cst_30 = arith.constant dense<0.000000e+00> : vector<128x8xf32>
    %41 = tpu.matmul %38, %40, %cst_30 {dimension_numbers = #tpu.dot_dimension_numbers<[1], [0], [0], [1], [0, 0, 1, 1], [], []>} : vector<128x8xbf16>, vector<8x8xbf16>, vector<128x8xf32> -> vector<128x8xf32>
    %42 = arith.addf %32, %41 : vector<128x8xf32>
    %c1_i32_31 = arith.constant 1 : i32
    %43 = arith.addi %1, %c1_i32_31 : i32
    %c0_32 = arith.constant 0 : index
    %44 = arith.index_cast %43 : i32 to index
    %c1_33 = arith.constant 1 : index
    %c0_34 = arith.constant 0 : index
    %45 = vector.load %arg2[%c0_32, %44, %c1_33, %c0_34] : memref<1x18x18x8xf32, #tpu.memory_space<vmem>>, vector<1x8x16x8xf32>
    %46 = vector.shape_cast %45 : vector<1x8x16x8xf32> to vector<8x16x8xf32>
    %47 = vector.shape_cast %46 : vector<8x16x8xf32> to vector<128x8xf32>
    %48 = arith.truncf %47 : vector<128x8xf32> to vector<128x8xbf16>
    %c1_35 = arith.constant 1 : index
    %c1_36 = arith.constant 1 : index
    %c0_37 = arith.constant 0 : index
    %c0_38 = arith.constant 0 : index
    %49 = vector.load %arg4[%c1_35, %c1_36, %c0_37, %c0_38] : memref<3x3x8x8xbf16, #tpu.memory_space<vmem>>, vector<1x1x8x8xbf16>
    %50 = vector.shape_cast %49 : vector<1x1x8x8xbf16> to vector<8x8xbf16>
    %cst_39 = arith.constant dense<0.000000e+00> : vector<128x8xf32>
    %51 = tpu.matmul %48, %50, %cst_39 {dimension_numbers = #tpu.dot_dimension_numbers<[1], [0], [0], [1], [0, 0, 1, 1], [], []>} : vector<128x8xbf16>, vector<8x8xbf16>, vector<128x8xf32> -> vector<128x8xf32>
    %52 = arith.addf %42, %51 : vector<128x8xf32>
    %c1_i32_40 = arith.constant 1 : i32
    %53 = arith.addi %1, %c1_i32_40 : i32
    %c0_41 = arith.constant 0 : index
    %54 = arith.index_cast %53 : i32 to index
    %c2_42 = arith.constant 2 : index
    %c0_43 = arith.constant 0 : index
    %55 = vector.load %arg2[%c0_41, %54, %c2_42, %c0_43] : memref<1x18x18x8xf32, #tpu.memory_space<vmem>>, vector<1x8x16x8xf32>
    %56 = vector.shape_cast %55 : vector<1x8x16x8xf32> to vector<8x16x8xf32>
    %57 = vector.shape_cast %56 : vector<8x16x8xf32> to vector<128x8xf32>
    %58 = arith.truncf %57 : vector<128x8xf32> to vector<128x8xbf16>
    %c1_44 = arith.constant 1 : index
    %c2_45 = arith.constant 2 : index
    %c0_46 = arith.constant 0 : index
    %c0_47 = arith.constant 0 : index
    %59 = vector.load %arg4[%c1_44, %c2_45, %c0_46, %c0_47] : memref<3x3x8x8xbf16, #tpu.memory_space<vmem>>, vector<1x1x8x8xbf16>
    %60 = vector.shape_cast %59 : vector<1x1x8x8xbf16> to vector<8x8xbf16>
    %cst_48 = arith.constant dense<0.000000e+00> : vector<128x8xf32>
    %61 = tpu.matmul %58, %60, %cst_48 {dimension_numbers = #tpu.dot_dimension_numbers<[1], [0], [0], [1], [0, 0, 1, 1], [], []>} : vector<128x8xbf16>, vector<8x8xbf16>, vector<128x8xf32> -> vector<128x8xf32>
    %62 = arith.addf %52, %61 : vector<128x8xf32>
    %c2_i32 = arith.constant 2 : i32
    %63 = arith.addi %1, %c2_i32 : i32
    %c0_49 = arith.constant 0 : index
    %64 = arith.index_cast %63 : i32 to index
    %c0_50 = arith.constant 0 : index
    %c0_51 = arith.constant 0 : index
    %65 = vector.load %arg2[%c0_49, %64, %c0_50, %c0_51] : memref<1x18x18x8xf32, #tpu.memory_space<vmem>>, vector<1x8x16x8xf32>
    %66 = vector.shape_cast %65 : vector<1x8x16x8xf32> to vector<8x16x8xf32>
    %67 = vector.shape_cast %66 : vector<8x16x8xf32> to vector<128x8xf32>
    %68 = arith.truncf %67 : vector<128x8xf32> to vector<128x8xbf16>
    %c2_52 = arith.constant 2 : index
    %c0_53 = arith.constant 0 : index
    %c0_54 = arith.constant 0 : index
    %c0_55 = arith.constant 0 : index
    %69 = vector.load %arg4[%c2_52, %c0_53, %c0_54, %c0_55] : memref<3x3x8x8xbf16, #tpu.memory_space<vmem>>, vector<1x1x8x8xbf16>
    %70 = vector.shape_cast %69 : vector<1x1x8x8xbf16> to vector<8x8xbf16>
    %cst_56 = arith.constant dense<0.000000e+00> : vector<128x8xf32>
    %71 = tpu.matmul %68, %70, %cst_56 {dimension_numbers = #tpu.dot_dimension_numbers<[1], [0], [0], [1], [0, 0, 1, 1], [], []>} : vector<128x8xbf16>, vector<8x8xbf16>, vector<128x8xf32> -> vector<128x8xf32>
    %72 = arith.addf %62, %71 : vector<128x8xf32>
    %c2_i32_57 = arith.constant 2 : i32
    %73 = arith.addi %1, %c2_i32_57 : i32
    %c0_58 = arith.constant 0 : index
    %74 = arith.index_cast %73 : i32 to index
    %c1_59 = arith.constant 1 : index
    %c0_60 = arith.constant 0 : index
    %75 = vector.load %arg2[%c0_58, %74, %c1_59, %c0_60] : memref<1x18x18x8xf32, #tpu.memory_space<vmem>>, vector<1x8x16x8xf32>
    %76 = vector.shape_cast %75 : vector<1x8x16x8xf32> to vector<8x16x8xf32>
    %77 = vector.shape_cast %76 : vector<8x16x8xf32> to vector<128x8xf32>
    %78 = arith.truncf %77 : vector<128x8xf32> to vector<128x8xbf16>
    %c2_61 = arith.constant 2 : index
    %c1_62 = arith.constant 1 : index
    %c0_63 = arith.constant 0 : index
    %c0_64 = arith.constant 0 : index
    %79 = vector.load %arg4[%c2_61, %c1_62, %c0_63, %c0_64] : memref<3x3x8x8xbf16, #tpu.memory_space<vmem>>, vector<1x1x8x8xbf16>
    %80 = vector.shape_cast %79 : vector<1x1x8x8xbf16> to vector<8x8xbf16>
    %cst_65 = arith.constant dense<0.000000e+00> : vector<128x8xf32>
    %81 = tpu.matmul %78, %80, %cst_65 {dimension_numbers = #tpu.dot_dimension_numbers<[1], [0], [0], [1], [0, 0, 1, 1], [], []>} : vector<128x8xbf16>, vector<8x8xbf16>, vector<128x8xf32> -> vector<128x8xf32>
    %82 = arith.addf %72, %81 : vector<128x8xf32>
    %c2_i32_66 = arith.constant 2 : i32
    %83 = arith.addi %1, %c2_i32_66 : i32
    %c0_67 = arith.constant 0 : index
    %84 = arith.index_cast %83 : i32 to index
    %c2_68 = arith.constant 2 : index
    %c0_69 = arith.constant 0 : index
    %85 = vector.load %arg2[%c0_67, %84, %c2_68, %c0_69] : memref<1x18x18x8xf32, #tpu.memory_space<vmem>>, vector<1x8x16x8xf32>
    %86 = vector.shape_cast %85 : vector<1x8x16x8xf32> to vector<8x16x8xf32>
    %87 = vector.shape_cast %86 : vector<8x16x8xf32> to vector<128x8xf32>
    %88 = arith.truncf %87 : vector<128x8xf32> to vector<128x8xbf16>
    %c2_70 = arith.constant 2 : index
    %c2_71 = arith.constant 2 : index
    %c0_72 = arith.constant 0 : index
    %c0_73 = arith.constant 0 : index
    %89 = vector.load %arg4[%c2_70, %c2_71, %c0_72, %c0_73] : memref<3x3x8x8xbf16, #tpu.memory_space<vmem>>, vector<1x1x8x8xbf16>
    %90 = vector.shape_cast %89 : vector<1x1x8x8xbf16> to vector<8x8xbf16>
    %cst_74 = arith.constant dense<0.000000e+00> : vector<128x8xf32>
    %91 = tpu.matmul %88, %90, %cst_74 {dimension_numbers = #tpu.dot_dimension_numbers<[1], [0], [0], [1], [0, 0, 1, 1], [], []>} : vector<128x8xbf16>, vector<8x8xbf16>, vector<128x8xf32> -> vector<128x8xf32>
    %92 = arith.addf %82, %91 : vector<128x8xf32>
    %c0_75 = arith.constant 0 : index
    %c0_76 = arith.constant 0 : index
    %93 = vector.load %arg5[%c0_75, %c0_76] : memref<1x8xf32, #tpu.memory_space<vmem>>, vector<1x8xf32>
    %94 = vector.broadcast %93 : vector<1x8xf32> to vector<128x8xf32>
    %95 = arith.addf %92, %94 : vector<128x8xf32>
    %cst_77 = arith.constant 0.000000e+00 : f32
    %96 = vector.broadcast %cst_77 : f32 to vector<128x8xf32>
    %97 = arith.maximumf %95, %96 : vector<128x8xf32>
    %c0_78 = arith.constant 0 : index
    %98 = arith.index_cast %1 : i32 to index
    %c0_79 = arith.constant 0 : index
    %c0_80 = arith.constant 0 : index
    %99 = vector.load %arg3[%c0_78, %98, %c0_79, %c0_80] : memref<1x16x16x4xf32, #tpu.memory_space<vmem>>, vector<1x8x16x4xf32>
    %100 = vector.shape_cast %99 : vector<1x8x16x4xf32> to vector<8x16x4xf32>
    %101 = vector.shape_cast %100 : vector<8x16x4xf32> to vector<128x4xf32>
    %102 = arith.truncf %101 : vector<128x4xf32> to vector<128x4xbf16>
    %c0_81 = arith.constant 0 : index
    %c0_82 = arith.constant 0 : index
    %103 = vector.load %arg6[%c0_81, %c0_82] : memref<4x8xbf16, #tpu.memory_space<vmem>>, vector<4x8xbf16>
    %cst_83 = arith.constant dense<0.000000e+00> : vector<128x8xf32>
    %104 = tpu.matmul %102, %103, %cst_83 {dimension_numbers = #tpu.dot_dimension_numbers<[1], [0], [0], [1], [0, 0, 1, 1], [], []>} : vector<128x4xbf16>, vector<4x8xbf16>, vector<128x8xf32> -> vector<128x8xf32>
    %105 = arith.addf %104, %97 : vector<128x8xf32>
    %c0_84 = arith.constant 0 : index
    %c0_85 = arith.constant 0 : index
    %106 = vector.load %arg7[%c0_84, %c0_85] : memref<1x8xf32, #tpu.memory_space<vmem>>, vector<1x8xf32>
    %107 = vector.broadcast %106 : vector<1x8xf32> to vector<128x8xf32>
    %108 = arith.mulf %105, %107 : vector<128x8xf32>
    %c0_86 = arith.constant 0 : index
    %c0_87 = arith.constant 0 : index
    %109 = vector.load %arg8[%c0_86, %c0_87] : memref<1x8xf32, #tpu.memory_space<vmem>>, vector<1x8xf32>
    %110 = vector.broadcast %109 : vector<1x8xf32> to vector<128x8xf32>
    %111 = arith.addf %108, %110 : vector<128x8xf32>
    %cst_88 = arith.constant 0.000000e+00 : f32
    %112 = vector.broadcast %cst_88 : f32 to vector<128x8xf32>
    %113 = arith.maximumf %111, %112 : vector<128x8xf32>
    %114 = vector.shape_cast %113 : vector<128x8xf32> to vector<8x16x8xf32>
    %c0_89 = arith.constant 0 : index
    %c0_90 = arith.constant 0 : index
    %c0_91 = arith.constant 0 : index
    %c0_92 = arith.constant 0 : index
    %115 = vector.load %arg9[%c0_89, %c0_90, %c0_91, %c0_92] : memref<1x8x16x8xf32, #tpu.memory_space<vmem>>, vector<1x8x16x8xf32>
    %116 = vector.shape_cast %115 : vector<1x8x16x8xf32> to vector<8x16x8xf32>
    %117 = vector.shape_cast %114 : vector<8x16x8xf32> to vector<1x8x16x8xf32>
    tpu.vector_store %arg9[%c0_89, %c0_90, %c0_91, %c0_92], %117 {strides = array<i32>} : memref<1x8x16x8xf32, #tpu.memory_space<vmem>>, vector<1x8x16x8xf32>,
    return
  }
  func.func @transform_0(%arg0: i32, %arg1: i32) -> (i32, i32, i32, i32) {
    %c0_i32 = arith.constant 0 : i32
    %c0_i32_0 = arith.constant 0 : i32
    %c0_i32_1 = arith.constant 0 : i32
    %c0_i32_2 = arith.constant 0 : i32
    return %arg0, %c0_i32, %c0_i32_0, %c0_i32_1 : i32, i32, i32, i32
  }
  func.func @transform_1(%arg0: i32, %arg1: i32) -> (i32, i32, i32, i32) {
    %c0_i32 = arith.constant 0 : i32
    %c0_i32_0 = arith.constant 0 : i32
    %c0_i32_1 = arith.constant 0 : i32
    %c0_i32_2 = arith.constant 0 : i32
    return %arg0, %c0_i32, %c0_i32_0, %c0_i32_1 : i32, i32, i32, i32
  }
  func.func @transform_2(%arg0: i32, %arg1: i32) -> (i32, i32, i32, i32) {
    %c0_i32 = arith.constant 0 : i32
    %c0_i32_0 = arith.constant 0 : i32
    %c0_i32_1 = arith.constant 0 : i32
    %c0_i32_2 = arith.constant 0 : i32
    %c0_i32_3 = arith.constant 0 : i32
    return %c0_i32, %c0_i32_0, %c0_i32_1, %c0_i32_2 : i32, i32, i32, i32
  }
  func.func @transform_3(%arg0: i32, %arg1: i32) -> (i32, i32) {
    %c0_i32 = arith.constant 0 : i32
    %c0_i32_0 = arith.constant 0 : i32
    %c0_i32_1 = arith.constant 0 : i32
    return %c0_i32, %c0_i32_0 : i32, i32
  }
  func.func @transform_4(%arg0: i32, %arg1: i32) -> (i32, i32) {
    %c0_i32 = arith.constant 0 : i32
    %c0_i32_0 = arith.constant 0 : i32
    %c0_i32_1 = arith.constant 0 : i32
    return %c0_i32, %c0_i32_0 : i32, i32
  }
  func.func @transform_5(%arg0: i32, %arg1: i32) -> (i32, i32) {
    %c0_i32 = arith.constant 0 : i32
    %c0_i32_0 = arith.constant 0 : i32
    %c0_i32_1 = arith.constant 0 : i32
    return %c0_i32, %c0_i32_0 : i32, i32
  }
  func.func @transform_6(%arg0: i32, %arg1: i32) -> (i32, i32) {
    %c0_i32 = arith.constant 0 : i32
    %c0_i32_0 = arith.constant 0 : i32
    %c0_i32_1 = arith.constant 0 : i32
    return %c0_i32, %c0_i32_0 : i32, i32
  }
  func.func @transform_7(%arg0: i32, %arg1: i32) -> (i32, i32, i32, i32) {
    %c0_i32 = arith.constant 0 : i32
    %c0_i32_0 = arith.constant 0 : i32
    %c0_i32_1 = arith.constant 0 : i32
    return %arg0, %arg1, %c0_i32, %c0_i32_0 : i32, i32, i32, i32
  }
}

module attributes {stable_mosaic.version = 11 : i64} {
  func.func @_residual_tail_kernel(%arg0: i32, %arg1: i32, %arg2: memref<1x18x18x8xf32, #tpu.memory_space<vmem>>, %arg3: memref<1x16x16x8xf32, #tpu.memory_space<vmem>>, %arg4: memref<3x3x8x8xbf16, #tpu.memory_space<vmem>>, %arg5: memref<1x8xf32, #tpu.memory_space<vmem>>, %arg6: memref<8x8xbf16, #tpu.memory_space<vmem>>, %arg7: memref<1x8xf32, #tpu.memory_space<vmem>>, %arg8: memref<1x8xf32, #tpu.memory_space<vmem>>, %arg9: memref<1x8x16x8xf32, #tpu.memory_space<vmem>>) attributes {dimension_semantics = [#tpu.dimension_semantics<parallel>, #tpu.dimension_semantics<parallel>], iteration_bounds = array<i64: 2, 2>, scalar_prefetch = 0 : i64, scratch_operands = 0 : i64, tpu.core_type = #tpu.core_type<tc>, window_params = [{transform_indices = @transform_0, window_bounds = array<i64: 1, 18, 18, 8>}, {transform_indices = @transform_1, window_bounds = array<i64: 1, 16, 16, 8>}, {pipeline_mode = #tpu.pipeline_mode<synchronous>, transform_indices = @transform_2, window_bounds = array<i64: 3, 3, 8, 8>}, {pipeline_mode = #tpu.pipeline_mode<synchronous>, transform_indices = @transform_3, window_bounds = array<i64: 1, 8>}, {pipeline_mode = #tpu.pipeline_mode<synchronous>, transform_indices = @transform_4, window_bounds = array<i64: 8, 8>}, {pipeline_mode = #tpu.pipeline_mode<synchronous>, transform_indices = @transform_5, window_bounds = array<i64: 1, 8>}, {pipeline_mode = #tpu.pipeline_mode<synchronous>, transform_indices = @transform_6, window_bounds = array<i64: 1, 8>}, {transform_indices = @transform_7, window_bounds = array<i64: 1, 8, 16, 8>}]} {
    %c8_i32 = arith.constant 8 : i32
    %0 = arith.muli %arg1, %c8_i32 : i32
    %1 = tpu.assume_multiple %0, 8 : i32
    %cst = arith.constant 0.000000e+00 : f32
    %2 = vector.broadcast %cst : f32 to vector<128x8xf32>
    %c0_i32 = arith.constant 0 : i32
    %3 = arith.addi %1, %c0_i32 : i32
    %c0 = arith.constant 0 : index
    %4 = arith.index_cast %3 : i32 to index
    %c0_0 = arith.constant 0 : index
    %c0_1 = arith.constant 0 : index
    %5 = vector.load %arg2[%c0, %4, %c0_0, %c0_1] : memref<1x18x18x8xf32, #tpu.memory_space<vmem>>, vector<1x8x16x8xf32>
    %6 = vector.shape_cast %5 : vector<1x8x16x8xf32> to vector<8x16x8xf32>
    %7 = vector.shape_cast %6 : vector<8x16x8xf32> to vector<128x8xf32>
    %8 = arith.truncf %7 : vector<128x8xf32> to vector<128x8xbf16>
    %c0_2 = arith.constant 0 : index
    %c0_3 = arith.constant 0 : index
    %c0_4 = arith.constant 0 : index
    %c0_5 = arith.constant 0 : index
    %9 = vector.load %arg4[%c0_2, %c0_3, %c0_4, %c0_5] : memref<3x3x8x8xbf16, #tpu.memory_space<vmem>>, vector<1x1x8x8xbf16>
    %10 = vector.shape_cast %9 : vector<1x1x8x8xbf16> to vector<8x8xbf16>
    %cst_6 = arith.constant dense<0.000000e+00> : vector<128x8xf32>
    %11 = tpu.matmul %8, %10, %cst_6 {dimension_numbers = #tpu.dot_dimension_numbers<[1], [0], [0], [1], [0, 0, 1, 1], [], []>} : vector<128x8xbf16>, vector<8x8xbf16>, vector<128x8xf32> -> vector<128x8xf32>
    %12 = arith.addf %2, %11 : vector<128x8xf32>
    %c0_i32_7 = arith.constant 0 : i32
    %13 = arith.addi %1, %c0_i32_7 : i32
    %c0_8 = arith.constant 0 : index
    %14 = arith.index_cast %13 : i32 to index
    %c1 = arith.constant 1 : index
    %c0_9 = arith.constant 0 : index
    %15 = vector.load %arg2[%c0_8, %14, %c1, %c0_9] : memref<1x18x18x8xf32, #tpu.memory_space<vmem>>, vector<1x8x16x8xf32>
    %16 = vector.shape_cast %15 : vector<1x8x16x8xf32> to vector<8x16x8xf32>
    %17 = vector.shape_cast %16 : vector<8x16x8xf32> to vector<128x8xf32>
    %18 = arith.truncf %17 : vector<128x8xf32> to vector<128x8xbf16>
    %c0_10 = arith.constant 0 : index
    %c1_11 = arith.constant 1 : index
    %c0_12 = arith.constant 0 : index
    %c0_13 = arith.constant 0 : index
    %19 = vector.load %arg4[%c0_10, %c1_11, %c0_12, %c0_13] : memref<3x3x8x8xbf16, #tpu.memory_space<vmem>>, vector<1x1x8x8xbf16>
    %20 = vector.shape_cast %19 : vector<1x1x8x8xbf16> to vector<8x8xbf16>
    %cst_14 = arith.constant dense<0.000000e+00> : vector<128x8xf32>
    %21 = tpu.matmul %18, %20, %cst_14 {dimension_numbers = #tpu.dot_dimension_numbers<[1], [0], [0], [1], [0, 0, 1, 1], [], []>} : vector<128x8xbf16>, vector<8x8xbf16>, vector<128x8xf32> -> vector<128x8xf32>
    %22 = arith.addf %12, %21 : vector<128x8xf32>
    %c0_i32_15 = arith.constant 0 : i32
    %23 = arith.addi %1, %c0_i32_15 : i32
    %c0_16 = arith.constant 0 : index
    %24 = arith.index_cast %23 : i32 to index
    %c2 = arith.constant 2 : index
    %c0_17 = arith.constant 0 : index
    %25 = vector.load %arg2[%c0_16, %24, %c2, %c0_17] : memref<1x18x18x8xf32, #tpu.memory_space<vmem>>, vector<1x8x16x8xf32>
    %26 = vector.shape_cast %25 : vector<1x8x16x8xf32> to vector<8x16x8xf32>
    %27 = vector.shape_cast %26 : vector<8x16x8xf32> to vector<128x8xf32>
    %28 = arith.truncf %27 : vector<128x8xf32> to vector<128x8xbf16>
    %c0_18 = arith.constant 0 : index
    %c2_19 = arith.constant 2 : index
    %c0_20 = arith.constant 0 : index
    %c0_21 = arith.constant 0 : index
    %29 = vector.load %arg4[%c0_18, %c2_19, %c0_20, %c0_21] : memref<3x3x8x8xbf16, #tpu.memory_space<vmem>>, vector<1x1x8x8xbf16>
    %30 = vector.shape_cast %29 : vector<1x1x8x8xbf16> to vector<8x8xbf16>
    %cst_22 = arith.constant dense<0.000000e+00> : vector<128x8xf32>
    %31 = tpu.matmul %28, %30, %cst_22 {dimension_numbers = #tpu.dot_dimension_numbers<[1], [0], [0], [1], [0, 0, 1, 1], [], []>} : vector<128x8xbf16>, vector<8x8xbf16>, vector<128x8xf32> -> vector<128x8xf32>
    %32 = arith.addf %22, %31 : vector<128x8xf32>
    %c1_i32 = arith.constant 1 : i32
    %33 = arith.addi %1, %c1_i32 : i32
    %c0_23 = arith.constant 0 : index
    %34 = arith.index_cast %33 : i32 to index
    %c0_24 = arith.constant 0 : index
    %c0_25 = arith.constant 0 : index
    %35 = vector.load %arg2[%c0_23, %34, %c0_24, %c0_25] : memref<1x18x18x8xf32, #tpu.memory_space<vmem>>, vector<1x8x16x8xf32>
    %36 = vector.shape_cast %35 : vector<1x8x16x8xf32> to vector<8x16x8xf32>
    %37 = vector.shape_cast %36 : vector<8x16x8xf32> to vector<128x8xf32>
    %38 = arith.truncf %37 : vector<128x8xf32> to vector<128x8xbf16>
    %c1_26 = arith.constant 1 : index
    %c0_27 = arith.constant 0 : index
    %c0_28 = arith.constant 0 : index
    %c0_29 = arith.constant 0 : index
    %39 = vector.load %arg4[%c1_26, %c0_27, %c0_28, %c0_29] : memref<3x3x8x8xbf16, #tpu.memory_space<vmem>>, vector<1x1x8x8xbf16>
    %40 = vector.shape_cast %39 : vector<1x1x8x8xbf16> to vector<8x8xbf16>
    %cst_30 = arith.constant dense<0.000000e+00> : vector<128x8xf32>
    %41 = tpu.matmul %38, %40, %cst_30 {dimension_numbers = #tpu.dot_dimension_numbers<[1], [0], [0], [1], [0, 0, 1, 1], [], []>} : vector<128x8xbf16>, vector<8x8xbf16>, vector<128x8xf32> -> vector<128x8xf32>
    %42 = arith.addf %32, %41 : vector<128x8xf32>
    %c1_i32_31 = arith.constant 1 : i32
    %43 = arith.addi %1, %c1_i32_31 : i32
    %c0_32 = arith.constant 0 : index
    %44 = arith.index_cast %43 : i32 to index
    %c1_33 = arith.constant 1 : index
    %c0_34 = arith.constant 0 : index
    %45 = vector.load %arg2[%c0_32, %44, %c1_33, %c0_34] : memref<1x18x18x8xf32, #tpu.memory_space<vmem>>, vector<1x8x16x8xf32>
    %46 = vector.shape_cast %45 : vector<1x8x16x8xf32> to vector<8x16x8xf32>
    %47 = vector.shape_cast %46 : vector<8x16x8xf32> to vector<128x8xf32>
    %48 = arith.truncf %47 : vector<128x8xf32> to vector<128x8xbf16>
    %c1_35 = arith.constant 1 : index
    %c1_36 = arith.constant 1 : index
    %c0_37 = arith.constant 0 : index
    %c0_38 = arith.constant 0 : index
    %49 = vector.load %arg4[%c1_35, %c1_36, %c0_37, %c0_38] : memref<3x3x8x8xbf16, #tpu.memory_space<vmem>>, vector<1x1x8x8xbf16>
    %50 = vector.shape_cast %49 : vector<1x1x8x8xbf16> to vector<8x8xbf16>
    %cst_39 = arith.constant dense<0.000000e+00> : vector<128x8xf32>
    %51 = tpu.matmul %48, %50, %cst_39 {dimension_numbers = #tpu.dot_dimension_numbers<[1], [0], [0], [1], [0, 0, 1, 1], [], []>} : vector<128x8xbf16>, vector<8x8xbf16>, vector<128x8xf32> -> vector<128x8xf32>
    %52 = arith.addf %42, %51 : vector<128x8xf32>
    %c1_i32_40 = arith.constant 1 : i32
    %53 = arith.addi %1, %c1_i32_40 : i32
    %c0_41 = arith.constant 0 : index
    %54 = arith.index_cast %53 : i32 to index
    %c2_42 = arith.constant 2 : index
    %c0_43 = arith.constant 0 : index
    %55 = vector.load %arg2[%c0_41, %54, %c2_42, %c0_43] : memref<1x18x18x8xf32, #tpu.memory_space<vmem>>, vector<1x8x16x8xf32>
    %56 = vector.shape_cast %55 : vector<1x8x16x8xf32> to vector<8x16x8xf32>
    %57 = vector.shape_cast %56 : vector<8x16x8xf32> to vector<128x8xf32>
    %58 = arith.truncf %57 : vector<128x8xf32> to vector<128x8xbf16>
    %c1_44 = arith.constant 1 : index
    %c2_45 = arith.constant 2 : index
    %c0_46 = arith.constant 0 : index
    %c0_47 = arith.constant 0 : index
    %59 = vector.load %arg4[%c1_44, %c2_45, %c0_46, %c0_47] : memref<3x3x8x8xbf16, #tpu.memory_space<vmem>>, vector<1x1x8x8xbf16>
    %60 = vector.shape_cast %59 : vector<1x1x8x8xbf16> to vector<8x8xbf16>
    %cst_48 = arith.constant dense<0.000000e+00> : vector<128x8xf32>
    %61 = tpu.matmul %58, %60, %cst_48 {dimension_numbers = #tpu.dot_dimension_numbers<[1], [0], [0], [1], [0, 0, 1, 1], [], []>} : vector<128x8xbf16>, vector<8x8xbf16>, vector<128x8xf32> -> vector<128x8xf32>
    %62 = arith.addf %52, %61 : vector<128x8xf32>
    %c2_i32 = arith.constant 2 : i32
    %63 = arith.addi %1, %c2_i32 : i32
    %c0_49 = arith.constant 0 : index
    %64 = arith.index_cast %63 : i32 to index
    %c0_50 = arith.constant 0 : index
    %c0_51 = arith.constant 0 : index
    %65 = vector.load %arg2[%c0_49, %64, %c0_50, %c0_51] : memref<1x18x18x8xf32, #tpu.memory_space<vmem>>, vector<1x8x16x8xf32>
    %66 = vector.shape_cast %65 : vector<1x8x16x8xf32> to vector<8x16x8xf32>
    %67 = vector.shape_cast %66 : vector<8x16x8xf32> to vector<128x8xf32>
    %68 = arith.truncf %67 : vector<128x8xf32> to vector<128x8xbf16>
    %c2_52 = arith.constant 2 : index
    %c0_53 = arith.constant 0 : index
    %c0_54 = arith.constant 0 : index
    %c0_55 = arith.constant 0 : index
    %69 = vector.load %arg4[%c2_52, %c0_53, %c0_54, %c0_55] : memref<3x3x8x8xbf16, #tpu.memory_space<vmem>>, vector<1x1x8x8xbf16>
    %70 = vector.shape_cast %69 : vector<1x1x8x8xbf16> to vector<8x8xbf16>
    %cst_56 = arith.constant dense<0.000000e+00> : vector<128x8xf32>
    %71 = tpu.matmul %68, %70, %cst_56 {dimension_numbers = #tpu.dot_dimension_numbers<[1], [0], [0], [1], [0, 0, 1, 1], [], []>} : vector<128x8xbf16>, vector<8x8xbf16>, vector<128x8xf32> -> vector<128x8xf32>
    %72 = arith.addf %62, %71 : vector<128x8xf32>
    %c2_i32_57 = arith.constant 2 : i32
    %73 = arith.addi %1, %c2_i32_57 : i32
    %c0_58 = arith.constant 0 : index
    %74 = arith.index_cast %73 : i32 to index
    %c1_59 = arith.constant 1 : index
    %c0_60 = arith.constant 0 : index
    %75 = vector.load %arg2[%c0_58, %74, %c1_59, %c0_60] : memref<1x18x18x8xf32, #tpu.memory_space<vmem>>, vector<1x8x16x8xf32>
    %76 = vector.shape_cast %75 : vector<1x8x16x8xf32> to vector<8x16x8xf32>
    %77 = vector.shape_cast %76 : vector<8x16x8xf32> to vector<128x8xf32>
    %78 = arith.truncf %77 : vector<128x8xf32> to vector<128x8xbf16>
    %c2_61 = arith.constant 2 : index
    %c1_62 = arith.constant 1 : index
    %c0_63 = arith.constant 0 : index
    %c0_64 = arith.constant 0 : index
    %79 = vector.load %arg4[%c2_61, %c1_62, %c0_63, %c0_64] : memref<3x3x8x8xbf16, #tpu.memory_space<vmem>>, vector<1x1x8x8xbf16>
    %80 = vector.shape_cast %79 : vector<1x1x8x8xbf16> to vector<8x8xbf16>
    %cst_65 = arith.constant dense<0.000000e+00> : vector<128x8xf32>
    %81 = tpu.matmul %78, %80, %cst_65 {dimension_numbers = #tpu.dot_dimension_numbers<[1], [0], [0], [1], [0, 0, 1, 1], [], []>} : vector<128x8xbf16>, vector<8x8xbf16>, vector<128x8xf32> -> vector<128x8xf32>
    %82 = arith.addf %72, %81 : vector<128x8xf32>
    %c2_i32_66 = arith.constant 2 : i32
    %83 = arith.addi %1, %c2_i32_66 : i32
    %c0_67 = arith.constant 0 : index
    %84 = arith.index_cast %83 : i32 to index
    %c2_68 = arith.constant 2 : index
    %c0_69 = arith.constant 0 : index
    %85 = vector.load %arg2[%c0_67, %84, %c2_68, %c0_69] : memref<1x18x18x8xf32, #tpu.memory_space<vmem>>, vector<1x8x16x8xf32>
    %86 = vector.shape_cast %85 : vector<1x8x16x8xf32> to vector<8x16x8xf32>
    %87 = vector.shape_cast %86 : vector<8x16x8xf32> to vector<128x8xf32>
    %88 = arith.truncf %87 : vector<128x8xf32> to vector<128x8xbf16>
    %c2_70 = arith.constant 2 : index
    %c2_71 = arith.constant 2 : index
    %c0_72 = arith.constant 0 : index
    %c0_73 = arith.constant 0 : index
    %89 = vector.load %arg4[%c2_70, %c2_71, %c0_72, %c0_73] : memref<3x3x8x8xbf16, #tpu.memory_space<vmem>>, vector<1x1x8x8xbf16>
    %90 = vector.shape_cast %89 : vector<1x1x8x8xbf16> to vector<8x8xbf16>
    %cst_74 = arith.constant dense<0.000000e+00> : vector<128x8xf32>
    %91 = tpu.matmul %88, %90, %cst_74 {dimension_numbers = #tpu.dot_dimension_numbers<[1], [0], [0], [1], [0, 0, 1, 1], [], []>} : vector<128x8xbf16>, vector<8x8xbf16>, vector<128x8xf32> -> vector<128x8xf32>
    %92 = arith.addf %82, %91 : vector<128x8xf32>
    %c0_75 = arith.constant 0 : index
    %c0_76 = arith.constant 0 : index
    %93 = vector.load %arg5[%c0_75, %c0_76] : memref<1x8xf32, #tpu.memory_space<vmem>>, vector<1x8xf32>
    %94 = vector.broadcast %93 : vector<1x8xf32> to vector<128x8xf32>
    %95 = arith.addf %92, %94 : vector<128x8xf32>
    %cst_77 = arith.constant 0.000000e+00 : f32
    %96 = vector.broadcast %cst_77 : f32 to vector<128x8xf32>
    %97 = arith.maximumf %95, %96 : vector<128x8xf32>
    %c0_78 = arith.constant 0 : index
    %98 = arith.index_cast %1 : i32 to index
    %c0_79 = arith.constant 0 : index
    %c0_80 = arith.constant 0 : index
    %99 = vector.load %arg3[%c0_78, %98, %c0_79, %c0_80] : memref<1x16x16x8xf32, #tpu.memory_space<vmem>>, vector<1x8x16x8xf32>
    %100 = vector.shape_cast %99 : vector<1x8x16x8xf32> to vector<8x16x8xf32>
    %101 = vector.shape_cast %100 : vector<8x16x8xf32> to vector<128x8xf32>
    %102 = arith.truncf %101 : vector<128x8xf32> to vector<128x8xbf16>
    %c0_81 = arith.constant 0 : index
    %c0_82 = arith.constant 0 : index
    %103 = vector.load %arg6[%c0_81, %c0_82] : memref<8x8xbf16, #tpu.memory_space<vmem>>, vector<8x8xbf16>
    %cst_83 = arith.constant dense<0.000000e+00> : vector<128x8xf32>
    %104 = tpu.matmul %102, %103, %cst_83 {dimension_numbers = #tpu.dot_dimension_numbers<[1], [0], [0], [1], [0, 0, 1, 1], [], []>} : vector<128x8xbf16>, vector<8x8xbf16>, vector<128x8xf32> -> vector<128x8xf32>
    %105 = arith.addf %104, %97 : vector<128x8xf32>
    %c0_84 = arith.constant 0 : index
    %c0_85 = arith.constant 0 : index
    %106 = vector.load %arg7[%c0_84, %c0_85] : memref<1x8xf32, #tpu.memory_space<vmem>>, vector<1x8xf32>
    %107 = vector.broadcast %106 : vector<1x8xf32> to vector<128x8xf32>
    %108 = arith.mulf %105, %107 : vector<128x8xf32>
    %c0_86 = arith.constant 0 : index
    %c0_87 = arith.constant 0 : index
    %109 = vector.load %arg8[%c0_86, %c0_87] : memref<1x8xf32, #tpu.memory_space<vmem>>, vector<1x8xf32>
    %110 = vector.broadcast %109 : vector<1x8xf32> to vector<128x8xf32>
    %111 = arith.addf %108, %110 : vector<128x8xf32>
    %cst_88 = arith.constant 0.000000e+00 : f32
    %112 = vector.broadcast %cst_88 : f32 to vector<128x8xf32>
    %113 = arith.maximumf %111, %112 : vector<128x8xf32>
    %114 = vector.shape_cast %113 : vector<128x8xf32> to vector<8x16x8xf32>
    %c0_89 = arith.constant 0 : index
    %c0_90 = arith.constant 0 : index
    %c0_91 = arith.constant 0 : index
    %c0_92 = arith.constant 0 : index
    %115 = vector.load %arg9[%c0_89, %c0_90, %c0_91, %c0_92] : memref<1x8x16x8xf32, #tpu.memory_space<vmem>>, vector<1x8x16x8xf32>
    %116 = vector.shape_cast %115 : vector<1x8x16x8xf32> to vector<8x16x8xf32>
    %117 = vector.shape_cast %114 : vector<8x16x8xf32> to vector<1x8x16x8xf32>
    tpu.vector_store %arg9[%c0_89, %c0_90, %c0_91, %c0_92], %117 {strides = array<i32>} : memref<1x8x16x8xf32, #tpu.memory_space<vmem>>, vector<1x8x16x8xf32>,
    return
  }
  func.func @transform_0(%arg0: i32, %arg1: i32) -> (i32, i32, i32, i32) {
    %c0_i32 = arith.constant 0 : i32
    %c0_i32_0 = arith.constant 0 : i32
    %c0_i32_1 = arith.constant 0 : i32
    %c0_i32_2 = arith.constant 0 : i32
    return %arg0, %c0_i32, %c0_i32_0, %c0_i32_1 : i32, i32, i32, i32
  }
  func.func @transform_1(%arg0: i32, %arg1: i32) -> (i32, i32, i32, i32) {
    %c0_i32 = arith.constant 0 : i32
    %c0_i32_0 = arith.constant 0 : i32
    %c0_i32_1 = arith.constant 0 : i32
    %c0_i32_2 = arith.constant 0 : i32
    return %arg0, %c0_i32, %c0_i32_0, %c0_i32_1 : i32, i32, i32, i32
  }
  func.func @transform_2(%arg0: i32, %arg1: i32) -> (i32, i32, i32, i32) {
    %c0_i32 = arith.constant 0 : i32
    %c0_i32_0 = arith.constant 0 : i32
    %c0_i32_1 = arith.constant 0 : i32
    %c0_i32_2 = arith.constant 0 : i32
    %c0_i32_3 = arith.constant 0 : i32
    return %c0_i32, %c0_i32_0, %c0_i32_1, %c0_i32_2 : i32, i32, i32, i32
  }
  func.func @transform_3(%arg0: i32, %arg1: i32) -> (i32, i32) {
    %c0_i32 = arith.constant 0 : i32
    %c0_i32_0 = arith.constant 0 : i32
    %c0_i32_1 = arith.constant 0 : i32
    return %c0_i32, %c0_i32_0 : i32, i32
  }
  func.func @transform_4(%arg0: i32, %arg1: i32) -> (i32, i32) {
    %c0_i32 = arith.constant 0 : i32
    %c0_i32_0 = arith.constant 0 : i32
    %c0_i32_1 = arith.constant 0 : i32
    return %c0_i32, %c0_i32_0 : i32, i32
  }
  func.func @transform_5(%arg0: i32, %arg1: i32) -> (i32, i32) {
    %c0_i32 = arith.constant 0 : i32
    %c0_i32_0 = arith.constant 0 : i32
    %c0_i32_1 = arith.constant 0 : i32
    return %c0_i32, %c0_i32_0 : i32, i32
  }
  func.func @transform_6(%arg0: i32, %arg1: i32) -> (i32, i32) {
    %c0_i32 = arith.constant 0 : i32
    %c0_i32_0 = arith.constant 0 : i32
    %c0_i32_1 = arith.constant 0 : i32
    return %c0_i32, %c0_i32_0 : i32, i32
  }
  func.func @transform_7(%arg0: i32, %arg1: i32) -> (i32, i32, i32, i32) {
    %c0_i32 = arith.constant 0 : i32
    %c0_i32_0 = arith.constant 0 : i32
    %c0_i32_1 = arith.constant 0 : i32
    return %arg0, %arg1, %c0_i32, %c0_i32_0 : i32, i32, i32, i32
  }
}

module attributes {stable_mosaic.version = 11 : i64} {
  func.func @_conv_bias_act_kernel(%arg0: i32, %arg1: i32, %arg2: memref<1x18x18x8xf32, #tpu.memory_space<vmem>>, %arg3: memref<3x3x8x8xbf16, #tpu.memory_space<vmem>>, %arg4: memref<1x8xf32, #tpu.memory_space<vmem>>, %arg5: memref<1x8x16x8xf32, #tpu.memory_space<vmem>>) attributes {dimension_semantics = [#tpu.dimension_semantics<parallel>, #tpu.dimension_semantics<parallel>], iteration_bounds = array<i64: 2, 2>, scalar_prefetch = 0 : i64, scratch_operands = 0 : i64, tpu.core_type = #tpu.core_type<tc>, window_params = [{transform_indices = @transform_0, window_bounds = array<i64: 1, 18, 18, 8>}, {pipeline_mode = #tpu.pipeline_mode<synchronous>, transform_indices = @transform_1, window_bounds = array<i64: 3, 3, 8, 8>}, {pipeline_mode = #tpu.pipeline_mode<synchronous>, transform_indices = @transform_2, window_bounds = array<i64: 1, 8>}, {transform_indices = @transform_3, window_bounds = array<i64: 1, 8, 16, 8>}]} {
    %c8_i32 = arith.constant 8 : i32
    %0 = arith.muli %arg1, %c8_i32 : i32
    %1 = tpu.assume_multiple %0, 8 : i32
    %cst = arith.constant 0.000000e+00 : f32
    %2 = vector.broadcast %cst : f32 to vector<128x8xf32>
    %c0_i32 = arith.constant 0 : i32
    %3 = arith.addi %1, %c0_i32 : i32
    %c0 = arith.constant 0 : index
    %4 = arith.index_cast %3 : i32 to index
    %c0_0 = arith.constant 0 : index
    %c0_1 = arith.constant 0 : index
    %5 = vector.load %arg2[%c0, %4, %c0_0, %c0_1] : memref<1x18x18x8xf32, #tpu.memory_space<vmem>>, vector<1x8x16x8xf32>
    %6 = vector.shape_cast %5 : vector<1x8x16x8xf32> to vector<8x16x8xf32>
    %7 = vector.shape_cast %6 : vector<8x16x8xf32> to vector<128x8xf32>
    %8 = arith.truncf %7 : vector<128x8xf32> to vector<128x8xbf16>
    %c0_2 = arith.constant 0 : index
    %c0_3 = arith.constant 0 : index
    %c0_4 = arith.constant 0 : index
    %c0_5 = arith.constant 0 : index
    %9 = vector.load %arg3[%c0_2, %c0_3, %c0_4, %c0_5] : memref<3x3x8x8xbf16, #tpu.memory_space<vmem>>, vector<1x1x8x8xbf16>
    %10 = vector.shape_cast %9 : vector<1x1x8x8xbf16> to vector<8x8xbf16>
    %cst_6 = arith.constant dense<0.000000e+00> : vector<128x8xf32>
    %11 = tpu.matmul %8, %10, %cst_6 {dimension_numbers = #tpu.dot_dimension_numbers<[1], [0], [0], [1], [0, 0, 1, 1], [], []>} : vector<128x8xbf16>, vector<8x8xbf16>, vector<128x8xf32> -> vector<128x8xf32>
    %12 = arith.addf %2, %11 : vector<128x8xf32>
    %c0_i32_7 = arith.constant 0 : i32
    %13 = arith.addi %1, %c0_i32_7 : i32
    %c0_8 = arith.constant 0 : index
    %14 = arith.index_cast %13 : i32 to index
    %c1 = arith.constant 1 : index
    %c0_9 = arith.constant 0 : index
    %15 = vector.load %arg2[%c0_8, %14, %c1, %c0_9] : memref<1x18x18x8xf32, #tpu.memory_space<vmem>>, vector<1x8x16x8xf32>
    %16 = vector.shape_cast %15 : vector<1x8x16x8xf32> to vector<8x16x8xf32>
    %17 = vector.shape_cast %16 : vector<8x16x8xf32> to vector<128x8xf32>
    %18 = arith.truncf %17 : vector<128x8xf32> to vector<128x8xbf16>
    %c0_10 = arith.constant 0 : index
    %c1_11 = arith.constant 1 : index
    %c0_12 = arith.constant 0 : index
    %c0_13 = arith.constant 0 : index
    %19 = vector.load %arg3[%c0_10, %c1_11, %c0_12, %c0_13] : memref<3x3x8x8xbf16, #tpu.memory_space<vmem>>, vector<1x1x8x8xbf16>
    %20 = vector.shape_cast %19 : vector<1x1x8x8xbf16> to vector<8x8xbf16>
    %cst_14 = arith.constant dense<0.000000e+00> : vector<128x8xf32>
    %21 = tpu.matmul %18, %20, %cst_14 {dimension_numbers = #tpu.dot_dimension_numbers<[1], [0], [0], [1], [0, 0, 1, 1], [], []>} : vector<128x8xbf16>, vector<8x8xbf16>, vector<128x8xf32> -> vector<128x8xf32>
    %22 = arith.addf %12, %21 : vector<128x8xf32>
    %c0_i32_15 = arith.constant 0 : i32
    %23 = arith.addi %1, %c0_i32_15 : i32
    %c0_16 = arith.constant 0 : index
    %24 = arith.index_cast %23 : i32 to index
    %c2 = arith.constant 2 : index
    %c0_17 = arith.constant 0 : index
    %25 = vector.load %arg2[%c0_16, %24, %c2, %c0_17] : memref<1x18x18x8xf32, #tpu.memory_space<vmem>>, vector<1x8x16x8xf32>
    %26 = vector.shape_cast %25 : vector<1x8x16x8xf32> to vector<8x16x8xf32>
    %27 = vector.shape_cast %26 : vector<8x16x8xf32> to vector<128x8xf32>
    %28 = arith.truncf %27 : vector<128x8xf32> to vector<128x8xbf16>
    %c0_18 = arith.constant 0 : index
    %c2_19 = arith.constant 2 : index
    %c0_20 = arith.constant 0 : index
    %c0_21 = arith.constant 0 : index
    %29 = vector.load %arg3[%c0_18, %c2_19, %c0_20, %c0_21] : memref<3x3x8x8xbf16, #tpu.memory_space<vmem>>, vector<1x1x8x8xbf16>
    %30 = vector.shape_cast %29 : vector<1x1x8x8xbf16> to vector<8x8xbf16>
    %cst_22 = arith.constant dense<0.000000e+00> : vector<128x8xf32>
    %31 = tpu.matmul %28, %30, %cst_22 {dimension_numbers = #tpu.dot_dimension_numbers<[1], [0], [0], [1], [0, 0, 1, 1], [], []>} : vector<128x8xbf16>, vector<8x8xbf16>, vector<128x8xf32> -> vector<128x8xf32>
    %32 = arith.addf %22, %31 : vector<128x8xf32>
    %c1_i32 = arith.constant 1 : i32
    %33 = arith.addi %1, %c1_i32 : i32
    %c0_23 = arith.constant 0 : index
    %34 = arith.index_cast %33 : i32 to index
    %c0_24 = arith.constant 0 : index
    %c0_25 = arith.constant 0 : index
    %35 = vector.load %arg2[%c0_23, %34, %c0_24, %c0_25] : memref<1x18x18x8xf32, #tpu.memory_space<vmem>>, vector<1x8x16x8xf32>
    %36 = vector.shape_cast %35 : vector<1x8x16x8xf32> to vector<8x16x8xf32>
    %37 = vector.shape_cast %36 : vector<8x16x8xf32> to vector<128x8xf32>
    %38 = arith.truncf %37 : vector<128x8xf32> to vector<128x8xbf16>
    %c1_26 = arith.constant 1 : index
    %c0_27 = arith.constant 0 : index
    %c0_28 = arith.constant 0 : index
    %c0_29 = arith.constant 0 : index
    %39 = vector.load %arg3[%c1_26, %c0_27, %c0_28, %c0_29] : memref<3x3x8x8xbf16, #tpu.memory_space<vmem>>, vector<1x1x8x8xbf16>
    %40 = vector.shape_cast %39 : vector<1x1x8x8xbf16> to vector<8x8xbf16>
    %cst_30 = arith.constant dense<0.000000e+00> : vector<128x8xf32>
    %41 = tpu.matmul %38, %40, %cst_30 {dimension_numbers = #tpu.dot_dimension_numbers<[1], [0], [0], [1], [0, 0, 1, 1], [], []>} : vector<128x8xbf16>, vector<8x8xbf16>, vector<128x8xf32> -> vector<128x8xf32>
    %42 = arith.addf %32, %41 : vector<128x8xf32>
    %c1_i32_31 = arith.constant 1 : i32
    %43 = arith.addi %1, %c1_i32_31 : i32
    %c0_32 = arith.constant 0 : index
    %44 = arith.index_cast %43 : i32 to index
    %c1_33 = arith.constant 1 : index
    %c0_34 = arith.constant 0 : index
    %45 = vector.load %arg2[%c0_32, %44, %c1_33, %c0_34] : memref<1x18x18x8xf32, #tpu.memory_space<vmem>>, vector<1x8x16x8xf32>
    %46 = vector.shape_cast %45 : vector<1x8x16x8xf32> to vector<8x16x8xf32>
    %47 = vector.shape_cast %46 : vector<8x16x8xf32> to vector<128x8xf32>
    %48 = arith.truncf %47 : vector<128x8xf32> to vector<128x8xbf16>
    %c1_35 = arith.constant 1 : index
    %c1_36 = arith.constant 1 : index
    %c0_37 = arith.constant 0 : index
    %c0_38 = arith.constant 0 : index
    %49 = vector.load %arg3[%c1_35, %c1_36, %c0_37, %c0_38] : memref<3x3x8x8xbf16, #tpu.memory_space<vmem>>, vector<1x1x8x8xbf16>
    %50 = vector.shape_cast %49 : vector<1x1x8x8xbf16> to vector<8x8xbf16>
    %cst_39 = arith.constant dense<0.000000e+00> : vector<128x8xf32>
    %51 = tpu.matmul %48, %50, %cst_39 {dimension_numbers = #tpu.dot_dimension_numbers<[1], [0], [0], [1], [0, 0, 1, 1], [], []>} : vector<128x8xbf16>, vector<8x8xbf16>, vector<128x8xf32> -> vector<128x8xf32>
    %52 = arith.addf %42, %51 : vector<128x8xf32>
    %c1_i32_40 = arith.constant 1 : i32
    %53 = arith.addi %1, %c1_i32_40 : i32
    %c0_41 = arith.constant 0 : index
    %54 = arith.index_cast %53 : i32 to index
    %c2_42 = arith.constant 2 : index
    %c0_43 = arith.constant 0 : index
    %55 = vector.load %arg2[%c0_41, %54, %c2_42, %c0_43] : memref<1x18x18x8xf32, #tpu.memory_space<vmem>>, vector<1x8x16x8xf32>
    %56 = vector.shape_cast %55 : vector<1x8x16x8xf32> to vector<8x16x8xf32>
    %57 = vector.shape_cast %56 : vector<8x16x8xf32> to vector<128x8xf32>
    %58 = arith.truncf %57 : vector<128x8xf32> to vector<128x8xbf16>
    %c1_44 = arith.constant 1 : index
    %c2_45 = arith.constant 2 : index
    %c0_46 = arith.constant 0 : index
    %c0_47 = arith.constant 0 : index
    %59 = vector.load %arg3[%c1_44, %c2_45, %c0_46, %c0_47] : memref<3x3x8x8xbf16, #tpu.memory_space<vmem>>, vector<1x1x8x8xbf16>
    %60 = vector.shape_cast %59 : vector<1x1x8x8xbf16> to vector<8x8xbf16>
    %cst_48 = arith.constant dense<0.000000e+00> : vector<128x8xf32>
    %61 = tpu.matmul %58, %60, %cst_48 {dimension_numbers = #tpu.dot_dimension_numbers<[1], [0], [0], [1], [0, 0, 1, 1], [], []>} : vector<128x8xbf16>, vector<8x8xbf16>, vector<128x8xf32> -> vector<128x8xf32>
    %62 = arith.addf %52, %61 : vector<128x8xf32>
    %c2_i32 = arith.constant 2 : i32
    %63 = arith.addi %1, %c2_i32 : i32
    %c0_49 = arith.constant 0 : index
    %64 = arith.index_cast %63 : i32 to index
    %c0_50 = arith.constant 0 : index
    %c0_51 = arith.constant 0 : index
    %65 = vector.load %arg2[%c0_49, %64, %c0_50, %c0_51] : memref<1x18x18x8xf32, #tpu.memory_space<vmem>>, vector<1x8x16x8xf32>
    %66 = vector.shape_cast %65 : vector<1x8x16x8xf32> to vector<8x16x8xf32>
    %67 = vector.shape_cast %66 : vector<8x16x8xf32> to vector<128x8xf32>
    %68 = arith.truncf %67 : vector<128x8xf32> to vector<128x8xbf16>
    %c2_52 = arith.constant 2 : index
    %c0_53 = arith.constant 0 : index
    %c0_54 = arith.constant 0 : index
    %c0_55 = arith.constant 0 : index
    %69 = vector.load %arg3[%c2_52, %c0_53, %c0_54, %c0_55] : memref<3x3x8x8xbf16, #tpu.memory_space<vmem>>, vector<1x1x8x8xbf16>
    %70 = vector.shape_cast %69 : vector<1x1x8x8xbf16> to vector<8x8xbf16>
    %cst_56 = arith.constant dense<0.000000e+00> : vector<128x8xf32>
    %71 = tpu.matmul %68, %70, %cst_56 {dimension_numbers = #tpu.dot_dimension_numbers<[1], [0], [0], [1], [0, 0, 1, 1], [], []>} : vector<128x8xbf16>, vector<8x8xbf16>, vector<128x8xf32> -> vector<128x8xf32>
    %72 = arith.addf %62, %71 : vector<128x8xf32>
    %c2_i32_57 = arith.constant 2 : i32
    %73 = arith.addi %1, %c2_i32_57 : i32
    %c0_58 = arith.constant 0 : index
    %74 = arith.index_cast %73 : i32 to index
    %c1_59 = arith.constant 1 : index
    %c0_60 = arith.constant 0 : index
    %75 = vector.load %arg2[%c0_58, %74, %c1_59, %c0_60] : memref<1x18x18x8xf32, #tpu.memory_space<vmem>>, vector<1x8x16x8xf32>
    %76 = vector.shape_cast %75 : vector<1x8x16x8xf32> to vector<8x16x8xf32>
    %77 = vector.shape_cast %76 : vector<8x16x8xf32> to vector<128x8xf32>
    %78 = arith.truncf %77 : vector<128x8xf32> to vector<128x8xbf16>
    %c2_61 = arith.constant 2 : index
    %c1_62 = arith.constant 1 : index
    %c0_63 = arith.constant 0 : index
    %c0_64 = arith.constant 0 : index
    %79 = vector.load %arg3[%c2_61, %c1_62, %c0_63, %c0_64] : memref<3x3x8x8xbf16, #tpu.memory_space<vmem>>, vector<1x1x8x8xbf16>
    %80 = vector.shape_cast %79 : vector<1x1x8x8xbf16> to vector<8x8xbf16>
    %cst_65 = arith.constant dense<0.000000e+00> : vector<128x8xf32>
    %81 = tpu.matmul %78, %80, %cst_65 {dimension_numbers = #tpu.dot_dimension_numbers<[1], [0], [0], [1], [0, 0, 1, 1], [], []>} : vector<128x8xbf16>, vector<8x8xbf16>, vector<128x8xf32> -> vector<128x8xf32>
    %82 = arith.addf %72, %81 : vector<128x8xf32>
    %c2_i32_66 = arith.constant 2 : i32
    %83 = arith.addi %1, %c2_i32_66 : i32
    %c0_67 = arith.constant 0 : index
    %84 = arith.index_cast %83 : i32 to index
    %c2_68 = arith.constant 2 : index
    %c0_69 = arith.constant 0 : index
    %85 = vector.load %arg2[%c0_67, %84, %c2_68, %c0_69] : memref<1x18x18x8xf32, #tpu.memory_space<vmem>>, vector<1x8x16x8xf32>
    %86 = vector.shape_cast %85 : vector<1x8x16x8xf32> to vector<8x16x8xf32>
    %87 = vector.shape_cast %86 : vector<8x16x8xf32> to vector<128x8xf32>
    %88 = arith.truncf %87 : vector<128x8xf32> to vector<128x8xbf16>
    %c2_70 = arith.constant 2 : index
    %c2_71 = arith.constant 2 : index
    %c0_72 = arith.constant 0 : index
    %c0_73 = arith.constant 0 : index
    %89 = vector.load %arg3[%c2_70, %c2_71, %c0_72, %c0_73] : memref<3x3x8x8xbf16, #tpu.memory_space<vmem>>, vector<1x1x8x8xbf16>
    %90 = vector.shape_cast %89 : vector<1x1x8x8xbf16> to vector<8x8xbf16>
    %cst_74 = arith.constant dense<0.000000e+00> : vector<128x8xf32>
    %91 = tpu.matmul %88, %90, %cst_74 {dimension_numbers = #tpu.dot_dimension_numbers<[1], [0], [0], [1], [0, 0, 1, 1], [], []>} : vector<128x8xbf16>, vector<8x8xbf16>, vector<128x8xf32> -> vector<128x8xf32>
    %92 = arith.addf %82, %91 : vector<128x8xf32>
    %c0_75 = arith.constant 0 : index
    %c0_76 = arith.constant 0 : index
    %93 = vector.load %arg4[%c0_75, %c0_76] : memref<1x8xf32, #tpu.memory_space<vmem>>, vector<1x8xf32>
    %94 = vector.broadcast %93 : vector<1x8xf32> to vector<128x8xf32>
    %95 = arith.addf %92, %94 : vector<128x8xf32>
    %cst_77 = arith.constant 0.000000e+00 : f32
    %96 = vector.broadcast %cst_77 : f32 to vector<128x8xf32>
    %97 = arith.maximumf %95, %96 : vector<128x8xf32>
    %98 = vector.shape_cast %97 : vector<128x8xf32> to vector<8x16x8xf32>
    %c0_78 = arith.constant 0 : index
    %c0_79 = arith.constant 0 : index
    %c0_80 = arith.constant 0 : index
    %c0_81 = arith.constant 0 : index
    %99 = vector.load %arg5[%c0_78, %c0_79, %c0_80, %c0_81] : memref<1x8x16x8xf32, #tpu.memory_space<vmem>>, vector<1x8x16x8xf32>
    %100 = vector.shape_cast %99 : vector<1x8x16x8xf32> to vector<8x16x8xf32>
    %101 = vector.shape_cast %98 : vector<8x16x8xf32> to vector<1x8x16x8xf32>
    tpu.vector_store %arg5[%c0_78, %c0_79, %c0_80, %c0_81], %101 {strides = array<i32>} : memref<1x8x16x8xf32, #tpu.memory_space<vmem>>, vector<1x8x16x8xf32>,
    return
  }
  func.func @transform_0(%arg0: i32, %arg1: i32) -> (i32, i32, i32, i32) {
    %c0_i32 = arith.constant 0 : i32
    %c0_i32_0 = arith.constant 0 : i32
    %c0_i32_1 = arith.constant 0 : i32
    %c0_i32_2 = arith.constant 0 : i32
    return %arg0, %c0_i32, %c0_i32_0, %c0_i32_1 : i32, i32, i32, i32
  }
  func.func @transform_1(%arg0: i32, %arg1: i32) -> (i32, i32, i32, i32) {
    %c0_i32 = arith.constant 0 : i32
    %c0_i32_0 = arith.constant 0 : i32
    %c0_i32_1 = arith.constant 0 : i32
    %c0_i32_2 = arith.constant 0 : i32
    %c0_i32_3 = arith.constant 0 : i32
    return %c0_i32, %c0_i32_0, %c0_i32_1, %c0_i32_2 : i32, i32, i32, i32
  }
  func.func @transform_2(%arg0: i32, %arg1: i32) -> (i32, i32) {
    %c0_i32 = arith.constant 0 : i32
    %c0_i32_0 = arith.constant 0 : i32
    %c0_i32_1 = arith.constant 0 : i32
    return %c0_i32, %c0_i32_0 : i32, i32
  }
  func.func @transform_3(%arg0: i32, %arg1: i32) -> (i32, i32, i32, i32) {
    %c0_i32 = arith.constant 0 : i32
    %c0_i32_0 = arith.constant 0 : i32
    %c0_i32_1 = arith.constant 0 : i32
    return %arg0, %arg1, %c0_i32, %c0_i32_0 : i32, i32, i32, i32
  }
}

module attributes {stable_mosaic.version = 11 : i64} {
  func.func @_conv_bias_act_kernel(%arg0: i32, %arg1: i32, %arg2: memref<1x20x20x8xf32, #tpu.memory_space<vmem>>, %arg3: memref<3x3x8x8xbf16, #tpu.memory_space<vmem>>, %arg4: memref<1x8xf32, #tpu.memory_space<vmem>>, %arg5: memref<1x8x16x8xf32, #tpu.memory_space<vmem>>) attributes {dimension_semantics = [#tpu.dimension_semantics<parallel>, #tpu.dimension_semantics<parallel>], iteration_bounds = array<i64: 2, 2>, scalar_prefetch = 0 : i64, scratch_operands = 0 : i64, tpu.core_type = #tpu.core_type<tc>, window_params = [{transform_indices = @transform_0, window_bounds = array<i64: 1, 20, 20, 8>}, {pipeline_mode = #tpu.pipeline_mode<synchronous>, transform_indices = @transform_1, window_bounds = array<i64: 3, 3, 8, 8>}, {pipeline_mode = #tpu.pipeline_mode<synchronous>, transform_indices = @transform_2, window_bounds = array<i64: 1, 8>}, {transform_indices = @transform_3, window_bounds = array<i64: 1, 8, 16, 8>}]} {
    %c8_i32 = arith.constant 8 : i32
    %0 = arith.muli %arg1, %c8_i32 : i32
    %1 = tpu.assume_multiple %0, 8 : i32
    %cst = arith.constant 0.000000e+00 : f32
    %2 = vector.broadcast %cst : f32 to vector<128x8xf32>
    %c0_i32 = arith.constant 0 : i32
    %3 = arith.addi %1, %c0_i32 : i32
    %c0 = arith.constant 0 : index
    %4 = arith.index_cast %3 : i32 to index
    %c0_0 = arith.constant 0 : index
    %c0_1 = arith.constant 0 : index
    %5 = vector.load %arg2[%c0, %4, %c0_0, %c0_1] : memref<1x20x20x8xf32, #tpu.memory_space<vmem>>, vector<1x8x16x8xf32>
    %6 = vector.shape_cast %5 : vector<1x8x16x8xf32> to vector<8x16x8xf32>
    %7 = vector.shape_cast %6 : vector<8x16x8xf32> to vector<128x8xf32>
    %8 = arith.truncf %7 : vector<128x8xf32> to vector<128x8xbf16>
    %c0_2 = arith.constant 0 : index
    %c0_3 = arith.constant 0 : index
    %c0_4 = arith.constant 0 : index
    %c0_5 = arith.constant 0 : index
    %9 = vector.load %arg3[%c0_2, %c0_3, %c0_4, %c0_5] : memref<3x3x8x8xbf16, #tpu.memory_space<vmem>>, vector<1x1x8x8xbf16>
    %10 = vector.shape_cast %9 : vector<1x1x8x8xbf16> to vector<8x8xbf16>
    %cst_6 = arith.constant dense<0.000000e+00> : vector<128x8xf32>
    %11 = tpu.matmul %8, %10, %cst_6 {dimension_numbers = #tpu.dot_dimension_numbers<[1], [0], [0], [1], [0, 0, 1, 1], [], []>} : vector<128x8xbf16>, vector<8x8xbf16>, vector<128x8xf32> -> vector<128x8xf32>
    %12 = arith.addf %2, %11 : vector<128x8xf32>
    %c0_i32_7 = arith.constant 0 : i32
    %13 = arith.addi %1, %c0_i32_7 : i32
    %c0_8 = arith.constant 0 : index
    %14 = arith.index_cast %13 : i32 to index
    %c2 = arith.constant 2 : index
    %c0_9 = arith.constant 0 : index
    %15 = vector.load %arg2[%c0_8, %14, %c2, %c0_9] : memref<1x20x20x8xf32, #tpu.memory_space<vmem>>, vector<1x8x16x8xf32>
    %16 = vector.shape_cast %15 : vector<1x8x16x8xf32> to vector<8x16x8xf32>
    %17 = vector.shape_cast %16 : vector<8x16x8xf32> to vector<128x8xf32>
    %18 = arith.truncf %17 : vector<128x8xf32> to vector<128x8xbf16>
    %c0_10 = arith.constant 0 : index
    %c1 = arith.constant 1 : index
    %c0_11 = arith.constant 0 : index
    %c0_12 = arith.constant 0 : index
    %19 = vector.load %arg3[%c0_10, %c1, %c0_11, %c0_12] : memref<3x3x8x8xbf16, #tpu.memory_space<vmem>>, vector<1x1x8x8xbf16>
    %20 = vector.shape_cast %19 : vector<1x1x8x8xbf16> to vector<8x8xbf16>
    %cst_13 = arith.constant dense<0.000000e+00> : vector<128x8xf32>
    %21 = tpu.matmul %18, %20, %cst_13 {dimension_numbers = #tpu.dot_dimension_numbers<[1], [0], [0], [1], [0, 0, 1, 1], [], []>} : vector<128x8xbf16>, vector<8x8xbf16>, vector<128x8xf32> -> vector<128x8xf32>
    %22 = arith.addf %12, %21 : vector<128x8xf32>
    %c0_i32_14 = arith.constant 0 : i32
    %23 = arith.addi %1, %c0_i32_14 : i32
    %c0_15 = arith.constant 0 : index
    %24 = arith.index_cast %23 : i32 to index
    %c4 = arith.constant 4 : index
    %c0_16 = arith.constant 0 : index
    %25 = vector.load %arg2[%c0_15, %24, %c4, %c0_16] : memref<1x20x20x8xf32, #tpu.memory_space<vmem>>, vector<1x8x16x8xf32>
    %26 = vector.shape_cast %25 : vector<1x8x16x8xf32> to vector<8x16x8xf32>
    %27 = vector.shape_cast %26 : vector<8x16x8xf32> to vector<128x8xf32>
    %28 = arith.truncf %27 : vector<128x8xf32> to vector<128x8xbf16>
    %c0_17 = arith.constant 0 : index
    %c2_18 = arith.constant 2 : index
    %c0_19 = arith.constant 0 : index
    %c0_20 = arith.constant 0 : index
    %29 = vector.load %arg3[%c0_17, %c2_18, %c0_19, %c0_20] : memref<3x3x8x8xbf16, #tpu.memory_space<vmem>>, vector<1x1x8x8xbf16>
    %30 = vector.shape_cast %29 : vector<1x1x8x8xbf16> to vector<8x8xbf16>
    %cst_21 = arith.constant dense<0.000000e+00> : vector<128x8xf32>
    %31 = tpu.matmul %28, %30, %cst_21 {dimension_numbers = #tpu.dot_dimension_numbers<[1], [0], [0], [1], [0, 0, 1, 1], [], []>} : vector<128x8xbf16>, vector<8x8xbf16>, vector<128x8xf32> -> vector<128x8xf32>
    %32 = arith.addf %22, %31 : vector<128x8xf32>
    %c2_i32 = arith.constant 2 : i32
    %33 = arith.addi %1, %c2_i32 : i32
    %c0_22 = arith.constant 0 : index
    %34 = arith.index_cast %33 : i32 to index
    %c0_23 = arith.constant 0 : index
    %c0_24 = arith.constant 0 : index
    %35 = vector.load %arg2[%c0_22, %34, %c0_23, %c0_24] : memref<1x20x20x8xf32, #tpu.memory_space<vmem>>, vector<1x8x16x8xf32>
    %36 = vector.shape_cast %35 : vector<1x8x16x8xf32> to vector<8x16x8xf32>
    %37 = vector.shape_cast %36 : vector<8x16x8xf32> to vector<128x8xf32>
    %38 = arith.truncf %37 : vector<128x8xf32> to vector<128x8xbf16>
    %c1_25 = arith.constant 1 : index
    %c0_26 = arith.constant 0 : index
    %c0_27 = arith.constant 0 : index
    %c0_28 = arith.constant 0 : index
    %39 = vector.load %arg3[%c1_25, %c0_26, %c0_27, %c0_28] : memref<3x3x8x8xbf16, #tpu.memory_space<vmem>>, vector<1x1x8x8xbf16>
    %40 = vector.shape_cast %39 : vector<1x1x8x8xbf16> to vector<8x8xbf16>
    %cst_29 = arith.constant dense<0.000000e+00> : vector<128x8xf32>
    %41 = tpu.matmul %38, %40, %cst_29 {dimension_numbers = #tpu.dot_dimension_numbers<[1], [0], [0], [1], [0, 0, 1, 1], [], []>} : vector<128x8xbf16>, vector<8x8xbf16>, vector<128x8xf32> -> vector<128x8xf32>
    %42 = arith.addf %32, %41 : vector<128x8xf32>
    %c2_i32_30 = arith.constant 2 : i32
    %43 = arith.addi %1, %c2_i32_30 : i32
    %c0_31 = arith.constant 0 : index
    %44 = arith.index_cast %43 : i32 to index
    %c2_32 = arith.constant 2 : index
    %c0_33 = arith.constant 0 : index
    %45 = vector.load %arg2[%c0_31, %44, %c2_32, %c0_33] : memref<1x20x20x8xf32, #tpu.memory_space<vmem>>, vector<1x8x16x8xf32>
    %46 = vector.shape_cast %45 : vector<1x8x16x8xf32> to vector<8x16x8xf32>
    %47 = vector.shape_cast %46 : vector<8x16x8xf32> to vector<128x8xf32>
    %48 = arith.truncf %47 : vector<128x8xf32> to vector<128x8xbf16>
    %c1_34 = arith.constant 1 : index
    %c1_35 = arith.constant 1 : index
    %c0_36 = arith.constant 0 : index
    %c0_37 = arith.constant 0 : index
    %49 = vector.load %arg3[%c1_34, %c1_35, %c0_36, %c0_37] : memref<3x3x8x8xbf16, #tpu.memory_space<vmem>>, vector<1x1x8x8xbf16>
    %50 = vector.shape_cast %49 : vector<1x1x8x8xbf16> to vector<8x8xbf16>
    %cst_38 = arith.constant dense<0.000000e+00> : vector<128x8xf32>
    %51 = tpu.matmul %48, %50, %cst_38 {dimension_numbers = #tpu.dot_dimension_numbers<[1], [0], [0], [1], [0, 0, 1, 1], [], []>} : vector<128x8xbf16>, vector<8x8xbf16>, vector<128x8xf32> -> vector<128x8xf32>
    %52 = arith.addf %42, %51 : vector<128x8xf32>
    %c2_i32_39 = arith.constant 2 : i32
    %53 = arith.addi %1, %c2_i32_39 : i32
    %c0_40 = arith.constant 0 : index
    %54 = arith.index_cast %53 : i32 to index
    %c4_41 = arith.constant 4 : index
    %c0_42 = arith.constant 0 : index
    %55 = vector.load %arg2[%c0_40, %54, %c4_41, %c0_42] : memref<1x20x20x8xf32, #tpu.memory_space<vmem>>, vector<1x8x16x8xf32>
    %56 = vector.shape_cast %55 : vector<1x8x16x8xf32> to vector<8x16x8xf32>
    %57 = vector.shape_cast %56 : vector<8x16x8xf32> to vector<128x8xf32>
    %58 = arith.truncf %57 : vector<128x8xf32> to vector<128x8xbf16>
    %c1_43 = arith.constant 1 : index
    %c2_44 = arith.constant 2 : index
    %c0_45 = arith.constant 0 : index
    %c0_46 = arith.constant 0 : index
    %59 = vector.load %arg3[%c1_43, %c2_44, %c0_45, %c0_46] : memref<3x3x8x8xbf16, #tpu.memory_space<vmem>>, vector<1x1x8x8xbf16>
    %60 = vector.shape_cast %59 : vector<1x1x8x8xbf16> to vector<8x8xbf16>
    %cst_47 = arith.constant dense<0.000000e+00> : vector<128x8xf32>
    %61 = tpu.matmul %58, %60, %cst_47 {dimension_numbers = #tpu.dot_dimension_numbers<[1], [0], [0], [1], [0, 0, 1, 1], [], []>} : vector<128x8xbf16>, vector<8x8xbf16>, vector<128x8xf32> -> vector<128x8xf32>
    %62 = arith.addf %52, %61 : vector<128x8xf32>
    %c4_i32 = arith.constant 4 : i32
    %63 = arith.addi %1, %c4_i32 : i32
    %c0_48 = arith.constant 0 : index
    %64 = arith.index_cast %63 : i32 to index
    %c0_49 = arith.constant 0 : index
    %c0_50 = arith.constant 0 : index
    %65 = vector.load %arg2[%c0_48, %64, %c0_49, %c0_50] : memref<1x20x20x8xf32, #tpu.memory_space<vmem>>, vector<1x8x16x8xf32>
    %66 = vector.shape_cast %65 : vector<1x8x16x8xf32> to vector<8x16x8xf32>
    %67 = vector.shape_cast %66 : vector<8x16x8xf32> to vector<128x8xf32>
    %68 = arith.truncf %67 : vector<128x8xf32> to vector<128x8xbf16>
    %c2_51 = arith.constant 2 : index
    %c0_52 = arith.constant 0 : index
    %c0_53 = arith.constant 0 : index
    %c0_54 = arith.constant 0 : index
    %69 = vector.load %arg3[%c2_51, %c0_52, %c0_53, %c0_54] : memref<3x3x8x8xbf16, #tpu.memory_space<vmem>>, vector<1x1x8x8xbf16>
    %70 = vector.shape_cast %69 : vector<1x1x8x8xbf16> to vector<8x8xbf16>
    %cst_55 = arith.constant dense<0.000000e+00> : vector<128x8xf32>
    %71 = tpu.matmul %68, %70, %cst_55 {dimension_numbers = #tpu.dot_dimension_numbers<[1], [0], [0], [1], [0, 0, 1, 1], [], []>} : vector<128x8xbf16>, vector<8x8xbf16>, vector<128x8xf32> -> vector<128x8xf32>
    %72 = arith.addf %62, %71 : vector<128x8xf32>
    %c4_i32_56 = arith.constant 4 : i32
    %73 = arith.addi %1, %c4_i32_56 : i32
    %c0_57 = arith.constant 0 : index
    %74 = arith.index_cast %73 : i32 to index
    %c2_58 = arith.constant 2 : index
    %c0_59 = arith.constant 0 : index
    %75 = vector.load %arg2[%c0_57, %74, %c2_58, %c0_59] : memref<1x20x20x8xf32, #tpu.memory_space<vmem>>, vector<1x8x16x8xf32>
    %76 = vector.shape_cast %75 : vector<1x8x16x8xf32> to vector<8x16x8xf32>
    %77 = vector.shape_cast %76 : vector<8x16x8xf32> to vector<128x8xf32>
    %78 = arith.truncf %77 : vector<128x8xf32> to vector<128x8xbf16>
    %c2_60 = arith.constant 2 : index
    %c1_61 = arith.constant 1 : index
    %c0_62 = arith.constant 0 : index
    %c0_63 = arith.constant 0 : index
    %79 = vector.load %arg3[%c2_60, %c1_61, %c0_62, %c0_63] : memref<3x3x8x8xbf16, #tpu.memory_space<vmem>>, vector<1x1x8x8xbf16>
    %80 = vector.shape_cast %79 : vector<1x1x8x8xbf16> to vector<8x8xbf16>
    %cst_64 = arith.constant dense<0.000000e+00> : vector<128x8xf32>
    %81 = tpu.matmul %78, %80, %cst_64 {dimension_numbers = #tpu.dot_dimension_numbers<[1], [0], [0], [1], [0, 0, 1, 1], [], []>} : vector<128x8xbf16>, vector<8x8xbf16>, vector<128x8xf32> -> vector<128x8xf32>
    %82 = arith.addf %72, %81 : vector<128x8xf32>
    %c4_i32_65 = arith.constant 4 : i32
    %83 = arith.addi %1, %c4_i32_65 : i32
    %c0_66 = arith.constant 0 : index
    %84 = arith.index_cast %83 : i32 to index
    %c4_67 = arith.constant 4 : index
    %c0_68 = arith.constant 0 : index
    %85 = vector.load %arg2[%c0_66, %84, %c4_67, %c0_68] : memref<1x20x20x8xf32, #tpu.memory_space<vmem>>, vector<1x8x16x8xf32>
    %86 = vector.shape_cast %85 : vector<1x8x16x8xf32> to vector<8x16x8xf32>
    %87 = vector.shape_cast %86 : vector<8x16x8xf32> to vector<128x8xf32>
    %88 = arith.truncf %87 : vector<128x8xf32> to vector<128x8xbf16>
    %c2_69 = arith.constant 2 : index
    %c2_70 = arith.constant 2 : index
    %c0_71 = arith.constant 0 : index
    %c0_72 = arith.constant 0 : index
    %89 = vector.load %arg3[%c2_69, %c2_70, %c0_71, %c0_72] : memref<3x3x8x8xbf16, #tpu.memory_space<vmem>>, vector<1x1x8x8xbf16>
    %90 = vector.shape_cast %89 : vector<1x1x8x8xbf16> to vector<8x8xbf16>
    %cst_73 = arith.constant dense<0.000000e+00> : vector<128x8xf32>
    %91 = tpu.matmul %88, %90, %cst_73 {dimension_numbers = #tpu.dot_dimension_numbers<[1], [0], [0], [1], [0, 0, 1, 1], [], []>} : vector<128x8xbf16>, vector<8x8xbf16>, vector<128x8xf32> -> vector<128x8xf32>
    %92 = arith.addf %82, %91 : vector<128x8xf32>
    %c0_74 = arith.constant 0 : index
    %c0_75 = arith.constant 0 : index
    %93 = vector.load %arg4[%c0_74, %c0_75] : memref<1x8xf32, #tpu.memory_space<vmem>>, vector<1x8xf32>
    %94 = vector.broadcast %93 : vector<1x8xf32> to vector<128x8xf32>
    %95 = arith.addf %92, %94 : vector<128x8xf32>
    %cst_76 = arith.constant 0.000000e+00 : f32
    %96 = vector.broadcast %cst_76 : f32 to vector<128x8xf32>
    %97 = arith.maximumf %95, %96 : vector<128x8xf32>
    %98 = vector.shape_cast %97 : vector<128x8xf32> to vector<8x16x8xf32>
    %c0_77 = arith.constant 0 : index
    %c0_78 = arith.constant 0 : index
    %c0_79 = arith.constant 0 : index
    %c0_80 = arith.constant 0 : index
    %99 = vector.load %arg5[%c0_77, %c0_78, %c0_79, %c0_80] : memref<1x8x16x8xf32, #tpu.memory_space<vmem>>, vector<1x8x16x8xf32>
    %100 = vector.shape_cast %99 : vector<1x8x16x8xf32> to vector<8x16x8xf32>
    %101 = vector.shape_cast %98 : vector<8x16x8xf32> to vector<1x8x16x8xf32>
    tpu.vector_store %arg5[%c0_77, %c0_78, %c0_79, %c0_80], %101 {strides = array<i32>} : memref<1x8x16x8xf32, #tpu.memory_space<vmem>>, vector<1x8x16x8xf32>,
    return
  }
  func.func @transform_0(%arg0: i32, %arg1: i32) -> (i32, i32, i32, i32) {
    %c0_i32 = arith.constant 0 : i32
    %c0_i32_0 = arith.constant 0 : i32
    %c0_i32_1 = arith.constant 0 : i32
    %c0_i32_2 = arith.constant 0 : i32
    return %arg0, %c0_i32, %c0_i32_0, %c0_i32_1 : i32, i32, i32, i32
  }
  func.func @transform_1(%arg0: i32, %arg1: i32) -> (i32, i32, i32, i32) {
    %c0_i32 = arith.constant 0 : i32
    %c0_i32_0 = arith.constant 0 : i32
    %c0_i32_1 = arith.constant 0 : i32
    %c0_i32_2 = arith.constant 0 : i32
    %c0_i32_3 = arith.constant 0 : i32
    return %c0_i32, %c0_i32_0, %c0_i32_1, %c0_i32_2 : i32, i32, i32, i32
  }
  func.func @transform_2(%arg0: i32, %arg1: i32) -> (i32, i32) {
    %c0_i32 = arith.constant 0 : i32
    %c0_i32_0 = arith.constant 0 : i32
    %c0_i32_1 = arith.constant 0 : i32
    return %c0_i32, %c0_i32_0 : i32, i32
  }
  func.func @transform_3(%arg0: i32, %arg1: i32) -> (i32, i32, i32, i32) {
    %c0_i32 = arith.constant 0 : i32
    %c0_i32_0 = arith.constant 0 : i32
    %c0_i32_1 = arith.constant 0 : i32
    return %arg0, %arg1, %c0_i32, %c0_i32_0 : i32, i32, i32, i32
  }
}

module attributes {stable_mosaic.version = 11 : i64} {
  func.func @_conv_bias_act_kernel(%arg0: i32, %arg1: i32, %arg2: memref<1x22x22x8xf32, #tpu.memory_space<vmem>>, %arg3: memref<3x3x8x8xbf16, #tpu.memory_space<vmem>>, %arg4: memref<1x8xf32, #tpu.memory_space<vmem>>, %arg5: memref<1x8x16x8xf32, #tpu.memory_space<vmem>>) attributes {dimension_semantics = [#tpu.dimension_semantics<parallel>, #tpu.dimension_semantics<parallel>], iteration_bounds = array<i64: 2, 2>, scalar_prefetch = 0 : i64, scratch_operands = 0 : i64, tpu.core_type = #tpu.core_type<tc>, window_params = [{transform_indices = @transform_0, window_bounds = array<i64: 1, 22, 22, 8>}, {pipeline_mode = #tpu.pipeline_mode<synchronous>, transform_indices = @transform_1, window_bounds = array<i64: 3, 3, 8, 8>}, {pipeline_mode = #tpu.pipeline_mode<synchronous>, transform_indices = @transform_2, window_bounds = array<i64: 1, 8>}, {transform_indices = @transform_3, window_bounds = array<i64: 1, 8, 16, 8>}]} {
    %c8_i32 = arith.constant 8 : i32
    %0 = arith.muli %arg1, %c8_i32 : i32
    %1 = tpu.assume_multiple %0, 8 : i32
    %cst = arith.constant 0.000000e+00 : f32
    %2 = vector.broadcast %cst : f32 to vector<128x8xf32>
    %c0_i32 = arith.constant 0 : i32
    %3 = arith.addi %1, %c0_i32 : i32
    %c0 = arith.constant 0 : index
    %4 = arith.index_cast %3 : i32 to index
    %c0_0 = arith.constant 0 : index
    %c0_1 = arith.constant 0 : index
    %5 = vector.load %arg2[%c0, %4, %c0_0, %c0_1] : memref<1x22x22x8xf32, #tpu.memory_space<vmem>>, vector<1x8x16x8xf32>
    %6 = vector.shape_cast %5 : vector<1x8x16x8xf32> to vector<8x16x8xf32>
    %7 = vector.shape_cast %6 : vector<8x16x8xf32> to vector<128x8xf32>
    %8 = arith.truncf %7 : vector<128x8xf32> to vector<128x8xbf16>
    %c0_2 = arith.constant 0 : index
    %c0_3 = arith.constant 0 : index
    %c0_4 = arith.constant 0 : index
    %c0_5 = arith.constant 0 : index
    %9 = vector.load %arg3[%c0_2, %c0_3, %c0_4, %c0_5] : memref<3x3x8x8xbf16, #tpu.memory_space<vmem>>, vector<1x1x8x8xbf16>
    %10 = vector.shape_cast %9 : vector<1x1x8x8xbf16> to vector<8x8xbf16>
    %cst_6 = arith.constant dense<0.000000e+00> : vector<128x8xf32>
    %11 = tpu.matmul %8, %10, %cst_6 {dimension_numbers = #tpu.dot_dimension_numbers<[1], [0], [0], [1], [0, 0, 1, 1], [], []>} : vector<128x8xbf16>, vector<8x8xbf16>, vector<128x8xf32> -> vector<128x8xf32>
    %12 = arith.addf %2, %11 : vector<128x8xf32>
    %c0_i32_7 = arith.constant 0 : i32
    %13 = arith.addi %1, %c0_i32_7 : i32
    %c0_8 = arith.constant 0 : index
    %14 = arith.index_cast %13 : i32 to index
    %c3 = arith.constant 3 : index
    %c0_9 = arith.constant 0 : index
    %15 = vector.load %arg2[%c0_8, %14, %c3, %c0_9] : memref<1x22x22x8xf32, #tpu.memory_space<vmem>>, vector<1x8x16x8xf32>
    %16 = vector.shape_cast %15 : vector<1x8x16x8xf32> to vector<8x16x8xf32>
    %17 = vector.shape_cast %16 : vector<8x16x8xf32> to vector<128x8xf32>
    %18 = arith.truncf %17 : vector<128x8xf32> to vector<128x8xbf16>
    %c0_10 = arith.constant 0 : index
    %c1 = arith.constant 1 : index
    %c0_11 = arith.constant 0 : index
    %c0_12 = arith.constant 0 : index
    %19 = vector.load %arg3[%c0_10, %c1, %c0_11, %c0_12] : memref<3x3x8x8xbf16, #tpu.memory_space<vmem>>, vector<1x1x8x8xbf16>
    %20 = vector.shape_cast %19 : vector<1x1x8x8xbf16> to vector<8x8xbf16>
    %cst_13 = arith.constant dense<0.000000e+00> : vector<128x8xf32>
    %21 = tpu.matmul %18, %20, %cst_13 {dimension_numbers = #tpu.dot_dimension_numbers<[1], [0], [0], [1], [0, 0, 1, 1], [], []>} : vector<128x8xbf16>, vector<8x8xbf16>, vector<128x8xf32> -> vector<128x8xf32>
    %22 = arith.addf %12, %21 : vector<128x8xf32>
    %c0_i32_14 = arith.constant 0 : i32
    %23 = arith.addi %1, %c0_i32_14 : i32
    %c0_15 = arith.constant 0 : index
    %24 = arith.index_cast %23 : i32 to index
    %c6 = arith.constant 6 : index
    %c0_16 = arith.constant 0 : index
    %25 = vector.load %arg2[%c0_15, %24, %c6, %c0_16] : memref<1x22x22x8xf32, #tpu.memory_space<vmem>>, vector<1x8x16x8xf32>
    %26 = vector.shape_cast %25 : vector<1x8x16x8xf32> to vector<8x16x8xf32>
    %27 = vector.shape_cast %26 : vector<8x16x8xf32> to vector<128x8xf32>
    %28 = arith.truncf %27 : vector<128x8xf32> to vector<128x8xbf16>
    %c0_17 = arith.constant 0 : index
    %c2 = arith.constant 2 : index
    %c0_18 = arith.constant 0 : index
    %c0_19 = arith.constant 0 : index
    %29 = vector.load %arg3[%c0_17, %c2, %c0_18, %c0_19] : memref<3x3x8x8xbf16, #tpu.memory_space<vmem>>, vector<1x1x8x8xbf16>
    %30 = vector.shape_cast %29 : vector<1x1x8x8xbf16> to vector<8x8xbf16>
    %cst_20 = arith.constant dense<0.000000e+00> : vector<128x8xf32>
    %31 = tpu.matmul %28, %30, %cst_20 {dimension_numbers = #tpu.dot_dimension_numbers<[1], [0], [0], [1], [0, 0, 1, 1], [], []>} : vector<128x8xbf16>, vector<8x8xbf16>, vector<128x8xf32> -> vector<128x8xf32>
    %32 = arith.addf %22, %31 : vector<128x8xf32>
    %c3_i32 = arith.constant 3 : i32
    %33 = arith.addi %1, %c3_i32 : i32
    %c0_21 = arith.constant 0 : index
    %34 = arith.index_cast %33 : i32 to index
    %c0_22 = arith.constant 0 : index
    %c0_23 = arith.constant 0 : index
    %35 = vector.load %arg2[%c0_21, %34, %c0_22, %c0_23] : memref<1x22x22x8xf32, #tpu.memory_space<vmem>>, vector<1x8x16x8xf32>
    %36 = vector.shape_cast %35 : vector<1x8x16x8xf32> to vector<8x16x8xf32>
    %37 = vector.shape_cast %36 : vector<8x16x8xf32> to vector<128x8xf32>
    %38 = arith.truncf %37 : vector<128x8xf32> to vector<128x8xbf16>
    %c1_24 = arith.constant 1 : index
    %c0_25 = arith.constant 0 : index
    %c0_26 = arith.constant 0 : index
    %c0_27 = arith.constant 0 : index
    %39 = vector.load %arg3[%c1_24, %c0_25, %c0_26, %c0_27] : memref<3x3x8x8xbf16, #tpu.memory_space<vmem>>, vector<1x1x8x8xbf16>
    %40 = vector.shape_cast %39 : vector<1x1x8x8xbf16> to vector<8x8xbf16>
    %cst_28 = arith.constant dense<0.000000e+00> : vector<128x8xf32>
    %41 = tpu.matmul %38, %40, %cst_28 {dimension_numbers = #tpu.dot_dimension_numbers<[1], [0], [0], [1], [0, 0, 1, 1], [], []>} : vector<128x8xbf16>, vector<8x8xbf16>, vector<128x8xf32> -> vector<128x8xf32>
    %42 = arith.addf %32, %41 : vector<128x8xf32>
    %c3_i32_29 = arith.constant 3 : i32
    %43 = arith.addi %1, %c3_i32_29 : i32
    %c0_30 = arith.constant 0 : index
    %44 = arith.index_cast %43 : i32 to index
    %c3_31 = arith.constant 3 : index
    %c0_32 = arith.constant 0 : index
    %45 = vector.load %arg2[%c0_30, %44, %c3_31, %c0_32] : memref<1x22x22x8xf32, #tpu.memory_space<vmem>>, vector<1x8x16x8xf32>
    %46 = vector.shape_cast %45 : vector<1x8x16x8xf32> to vector<8x16x8xf32>
    %47 = vector.shape_cast %46 : vector<8x16x8xf32> to vector<128x8xf32>
    %48 = arith.truncf %47 : vector<128x8xf32> to vector<128x8xbf16>
    %c1_33 = arith.constant 1 : index
    %c1_34 = arith.constant 1 : index
    %c0_35 = arith.constant 0 : index
    %c0_36 = arith.constant 0 : index
    %49 = vector.load %arg3[%c1_33, %c1_34, %c0_35, %c0_36] : memref<3x3x8x8xbf16, #tpu.memory_space<vmem>>, vector<1x1x8x8xbf16>
    %50 = vector.shape_cast %49 : vector<1x1x8x8xbf16> to vector<8x8xbf16>
    %cst_37 = arith.constant dense<0.000000e+00> : vector<128x8xf32>
    %51 = tpu.matmul %48, %50, %cst_37 {dimension_numbers = #tpu.dot_dimension_numbers<[1], [0], [0], [1], [0, 0, 1, 1], [], []>} : vector<128x8xbf16>, vector<8x8xbf16>, vector<128x8xf32> -> vector<128x8xf32>
    %52 = arith.addf %42, %51 : vector<128x8xf32>
    %c3_i32_38 = arith.constant 3 : i32
    %53 = arith.addi %1, %c3_i32_38 : i32
    %c0_39 = arith.constant 0 : index
    %54 = arith.index_cast %53 : i32 to index
    %c6_40 = arith.constant 6 : index
    %c0_41 = arith.constant 0 : index
    %55 = vector.load %arg2[%c0_39, %54, %c6_40, %c0_41] : memref<1x22x22x8xf32, #tpu.memory_space<vmem>>, vector<1x8x16x8xf32>
    %56 = vector.shape_cast %55 : vector<1x8x16x8xf32> to vector<8x16x8xf32>
    %57 = vector.shape_cast %56 : vector<8x16x8xf32> to vector<128x8xf32>
    %58 = arith.truncf %57 : vector<128x8xf32> to vector<128x8xbf16>
    %c1_42 = arith.constant 1 : index
    %c2_43 = arith.constant 2 : index
    %c0_44 = arith.constant 0 : index
    %c0_45 = arith.constant 0 : index
    %59 = vector.load %arg3[%c1_42, %c2_43, %c0_44, %c0_45] : memref<3x3x8x8xbf16, #tpu.memory_space<vmem>>, vector<1x1x8x8xbf16>
    %60 = vector.shape_cast %59 : vector<1x1x8x8xbf16> to vector<8x8xbf16>
    %cst_46 = arith.constant dense<0.000000e+00> : vector<128x8xf32>
    %61 = tpu.matmul %58, %60, %cst_46 {dimension_numbers = #tpu.dot_dimension_numbers<[1], [0], [0], [1], [0, 0, 1, 1], [], []>} : vector<128x8xbf16>, vector<8x8xbf16>, vector<128x8xf32> -> vector<128x8xf32>
    %62 = arith.addf %52, %61 : vector<128x8xf32>
    %c6_i32 = arith.constant 6 : i32
    %63 = arith.addi %1, %c6_i32 : i32
    %c0_47 = arith.constant 0 : index
    %64 = arith.index_cast %63 : i32 to index
    %c0_48 = arith.constant 0 : index
    %c0_49 = arith.constant 0 : index
    %65 = vector.load %arg2[%c0_47, %64, %c0_48, %c0_49] : memref<1x22x22x8xf32, #tpu.memory_space<vmem>>, vector<1x8x16x8xf32>
    %66 = vector.shape_cast %65 : vector<1x8x16x8xf32> to vector<8x16x8xf32>
    %67 = vector.shape_cast %66 : vector<8x16x8xf32> to vector<128x8xf32>
    %68 = arith.truncf %67 : vector<128x8xf32> to vector<128x8xbf16>
    %c2_50 = arith.constant 2 : index
    %c0_51 = arith.constant 0 : index
    %c0_52 = arith.constant 0 : index
    %c0_53 = arith.constant 0 : index
    %69 = vector.load %arg3[%c2_50, %c0_51, %c0_52, %c0_53] : memref<3x3x8x8xbf16, #tpu.memory_space<vmem>>, vector<1x1x8x8xbf16>
    %70 = vector.shape_cast %69 : vector<1x1x8x8xbf16> to vector<8x8xbf16>
    %cst_54 = arith.constant dense<0.000000e+00> : vector<128x8xf32>
    %71 = tpu.matmul %68, %70, %cst_54 {dimension_numbers = #tpu.dot_dimension_numbers<[1], [0], [0], [1], [0, 0, 1, 1], [], []>} : vector<128x8xbf16>, vector<8x8xbf16>, vector<128x8xf32> -> vector<128x8xf32>
    %72 = arith.addf %62, %71 : vector<128x8xf32>
    %c6_i32_55 = arith.constant 6 : i32
    %73 = arith.addi %1, %c6_i32_55 : i32
    %c0_56 = arith.constant 0 : index
    %74 = arith.index_cast %73 : i32 to index
    %c3_57 = arith.constant 3 : index
    %c0_58 = arith.constant 0 : index
    %75 = vector.load %arg2[%c0_56, %74, %c3_57, %c0_58] : memref<1x22x22x8xf32, #tpu.memory_space<vmem>>, vector<1x8x16x8xf32>
    %76 = vector.shape_cast %75 : vector<1x8x16x8xf32> to vector<8x16x8xf32>
    %77 = vector.shape_cast %76 : vector<8x16x8xf32> to vector<128x8xf32>
    %78 = arith.truncf %77 : vector<128x8xf32> to vector<128x8xbf16>
    %c2_59 = arith.constant 2 : index
    %c1_60 = arith.constant 1 : index
    %c0_61 = arith.constant 0 : index
    %c0_62 = arith.constant 0 : index
    %79 = vector.load %arg3[%c2_59, %c1_60, %c0_61, %c0_62] : memref<3x3x8x8xbf16, #tpu.memory_space<vmem>>, vector<1x1x8x8xbf16>
    %80 = vector.shape_cast %79 : vector<1x1x8x8xbf16> to vector<8x8xbf16>
    %cst_63 = arith.constant dense<0.000000e+00> : vector<128x8xf32>
    %81 = tpu.matmul %78, %80, %cst_63 {dimension_numbers = #tpu.dot_dimension_numbers<[1], [0], [0], [1], [0, 0, 1, 1], [], []>} : vector<128x8xbf16>, vector<8x8xbf16>, vector<128x8xf32> -> vector<128x8xf32>
    %82 = arith.addf %72, %81 : vector<128x8xf32>
    %c6_i32_64 = arith.constant 6 : i32
    %83 = arith.addi %1, %c6_i32_64 : i32
    %c0_65 = arith.constant 0 : index
    %84 = arith.index_cast %83 : i32 to index
    %c6_66 = arith.constant 6 : index
    %c0_67 = arith.constant 0 : index
    %85 = vector.load %arg2[%c0_65, %84, %c6_66, %c0_67] : memref<1x22x22x8xf32, #tpu.memory_space<vmem>>, vector<1x8x16x8xf32>
    %86 = vector.shape_cast %85 : vector<1x8x16x8xf32> to vector<8x16x8xf32>
    %87 = vector.shape_cast %86 : vector<8x16x8xf32> to vector<128x8xf32>
    %88 = arith.truncf %87 : vector<128x8xf32> to vector<128x8xbf16>
    %c2_68 = arith.constant 2 : index
    %c2_69 = arith.constant 2 : index
    %c0_70 = arith.constant 0 : index
    %c0_71 = arith.constant 0 : index
    %89 = vector.load %arg3[%c2_68, %c2_69, %c0_70, %c0_71] : memref<3x3x8x8xbf16, #tpu.memory_space<vmem>>, vector<1x1x8x8xbf16>
    %90 = vector.shape_cast %89 : vector<1x1x8x8xbf16> to vector<8x8xbf16>
    %cst_72 = arith.constant dense<0.000000e+00> : vector<128x8xf32>
    %91 = tpu.matmul %88, %90, %cst_72 {dimension_numbers = #tpu.dot_dimension_numbers<[1], [0], [0], [1], [0, 0, 1, 1], [], []>} : vector<128x8xbf16>, vector<8x8xbf16>, vector<128x8xf32> -> vector<128x8xf32>
    %92 = arith.addf %82, %91 : vector<128x8xf32>
    %c0_73 = arith.constant 0 : index
    %c0_74 = arith.constant 0 : index
    %93 = vector.load %arg4[%c0_73, %c0_74] : memref<1x8xf32, #tpu.memory_space<vmem>>, vector<1x8xf32>
    %94 = vector.broadcast %93 : vector<1x8xf32> to vector<128x8xf32>
    %95 = arith.addf %92, %94 : vector<128x8xf32>
    %cst_75 = arith.constant 0.000000e+00 : f32
    %96 = vector.broadcast %cst_75 : f32 to vector<128x8xf32>
    %97 = arith.maximumf %95, %96 : vector<128x8xf32>
    %98 = vector.shape_cast %97 : vector<128x8xf32> to vector<8x16x8xf32>
    %c0_76 = arith.constant 0 : index
    %c0_77 = arith.constant 0 : index
    %c0_78 = arith.constant 0 : index
    %c0_79 = arith.constant 0 : index
    %99 = vector.load %arg5[%c0_76, %c0_77, %c0_78, %c0_79] : memref<1x8x16x8xf32, #tpu.memory_space<vmem>>, vector<1x8x16x8xf32>
    %100 = vector.shape_cast %99 : vector<1x8x16x8xf32> to vector<8x16x8xf32>
    %101 = vector.shape_cast %98 : vector<8x16x8xf32> to vector<1x8x16x8xf32>
    tpu.vector_store %arg5[%c0_76, %c0_77, %c0_78, %c0_79], %101 {strides = array<i32>} : memref<1x8x16x8xf32, #tpu.memory_space<vmem>>, vector<1x8x16x8xf32>,
    return
  }
  func.func @transform_0(%arg0: i32, %arg1: i32) -> (i32, i32, i32, i32) {
    %c0_i32 = arith.constant 0 : i32
    %c0_i32_0 = arith.constant 0 : i32
    %c0_i32_1 = arith.constant 0 : i32
    %c0_i32_2 = arith.constant 0 : i32
    return %arg0, %c0_i32, %c0_i32_0, %c0_i32_1 : i32, i32, i32, i32
  }
  func.func @transform_1(%arg0: i32, %arg1: i32) -> (i32, i32, i32, i32) {
    %c0_i32 = arith.constant 0 : i32
    %c0_i32_0 = arith.constant 0 : i32
    %c0_i32_1 = arith.constant 0 : i32
    %c0_i32_2 = arith.constant 0 : i32
    %c0_i32_3 = arith.constant 0 : i32
    return %c0_i32, %c0_i32_0, %c0_i32_1, %c0_i32_2 : i32, i32, i32, i32
  }
  func.func @transform_2(%arg0: i32, %arg1: i32) -> (i32, i32) {
    %c0_i32 = arith.constant 0 : i32
    %c0_i32_0 = arith.constant 0 : i32
    %c0_i32_1 = arith.constant 0 : i32
    return %c0_i32, %c0_i32_0 : i32, i32
  }
  func.func @transform_3(%arg0: i32, %arg1: i32) -> (i32, i32, i32, i32) {
    %c0_i32 = arith.constant 0 : i32
    %c0_i32_0 = arith.constant 0 : i32
    %c0_i32_1 = arith.constant 0 : i32
    return %arg0, %arg1, %c0_i32, %c0_i32_0 : i32, i32, i32, i32
  }
}

module attributes {stable_mosaic.version = 11 : i64} {
  func.func @_conv_bias_act_kernel(%arg0: i32, %arg1: i32, %arg2: memref<1x16x22x4xf32, #tpu.memory_space<vmem>>, %arg3: memref<1x7x4x8xbf16, #tpu.memory_space<vmem>>, %arg4: memref<1x8xf32, #tpu.memory_space<vmem>>, %arg5: memref<1x8x16x8xf32, #tpu.memory_space<vmem>>) attributes {dimension_semantics = [#tpu.dimension_semantics<parallel>, #tpu.dimension_semantics<parallel>], iteration_bounds = array<i64: 2, 2>, scalar_prefetch = 0 : i64, scratch_operands = 0 : i64, tpu.core_type = #tpu.core_type<tc>, window_params = [{transform_indices = @transform_0, window_bounds = array<i64: 1, 16, 22, 4>}, {pipeline_mode = #tpu.pipeline_mode<synchronous>, transform_indices = @transform_1, window_bounds = array<i64: 1, 7, 4, 8>}, {pipeline_mode = #tpu.pipeline_mode<synchronous>, transform_indices = @transform_2, window_bounds = array<i64: 1, 8>}, {transform_indices = @transform_3, window_bounds = array<i64: 1, 8, 16, 8>}]} {
    %c8_i32 = arith.constant 8 : i32
    %0 = arith.muli %arg1, %c8_i32 : i32
    %1 = tpu.assume_multiple %0, 8 : i32
    %cst = arith.constant 0.000000e+00 : f32
    %2 = vector.broadcast %cst : f32 to vector<128x8xf32>
    %c0_i32 = arith.constant 0 : i32
    %3 = arith.addi %1, %c0_i32 : i32
    %c0 = arith.constant 0 : index
    %4 = arith.index_cast %3 : i32 to index
    %c0_0 = arith.constant 0 : index
    %c0_1 = arith.constant 0 : index
    %5 = vector.load %arg2[%c0, %4, %c0_0, %c0_1] : memref<1x16x22x4xf32, #tpu.memory_space<vmem>>, vector<1x8x16x4xf32>
    %6 = vector.shape_cast %5 : vector<1x8x16x4xf32> to vector<8x16x4xf32>
    %7 = vector.shape_cast %6 : vector<8x16x4xf32> to vector<128x4xf32>
    %8 = arith.truncf %7 : vector<128x4xf32> to vector<128x4xbf16>
    %c0_2 = arith.constant 0 : index
    %c0_3 = arith.constant 0 : index
    %c0_4 = arith.constant 0 : index
    %c0_5 = arith.constant 0 : index
    %9 = vector.load %arg3[%c0_2, %c0_3, %c0_4, %c0_5] : memref<1x7x4x8xbf16, #tpu.memory_space<vmem>>, vector<1x1x4x8xbf16>
    %10 = vector.shape_cast %9 : vector<1x1x4x8xbf16> to vector<4x8xbf16>
    %cst_6 = arith.constant dense<0.000000e+00> : vector<128x8xf32>
    %11 = tpu.matmul %8, %10, %cst_6 {dimension_numbers = #tpu.dot_dimension_numbers<[1], [0], [0], [1], [0, 0, 1, 1], [], []>} : vector<128x4xbf16>, vector<4x8xbf16>, vector<128x8xf32> -> vector<128x8xf32>
    %12 = arith.addf %2, %11 : vector<128x8xf32>
    %c0_i32_7 = arith.constant 0 : i32
    %13 = arith.addi %1, %c0_i32_7 : i32
    %c0_8 = arith.constant 0 : index
    %14 = arith.index_cast %13 : i32 to index
    %c1 = arith.constant 1 : index
    %c0_9 = arith.constant 0 : index
    %15 = vector.load %arg2[%c0_8, %14, %c1, %c0_9] : memref<1x16x22x4xf32, #tpu.memory_space<vmem>>, vector<1x8x16x4xf32>
    %16 = vector.shape_cast %15 : vector<1x8x16x4xf32> to vector<8x16x4xf32>
    %17 = vector.shape_cast %16 : vector<8x16x4xf32> to vector<128x4xf32>
    %18 = arith.truncf %17 : vector<128x4xf32> to vector<128x4xbf16>
    %c0_10 = arith.constant 0 : index
    %c1_11 = arith.constant 1 : index
    %c0_12 = arith.constant 0 : index
    %c0_13 = arith.constant 0 : index
    %19 = vector.load %arg3[%c0_10, %c1_11, %c0_12, %c0_13] : memref<1x7x4x8xbf16, #tpu.memory_space<vmem>>, vector<1x1x4x8xbf16>
    %20 = vector.shape_cast %19 : vector<1x1x4x8xbf16> to vector<4x8xbf16>
    %cst_14 = arith.constant dense<0.000000e+00> : vector<128x8xf32>
    %21 = tpu.matmul %18, %20, %cst_14 {dimension_numbers = #tpu.dot_dimension_numbers<[1], [0], [0], [1], [0, 0, 1, 1], [], []>} : vector<128x4xbf16>, vector<4x8xbf16>, vector<128x8xf32> -> vector<128x8xf32>
    %22 = arith.addf %12, %21 : vector<128x8xf32>
    %c0_i32_15 = arith.constant 0 : i32
    %23 = arith.addi %1, %c0_i32_15 : i32
    %c0_16 = arith.constant 0 : index
    %24 = arith.index_cast %23 : i32 to index
    %c2 = arith.constant 2 : index
    %c0_17 = arith.constant 0 : index
    %25 = vector.load %arg2[%c0_16, %24, %c2, %c0_17] : memref<1x16x22x4xf32, #tpu.memory_space<vmem>>, vector<1x8x16x4xf32>
    %26 = vector.shape_cast %25 : vector<1x8x16x4xf32> to vector<8x16x4xf32>
    %27 = vector.shape_cast %26 : vector<8x16x4xf32> to vector<128x4xf32>
    %28 = arith.truncf %27 : vector<128x4xf32> to vector<128x4xbf16>
    %c0_18 = arith.constant 0 : index
    %c2_19 = arith.constant 2 : index
    %c0_20 = arith.constant 0 : index
    %c0_21 = arith.constant 0 : index
    %29 = vector.load %arg3[%c0_18, %c2_19, %c0_20, %c0_21] : memref<1x7x4x8xbf16, #tpu.memory_space<vmem>>, vector<1x1x4x8xbf16>
    %30 = vector.shape_cast %29 : vector<1x1x4x8xbf16> to vector<4x8xbf16>
    %cst_22 = arith.constant dense<0.000000e+00> : vector<128x8xf32>
    %31 = tpu.matmul %28, %30, %cst_22 {dimension_numbers = #tpu.dot_dimension_numbers<[1], [0], [0], [1], [0, 0, 1, 1], [], []>} : vector<128x4xbf16>, vector<4x8xbf16>, vector<128x8xf32> -> vector<128x8xf32>
    %32 = arith.addf %22, %31 : vector<128x8xf32>
    %c0_i32_23 = arith.constant 0 : i32
    %33 = arith.addi %1, %c0_i32_23 : i32
    %c0_24 = arith.constant 0 : index
    %34 = arith.index_cast %33 : i32 to index
    %c3 = arith.constant 3 : index
    %c0_25 = arith.constant 0 : index
    %35 = vector.load %arg2[%c0_24, %34, %c3, %c0_25] : memref<1x16x22x4xf32, #tpu.memory_space<vmem>>, vector<1x8x16x4xf32>
    %36 = vector.shape_cast %35 : vector<1x8x16x4xf32> to vector<8x16x4xf32>
    %37 = vector.shape_cast %36 : vector<8x16x4xf32> to vector<128x4xf32>
    %38 = arith.truncf %37 : vector<128x4xf32> to vector<128x4xbf16>
    %c0_26 = arith.constant 0 : index
    %c3_27 = arith.constant 3 : index
    %c0_28 = arith.constant 0 : index
    %c0_29 = arith.constant 0 : index
    %39 = vector.load %arg3[%c0_26, %c3_27, %c0_28, %c0_29] : memref<1x7x4x8xbf16, #tpu.memory_space<vmem>>, vector<1x1x4x8xbf16>
    %40 = vector.shape_cast %39 : vector<1x1x4x8xbf16> to vector<4x8xbf16>
    %cst_30 = arith.constant dense<0.000000e+00> : vector<128x8xf32>
    %41 = tpu.matmul %38, %40, %cst_30 {dimension_numbers = #tpu.dot_dimension_numbers<[1], [0], [0], [1], [0, 0, 1, 1], [], []>} : vector<128x4xbf16>, vector<4x8xbf16>, vector<128x8xf32> -> vector<128x8xf32>
    %42 = arith.addf %32, %41 : vector<128x8xf32>
    %c0_i32_31 = arith.constant 0 : i32
    %43 = arith.addi %1, %c0_i32_31 : i32
    %c0_32 = arith.constant 0 : index
    %44 = arith.index_cast %43 : i32 to index
    %c4 = arith.constant 4 : index
    %c0_33 = arith.constant 0 : index
    %45 = vector.load %arg2[%c0_32, %44, %c4, %c0_33] : memref<1x16x22x4xf32, #tpu.memory_space<vmem>>, vector<1x8x16x4xf32>
    %46 = vector.shape_cast %45 : vector<1x8x16x4xf32> to vector<8x16x4xf32>
    %47 = vector.shape_cast %46 : vector<8x16x4xf32> to vector<128x4xf32>
    %48 = arith.truncf %47 : vector<128x4xf32> to vector<128x4xbf16>
    %c0_34 = arith.constant 0 : index
    %c4_35 = arith.constant 4 : index
    %c0_36 = arith.constant 0 : index
    %c0_37 = arith.constant 0 : index
    %49 = vector.load %arg3[%c0_34, %c4_35, %c0_36, %c0_37] : memref<1x7x4x8xbf16, #tpu.memory_space<vmem>>, vector<1x1x4x8xbf16>
    %50 = vector.shape_cast %49 : vector<1x1x4x8xbf16> to vector<4x8xbf16>
    %cst_38 = arith.constant dense<0.000000e+00> : vector<128x8xf32>
    %51 = tpu.matmul %48, %50, %cst_38 {dimension_numbers = #tpu.dot_dimension_numbers<[1], [0], [0], [1], [0, 0, 1, 1], [], []>} : vector<128x4xbf16>, vector<4x8xbf16>, vector<128x8xf32> -> vector<128x8xf32>
    %52 = arith.addf %42, %51 : vector<128x8xf32>
    %c0_i32_39 = arith.constant 0 : i32
    %53 = arith.addi %1, %c0_i32_39 : i32
    %c0_40 = arith.constant 0 : index
    %54 = arith.index_cast %53 : i32 to index
    %c5 = arith.constant 5 : index
    %c0_41 = arith.constant 0 : index
    %55 = vector.load %arg2[%c0_40, %54, %c5, %c0_41] : memref<1x16x22x4xf32, #tpu.memory_space<vmem>>, vector<1x8x16x4xf32>
    %56 = vector.shape_cast %55 : vector<1x8x16x4xf32> to vector<8x16x4xf32>
    %57 = vector.shape_cast %56 : vector<8x16x4xf32> to vector<128x4xf32>
    %58 = arith.truncf %57 : vector<128x4xf32> to vector<128x4xbf16>
    %c0_42 = arith.constant 0 : index
    %c5_43 = arith.constant 5 : index
    %c0_44 = arith.constant 0 : index
    %c0_45 = arith.constant 0 : index
    %59 = vector.load %arg3[%c0_42, %c5_43, %c0_44, %c0_45] : memref<1x7x4x8xbf16, #tpu.memory_space<vmem>>, vector<1x1x4x8xbf16>
    %60 = vector.shape_cast %59 : vector<1x1x4x8xbf16> to vector<4x8xbf16>
    %cst_46 = arith.constant dense<0.000000e+00> : vector<128x8xf32>
    %61 = tpu.matmul %58, %60, %cst_46 {dimension_numbers = #tpu.dot_dimension_numbers<[1], [0], [0], [1], [0, 0, 1, 1], [], []>} : vector<128x4xbf16>, vector<4x8xbf16>, vector<128x8xf32> -> vector<128x8xf32>
    %62 = arith.addf %52, %61 : vector<128x8xf32>
    %c0_i32_47 = arith.constant 0 : i32
    %63 = arith.addi %1, %c0_i32_47 : i32
    %c0_48 = arith.constant 0 : index
    %64 = arith.index_cast %63 : i32 to index
    %c6 = arith.constant 6 : index
    %c0_49 = arith.constant 0 : index
    %65 = vector.load %arg2[%c0_48, %64, %c6, %c0_49] : memref<1x16x22x4xf32, #tpu.memory_space<vmem>>, vector<1x8x16x4xf32>
    %66 = vector.shape_cast %65 : vector<1x8x16x4xf32> to vector<8x16x4xf32>
    %67 = vector.shape_cast %66 : vector<8x16x4xf32> to vector<128x4xf32>
    %68 = arith.truncf %67 : vector<128x4xf32> to vector<128x4xbf16>
    %c0_50 = arith.constant 0 : index
    %c6_51 = arith.constant 6 : index
    %c0_52 = arith.constant 0 : index
    %c0_53 = arith.constant 0 : index
    %69 = vector.load %arg3[%c0_50, %c6_51, %c0_52, %c0_53] : memref<1x7x4x8xbf16, #tpu.memory_space<vmem>>, vector<1x1x4x8xbf16>
    %70 = vector.shape_cast %69 : vector<1x1x4x8xbf16> to vector<4x8xbf16>
    %cst_54 = arith.constant dense<0.000000e+00> : vector<128x8xf32>
    %71 = tpu.matmul %68, %70, %cst_54 {dimension_numbers = #tpu.dot_dimension_numbers<[1], [0], [0], [1], [0, 0, 1, 1], [], []>} : vector<128x4xbf16>, vector<4x8xbf16>, vector<128x8xf32> -> vector<128x8xf32>
    %72 = arith.addf %62, %71 : vector<128x8xf32>
    %c0_55 = arith.constant 0 : index
    %c0_56 = arith.constant 0 : index
    %73 = vector.load %arg4[%c0_55, %c0_56] : memref<1x8xf32, #tpu.memory_space<vmem>>, vector<1x8xf32>
    %74 = vector.broadcast %73 : vector<1x8xf32> to vector<128x8xf32>
    %75 = arith.addf %72, %74 : vector<128x8xf32>
    %cst_57 = arith.constant 0.000000e+00 : f32
    %76 = vector.broadcast %cst_57 : f32 to vector<128x8xf32>
    %77 = arith.maximumf %75, %76 : vector<128x8xf32>
    %78 = vector.shape_cast %77 : vector<128x8xf32> to vector<8x16x8xf32>
    %c0_58 = arith.constant 0 : index
    %c0_59 = arith.constant 0 : index
    %c0_60 = arith.constant 0 : index
    %c0_61 = arith.constant 0 : index
    %79 = vector.load %arg5[%c0_58, %c0_59, %c0_60, %c0_61] : memref<1x8x16x8xf32, #tpu.memory_space<vmem>>, vector<1x8x16x8xf32>
    %80 = vector.shape_cast %79 : vector<1x8x16x8xf32> to vector<8x16x8xf32>
    %81 = vector.shape_cast %78 : vector<8x16x8xf32> to vector<1x8x16x8xf32>
    tpu.vector_store %arg5[%c0_58, %c0_59, %c0_60, %c0_61], %81 {strides = array<i32>} : memref<1x8x16x8xf32, #tpu.memory_space<vmem>>, vector<1x8x16x8xf32>,
    return
  }
  func.func @transform_0(%arg0: i32, %arg1: i32) -> (i32, i32, i32, i32) {
    %c0_i32 = arith.constant 0 : i32
    %c0_i32_0 = arith.constant 0 : i32
    %c0_i32_1 = arith.constant 0 : i32
    %c0_i32_2 = arith.constant 0 : i32
    return %arg0, %c0_i32, %c0_i32_0, %c0_i32_1 : i32, i32, i32, i32
  }
  func.func @transform_1(%arg0: i32, %arg1: i32) -> (i32, i32, i32, i32) {
    %c0_i32 = arith.constant 0 : i32
    %c0_i32_0 = arith.constant 0 : i32
    %c0_i32_1 = arith.constant 0 : i32
    %c0_i32_2 = arith.constant 0 : i32
    %c0_i32_3 = arith.constant 0 : i32
    return %c0_i32, %c0_i32_0, %c0_i32_1, %c0_i32_2 : i32, i32, i32, i32
  }
  func.func @transform_2(%arg0: i32, %arg1: i32) -> (i32, i32) {
    %c0_i32 = arith.constant 0 : i32
    %c0_i32_0 = arith.constant 0 : i32
    %c0_i32_1 = arith.constant 0 : i32
    return %c0_i32, %c0_i32_0 : i32, i32
  }
  func.func @transform_3(%arg0: i32, %arg1: i32) -> (i32, i32, i32, i32) {
    %c0_i32 = arith.constant 0 : i32
    %c0_i32_0 = arith.constant 0 : i32
    %c0_i32_1 = arith.constant 0 : i32
    return %arg0, %arg1, %c0_i32, %c0_i32_0 : i32, i32, i32, i32
  }
}

module attributes {stable_mosaic.version = 11 : i64} {
  func.func @_conv_bias_act_kernel(%arg0: i32, %arg1: i32, %arg2: memref<1x22x16x8xf32, #tpu.memory_space<vmem>>, %arg3: memref<7x1x8x8xbf16, #tpu.memory_space<vmem>>, %arg4: memref<1x8xf32, #tpu.memory_space<vmem>>, %arg5: memref<1x8x16x8xf32, #tpu.memory_space<vmem>>) attributes {dimension_semantics = [#tpu.dimension_semantics<parallel>, #tpu.dimension_semantics<parallel>], iteration_bounds = array<i64: 2, 2>, scalar_prefetch = 0 : i64, scratch_operands = 0 : i64, tpu.core_type = #tpu.core_type<tc>, window_params = [{transform_indices = @transform_0, window_bounds = array<i64: 1, 22, 16, 8>}, {pipeline_mode = #tpu.pipeline_mode<synchronous>, transform_indices = @transform_1, window_bounds = array<i64: 7, 1, 8, 8>}, {pipeline_mode = #tpu.pipeline_mode<synchronous>, transform_indices = @transform_2, window_bounds = array<i64: 1, 8>}, {transform_indices = @transform_3, window_bounds = array<i64: 1, 8, 16, 8>}]} {
    %c8_i32 = arith.constant 8 : i32
    %0 = arith.muli %arg1, %c8_i32 : i32
    %1 = tpu.assume_multiple %0, 8 : i32
    %cst = arith.constant 0.000000e+00 : f32
    %2 = vector.broadcast %cst : f32 to vector<128x8xf32>
    %c0_i32 = arith.constant 0 : i32
    %3 = arith.addi %1, %c0_i32 : i32
    %c0 = arith.constant 0 : index
    %4 = arith.index_cast %3 : i32 to index
    %c0_0 = arith.constant 0 : index
    %c0_1 = arith.constant 0 : index
    %5 = vector.load %arg2[%c0, %4, %c0_0, %c0_1] : memref<1x22x16x8xf32, #tpu.memory_space<vmem>>, vector<1x8x16x8xf32>
    %6 = vector.shape_cast %5 : vector<1x8x16x8xf32> to vector<8x16x8xf32>
    %7 = vector.shape_cast %6 : vector<8x16x8xf32> to vector<128x8xf32>
    %8 = arith.truncf %7 : vector<128x8xf32> to vector<128x8xbf16>
    %c0_2 = arith.constant 0 : index
    %c0_3 = arith.constant 0 : index
    %c0_4 = arith.constant 0 : index
    %c0_5 = arith.constant 0 : index
    %9 = vector.load %arg3[%c0_2, %c0_3, %c0_4, %c0_5] : memref<7x1x8x8xbf16, #tpu.memory_space<vmem>>, vector<1x1x8x8xbf16>
    %10 = vector.shape_cast %9 : vector<1x1x8x8xbf16> to vector<8x8xbf16>
    %cst_6 = arith.constant dense<0.000000e+00> : vector<128x8xf32>
    %11 = tpu.matmul %8, %10, %cst_6 {dimension_numbers = #tpu.dot_dimension_numbers<[1], [0], [0], [1], [0, 0, 1, 1], [], []>} : vector<128x8xbf16>, vector<8x8xbf16>, vector<128x8xf32> -> vector<128x8xf32>
    %12 = arith.addf %2, %11 : vector<128x8xf32>
    %c1_i32 = arith.constant 1 : i32
    %13 = arith.addi %1, %c1_i32 : i32
    %c0_7 = arith.constant 0 : index
    %14 = arith.index_cast %13 : i32 to index
    %c0_8 = arith.constant 0 : index
    %c0_9 = arith.constant 0 : index
    %15 = vector.load %arg2[%c0_7, %14, %c0_8, %c0_9] : memref<1x22x16x8xf32, #tpu.memory_space<vmem>>, vector<1x8x16x8xf32>
    %16 = vector.shape_cast %15 : vector<1x8x16x8xf32> to vector<8x16x8xf32>
    %17 = vector.shape_cast %16 : vector<8x16x8xf32> to vector<128x8xf32>
    %18 = arith.truncf %17 : vector<128x8xf32> to vector<128x8xbf16>
    %c1 = arith.constant 1 : index
    %c0_10 = arith.constant 0 : index
    %c0_11 = arith.constant 0 : index
    %c0_12 = arith.constant 0 : index
    %19 = vector.load %arg3[%c1, %c0_10, %c0_11, %c0_12] : memref<7x1x8x8xbf16, #tpu.memory_space<vmem>>, vector<1x1x8x8xbf16>
    %20 = vector.shape_cast %19 : vector<1x1x8x8xbf16> to vector<8x8xbf16>
    %cst_13 = arith.constant dense<0.000000e+00> : vector<128x8xf32>
    %21 = tpu.matmul %18, %20, %cst_13 {dimension_numbers = #tpu.dot_dimension_numbers<[1], [0], [0], [1], [0, 0, 1, 1], [], []>} : vector<128x8xbf16>, vector<8x8xbf16>, vector<128x8xf32> -> vector<128x8xf32>
    %22 = arith.addf %12, %21 : vector<128x8xf32>
    %c2_i32 = arith.constant 2 : i32
    %23 = arith.addi %1, %c2_i32 : i32
    %c0_14 = arith.constant 0 : index
    %24 = arith.index_cast %23 : i32 to index
    %c0_15 = arith.constant 0 : index
    %c0_16 = arith.constant 0 : index
    %25 = vector.load %arg2[%c0_14, %24, %c0_15, %c0_16] : memref<1x22x16x8xf32, #tpu.memory_space<vmem>>, vector<1x8x16x8xf32>
    %26 = vector.shape_cast %25 : vector<1x8x16x8xf32> to vector<8x16x8xf32>
    %27 = vector.shape_cast %26 : vector<8x16x8xf32> to vector<128x8xf32>
    %28 = arith.truncf %27 : vector<128x8xf32> to vector<128x8xbf16>
    %c2 = arith.constant 2 : index
    %c0_17 = arith.constant 0 : index
    %c0_18 = arith.constant 0 : index
    %c0_19 = arith.constant 0 : index
    %29 = vector.load %arg3[%c2, %c0_17, %c0_18, %c0_19] : memref<7x1x8x8xbf16, #tpu.memory_space<vmem>>, vector<1x1x8x8xbf16>
    %30 = vector.shape_cast %29 : vector<1x1x8x8xbf16> to vector<8x8xbf16>
    %cst_20 = arith.constant dense<0.000000e+00> : vector<128x8xf32>
    %31 = tpu.matmul %28, %30, %cst_20 {dimension_numbers = #tpu.dot_dimension_numbers<[1], [0], [0], [1], [0, 0, 1, 1], [], []>} : vector<128x8xbf16>, vector<8x8xbf16>, vector<128x8xf32> -> vector<128x8xf32>
    %32 = arith.addf %22, %31 : vector<128x8xf32>
    %c3_i32 = arith.constant 3 : i32
    %33 = arith.addi %1, %c3_i32 : i32
    %c0_21 = arith.constant 0 : index
    %34 = arith.index_cast %33 : i32 to index
    %c0_22 = arith.constant 0 : index
    %c0_23 = arith.constant 0 : index
    %35 = vector.load %arg2[%c0_21, %34, %c0_22, %c0_23] : memref<1x22x16x8xf32, #tpu.memory_space<vmem>>, vector<1x8x16x8xf32>
    %36 = vector.shape_cast %35 : vector<1x8x16x8xf32> to vector<8x16x8xf32>
    %37 = vector.shape_cast %36 : vector<8x16x8xf32> to vector<128x8xf32>
    %38 = arith.truncf %37 : vector<128x8xf32> to vector<128x8xbf16>
    %c3 = arith.constant 3 : index
    %c0_24 = arith.constant 0 : index
    %c0_25 = arith.constant 0 : index
    %c0_26 = arith.constant 0 : index
    %39 = vector.load %arg3[%c3, %c0_24, %c0_25, %c0_26] : memref<7x1x8x8xbf16, #tpu.memory_space<vmem>>, vector<1x1x8x8xbf16>
    %40 = vector.shape_cast %39 : vector<1x1x8x8xbf16> to vector<8x8xbf16>
    %cst_27 = arith.constant dense<0.000000e+00> : vector<128x8xf32>
    %41 = tpu.matmul %38, %40, %cst_27 {dimension_numbers = #tpu.dot_dimension_numbers<[1], [0], [0], [1], [0, 0, 1, 1], [], []>} : vector<128x8xbf16>, vector<8x8xbf16>, vector<128x8xf32> -> vector<128x8xf32>
    %42 = arith.addf %32, %41 : vector<128x8xf32>
    %c4_i32 = arith.constant 4 : i32
    %43 = arith.addi %1, %c4_i32 : i32
    %c0_28 = arith.constant 0 : index
    %44 = arith.index_cast %43 : i32 to index
    %c0_29 = arith.constant 0 : index
    %c0_30 = arith.constant 0 : index
    %45 = vector.load %arg2[%c0_28, %44, %c0_29, %c0_30] : memref<1x22x16x8xf32, #tpu.memory_space<vmem>>, vector<1x8x16x8xf32>
    %46 = vector.shape_cast %45 : vector<1x8x16x8xf32> to vector<8x16x8xf32>
    %47 = vector.shape_cast %46 : vector<8x16x8xf32> to vector<128x8xf32>
    %48 = arith.truncf %47 : vector<128x8xf32> to vector<128x8xbf16>
    %c4 = arith.constant 4 : index
    %c0_31 = arith.constant 0 : index
    %c0_32 = arith.constant 0 : index
    %c0_33 = arith.constant 0 : index
    %49 = vector.load %arg3[%c4, %c0_31, %c0_32, %c0_33] : memref<7x1x8x8xbf16, #tpu.memory_space<vmem>>, vector<1x1x8x8xbf16>
    %50 = vector.shape_cast %49 : vector<1x1x8x8xbf16> to vector<8x8xbf16>
    %cst_34 = arith.constant dense<0.000000e+00> : vector<128x8xf32>
    %51 = tpu.matmul %48, %50, %cst_34 {dimension_numbers = #tpu.dot_dimension_numbers<[1], [0], [0], [1], [0, 0, 1, 1], [], []>} : vector<128x8xbf16>, vector<8x8xbf16>, vector<128x8xf32> -> vector<128x8xf32>
    %52 = arith.addf %42, %51 : vector<128x8xf32>
    %c5_i32 = arith.constant 5 : i32
    %53 = arith.addi %1, %c5_i32 : i32
    %c0_35 = arith.constant 0 : index
    %54 = arith.index_cast %53 : i32 to index
    %c0_36 = arith.constant 0 : index
    %c0_37 = arith.constant 0 : index
    %55 = vector.load %arg2[%c0_35, %54, %c0_36, %c0_37] : memref<1x22x16x8xf32, #tpu.memory_space<vmem>>, vector<1x8x16x8xf32>
    %56 = vector.shape_cast %55 : vector<1x8x16x8xf32> to vector<8x16x8xf32>
    %57 = vector.shape_cast %56 : vector<8x16x8xf32> to vector<128x8xf32>
    %58 = arith.truncf %57 : vector<128x8xf32> to vector<128x8xbf16>
    %c5 = arith.constant 5 : index
    %c0_38 = arith.constant 0 : index
    %c0_39 = arith.constant 0 : index
    %c0_40 = arith.constant 0 : index
    %59 = vector.load %arg3[%c5, %c0_38, %c0_39, %c0_40] : memref<7x1x8x8xbf16, #tpu.memory_space<vmem>>, vector<1x1x8x8xbf16>
    %60 = vector.shape_cast %59 : vector<1x1x8x8xbf16> to vector<8x8xbf16>
    %cst_41 = arith.constant dense<0.000000e+00> : vector<128x8xf32>
    %61 = tpu.matmul %58, %60, %cst_41 {dimension_numbers = #tpu.dot_dimension_numbers<[1], [0], [0], [1], [0, 0, 1, 1], [], []>} : vector<128x8xbf16>, vector<8x8xbf16>, vector<128x8xf32> -> vector<128x8xf32>
    %62 = arith.addf %52, %61 : vector<128x8xf32>
    %c6_i32 = arith.constant 6 : i32
    %63 = arith.addi %1, %c6_i32 : i32
    %c0_42 = arith.constant 0 : index
    %64 = arith.index_cast %63 : i32 to index
    %c0_43 = arith.constant 0 : index
    %c0_44 = arith.constant 0 : index
    %65 = vector.load %arg2[%c0_42, %64, %c0_43, %c0_44] : memref<1x22x16x8xf32, #tpu.memory_space<vmem>>, vector<1x8x16x8xf32>
    %66 = vector.shape_cast %65 : vector<1x8x16x8xf32> to vector<8x16x8xf32>
    %67 = vector.shape_cast %66 : vector<8x16x8xf32> to vector<128x8xf32>
    %68 = arith.truncf %67 : vector<128x8xf32> to vector<128x8xbf16>
    %c6 = arith.constant 6 : index
    %c0_45 = arith.constant 0 : index
    %c0_46 = arith.constant 0 : index
    %c0_47 = arith.constant 0 : index
    %69 = vector.load %arg3[%c6, %c0_45, %c0_46, %c0_47] : memref<7x1x8x8xbf16, #tpu.memory_space<vmem>>, vector<1x1x8x8xbf16>
    %70 = vector.shape_cast %69 : vector<1x1x8x8xbf16> to vector<8x8xbf16>
    %cst_48 = arith.constant dense<0.000000e+00> : vector<128x8xf32>
    %71 = tpu.matmul %68, %70, %cst_48 {dimension_numbers = #tpu.dot_dimension_numbers<[1], [0], [0], [1], [0, 0, 1, 1], [], []>} : vector<128x8xbf16>, vector<8x8xbf16>, vector<128x8xf32> -> vector<128x8xf32>
    %72 = arith.addf %62, %71 : vector<128x8xf32>
    %c0_49 = arith.constant 0 : index
    %c0_50 = arith.constant 0 : index
    %73 = vector.load %arg4[%c0_49, %c0_50] : memref<1x8xf32, #tpu.memory_space<vmem>>, vector<1x8xf32>
    %74 = vector.broadcast %73 : vector<1x8xf32> to vector<128x8xf32>
    %75 = arith.addf %72, %74 : vector<128x8xf32>
    %cst_51 = arith.constant 0.000000e+00 : f32
    %76 = vector.broadcast %cst_51 : f32 to vector<128x8xf32>
    %77 = arith.maximumf %75, %76 : vector<128x8xf32>
    %78 = vector.shape_cast %77 : vector<128x8xf32> to vector<8x16x8xf32>
    %c0_52 = arith.constant 0 : index
    %c0_53 = arith.constant 0 : index
    %c0_54 = arith.constant 0 : index
    %c0_55 = arith.constant 0 : index
    %79 = vector.load %arg5[%c0_52, %c0_53, %c0_54, %c0_55] : memref<1x8x16x8xf32, #tpu.memory_space<vmem>>, vector<1x8x16x8xf32>
    %80 = vector.shape_cast %79 : vector<1x8x16x8xf32> to vector<8x16x8xf32>
    %81 = vector.shape_cast %78 : vector<8x16x8xf32> to vector<1x8x16x8xf32>
    tpu.vector_store %arg5[%c0_52, %c0_53, %c0_54, %c0_55], %81 {strides = array<i32>} : memref<1x8x16x8xf32, #tpu.memory_space<vmem>>, vector<1x8x16x8xf32>,
    return
  }
  func.func @transform_0(%arg0: i32, %arg1: i32) -> (i32, i32, i32, i32) {
    %c0_i32 = arith.constant 0 : i32
    %c0_i32_0 = arith.constant 0 : i32
    %c0_i32_1 = arith.constant 0 : i32
    %c0_i32_2 = arith.constant 0 : i32
    return %arg0, %c0_i32, %c0_i32_0, %c0_i32_1 : i32, i32, i32, i32
  }
  func.func @transform_1(%arg0: i32, %arg1: i32) -> (i32, i32, i32, i32) {
    %c0_i32 = arith.constant 0 : i32
    %c0_i32_0 = arith.constant 0 : i32
    %c0_i32_1 = arith.constant 0 : i32
    %c0_i32_2 = arith.constant 0 : i32
    %c0_i32_3 = arith.constant 0 : i32
    return %c0_i32, %c0_i32_0, %c0_i32_1, %c0_i32_2 : i32, i32, i32, i32
  }
  func.func @transform_2(%arg0: i32, %arg1: i32) -> (i32, i32) {
    %c0_i32 = arith.constant 0 : i32
    %c0_i32_0 = arith.constant 0 : i32
    %c0_i32_1 = arith.constant 0 : i32
    return %c0_i32, %c0_i32_0 : i32, i32
  }
  func.func @transform_3(%arg0: i32, %arg1: i32) -> (i32, i32, i32, i32) {
    %c0_i32 = arith.constant 0 : i32
    %c0_i32_0 = arith.constant 0 : i32
    %c0_i32_1 = arith.constant 0 : i32
    return %arg0, %arg1, %c0_i32, %c0_i32_0 : i32, i32, i32, i32
  }
}

module attributes {stable_mosaic.version = 11 : i64} {
  func.func @_sum6_bn_act_kernel(%arg0: i32, %arg1: i32, %arg2: memref<1x8x128xf32, #tpu.memory_space<vmem>>, %arg3: memref<1x8x128xf32, #tpu.memory_space<vmem>>, %arg4: memref<1x8x128xf32, #tpu.memory_space<vmem>>, %arg5: memref<1x8x128xf32, #tpu.memory_space<vmem>>, %arg6: memref<1x8x128xf32, #tpu.memory_space<vmem>>, %arg7: memref<1x8x128xf32, #tpu.memory_space<vmem>>, %arg8: memref<1x1x128xf32, #tpu.memory_space<vmem>>, %arg9: memref<1x1x128xf32, #tpu.memory_space<vmem>>, %arg10: memref<1x8x128xf32, #tpu.memory_space<vmem>>) attributes {dimension_semantics = [#tpu.dimension_semantics<parallel>, #tpu.dimension_semantics<parallel>], iteration_bounds = array<i64: 2, 2>, scalar_prefetch = 0 : i64, scratch_operands = 0 : i64, tpu.core_type = #tpu.core_type<tc>, window_params = [{transform_indices = @transform_0, window_bounds = array<i64: 1, 8, 128>}, {transform_indices = @transform_1, window_bounds = array<i64: 1, 8, 128>}, {transform_indices = @transform_2, window_bounds = array<i64: 1, 8, 128>}, {transform_indices = @transform_3, window_bounds = array<i64: 1, 8, 128>}, {transform_indices = @transform_4, window_bounds = array<i64: 1, 8, 128>}, {transform_indices = @transform_5, window_bounds = array<i64: 1, 8, 128>}, {pipeline_mode = #tpu.pipeline_mode<synchronous>, transform_indices = @transform_6, window_bounds = array<i64: 1, 1, 128>}, {pipeline_mode = #tpu.pipeline_mode<synchronous>, transform_indices = @transform_7, window_bounds = array<i64: 1, 1, 128>}, {transform_indices = @transform_8, window_bounds = array<i64: 1, 8, 128>}]} {
    %c0 = arith.constant 0 : index
    %c0_0 = arith.constant 0 : index
    %c0_1 = arith.constant 0 : index
    %0 = vector.load %arg2[%c0, %c0_0, %c0_1] : memref<1x8x128xf32, #tpu.memory_space<vmem>>, vector<1x8x128xf32>
    %c0_2 = arith.constant 0 : index
    %c0_3 = arith.constant 0 : index
    %c0_4 = arith.constant 0 : index
    %1 = vector.load %arg3[%c0_2, %c0_3, %c0_4] : memref<1x8x128xf32, #tpu.memory_space<vmem>>, vector<1x8x128xf32>
    %2 = arith.addf %0, %1 : vector<1x8x128xf32>
    %c0_5 = arith.constant 0 : index
    %c0_6 = arith.constant 0 : index
    %c0_7 = arith.constant 0 : index
    %3 = vector.load %arg4[%c0_5, %c0_6, %c0_7] : memref<1x8x128xf32, #tpu.memory_space<vmem>>, vector<1x8x128xf32>
    %c0_8 = arith.constant 0 : index
    %c0_9 = arith.constant 0 : index
    %c0_10 = arith.constant 0 : index
    %4 = vector.load %arg5[%c0_8, %c0_9, %c0_10] : memref<1x8x128xf32, #tpu.memory_space<vmem>>, vector<1x8x128xf32>
    %5 = arith.addf %3, %4 : vector<1x8x128xf32>
    %6 = arith.addf %2, %5 : vector<1x8x128xf32>
    %c0_11 = arith.constant 0 : index
    %c0_12 = arith.constant 0 : index
    %c0_13 = arith.constant 0 : index
    %7 = vector.load %arg6[%c0_11, %c0_12, %c0_13] : memref<1x8x128xf32, #tpu.memory_space<vmem>>, vector<1x8x128xf32>
    %c0_14 = arith.constant 0 : index
    %c0_15 = arith.constant 0 : index
    %c0_16 = arith.constant 0 : index
    %8 = vector.load %arg7[%c0_14, %c0_15, %c0_16] : memref<1x8x128xf32, #tpu.memory_space<vmem>>, vector<1x8x128xf32>
    %9 = arith.addf %7, %8 : vector<1x8x128xf32>
    %10 = arith.addf %6, %9 : vector<1x8x128xf32>
    %c0_17 = arith.constant 0 : index
    %c0_18 = arith.constant 0 : index
    %c0_19 = arith.constant 0 : index
    %11 = vector.load %arg8[%c0_17, %c0_18, %c0_19] : memref<1x1x128xf32, #tpu.memory_space<vmem>>, vector<1x1x128xf32>
    %12 = vector.broadcast %11 : vector<1x1x128xf32> to vector<1x8x128xf32>
    %13 = arith.mulf %10, %12 : vector<1x8x128xf32>
    %c0_20 = arith.constant 0 : index
    %c0_21 = arith.constant 0 : index
    %c0_22 = arith.constant 0 : index
    %14 = vector.load %arg9[%c0_20, %c0_21, %c0_22] : memref<1x1x128xf32, #tpu.memory_space<vmem>>, vector<1x1x128xf32>
    %15 = vector.broadcast %14 : vector<1x1x128xf32> to vector<1x8x128xf32>
    %16 = arith.addf %13, %15 : vector<1x8x128xf32>
    %cst = arith.constant 0.000000e+00 : f32
    %17 = vector.broadcast %cst : f32 to vector<1x8x128xf32>
    %18 = arith.maximumf %16, %17 : vector<1x8x128xf32>
    %c0_23 = arith.constant 0 : index
    %c0_24 = arith.constant 0 : index
    %c0_25 = arith.constant 0 : index
    %19 = vector.load %arg10[%c0_23, %c0_24, %c0_25] : memref<1x8x128xf32, #tpu.memory_space<vmem>>, vector<1x8x128xf32>
    tpu.vector_store %arg10[%c0_23, %c0_24, %c0_25], %18 {strides = array<i32>} : memref<1x8x128xf32, #tpu.memory_space<vmem>>, vector<1x8x128xf32>,
    return
  }
  func.func @transform_0(%arg0: i32, %arg1: i32) -> (i32, i32, i32) {
    %c0_i32 = arith.constant 0 : i32
    %c0_i32_0 = arith.constant 0 : i32
    return %arg0, %arg1, %c0_i32 : i32, i32, i32
  }
  func.func @transform_1(%arg0: i32, %arg1: i32) -> (i32, i32, i32) {
    %c0_i32 = arith.constant 0 : i32
    %c0_i32_0 = arith.constant 0 : i32
    return %arg0, %arg1, %c0_i32 : i32, i32, i32
  }
  func.func @transform_2(%arg0: i32, %arg1: i32) -> (i32, i32, i32) {
    %c0_i32 = arith.constant 0 : i32
    %c0_i32_0 = arith.constant 0 : i32
    return %arg0, %arg1, %c0_i32 : i32, i32, i32
  }
  func.func @transform_3(%arg0: i32, %arg1: i32) -> (i32, i32, i32) {
    %c0_i32 = arith.constant 0 : i32
    %c0_i32_0 = arith.constant 0 : i32
    return %arg0, %arg1, %c0_i32 : i32, i32, i32
  }
  func.func @transform_4(%arg0: i32, %arg1: i32) -> (i32, i32, i32) {
    %c0_i32 = arith.constant 0 : i32
    %c0_i32_0 = arith.constant 0 : i32
    return %arg0, %arg1, %c0_i32 : i32, i32, i32
  }
  func.func @transform_5(%arg0: i32, %arg1: i32) -> (i32, i32, i32) {
    %c0_i32 = arith.constant 0 : i32
    %c0_i32_0 = arith.constant 0 : i32
    return %arg0, %arg1, %c0_i32 : i32, i32, i32
  }
  func.func @transform_6(%arg0: i32, %arg1: i32) -> (i32, i32, i32) {
    %c0_i32 = arith.constant 0 : i32
    %c0_i32_0 = arith.constant 0 : i32
    %c0_i32_1 = arith.constant 0 : i32
    %c0_i32_2 = arith.constant 0 : i32
    return %c0_i32, %c0_i32_0, %c0_i32_1 : i32, i32, i32
  }
  func.func @transform_7(%arg0: i32, %arg1: i32) -> (i32, i32, i32) {
    %c0_i32 = arith.constant 0 : i32
    %c0_i32_0 = arith.constant 0 : i32
    %c0_i32_1 = arith.constant 0 : i32
    %c0_i32_2 = arith.constant 0 : i32
    return %c0_i32, %c0_i32_0, %c0_i32_1 : i32, i32, i32
  }
  func.func @transform_8(%arg0: i32, %arg1: i32) -> (i32, i32, i32) {
    %c0_i32 = arith.constant 0 : i32
    %c0_i32_0 = arith.constant 0 : i32
    return %arg0, %arg1, %c0_i32 : i32, i32, i32
  }
}

</mosaic_0001>

<bundles_post_ra>
// kernel: tile.23
= control target key start
LH: loop header
LB: loop body
LE: loop exit
PB: predicated region body
PF: predicated region fallthrough
CT: control target
= control target key end

     0   :  { %s28_s0 = inlined_call_operand.vmem [shape: f32[4], index: 0, kind: input, shape index: {}]   ;;  %s29_s1 = inlined_call_operand.vmem [shape: f32[16,4], index: 1, kind: output, shape index: {}]  }
   0x1   :  { %v4_v0 = vld [vmem:[%s28_s0] ss:$0 sm:$0xff] }
   0x2   :  { %5 = vst [vmem:[%s29_s1] sm:$0xff] %v4_v0 }
   0x3   :  { %8 = vst [vmem:[%s29_s1 + $0x8] sm:$0xff] %v4_v0 }

// kernel: tile.24
= control target key start
LH: loop header
LB: loop body
LE: loop exit
PB: predicated region body
PF: predicated region fallthrough
CT: control target
= control target key end

     0   :  { %s131_s10 = smov 60   ;;  %s132_s11 = smov 52   ;;  %vm3_vm0 = vcmask 31744   ;;  %vm9_vm1 = vcmask 523744   ;;  %vm15_vm2 = vcmask 490944   ;;  %vm21_vm3 = vcmask 458144   ;;  %s207_s0 = inlined_call_operand.vmem [shape: f32[16,4], index: 0, kind: input, shape index: {}]   ;;  %s208_s1 = inlined_call_operand.vmem [shape: f32[1,1,64], index: 1, kind: output, shape index: {}]  }
   0x1   :  { %v101_v0 = vld [vmem:[%s207_s0 + $0xf] sm:$0x1]   ;;  %v103_v1 = vld [vmem:[%s207_s0 + $0xd] sm:$0x1]   ;;  %v105_v2 = vld [vmem:[%s207_s0 + $0xb] sm:$0x1]  }
   0x2   :  { %7 = vrot.lane.b32.xlu0 %v101_v0, %s131_s10  ;;  %19 = vrot.lane.b32.xlu1 %v103_v1, %s132_s11  ;;  %s133_s14 = smov 44   ;;  %v102_v3 = vld [vmem:[%s207_s0 + $0xe] sm:$0x1]   ;;  %v104_v4 = vld [vmem:[%s207_s0 + $0xc] sm:$0x1]   ;;  %s134_s19 = smov 56  }
   0x3   :  { %31 = vrot.lane.b32.xlu2 %v105_v2, %s133_s14  ;;  %s135_s20 = smov 48   ;;  %v106_v5 = vld [vmem:[%s207_s0 + $0xa] sm:$0x1]   ;;  %s136_s23 = smov 40   ;;  %v107_v6 = vld [vmem:[%s207_s0 + $0x9] sm:$0x1]  }
   0x4   :  { %v108_v7 = vld [vmem:[%s207_s0 + $0x8] sm:$0x1]   ;;  %s137_s28 = smov 36   ;;  %s138_s29 = smov 32   ;;  %v109_v8 = vld [vmem:[%s207_s0 + $0x7] sm:$0x1]  }
   0x5   :  { %s139_s3 = smov 28   ;;  %v110_v9 = vld [vmem:[%s207_s0 + $0x6] sm:$0x1]   ;;  %v111_v10 = vld [vmem:[%s207_s0 + $0x5] sm:$0x1]   ;;  %s140_s8 = smov 24  }
   0x6   :  { %s141_s9 = smov 20   ;;  %v112_v11 = vld [vmem:[%s207_s0 + $0x4] sm:$0x1]   ;;  %s142_s12 = smov 16   ;;  %v113_v12 = vld [vmem:[%s207_s0 + $0x3] sm:$0x1]  }
   0x7   :  { %v114_v13 = vld [vmem:[%s207_s0 + $0x2] sm:$0x1]   ;;  %s143_s17 = smov 12   ;;  %s144_s18 = smov 8   ;;  %v115_v14 = vld [vmem:[%s207_s0 + $0x1] sm:$0x1]  }
   0x8   :  { %s145_s21 = smov 4   ;;  %v2_v15 = vld [vmem:[%s207_s0] sm:$0x1]   ;;  %vm27_vm4 = vcmask 425344   ;;  %vm33_vm5 = vcmask 392544   ;;  %vm39_vm6 = vcmask 359744  }
   0x9   :  { %4 = vst.msk [vmem:[#allocation0] sm:$0x1] %vm3_vm0, %v2_v15   ;;  %vm45_vm7 = vcmask 326944   ;;  %vm51_vm8 = vcmask 294144   ;;  %vm57_vm9 = vcmask 261344   ;;  %vm63_vm10 = vcmask 228544  }
   0xa   :  { %13 = vrot.lane.b32.xlu0 %v102_v3, %s134_s19  ;;  %25 = vrot.lane.b32.xlu1 %v104_v4, %s135_s20  ;;  %vm69_vm11 = vcmask 195744   ;;  %vm75_vm12 = vcmask 162944   ;;  %vm81_vm13 = vcmask 130144   ;;  %vm87_vm14 = vcmask 97344  }
   0xb   :  { %37 = vrot.lane.b32.xlu2 %v106_v5, %s136_s23  ;;  %vm93_vm15 = vcmask 64544  }
  0x12   :  { %43 = vrot.lane.b32.xlu0 %v107_v6, %s137_s28  ;;  %49 = vrot.lane.b32.xlu1 %v108_v7, %s138_s29 }
  0x13   :  { %55 = vrot.lane.b32.xlu2 %v109_v8, %s139_s3 }
  0x1a   :  { %61 = vrot.lane.b32.xlu0 %v110_v9, %s140_s8  ;;  %67 = vrot.lane.b32.xlu1 %v111_v10, %s141_s9 }
  0x1b   :  { %73 = vrot.lane.b32.xlu2 %v112_v11, %s142_s12 }
  0x22   :  { %79 = vrot.lane.b32.xlu0 %v113_v12, %s143_s17  ;;  %85 = vrot.lane.b32.xlu1 %v114_v13, %s144_s18 }
  0x23   :  { %91 = vrot.lane.b32.xlu2 %v115_v14, %s145_s21 }
  0x5d   :  { %v32_v16 = vpop.permute.xlu2 %31  }
  0x65   :  { %v38_v17 = vpop.permute.xlu2 %37  }
  0x6d   :  { %v56_v18 = vpop.permute.xlu2 %55  }
  0x74   :  { %v8_v19 = vpop.permute.xlu0 %7   ;;  %v20_v20 = vpop.permute.xlu1 %19  }
  0x75   :  { %10 = vst.msk [vmem:[#allocation0] sm:$0x1] %vm9_vm1, %v8_v19   ;;  %v74_v21 = vpop.permute.xlu2 %73  }
  0x7c   :  { %v14_v22 = vpop.permute.xlu0 %13   ;;  %v26_v23 = vpop.permute.xlu1 %25  }
  0x7d   :  { %16 = vst.msk [vmem:[#allocation0] sm:$0x1] %vm15_vm2, %v14_v22   ;;  %v92_v24 = vpop.permute.xlu2 %91  }
  0x7e   :  { %22 = vst.msk [vmem:[#allocation0] sm:$0x1] %vm21_vm3, %v20_v20  }
  0x7f   :  { %28 = vst.msk [vmem:[#allocation0] sm:$0x1] %vm27_vm4, %v26_v23  }
  0x80   :  { %34 = vst.msk [vmem:[#allocation0] sm:$0x1] %vm33_vm5, %v32_v16  }
  0x81   :  { %40 = vst.msk [vmem:[#allocation0] sm:$0x1] %vm39_vm6, %v38_v17  }
  0x84   :  { %v44_v25 = vpop.permute.xlu0 %43   ;;  %v50_v26 = vpop.permute.xlu1 %49  }
  0x85   :  { %46 = vst.msk [vmem:[#allocation0] sm:$0x1] %vm45_vm7, %v44_v25  }
  0x86   :  { %52 = vst.msk [vmem:[#allocation0] sm:$0x1] %vm51_vm8, %v50_v26  }
  0x87   :  { %58 = vst.msk [vmem:[#allocation0] sm:$0x1] %vm57_vm9, %v56_v18  }
  0x8c   :  { %v62_v27 = vpop.permute.xlu0 %61   ;;  %v68_v28 = vpop.permute.xlu1 %67  }
  0x8d   :  { %64 = vst.msk [vmem:[#allocation0] sm:$0x1] %vm63_vm10, %v62_v27  }
  0x8e   :  { %70 = vst.msk [vmem:[#allocation0] sm:$0x1] %vm69_vm11, %v68_v28  }
  0x8f   :  { %76 = vst.msk [vmem:[#allocation0] sm:$0x1] %vm75_vm12, %v74_v21  }
  0x94   :  { %v80_v29 = vpop.permute.xlu0 %79   ;;  %v86_v30 = vpop.permute.xlu1 %85  }
  0x95   :  { %82 = vst.msk [vmem:[#allocation0] sm:$0x1] %vm81_vm13, %v80_v29  }
  0x96   :  { %88 = vst.msk [vmem:[#allocation0] sm:$0x1] %vm87_vm14, %v86_v30  }
  0x97   :  { %94 = vst.msk [vmem:[#allocation0] sm:$0x1] %vm93_vm15, %v92_v24  }
  0x9e   :  { %v97_v31 = vld [vmem:[#allocation0] sm:$0x1] }
  0x9f   :  { %100 = vst [vmem:[%s208_s1] sm:$0x1] %v97_v31 }

// kernel: _lambda_.21
= control target key start
LH: loop header
LB: loop body
LE: loop exit
PB: predicated region body
PF: predicated region fallthrough
CT: control target
= control target key end

     0   :  { %s415_s12 = smov 0   ;;  %s417_s13 = smov 0   ;;  %s466_s0 = inlined_call_operand.vmem [shape: f32[2,16,64], index: 0, kind: input, shape index: {}]   ;;  %s467_s1 = inlined_call_operand.vmem [shape: f32[1,1,64], index: 1, kind: input, shape index: {}]   ;;  %s468_s2 = inlined_call_operand.vmem [shape: f32[1,1,64], index: 2, kind: input, shape index: {}]   ;;  %s469_s3 = inlined_call_operand.vmem [shape: f32[2,16,64], index: 3, kind: output, shape index: {}]  }
   0x1   :  { %s419_s14 = smov 0   ;;  %s421_s15 = smov 0  }
   0x2   :  { %s423_s16 = smov 0  }
   0x3 LB: > { %s22_s17 = sadd.s32 1, %s385_s14  ;;  %s25_s18 = sadd.s32 1, %s389_s15  ;;  %s393_s16 = sphi %s423_s16, %s13_s16   ;;  %s389_s15 = sphi %s421_s15, %s473_s15   ;;  %s385_s14 = sphi %s419_s14, %s472_s14   ;;  %s381_s13 = sphi %s417_s13, %s471_s13   ;;  %s377_s12 = sphi %s415_s12, %s470_s12  }
   0x4   : > { %p23_p0 = scmp.ge.s32.totalorder %s22_s17, 2  ;;  %p306_p1 = scmp.ge.s32.totalorder %s393_s16, 1 }
   0x5   : > { %p156_p2 = scmp.lt.s32.totalorder %s393_s16, 5 }
   0x6   : > { %s475_s17 = smov (%p23_p0, %s22_s17), 0  ;;  %s477_s18 = smov (!%p23_p0, %s25_s18), %s389_s15 }
   0x7   : > { %p157_p3 = pnand %p306_p1, %p156_p2  ;;  %p27_p4 = scmp.ge.s32.totalorder %s477_s18, 2 }
   0x8   : > { %p186_p5 = scmp.lt.s32.totalorder (!%p157_p3), %s381_s13, 1  ;;  %p188_p6 = scmp.lt.s32.totalorder (!%p157_p3), %s377_s12, 1 }
   0x9   : > { %s479_s18 = smov (%p27_p4, %s477_s18), 0  ;;  %160 = sbr.rel (%p157_p3) target bundleno = 27 (0x1b), region = 32 }
   0xe   : > { %s481_s13 = smov (!%p186_p5, %s381_s13), 1  ;;  %s483_s12 = smov (!%p188_p6, %s377_s12), 1  ;;  %v353_v0 = vld [vmem:[%s467_s1] ss:$0 sm:$0xff]  ;;  %vm214_vm0 = vcmask 523264  }
   0xf   : > { %s307_s19 = sshll.u32 %s481_s13, 1  ;;  %v354_v1 = vld [vmem:[%s468_s2] ss:$0 sm:$0xff] }
  0x10   : > { %s191_s20 = sadd.s32 %s307_s19, %s483_s12 }
  0x11   : > { %s308_s23 = sshll.u32 %s191_s20, 3 }
  0x12   : > { %s193_s26 = scalar_lea.vmem %s466_s0, %s308_s23  ;;  %s201_s4 = scalar_lea.vmem %s469_s3, %s308_s23 }
  0x13   : > { %v202_v2 = vld [vmem:[%s193_s26] sm:$0xff] }
  0x14   : > { %v207_v3 = vmul.f32 %v353_v0, %v202_v2 }
  0x16   : > { %v212_v4 = vadd.f32 %v354_v1, %v207_v3 }
  0x18   : > { %v213_v5 = vmax.f32 %v212_v4, 0.0 }
  0x1a   : > { %215 = vst.msk [vmem:[%s201_s4] sm:$0xff] %vm214_vm0, %v213_v5 }
  0x1b PF: > { %s13_s16 = sadd.s32 1, %s393_s16   ;;  %s470_s12 = smov %s385_s14 }
  0x1c   : > { %p10_p7 = scmp.ge.s32.totalorder %s13_s16, 6   ;;  %s471_s13 = smov %s389_s15 }
  0x1d   : > { %s472_s14 = smov %s475_s17  ;;  %s473_s15 = smov %s479_s18 }
  0x1e   :  { %12 = sbr.rel (!%p10_p7) target bundleno = 3 (0x3), region = 62 }

// kernel: _lambda_.33
= control target key start
LH: loop header
LB: loop body
LE: loop exit
PB: predicated region body
PF: predicated region fallthrough
CT: control target
= control target key end

     0   :  { %s1689_s12 = smov 0   ;;  %s1691_s13 = smov 0   ;;  %s2159_s0 = inlined_call_operand.vmem [shape: f32[2,18,18,4], index: 0, kind: input, shape index: {}]   ;;  %s2160_s1 = inlined_call_operand.vmem [shape: bf16[3,3,4,8], index: 1, kind: input, shape index: {}]   ;;  %s2161_s2 = inlined_call_operand.vmem [shape: f32[1,8], index: 2, kind: input, shape index: {}]   ;;  %s2162_s3 = inlined_call_operand.vmem [shape: f32[2,16,16,8], index: 3, kind: output, shape index: {}]  }
   0x1   :  { %s1693_s14 = smov 0   ;;  %s1695_s15 = smov 0  }
   0x2   :  { %s1697_s16 = smov 0  }
   0x3 LB: > { %s22_s17 = sadd.s32 1, %s1659_s14  ;;  %s25_s18 = sadd.s32 1, %s1663_s15  ;;  %s1667_s16 = sphi %s1697_s16, %s13_s16   ;;  %s1663_s15 = sphi %s1695_s15, %s2166_s15   ;;  %s1659_s14 = sphi %s1693_s14, %s2165_s14   ;;  %s1655_s13 = sphi %s1691_s13, %s2164_s13   ;;  %s1651_s12 = sphi %s1689_s12, %s2163_s12  }
   0x4   : > { %p23_p0 = scmp.ge.s32.totalorder %s22_s17, 2  ;;  %p1394_p1 = scmp.ge.s32.totalorder %s1667_s16, 1 }
   0x5   : > { %p151_p2 = scmp.lt.s32.totalorder %s1667_s16, 5 }
   0x6   : > { %s2168_s17 = smov (%p23_p0, %s22_s17), 0  ;;  %s2170_s18 = smov (!%p23_p0, %s25_s18), %s1663_s15 }
   0x7   : > { %p152_p3 = pnand %p1394_p1, %p151_p2  ;;  %p27_p4 = scmp.ge.s32.totalorder %s2170_s18, 2 }
   0x8   : > { %p180_p5 = scmp.lt.s32.totalorder (!%p152_p3), %s1655_s13, 1  ;;  %s1401_s27 = smul.u32 (!%p152_p3), 192, %s1651_s12 }
   0x9   : > { %s2172_s18 = smov (%p27_p4, %s2170_s18), 0  ;;  %155 = sbr.rel (%p152_p3) target bundleno = 447 (0x1bf), region = 32 }
   0xa   : > { %s1396_s23 = sshll.u32 (!%p152_p3), %s1651_s12, 3 }
   0xb   : > { %p188_p6 = scmp.lt.s32.totalorder (!%p152_p3), %s1396_s23, 15 }
   0xe   : > { %v1402_v0 = vld [vmem:[%s2160_s1 + $0x2] sm:$0x3]  ;;  %vm276_vm0 = vcmask 1041408   ;;  %v1419_v2 = vld [vmem:[%s2160_s1 + $0x4] sm:$0x3]  ;;  %s2174_s13 = smov (!%p180_p5, %s1655_s13), 1 }
   0xf   : > { %v278_v1 = vsel %vm276_vm0, %v1402_v0, 0  ;;  %v1446_v3 = vld [vmem:[%s2160_s1 + $0x6] sm:$0x3]  ;;  %v456_v4 = vsel %vm276_vm0, %v1419_v2, 0  ;;  %v224_v6 = vld [vmem:[%s2160_s1] sm:$0x3] }
  0x10   : > { %1584 = vmatpush.bf16.msra.mxu1 %v278_v1  ;;  %1585 = vmatpush.bf16.msra.mxu2 %v278_v1  ;;  %v577_v5 = vsel %vm276_vm0, %v1446_v3, 0  ;;  %v354_v7 = vsel %vm276_vm0, %v224_v6, 0  ;;  %v1471_v8 = vld [vmem:[%s2160_s1 + $0x8] sm:$0x3]  ;;  %s1587_s30 = smul.u32 432, %s2174_s13  ;;  %vm251_vm1 = vcmask 31744  }
  0x11   : > { %1586 = vmatpush.bf16.msra.mxu3 %v278_v1  ;;  %287 = vmatpush.bf16.msra.mxu0 %v278_v1  ;;  %v695_v9 = vsel %vm276_vm0, %v1471_v8, 0  ;;  %v1523_v22 = vld [vmem:[%s2160_s1 + $0xc] sm:$0x3]  ;;  %v1548_v23 = vld [vmem:[%s2160_s1 + $0xe] sm:$0x3]  ;;  %s2176_s23 = smov (!%p188_p6, %s1396_s23), 15 }
  0x12   : > { %s184_s6 = scalar_lea.vmem %s2159_s0, %s1587_s30  ;;  %v934_v24 = vsel %vm276_vm0, %v1523_v22, 0  ;;  %v1052_v25 = vsel %vm276_vm0, %v1548_v23, 0  ;;  %v1496_v26 = vld [vmem:[%s2160_s1 + $0xa] sm:$0x3]  ;;  %v1573_v27 = vld [vmem:[%s2160_s1 + $0x10] sm:$0x3] }
  0x13   : > { %s1748_s7 = scalar_lea.vmem %s184_s6, %s1401_s27  ;;  %v813_v28 = vsel %vm276_vm0, %v1496_v26, 0  ;;  %v1170_v29 = vsel %vm276_vm0, %v1573_v27, 0  ;;  %s1397_s24 = sshll.u32 %s2176_s23, 1  ;;  %vm1273_vm2 = vcmask 64512  }
  0x14   : > { %465 = vmatpush.bf16.msrb.mxu2 %v456_v4  ;;  %363 = vmatpush.bf16.msrb.mxu1 %v354_v7  ;;  %v229_v10 = vld [vmem:[%s1748_s7 + $0x31] sm:$0xff]  ;;  %v230_v11 = vld [vmem:[%s1748_s7 + $0x39] sm:$0xff]  ;;  %v233_v12 = vld [vmem:[%s1748_s7 + $0x61] sm:$0xff]  ;;  %s1398_s25 = sshll.u32 %s2174_s13, 5 }
  0x15   : > { %586 = vmatpush.bf16.msrb.mxu3 %v577_v5  ;;  %704 = vmatpush.bf16.msrb.mxu0 %v695_v9  ;;  %v1753_v13 = vpack.c.bf16 %v230_v11, %v229_v10  ;;  %v234_v14 = vld [vmem:[%s1748_s7 + $0x69] sm:$0xff]  ;;  %v237_v15 = vld [vmem:[%s1748_s7 + $0x91] sm:$0xff]  ;;  %v238_v16 = vld [vmem:[%s1748_s7 + $0x99] sm:$0xff]  ;;  %s192_s12 = sadd.s32 %s1398_s25, %s1397_s24 }
  0x16   : > { %v1758_v17 = vpack.c.bf16 %v234_v14, %v233_v12  ;;  %v1760_v18 = vpack.c.bf16 %v238_v16, %v237_v15  ;;  %v225_v19 = vld [vmem:[%s1748_s7 + $0x1] sm:$0xff]  ;;  %v226_v20 = vld [vmem:[%s1748_s7 + $0x9] sm:$0xff]  ;;  %v232_v31 = vld [vmem:[%s1748_s7 + $0x51] sm:$0xff]  ;;  %s1399_s28 = sshll.u32 %s192_s12, 3 }
  0x17   : > { %1405 = vmatmul.msk.bf16.vlgmr.msra.gmra.mxu1 %vm251_vm1, %v1753_v13  ;;  %v241_v21 = vpack.c.bf16 %v226_v20, %v225_v19  ;;  %v231_v30 = vld [vmem:[%s1748_s7 + $0x49] sm:$0xff]  ;;  %v235_v32 = vld [vmem:[%s1748_s7 + $0x79] sm:$0xff]  ;;  %v236_v33 = vld [vmem:[%s1748_s7 + $0x81] sm:$0xff]  ;;  %s2081_s30 = scalar_lea.vmem %s2162_s3, %s1399_s28 }
  0x18   : > { %1407 = vmatmul.msk.bf16.vlgmr.msra.gmra.mxu2 %vm251_vm1, %v1758_v17  ;;  %1409 = vmatmul.msk.bf16.vlgmr.msra.gmra.mxu3 %vm251_vm1, %v1760_v18  ;;  %v239_v34 = vld [vmem:[%s1748_s7 + $0xa9] sm:$0xff]  ;;  %v240_v35 = vld [vmem:[%s1748_s7 + $0xb1] sm:$0xff]  ;;  %v227_v36 = vld [vmem:[%s1748_s7 + $0x19] sm:$0xff]  ;;  %v1795_v38 = vpack.c.bf16 %v232_v31, %v231_v30  ;;  %v1797_v39 = vpack.c.bf16 %v236_v33, %v235_v32 }
  0x19   : > { %1403 = vmatmul.msk.bf16.vlgmr.msra.gmra.mxu0 %vm251_vm1, %v241_v21  ;;  %943 = vmatpush.bf16.msra.mxu2 %v934_v24  ;;  %v228_v37 = vld [vmem:[%s1748_s7 + $0x21] sm:$0xff]  ;;  %v1799_v40 = vpack.c.bf16 %v240_v35, %v239_v34  ;;  %v406_v45 = vld [vmem:[%s1748_s7 + $0xa] sm:$0xff]  ;;  %v1430_v46 = vld [vmem:[%s1748_s7 + $0x18] sm:$0xff] }
  0x1a   : > { %1061 = vmatpush.bf16.msra.mxu3 %v1052_v25  ;;  %822 = vmatpush.bf16.msra.mxu1 %v813_v28  ;;  %v242_v41 = vpack.c.bf16 %v228_v37, %v227_v36  ;;  %v200_v42 = vld [vmem:[%s1748_s7] sm:$0xff]  ;;  %v201_v43 = vld [vmem:[%s1748_s7 + $0x8] sm:$0xff]  ;;  %v1432_v53 = vld [vmem:[%s1748_s7 + $0x30] sm:$0xff] }
  0x1b   : > { %1179 = vmatpush.bf16.msra.mxu0 %v1170_v29  ;;  %v405_v44 = vld [vmem:[%s1748_s7 + $0x2] sm:$0xff]  ;;  %v216_v48 = vpack.c.bf16 %v201_v43, %v200_v42  ;;  %v407_v51 = vld [vmem:[%s1748_s7 + $0x1a] sm:$0xff]  ;;  %v409_v57 = vld [vmem:[%s1748_s7 + $0x32] sm:$0xff] }
  0x1c   : > { %v1431_v47 = vld [vmem:[%s1748_s7 + $0x20] sm:$0xff]  ;;  %v421_v49 = vpack.c.bf16 %v406_v45, %v405_v44  ;;  %v1433_v54 = vld [vmem:[%s1748_s7 + $0x38] sm:$0xff]  ;;  %v1434_v59 = vld [vmem:[%s1748_s7 + $0x48] sm:$0xff] }
  0x1d   : > { %v542_v50 = vpack.c.bf16 %v1431_v47, %v1430_v46  ;;  %v408_v52 = vld [vmem:[%s1748_s7 + $0x22] sm:$0xff]  ;;  %v1824_v56 = vpack.c.bf16 %v1433_v54, %v1432_v53  ;;  %v410_v58 = vld [vmem:[%s1748_s7 + $0x3a] sm:$0xff]  ;;  %v1435_v60 = vld [vmem:[%s1748_s7 + $0x50] sm:$0xff] }
  0x1e   : > { %v1822_v55 = vpack.c.bf16 %v408_v52, %v407_v51  ;;  %v1837_v61 = vpack.c.bf16 %v410_v58, %v409_v57  ;;  %v1839_v62 = vpack.c.bf16 %v1435_v60, %v1434_v59  ;;  %v411_v63 = vld [vmem:[%s1748_s7 + $0x4a] sm:$0xff]  ;;  %v412_v0 = vld [vmem:[%s1748_s7 + $0x52] sm:$0xff]  ;;  %v1436_v1 = vld [vmem:[%s1748_s7 + $0x60] sm:$0xff] }
  0x1f   : > { %v1437_v2 = vld [vmem:[%s1748_s7 + $0x68] sm:$0xff]  ;;  %v1853_v3 = vpack.c.bf16 %v412_v0, %v411_v63  ;;  %v1438_v7 = vld [vmem:[%s1748_s7 + $0x78] sm:$0xff]  ;;  %v1439_v8 = vld [vmem:[%s1748_s7 + $0x80] sm:$0xff] }
  0x20   : > { %v1855_v4 = vpack.c.bf16 %v1437_v2, %v1436_v1  ;;  %v413_v5 = vld [vmem:[%s1748_s7 + $0x62] sm:$0xff]  ;;  %v414_v6 = vld [vmem:[%s1748_s7 + $0x6a] sm:$0xff]  ;;  %v1871_v10 = vpack.c.bf16 %v1439_v8, %v1438_v7  ;;  %v415_v11 = vld [vmem:[%s1748_s7 + $0x7a] sm:$0xff] }
  0x21   : > { %v1869_v9 = vpack.c.bf16 %v414_v6, %v413_v5  ;;  %v416_v12 = vld [vmem:[%s1748_s7 + $0x82] sm:$0xff]  ;;  %v1440_v14 = vld [vmem:[%s1748_s7 + $0x90] sm:$0xff]  ;;  %v1441_v15 = vld [vmem:[%s1748_s7 + $0x98] sm:$0xff] }
  0x22   : > { %v1885_v16 = vpack.c.bf16 %v416_v12, %v415_v11  ;;  %v1887_v19 = vpack.c.bf16 %v1441_v15, %v1440_v14  ;;  %v417_v20 = vld [vmem:[%s1748_s7 + $0x92] sm:$0xff]  ;;  %v418_v21 = vld [vmem:[%s1748_s7 + $0x9a] sm:$0xff]  ;;  %v1442_v22 = vld [vmem:[%s1748_s7 + $0xa8] sm:$0xff] }
  0x23   : > { %v1443_v23 = vld [vmem:[%s1748_s7 + $0xb0] sm:$0xff]  ;;  %v1903_v25 = vpack.c.bf16 %v418_v21, %v417_v20  ;;  %v1444_v34 = vld [vmem:[%s1748_s7 + $0xc0] sm:$0xff]  ;;  %v1445_v35 = vld [vmem:[%s1748_s7 + $0xc8] sm:$0xff] }
  0x24   : > { %v1905_v26 = vpack.c.bf16 %v1443_v23, %v1442_v22  ;;  %v419_v32 = vld [vmem:[%s1748_s7 + $0xaa] sm:$0xff]  ;;  %v420_v33 = vld [vmem:[%s1748_s7 + $0xb2] sm:$0xff]  ;;  %v1469_v36 = vld [vmem:[%s1748_s7 + $0xc1] sm:$0xff]  ;;  %v1935_v45 = vpack.c.bf16 %v1445_v35, %v1444_v34 }
  0x25   : > { %v1470_v37 = vld [vmem:[%s1748_s7 + $0xc9] sm:$0xff]  ;;  %v1933_v44 = vpack.c.bf16 %v420_v33, %v419_v32 }
  0x26   : > { %v1937_v46 = vpack.c.bf16 %v1470_v37, %v1469_v36 }
  0x27   : > { %1406 = vmatmul.msk.bf16.gmra.mxu1 %vm251_vm1, %v1795_v38 }
  0x28   : > { %1408 = vmatmul.msk.bf16.gmra.mxu2 %vm251_vm1, %v1797_v39  ;;  %1410 = vmatmul.msk.bf16.gmra.mxu3 %vm251_vm1, %v1799_v40 }
  0x29   : > { %1404 = vmatmul.msk.bf16.gmra.mxu0 %vm251_vm1, %v242_v41 }
  0x37   : > { %1411 = vmatmul.msk.bf16.vlgmr.msrb.gmra.mxu1 %vm251_vm1, %v216_v48 }
  0x38   : > { %1420 = vmatmul.msk.bf16.vlgmr.msrb.gmra.mxu2 %vm251_vm1, %v421_v49  ;;  %1447 = vmatmul.msk.bf16.vlgmr.msrb.gmra.mxu3 %vm251_vm1, %v542_v50 }
  0x39   : > { %1472 = vmatmul.msk.bf16.vlgmr.msrb.gmra.mxu0 %vm251_vm1, %v242_v41 }
  0x47   : > { %1412 = vmatmul.msk.bf16.gmra.mxu1 %vm251_vm1, %v542_v50 }
  0x48   : > { %1421 = vmatmul.msk.bf16.gmra.mxu2 %vm251_vm1, %v1822_v55  ;;  %1448 = vmatmul.msk.bf16.gmra.mxu3 %vm251_vm1, %v1824_v56 }
  0x49   : > { %1473 = vmatmul.msk.bf16.gmra.mxu0 %vm251_vm1, %v1753_v13 }
  0x57   : > { %1413 = vmatmul.msk.bf16.gmra.mxu1 %vm251_vm1, %v1824_v56 }
  0x58   : > { %1422 = vmatmul.msk.bf16.gmra.mxu2 %vm251_vm1, %v1837_v61  ;;  %1449 = vmatmul.msk.bf16.gmra.mxu3 %vm251_vm1, %v1839_v62 }
  0x59   : > { %1474 = vmatmul.msk.bf16.gmra.mxu0 %vm251_vm1, %v1795_v38 }
  0x67   : > { %1414 = vmatmul.msk.bf16.gmra.mxu1 %vm251_vm1, %v1839_v62 }
  0x68   : > { %1423 = vmatmul.msk.bf16.gmra.mxu2 %vm251_vm1, %v1853_v3  ;;  %1450 = vmatmul.msk.bf16.gmra.mxu3 %vm251_vm1, %v1855_v4 }
  0x69   : > { %1475 = vmatmul.msk.bf16.gmra.mxu0 %vm251_vm1, %v1758_v17 }
  0x77   : > { %1415 = vmatmul.msk.bf16.gmra.mxu1 %vm251_vm1, %v1855_v4 }
  0x78   : > { %1424 = vmatmul.msk.bf16.gmra.mxu2 %vm251_vm1, %v1869_v9  ;;  %1451 = vmatmul.msk.bf16.gmra.mxu3 %vm251_vm1, %v1871_v10 }
  0x79   : > { %1476 = vmatmul.msk.bf16.gmra.mxu0 %vm251_vm1, %v1797_v39 }
  0x87   : > { %1416 = vmatmul.msk.bf16.gmra.mxu1 %vm251_vm1, %v1871_v10 }
  0x88   : > { %1425 = vmatmul.msk.bf16.gmra.mxu2 %vm251_vm1, %v1885_v16  ;;  %1452 = vmatmul.msk.bf16.gmra.mxu3 %vm251_vm1, %v1887_v19 }
  0x89   : > { %1477 = vmatmul.msk.bf16.gmra.mxu0 %vm251_vm1, %v1760_v18 }
  0x94   : > { %v1901_v24 = vpop.f32.mrf.mxu1 }
  0x96   : > { %v289_v27 = vpop.f32.mrf.mxu0 }
  0x97   : > { %1417 = vmatmul.msk.bf16.gmra.mxu1 %vm251_vm1, %v1887_v19 }
  0x98   : > { %1426 = vmatmul.msk.bf16.gmra.mxu2 %vm251_vm1, %v1903_v25  ;;  %1453 = vmatmul.msk.bf16.gmra.mxu3 %vm251_vm1, %v1905_v26 }
  0x99   : > { %1478 = vmatmul.msk.bf16.gmra.mxu0 %vm251_vm1, %v1799_v40 }
  0x9b   : > { %v1915_v28 = vpop.f32.mrf.mxu2  ;;  %v1917_v29 = vpop.f32.mrf.mxu3 }
  0x9c   : > { %v1919_v30 = vpop.f32.mrf.mxu1 }
  0x9e   : > { %v291_v31 = vpop.f32.mrf.mxu0 }
  0xa3   : > { %v1927_v41 = vpop.f32.mrf.mxu2  ;;  %v1929_v42 = vpop.f32.mrf.mxu3 }
  0xa4   : > { %v1931_v43 = vpop.f32.mrf.mxu1 }
  0xa6   : > { %v294_v47 = vpop.f32.mrf.mxu0 }
  0xa7   : > { %1418 = vmatmul.msk.bf16.gmra.mxu1 %vm251_vm1, %v1905_v26 }
  0xa8   : > { %1427 = vmatmul.msk.bf16.gmra.mxu2 %vm251_vm1, %v1933_v44  ;;  %1454 = vmatmul.msk.bf16.gmra.mxu3 %vm251_vm1, %v1935_v45 }
  0xa9   : > { %1479 = vmatmul.msk.bf16.gmra.mxu0 %vm251_vm1, %v1937_v46 }
  0xab   : > { %v1947_v48 = vpop.f32.mrf.mxu2  ;;  %v1949_v49 = vpop.f32.mrf.mxu3 }
  0xac   : > { %v1951_v50 = vpop.f32.mrf.mxu1 }
  0xae   : > { %v296_v51 = vpop.f32.mrf.mxu0 }
  0xb3   : > { %v1953_v52 = vpop.f32.mrf.mxu2  ;;  %v1955_v53 = vpop.f32.mrf.mxu3 }
  0xb4   : > { %v365_v54 = vpop.f32.mrf.mxu1 }
  0xb5   : > { %v366_v57 = vadd.f32 %v365_v54, %v289_v27 }
  0xb6   : > { %v706_v58 = vpop.f32.mrf.mxu0 }
  0xb7   : > { %1497 = vmatmul.msk.bf16.vlgmr.msra.gmra.mxu1 %vm251_vm1, %v1822_v55 }
  0xb8   : > { %1524 = vmatmul.msk.bf16.vlgmr.msra.gmra.mxu2 %vm251_vm1, %v1824_v56  ;;  %1549 = vmatmul.msk.bf16.vlgmr.msra.gmra.mxu3 %vm251_vm1, %v1753_v13 }
  0xb9   : > { %1574 = vmatmul.msk.bf16.vlgmr.msra.gmra.mxu0 %vm251_vm1, %v1837_v61 }
  0xbb   : > { %v467_v59 = vpop.f32.mrf.mxu2  ;;  %v588_v60 = vpop.f32.mrf.mxu3 }
  0xbc   : > { %v507_v63 = vadd.f32 %v467_v59, %v366_v57  ;;  %v367_v0 = vpop.f32.mrf.mxu1 }
  0xbd   : > { %v368_v1 = vadd.f32 %v367_v0, %v291_v31 }
  0xbe   : > { %v628_v2 = vadd.f32 %v588_v60, %v507_v63  ;;  %v708_v5 = vpop.f32.mrf.mxu0 }
  0xc0   : > { %v1965_v6 = vadd.f32 %v706_v58, %v628_v2 }
  0xc3   : > { %v469_v7 = vpop.f32.mrf.mxu2  ;;  %v590_v55 = vpop.f32.mrf.mxu3 }
  0xc4   : > { %v508_v8 = vadd.f32 %v469_v7, %v368_v1  ;;  %v370_v11 = vpop.f32.mrf.mxu1 }
  0xc5   : > { %v371_v56 = vadd.f32 %v370_v11, %v294_v47 }
  0xc6   : > { %v629_v12 = vadd.f32 %v590_v55, %v508_v8  ;;  %v711_v14 = vpop.f32.mrf.mxu0 }
  0xc7   : > { %1498 = vmatmul.msk.bf16.gmra.mxu1 %vm251_vm1, %v1837_v61 }
  0xc8   : > { %1525 = vmatmul.msk.bf16.gmra.mxu2 %vm251_vm1, %v1839_v62  ;;  %1550 = vmatmul.msk.bf16.gmra.mxu3 %vm251_vm1, %v1795_v38  ;;  %v1973_v13 = vadd.f32 %v708_v5, %v629_v12 }
  0xc9   : > { %1575 = vmatmul.msk.bf16.gmra.mxu0 %vm251_vm1, %v1853_v3 }
  0xcb   : > { %v472_v15 = vpop.f32.mrf.mxu2  ;;  %v593_v20 = vpop.f32.mrf.mxu3 }
  0xcc   : > { %v509_v21 = vadd.f32 %v472_v15, %v371_v56  ;;  %v372_v22 = vpop.f32.mrf.mxu1 }
  0xcd   : > { %v373_v23 = vadd.f32 %v372_v22, %v296_v51 }
  0xce   : > { %v630_v27 = vadd.f32 %v593_v20, %v509_v21  ;;  %v713_v31 = vpop.f32.mrf.mxu0 }
  0xd0   : > { %v1977_v32 = vadd.f32 %v711_v14, %v630_v27 }
  0xd3   : > { %v474_v61 = vpop.f32.mrf.mxu2  ;;  %v595_v33 = vpop.f32.mrf.mxu3 }
  0xd4   : > { %v510_v62 = vadd.f32 %v474_v61, %v373_v23  ;;  %v375_v34 = vpop.f32.mrf.mxu1 }
  0xd5   : > { %v376_v38 = vadd.f32 %v375_v34, %v1901_v24 }
  0xd6   : > { %v631_v35 = vadd.f32 %v595_v33, %v510_v62  ;;  %v716_v36 = vpop.f32.mrf.mxu0 }
  0xd7   : > { %1499 = vmatmul.msk.bf16.gmra.mxu1 %vm251_vm1, %v1853_v3 }
  0xd8   : > { %1526 = vmatmul.msk.bf16.gmra.mxu2 %vm251_vm1, %v1855_v4  ;;  %1551 = vmatmul.msk.bf16.gmra.mxu3 %vm251_vm1, %v1758_v17  ;;  %v1986_v37 = vadd.f32 %v713_v31, %v631_v35 }
  0xd9   : > { %1576 = vmatmul.msk.bf16.gmra.mxu0 %vm251_vm1, %v1869_v9 }
  0xdb   : > { %v477_v47 = vpop.f32.mrf.mxu2  ;;  %v598_v51 = vpop.f32.mrf.mxu3 }
  0xdc   : > { %v511_v54 = vadd.f32 %v477_v47, %v376_v38  ;;  %v377_v24 = vpop.f32.mrf.mxu1 }
  0xdd   : > { %v378_v57 = vadd.f32 %v377_v24, %v1919_v30 }
  0xde   : > { %v632_v58 = vadd.f32 %v598_v51, %v511_v54  ;;  %v718_v59 = vpop.f32.mrf.mxu0 }
  0xe0   : > { %v1991_v3 = vadd.f32 %v716_v36, %v632_v58 }
  0xe3   : > { %v479_v60 = vpop.f32.mrf.mxu2  ;;  %v600_v4 = vpop.f32.mrf.mxu3 }
  0xe4   : > { %v512_v63 = vadd.f32 %v479_v60, %v378_v57  ;;  %v380_v0 = vpop.f32.mrf.mxu1  ;;  %v1570_v60 = vld [vmem:[%s1748_s7 + $0xca] sm:$0xff] }
  0xe5   : > { %v381_v17 = vadd.f32 %v380_v0, %v1931_v43 }
  0xe6   : > { %v633_v1 = vadd.f32 %v600_v4, %v512_v63  ;;  %v721_v2 = vpop.f32.mrf.mxu0 }
  0xe7   : > { %1500 = vmatmul.msk.bf16.gmra.mxu1 %vm251_vm1, %v1869_v9 }
  0xe8   : > { %1527 = vmatmul.msk.bf16.gmra.mxu2 %vm251_vm1, %v1871_v10  ;;  %1552 = vmatmul.msk.bf16.gmra.mxu3 %vm251_vm1, %v1797_v39  ;;  %v2000_v30 = vadd.f32 %v718_v59, %v633_v1  ;;  %v1569_v59 = vld [vmem:[%s1748_s7 + $0xc2] sm:$0xff] }
  0xe9   : > { %1577 = vmatmul.msk.bf16.gmra.mxu0 %vm251_vm1, %v1885_v16 }
  0xeb   : > { %v482_v5 = vpop.f32.mrf.mxu2  ;;  %v603_v7 = vpop.f32.mrf.mxu3 }
  0xec   : > { %v513_v55 = vadd.f32 %v482_v5, %v381_v17  ;;  %v382_v43 = vpop.f32.mrf.mxu1  ;;  %v1141_v17 = vpack.c.bf16 %v1570_v60, %v1569_v59 }
  0xed   : > { %v383_v8 = vadd.f32 %v382_v43, %v1951_v50 }
  0xee   : > { %v634_v11 = vadd.f32 %v603_v7, %v513_v55  ;;  %v723_v56 = vpop.f32.mrf.mxu0 }
  0xf0   : > { %v2005_v9 = vadd.f32 %v721_v2, %v634_v11  ;;  %v1521_v11 = vld [vmem:[%s1748_s7 + $0xd8] sm:$0xff] }
  0xf3   : > { %v484_v12 = vpop.f32.mrf.mxu2  ;;  %v605_v10 = vpop.f32.mrf.mxu3 }
  0xf4   : > { %v514_v14 = vadd.f32 %v484_v12, %v383_v8  ;;  %v385_v15 = vpop.f32.mrf.mxu1  ;;  %v1546_v12 = vld [vmem:[%s1748_s7 + $0xd9] sm:$0xff] }
  0xf5   : > { %v386_v21 = vadd.f32 %v385_v15, %v1915_v28  ;;  %v1572_v15 = vld [vmem:[%s1748_s7 + $0xe2] sm:$0xff] }
  0xf6   : > { %v635_v39 = vadd.f32 %v605_v10, %v514_v14  ;;  %v726_v20 = vpop.f32.mrf.mxu0  ;;  %v1571_v14 = vld [vmem:[%s1748_s7 + $0xda] sm:$0xff] }
  0xf7   : > { %1501 = vmatmul.msk.bf16.gmra.mxu1 %vm251_vm1, %v1885_v16 }
  0xf8   : > { %1528 = vmatmul.msk.bf16.gmra.mxu2 %vm251_vm1, %v1887_v19  ;;  %1553 = vmatmul.msk.bf16.gmra.mxu3 %vm251_vm1, %v1760_v18  ;;  %v2013_v50 = vadd.f32 %v723_v56, %v635_v39 }
  0xf9   : > { %1578 = vmatmul.msk.bf16.gmra.mxu0 %vm251_vm1, %v1903_v25 }
  0xfb   : > { %v487_v22 = vpop.f32.mrf.mxu2  ;;  %v608_v23 = vpop.f32.mrf.mxu3 }
  0xfc   : > { %v515_v27 = vadd.f32 %v487_v22, %v386_v21  ;;  %v387_v31 = vpop.f32.mrf.mxu1 }
  0xfd   : > { %v388_v19 = vadd.f32 %v387_v31, %v1927_v41 }
  0xfe   : > { %v636_v61 = vadd.f32 %v608_v23, %v515_v27  ;;  %v728_v33 = vpop.f32.mrf.mxu0  ;;  %v1142_v27 = vpack.c.bf16 %v1572_v15, %v1571_v14 }
 0x100   : > { %v2018_v16 = vadd.f32 %v726_v20, %v636_v61 }
 0x103   : > { %v489_v62 = vpop.f32.mrf.mxu2  ;;  %v610_v34 = vpop.f32.mrf.mxu3 }
 0x104   : > { %v516_v18 = vadd.f32 %v489_v62, %v388_v19  ;;  %v390_v38 = vpop.f32.mrf.mxu1 }
 0x105   : > { %v391_v41 = vadd.f32 %v390_v38, %v1947_v48 }
 0x106   : > { %v637_v35 = vadd.f32 %v610_v34, %v516_v18  ;;  %v731_v36 = vpop.f32.mrf.mxu0 }
 0x107   : > { %1502 = vmatmul.msk.bf16.gmra.mxu1 %vm251_vm1, %v1903_v25 }
 0x108   : > { %1529 = vmatmul.msk.bf16.gmra.mxu2 %vm251_vm1, %v1905_v26  ;;  %1554 = vmatmul.msk.bf16.gmra.mxu3 %vm251_vm1, %v1799_v40  ;;  %v2027_v28 = vadd.f32 %v728_v33, %v637_v35 }
 0x109   : > { %1579 = vmatmul.msk.bf16.gmra.mxu0 %vm251_vm1, %v1933_v44 }
 0x10b   : > { %v492_v47 = vpop.f32.mrf.mxu2  ;;  %v613_v51 = vpop.f32.mrf.mxu3 }
 0x10c   : > { %v517_v54 = vadd.f32 %v492_v47, %v391_v41  ;;  %v392_v24 = vpop.f32.mrf.mxu1 }
 0x10d   : > { %v393_v26 = vadd.f32 %v392_v24, %v1953_v52 }
 0x10e   : > { %v638_v57 = vadd.f32 %v613_v51, %v517_v54  ;;  %v733_v58 = vpop.f32.mrf.mxu0 }
 0x110   : > { %v2032_v25 = vadd.f32 %v731_v36, %v638_v57 }
 0x113   : > { %v494_v40 = vpop.f32.mrf.mxu2  ;;  %v615_v4 = vpop.f32.mrf.mxu3 }
 0x114   : > { %v518_v63 = vadd.f32 %v494_v40, %v393_v26  ;;  %v395_v0 = vpop.f32.mrf.mxu1 }
 0x115   : > { %v396_v2 = vadd.f32 %v395_v0, %v1917_v29 }
 0x116   : > { %v639_v1 = vadd.f32 %v615_v4, %v518_v63  ;;  %v736_v48 = vpop.f32.mrf.mxu0  ;;  %v2074_v63 = vld [vmem:[%s2161_s2] ss:$0 sm:$0xff] }
 0x117   : > { %1503 = vmatmul.msk.bf16.gmra.mxu1 %vm251_vm1, %v1933_v44 }
 0x118   : > { %1530 = vmatmul.msk.bf16.gmra.mxu2 %vm251_vm1, %v1935_v45  ;;  %1555 = vmatmul.msk.bf16.gmra.mxu3 %vm251_vm1, %v1937_v46  ;;  %v2043_v52 = vadd.f32 %v733_v58, %v639_v1  ;;  %v1522_v45 = vld [vmem:[%s1748_s7 + $0xe0] sm:$0xff] }
 0x119   : > { %1580 = vmatmul.msk.bf16.gmra.mxu0 %vm251_vm1, %v1141_v17  ;;  %v1547_v46 = vld [vmem:[%s1748_s7 + $0xe1] sm:$0xff]  ;;  %v906_v22 = vpack.c.bf16 %v1522_v45, %v1521_v11 }
 0x11a   : > { %v1024_v23 = vpack.c.bf16 %v1547_v46, %v1546_v12 }
 0x11b   : > { %v497_v5 = vpop.f32.mrf.mxu2  ;;  %v618_v7 = vpop.f32.mrf.mxu3 }
 0x11c   : > { %v519_v55 = vadd.f32 %v497_v5, %v396_v2  ;;  %v397_v43 = vpop.f32.mrf.mxu1 }
 0x11d   : > { %v398_v10 = vadd.f32 %v397_v43, %v1929_v42 }
 0x11e   : > { %v640_v44 = vadd.f32 %v618_v7, %v519_v55  ;;  %v738_v8 = vpop.f32.mrf.mxu0 }
 0x120   : > { %v2048_v56 = vadd.f32 %v736_v48, %v640_v44 }
 0x123   : > { %v499_v39 = vpop.f32.mrf.mxu2  ;;  %v620_v20 = vpop.f32.mrf.mxu3 }
 0x124   : > { %v520_v21 = vadd.f32 %v499_v39, %v398_v10  ;;  %v400_v29 = vpop.f32.mrf.mxu1 }
 0x125   : > { %v401_v42 = vadd.f32 %v400_v29, %v1949_v49 }
 0x126   : > { %v641_v31 = vadd.f32 %v620_v20, %v520_v21  ;;  %v741_v61 = vpop.f32.mrf.mxu0 }
 0x127   : > { %1504 = vmatmul.msk.bf16.gmra.mxu1 %vm251_vm1, %v1141_v17 }
 0x128   : > { %1531 = vmatmul.msk.bf16.gmra.mxu2 %vm251_vm1, %v906_v22  ;;  %1556 = vmatmul.msk.bf16.gmra.mxu3 %vm251_vm1, %v1024_v23  ;;  %v2059_v33 = vadd.f32 %v738_v8, %v641_v31 }
 0x129   : > { %1581 = vmatmul.msk.bf16.gmra.mxu0 %vm251_vm1, %v1142_v27 }
 0x12b   : > { %v502_v19 = vpop.f32.mrf.mxu2  ;;  %v623_v62 = vpop.f32.mrf.mxu3 }
 0x12c   : > { %v521_v34 = vadd.f32 %v502_v19, %v401_v42  ;;  %v402_v18 = vpop.f32.mrf.mxu1 }
 0x12d   : > { %v403_v41 = vadd.f32 %v402_v18, %v1955_v53 }
 0x12e   : > { %v642_v38 = vadd.f32 %v623_v62, %v521_v34  ;;  %v743_v35 = vpop.f32.mrf.mxu0 }
 0x130   : > { %v2064_v36 = vadd.f32 %v741_v61, %v642_v38 }
 0x133   : > { %v504_v47 = vpop.f32.mrf.mxu2  ;;  %v625_v51 = vpop.f32.mrf.mxu3 }
 0x134   : > { %v522_v54 = vadd.f32 %v504_v47, %v403_v41  ;;  %v824_v24 = vpop.f32.mrf.mxu1 }
 0x135   : > { %v864_v26 = vadd.f32 %v824_v24, %v1965_v6 }
 0x136   : > { %v643_v57 = vadd.f32 %v625_v51, %v522_v54  ;;  %v1181_v58 = vpop.f32.mrf.mxu0 }
 0x138   : > { %v2067_v49 = vadd.f32 %v743_v35, %v643_v57 }
 0x13b   : > { %v945_v59 = vpop.f32.mrf.mxu2  ;;  %v1063_v60 = vpop.f32.mrf.mxu3 }
 0x13c   : > { %v985_v40 = vadd.f32 %v945_v59, %v864_v26  ;;  %v826_v4 = vpop.f32.mrf.mxu1 }
 0x13d   : > { %v865_v6 = vadd.f32 %v826_v4, %v1973_v13 }
 0x13e   : > { %v1103_v53 = vadd.f32 %v1063_v60, %v985_v40  ;;  %v1183_v0 = vpop.f32.mrf.mxu0 }
 0x140   : > { %v1221_v17 = vadd.f32 %v1181_v58, %v1103_v53 }
 0x142   : > { %v1241_v1 = vadd.f32 %v2074_v63, %v1221_v17 }
 0x143   : > { %v947_v48 = vpop.f32.mrf.mxu2  ;;  %v1065_v2 = vpop.f32.mrf.mxu3 }
 0x144   : > { %v1257_v5 = vmax.f32 %v1241_v1, 0.0  ;;  %v986_v7 = vadd.f32 %v947_v48, %v865_v6  ;;  %v829_v55 = vpop.f32.mrf.mxu1 }
 0x145   : > { %v866_v11 = vadd.f32 %v829_v55, %v1977_v32 }
 0x146   : > { %1274 = vst.msk [vmem:[%s2081_s30] sm:$0xff] %vm1273_vm2, %v1257_v5  ;;  %v1104_v43 = vadd.f32 %v1065_v2, %v986_v7  ;;  %v1186_v44 = vpop.f32.mrf.mxu0 }
 0x148   : > { %v1222_v8 = vadd.f32 %v1183_v0, %v1104_v43 }
 0x14a   : > { %v1242_v13 = vadd.f32 %v2074_v63, %v1222_v8 }
 0x14b   : > { %v950_v45 = vpop.f32.mrf.mxu2  ;;  %v1068_v12 = vpop.f32.mrf.mxu3 }
 0x14c   : > { %v1258_v46 = vmax.f32 %v1242_v13, 0.0  ;;  %v987_v10 = vadd.f32 %v950_v45, %v866_v11  ;;  %v831_v14 = vpop.f32.mrf.mxu1 }
 0x14d   : > { %v867_v29 = vadd.f32 %v831_v14, %v1986_v37 }
 0x14e   : > { %1275 = vst.msk [vmem:[%s2081_s30 + $0x8] sm:$0xff] %vm1273_vm2, %v1258_v46  ;;  %v1105_v15 = vadd.f32 %v1068_v12, %v987_v10  ;;  %v1188_v39 = vpop.f32.mrf.mxu0 }
 0x150   : > { %v1223_v20 = vadd.f32 %v1186_v44, %v1105_v15 }
 0x152   : > { %v1243_v21 = vadd.f32 %v2074_v63, %v1223_v20 }
 0x153   : > { %v952_v22 = vpop.f32.mrf.mxu2  ;;  %v1070_v23 = vpop.f32.mrf.mxu3 }
 0x154   : > { %v1259_v27 = vmax.f32 %v1243_v21, 0.0  ;;  %v988_v32 = vadd.f32 %v952_v22, %v867_v29  ;;  %v834_v31 = vpop.f32.mrf.mxu1 }
 0x155   : > { %v868_v34 = vadd.f32 %v834_v31, %v1991_v3 }
 0x156   : > { %1276 = vst.msk [vmem:[%s2081_s30 + $0x10] sm:$0xff] %vm1273_vm2, %v1259_v27  ;;  %v1106_v61 = vadd.f32 %v1070_v23, %v988_v32  ;;  %v1191_v42 = vpop.f32.mrf.mxu0 }
 0x158   : > { %v1224_v19 = vadd.f32 %v1188_v39, %v1106_v61 }
 0x15a   : > { %v1244_v62 = vadd.f32 %v2074_v63, %v1224_v19 }
 0x15b   : > { %v955_v18 = vpop.f32.mrf.mxu2  ;;  %v1073_v38 = vpop.f32.mrf.mxu3 }
 0x15c   : > { %v1260_v35 = vmax.f32 %v1244_v62, 0.0  ;;  %v989_v37 = vadd.f32 %v955_v18, %v868_v34  ;;  %v836_v41 = vpop.f32.mrf.mxu1 }
 0x15d   : > { %v869_v57 = vadd.f32 %v836_v41, %v2000_v30 }
 0x15e   : > { %1277 = vst.msk [vmem:[%s2081_s30 + $0x18] sm:$0xff] %vm1273_vm2, %v1260_v35  ;;  %v1107_v47 = vadd.f32 %v1073_v38, %v989_v37  ;;  %v1193_v51 = vpop.f32.mrf.mxu0 }
 0x160   : > { %v1225_v54 = vadd.f32 %v1191_v42, %v1107_v47 }
 0x162   : > { %v1245_v24 = vadd.f32 %v2074_v63, %v1225_v54 }
 0x163   : > { %v957_v58 = vpop.f32.mrf.mxu2  ;;  %v1075_v26 = vpop.f32.mrf.mxu3 }
 0x164   : > { %v1261_v59 = vmax.f32 %v1245_v24, 0.0  ;;  %v990_v3 = vadd.f32 %v957_v58, %v869_v57  ;;  %v839_v60 = vpop.f32.mrf.mxu1 }
 0x165   : > { %v870_v17 = vadd.f32 %v839_v60, %v2005_v9 }
 0x166   : > { %1278 = vst.msk [vmem:[%s2081_s30 + $0x20] sm:$0xff] %vm1273_vm2, %v1261_v59  ;;  %v1108_v40 = vadd.f32 %v1075_v26, %v990_v3  ;;  %v1196_v4 = vpop.f32.mrf.mxu0 }
 0x168   : > { %v1226_v53 = vadd.f32 %v1193_v51, %v1108_v40 }
 0x16a   : > { %v1246_v0 = vadd.f32 %v2074_v63, %v1226_v53 }
 0x16b   : > { %v960_v1 = vpop.f32.mrf.mxu2  ;;  %v1078_v6 = vpop.f32.mrf.mxu3 }
 0x16c   : > { %v1262_v48 = vmax.f32 %v1246_v0, 0.0  ;;  %v991_v30 = vadd.f32 %v960_v1, %v870_v17  ;;  %v841_v2 = vpop.f32.mrf.mxu1 }
 0x16d   : > { %v871_v44 = vadd.f32 %v841_v2, %v2013_v50 }
 0x16e   : > { %1279 = vst.msk [vmem:[%s2081_s30 + $0x28] sm:$0xff] %vm1273_vm2, %v1262_v48  ;;  %v1109_v5 = vadd.f32 %v1078_v6, %v991_v30  ;;  %v1198_v7 = vpop.f32.mrf.mxu0 }
 0x170   : > { %v1227_v55 = vadd.f32 %v1196_v4, %v1109_v5 }
 0x172   : > { %v1247_v43 = vadd.f32 %v2074_v63, %v1227_v55 }
 0x173   : > { %v962_v8 = vpop.f32.mrf.mxu2  ;;  %v1080_v13 = vpop.f32.mrf.mxu3 }
 0x174   : > { %v1263_v11 = vmax.f32 %v1247_v43, 0.0  ;;  %v992_v9 = vadd.f32 %v962_v8, %v871_v44  ;;  %v844_v45 = vpop.f32.mrf.mxu1 }
 0x175   : > { %v872_v15 = vadd.f32 %v844_v45, %v2018_v16 }
 0x176   : > { %1280 = vst.msk [vmem:[%s2081_s30 + $0x30] sm:$0xff] %vm1273_vm2, %v1263_v11  ;;  %v1110_v12 = vadd.f32 %v1080_v13, %v992_v9  ;;  %v1201_v46 = vpop.f32.mrf.mxu0 }
 0x178   : > { %v1228_v10 = vadd.f32 %v1198_v7, %v1110_v12 }
 0x17a   : > { %v1248_v14 = vadd.f32 %v2074_v63, %v1228_v10 }
 0x17b   : > { %v965_v39 = vpop.f32.mrf.mxu2  ;;  %v1083_v20 = vpop.f32.mrf.mxu3 }
 0x17c   : > { %v1264_v21 = vmax.f32 %v1248_v14, 0.0  ;;  %v993_v50 = vadd.f32 %v965_v39, %v872_v15  ;;  %v846_v29 = vpop.f32.mrf.mxu1 }
 0x17d   : > { %v873_v31 = vadd.f32 %v846_v29, %v2027_v28 }
 0x17e   : > { %1281 = vst.msk [vmem:[%s2081_s30 + $0x38] sm:$0xff] %vm1273_vm2, %v1264_v21  ;;  %v1111_v22 = vadd.f32 %v1083_v20, %v993_v50  ;;  %v1203_v23 = vpop.f32.mrf.mxu0 }
 0x180   : > { %v1229_v27 = vadd.f32 %v1201_v46, %v1111_v22 }
 0x182   : > { %v1249_v32 = vadd.f32 %v2074_v63, %v1229_v27 }
 0x183   : > { %v967_v61 = vpop.f32.mrf.mxu2  ;;  %v1085_v42 = vpop.f32.mrf.mxu3 }
 0x184   : > { %v1265_v19 = vmax.f32 %v1249_v32, 0.0  ;;  %v994_v16 = vadd.f32 %v967_v61, %v873_v31  ;;  %v849_v62 = vpop.f32.mrf.mxu1 }
 0x185   : > { %v874_v37 = vadd.f32 %v849_v62, %v2032_v25 }
 0x186   : > { %1282 = vst.msk [vmem:[%s2081_s30 + $0x40] sm:$0xff] %vm1273_vm2, %v1265_v19  ;;  %v1112_v34 = vadd.f32 %v1085_v42, %v994_v16  ;;  %v1206_v18 = vpop.f32.mrf.mxu0 }
 0x188   : > { %v1230_v38 = vadd.f32 %v1203_v23, %v1112_v34 }
 0x18a   : > { %v1250_v35 = vadd.f32 %v2074_v63, %v1230_v38 }
 0x18b   : > { %v970_v41 = vpop.f32.mrf.mxu2  ;;  %v1088_v47 = vpop.f32.mrf.mxu3 }
 0x18c   : > { %v1266_v51 = vmax.f32 %v1250_v35, 0.0  ;;  %v995_v28 = vadd.f32 %v970_v41, %v874_v37  ;;  %v851_v54 = vpop.f32.mrf.mxu1 }
 0x18d   : > { %v875_v59 = vadd.f32 %v851_v54, %v2043_v52 }
 0x18e   : > { %1283 = vst.msk [vmem:[%s2081_s30 + $0x48] sm:$0xff] %vm1273_vm2, %v1266_v51  ;;  %v1113_v24 = vadd.f32 %v1088_v47, %v995_v28  ;;  %v1208_v57 = vpop.f32.mrf.mxu0 }
 0x190   : > { %v1231_v58 = vadd.f32 %v1206_v18, %v1113_v24 }
 0x192   : > { %v1251_v26 = vadd.f32 %v2074_v63, %v1231_v58 }
 0x193   : > { %v972_v3 = vpop.f32.mrf.mxu2  ;;  %v1090_v60 = vpop.f32.mrf.mxu3 }
 0x194   : > { %v1267_v40 = vmax.f32 %v1251_v26, 0.0  ;;  %v996_v25 = vadd.f32 %v972_v3, %v875_v59  ;;  %v854_v4 = vpop.f32.mrf.mxu1 }
 0x195   : > { %v876_v6 = vadd.f32 %v854_v4, %v2048_v56 }
 0x196   : > { %1284 = vst.msk [vmem:[%s2081_s30 + $0x50] sm:$0xff] %vm1273_vm2, %v1267_v40  ;;  %v1114_v53 = vadd.f32 %v1090_v60, %v996_v25  ;;  %v1211_v17 = vpop.f32.mrf.mxu0 }
 0x198   : > { %v1232_v0 = vadd.f32 %v1208_v57, %v1114_v53 }
 0x19a   : > { %v1252_v1 = vadd.f32 %v2074_v63, %v1232_v0 }
 0x19b   : > { %v975_v48 = vpop.f32.mrf.mxu2  ;;  %v1093_v30 = vpop.f32.mrf.mxu3 }
 0x19c   : > { %v1268_v2 = vmax.f32 %v1252_v1, 0.0  ;;  %v997_v52 = vadd.f32 %v975_v48, %v876_v6  ;;  %v856_v5 = vpop.f32.mrf.mxu1 }
 0x19d   : > { %v877_v44 = vadd.f32 %v856_v5, %v2059_v33 }
 0x19e   : > { %1285 = vst.msk [vmem:[%s2081_s30 + $0x58] sm:$0xff] %vm1273_vm2, %v1268_v2  ;;  %v1115_v7 = vadd.f32 %v1093_v30, %v997_v52  ;;  %v1213_v8 = vpop.f32.mrf.mxu0 }
 0x1a0   : > { %v1233_v55 = vadd.f32 %v1211_v17, %v1115_v7 }
 0x1a2   : > { %v1253_v43 = vadd.f32 %v2074_v63, %v1233_v55 }
 0x1a3   : > { %v977_v13 = vpop.f32.mrf.mxu2  ;;  %v1095_v11 = vpop.f32.mrf.mxu3 }
 0x1a4   : > { %v1269_v9 = vmax.f32 %v1253_v43, 0.0  ;;  %v998_v56 = vadd.f32 %v977_v13, %v877_v44  ;;  %v859_v45 = vpop.f32.mrf.mxu1 }
 0x1a5   : > { %v878_v14 = vadd.f32 %v859_v45, %v2064_v36 }
 0x1a6   : > { %1286 = vst.msk [vmem:[%s2081_s30 + $0x60] sm:$0xff] %vm1273_vm2, %v1269_v9  ;;  %v1116_v12 = vadd.f32 %v1095_v11, %v998_v56  ;;  %v1216_v21 = vpop.f32.mrf.mxu0 }
 0x1a8   : > { %v1234_v46 = vadd.f32 %v1213_v8, %v1116_v12 }
 0x1aa   : > { %v1254_v10 = vadd.f32 %v2074_v63, %v1234_v46 }
 0x1ab   : > { %v980_v15 = vpop.f32.mrf.mxu2  ;;  %v1098_v39 = vpop.f32.mrf.mxu3 }
 0x1ac   : > { %v1270_v20 = vmax.f32 %v1254_v10, 0.0  ;;  %v999_v33 = vadd.f32 %v980_v15, %v878_v14  ;;  %v861_v29 = vpop.f32.mrf.mxu1 }
 0x1ad   : > { %v879_v27 = vadd.f32 %v861_v29, %v2067_v49 }
 0x1ae   : > { %1287 = vst.msk [vmem:[%s2081_s30 + $0x68] sm:$0xff] %vm1273_vm2, %v1270_v20  ;;  %v1117_v50 = vadd.f32 %v1098_v39, %v999_v33  ;;  %v1218_v19 = vpop.f32.mrf.mxu0 }
 0x1b0   : > { %v1235_v22 = vadd.f32 %v1216_v21, %v1117_v50 }
 0x1b2   : > { %v1255_v23 = vadd.f32 %v2074_v63, %v1235_v22 }
 0x1b3   : > { %v982_v32 = vpop.f32.mrf.mxu2  ;;  %v1100_v36 = vpop.f32.mrf.mxu3 }
 0x1b4   : > { %v1271_v31 = vmax.f32 %v1255_v23, 0.0  ;;  %v1000_v61 = vadd.f32 %v982_v32, %v879_v27 }
 0x1b6   : > { %1288 = vst.msk [vmem:[%s2081_s30 + $0x70] sm:$0xff] %vm1273_vm2, %v1271_v31  ;;  %v1118_v42 = vadd.f32 %v1100_v36, %v1000_v61 }
 0x1b8   : > { %v1236_v16 = vadd.f32 %v1218_v19, %v1118_v42 }
 0x1ba   : > { %v1256_v62 = vadd.f32 %v2074_v63, %v1236_v16 }
 0x1bc   : > { %v1272_v34 = vmax.f32 %v1256_v62, 0.0 }
 0x1be   : > { %1289 = vst.msk [vmem:[%s2081_s30 + $0x78] sm:$0xff] %vm1273_vm2, %v1272_v34 }
 0x1bf PF: > { %s13_s16 = sadd.s32 1, %s1667_s16   ;;  %s2163_s12 = smov %s1659_s14 }
 0x1c0   : > { %p10_p7 = scmp.ge.s32.totalorder %s13_s16, 6   ;;  %s2164_s13 = smov %s1663_s15 }
 0x1c1   : > { %s2165_s14 = smov %s2168_s17  ;;  %s2166_s15 = smov %s2172_s18 }
 0x1c2   :  { %12 = sbr.rel (!%p10_p7) target bundleno = 3 (0x3), region = 73 }

// kernel: _lambda_.34
= control target key start
LH: loop header
LB: loop body
LE: loop exit
PB: predicated region body
PF: predicated region fallthrough
CT: control target
= control target key end

     0   :  { %s2025_s24 = smov 0   ;;  %s2027_s25 = smov 0   ;;  %s2583_s0 = inlined_call_operand.vmem [shape: f32[2,18,18,8], index: 0, kind: input, shape index: {}]   ;;  %s2584_s1 = inlined_call_operand.vmem [shape: f32[2,16,16,4], index: 1, kind: input, shape index: {}]   ;;  %s2585_s2 = inlined_call_operand.vmem [shape: bf16[3,3,8,8], index: 2, kind: input, shape index: {}]   ;;  %s2586_s3 = inlined_call_operand.vmem [shape: f32[1,8], index: 3, kind: input, shape index: {}]   ;;  %s2587_s4 = inlined_call_operand.vmem [shape: bf16[4,8], index: 4, kind: input, shape index: {}]   ;;  %s2588_s5 = inlined_call_operand.vmem [shape: f32[1,8], index: 5, kind: input, shape index: {}]   ;;  %s2589_s6 = inlined_call_operand.vmem [shape: f32[1,8], index: 6, kind: input, shape index: {}]   ;;  %s2590_s7 = inlined_call_operand.vmem [shape: f32[2,16,16,8], index: 7, kind: output, shape index: {}]  }
   0x1   :  { %s2029_s26 = smov 0   ;;  %s2031_s27 = smov 0  }
   0x2   :  { %s2033_s28 = smov 0  }
   0x3 LB: > { %s26_s29 = sadd.s32 1, %s1975_s26  ;;  %s29_s30 = sadd.s32 1, %s1979_s27  ;;  %s1983_s28 = sphi %s2033_s28, %s17_s28   ;;  %s1979_s27 = sphi %s2031_s27, %s2594_s27   ;;  %s1975_s26 = sphi %s2029_s26, %s2593_s26   ;;  %s1971_s25 = sphi %s2027_s25, %s2592_s25   ;;  %s1967_s24 = sphi %s2025_s24, %s2591_s24  }
   0x4   : > { %p27_p0 = scmp.ge.s32.totalorder %s26_s29, 2  ;;  %p1696_p1 = scmp.ge.s32.totalorder %s1983_s28, 1 }
   0x5   : > { %p261_p2 = scmp.lt.s32.totalorder %s1983_s28, 5 }
   0x6   : > { %s2596_s29 = smov (%p27_p0, %s26_s29), 0  ;;  %s2598_s30 = smov (!%p27_p0, %s29_s30), %s1979_s27 }
   0x7   : > { %p262_p3 = pnand %p1696_p1, %p261_p2  ;;  %p31_p4 = scmp.ge.s32.totalorder %s2598_s30, 2 }
   0x8   : > { %p303_p5 = scmp.lt.s32.totalorder (!%p262_p3), %s1971_s25, 1  ;;  %s1705_s12 = smul.u32 (!%p262_p3), 192, %s1967_s24 }
   0x9   : > { %s2600_s30 = smov (%p31_p4, %s2598_s30), 0  ;;  %265 = sbr.rel (%p262_p3) target bundleno = 487 (0x1e7), region = 48 }
   0xa   : > { %s1898_s22 = sshll.u32 (!%p262_p3), %s1967_s24, 7 }
   0xe   : > { %v1706_v0 = vld [vmem:[%s2585_s2 + $0x4] sm:$0xf]  ;;  %vm404_vm0 = vcmask 1043456   ;;  %v352_v1 = vld [vmem:[%s2585_s2] sm:$0xf]  ;;  %s2602_s25 = smov (!%p303_p5, %s1971_s25), 1 }
   0xf   : > { %v406_v2 = vsel %vm404_vm0, %v1706_v0, 0  ;;  %v482_v3 = vsel %vm404_vm0, %v352_v1, 0  ;;  %v1723_v4 = vld [vmem:[%s2585_s2 + $0x8] sm:$0xf]  ;;  %v1750_v6 = vld [vmem:[%s2585_s2 + $0xc] sm:$0xf] }
  0x10   : > { %1899 = vmatpush.bf16.msra.mxu2 %v406_v2  ;;  %1900 = vmatpush.bf16.msra.mxu3 %v482_v3  ;;  %v584_v5 = vsel %vm404_vm0, %v1723_v4, 0  ;;  %v1775_v7 = vld [vmem:[%s2585_s2 + $0x10] sm:$0xf]  ;;  %v705_v8 = vsel %vm404_vm0, %v1750_v6, 0  ;;  %v1800_v10 = vld [vmem:[%s2585_s2 + $0x14] sm:$0xf] }
  0x11   : > { %415 = vmatpush.bf16.msra.mxu0 %v406_v2  ;;  %491 = vmatpush.bf16.msra.mxu1 %v482_v3  ;;  %v823_v9 = vsel %vm404_vm0, %v1775_v7, 0  ;;  %s1901_s21 = smul.u32 432, %s2602_s25  ;;  %v941_v11 = vsel %vm404_vm0, %v1800_v10, 0  ;;  %vm379_vm1 = vcmask 64512   ;;  %v1827_v48 = vld [vmem:[%s2585_s2 + $0x18] sm:$0xf] }
  0x12   : > { %v1852_v49 = vld [vmem:[%s2585_s2 + $0x1c] sm:$0xf]  ;;  %v1062_v50 = vsel %vm404_vm0, %v1827_v48, 0  ;;  %v1877_v52 = vld [vmem:[%s2585_s2 + $0x20] sm:$0xf]  ;;  %vm1453_vm2 = vcmask 1041408  }
  0x13   : > { %s307_s8 = scalar_lea.vmem %s2583_s0, %s1901_s21  ;;  %v1180_v51 = vsel %vm404_vm0, %v1852_v49, 0  ;;  %v1298_v53 = vsel %vm404_vm0, %v1877_v52, 0  ;;  %v1427_v2 = vld [vmem:[%s2587_s4] sm:$0x3]  ;;  %s1897_s18 = sshll.u32 %s2602_s25, 8  ;;  %vm1428_vm3 = vcmask 31744  }
  0x14   : > { %593 = vmatpush.bf16.msrb.mxu2 %v584_v5  ;;  %714 = vmatpush.bf16.msrb.mxu3 %v705_v8  ;;  %s2088_s9 = scalar_lea.vmem %s307_s8, %s1705_s12  ;;  %v1455_v3 = vsel %vm1453_vm2, %v1427_v2, 0  ;;  %s312_s21 = scalar_lea.vmem %s2584_s1, %s1897_s18 }
  0x15   : > { %832 = vmatpush.bf16.msrb.mxu0 %v823_v9  ;;  %950 = vmatpush.bf16.msrb.mxu1 %v941_v11  ;;  %v361_v12 = vld [vmem:[%s2088_s9 + $0x61] sm:$0xff]  ;;  %v362_v13 = vld [vmem:[%s2088_s9 + $0x69] sm:$0xff]  ;;  %v363_v24 = vld [vmem:[%s2088_s9 + $0x79] sm:$0xff]  ;;  %s2323_s23 = scalar_lea.vmem %s312_s21, %s1898_s22  ;;  %s1700_s8 = sshll.u32 %s1967_s24, 3 }
  0x16   : > { %v336_v14 = vld [vmem:[%s2088_s9 + $0x60] sm:$0xff]  ;;  %v2093_v15 = vpack.c.bf16 %v362_v13, %v361_v12  ;;  %v337_v16 = vld [vmem:[%s2088_s9 + $0x68] sm:$0xff]  ;;  %v338_v26 = vld [vmem:[%s2088_s9 + $0x78] sm:$0xff]  ;;  %p316_p6 = scmp.lt.s32.totalorder %s1700_s8, 15  ;;  %s1702_s11 = sshll.u32 %s2602_s25, 5 }
  0x17   : > { %v353_v17 = vld [vmem:[%s2088_s9 + $0x1] sm:$0xff]  ;;  %v354_v18 = vld [vmem:[%s2088_s9 + $0x9] sm:$0xff]  ;;  %v2098_v19 = vpack.c.bf16 %v337_v16, %v336_v14  ;;  %v355_v28 = vld [vmem:[%s2088_s9 + $0x19] sm:$0xff] }
  0x18   : > { %v369_v20 = vpack.c.bf16 %v354_v18, %v353_v17  ;;  %v328_v21 = vld [vmem:[%s2088_s9] sm:$0xff]  ;;  %v329_v22 = vld [vmem:[%s2088_s9 + $0x8] sm:$0xff]  ;;  %1711 = vmatmul.msk.bf16.vlgmr.msra.gmra.mxu2 %vm379_vm1, %v2093_v15  ;;  %v330_v30 = vld [vmem:[%s2088_s9 + $0x18] sm:$0xff]  ;;  %s2604_s8 = smov (!%p316_p6, %s1700_s8), 15 }
  0x19   : > { %v344_v23 = vpack.c.bf16 %v329_v22, %v328_v21  ;;  %1719 = vmatmul.msk.bf16.vlgmr.msra.gmra.mxu3 %vm379_vm1, %v2098_v19  ;;  %v364_v25 = vld [vmem:[%s2088_s9 + $0x81] sm:$0xff]  ;;  %v365_v36 = vld [vmem:[%s2088_s9 + $0x91] sm:$0xff]  ;;  %v366_v37 = vld [vmem:[%s2088_s9 + $0x99] sm:$0xff]  ;;  %1071 = vmatpush.bf16.msra.mxu2 %v1062_v50  ;;  %s1701_s24 = sshll.u32 %s2604_s8, 1 }
  0x1a   : > { %1707 = vmatmul.msk.bf16.vlgmr.msra.gmra.mxu0 %vm379_vm1, %v369_v20  ;;  %v339_v27 = vld [vmem:[%s2088_s9 + $0x80] sm:$0xff]  ;;  %v2116_v32 = vpack.c.bf16 %v364_v25, %v363_v24  ;;  %v340_v38 = vld [vmem:[%s2088_s9 + $0x90] sm:$0xff]  ;;  %v341_v39 = vld [vmem:[%s2088_s9 + $0x98] sm:$0xff]  ;;  %v2134_v44 = vpack.c.bf16 %v366_v37, %v365_v36  ;;  %1189 = vmatpush.bf16.msra.mxu3 %v1180_v51  ;;  %s320_s14 = sadd.s32 %s1702_s11, %s1701_s24 }
  0x1b   : > { %1715 = vmatmul.msk.bf16.vlgmr.msra.gmra.mxu1 %vm379_vm1, %v344_v23  ;;  %v356_v29 = vld [vmem:[%s2088_s9 + $0x21] sm:$0xff]  ;;  %v2118_v33 = vpack.c.bf16 %v339_v27, %v338_v26  ;;  %v357_v40 = vld [vmem:[%s2088_s9 + $0x31] sm:$0xff]  ;;  %v358_v41 = vld [vmem:[%s2088_s9 + $0x39] sm:$0xff]  ;;  %v2136_v45 = vpack.c.bf16 %v341_v39, %v340_v38  ;;  %1307 = vmatpush.bf16.msra.mxu0 %v1298_v53  ;;  %s1703_s25 = sshll.u32 %s320_s14, 3 }
  0x1c   : > { %v331_v31 = vld [vmem:[%s2088_s9 + $0x20] sm:$0xff]  ;;  %v370_v34 = vpack.c.bf16 %v356_v29, %v355_v28  ;;  %v332_v42 = vld [vmem:[%s2088_s9 + $0x30] sm:$0xff]  ;;  %v333_v43 = vld [vmem:[%s2088_s9 + $0x38] sm:$0xff]  ;;  %v2138_v46 = vpack.c.bf16 %v358_v41, %v357_v40  ;;  %1464 = vmatpush.bf16.msra.mxu1 %v1455_v3  ;;  %s2476_s19 = scalar_lea.vmem %s2590_s7, %s1703_s25 }
  0x1d   : > { %v345_v35 = vpack.c.bf16 %v331_v31, %v330_v30  ;;  %v2140_v47 = vpack.c.bf16 %v333_v43, %v332_v42  ;;  %v367_v54 = vld [vmem:[%s2088_s9 + $0xa9] sm:$0xff]  ;;  %v368_v55 = vld [vmem:[%s2088_s9 + $0xb1] sm:$0xff]  ;;  %v1784_v6 = vld [vmem:[%s2088_s9 + $0x1a] sm:$0xff] }
  0x1e   : > { %v342_v56 = vld [vmem:[%s2088_s9 + $0xa8] sm:$0xff]  ;;  %v343_v57 = vld [vmem:[%s2088_s9 + $0xb0] sm:$0xff]  ;;  %v2170_v62 = vpack.c.bf16 %v368_v55, %v367_v54  ;;  %v1787_v11 = vld [vmem:[%s2088_s9 + $0x3a] sm:$0xff] }
  0x1f   : > { %v359_v58 = vld [vmem:[%s2088_s9 + $0x49] sm:$0xff]  ;;  %v360_v59 = vld [vmem:[%s2088_s9 + $0x51] sm:$0xff]  ;;  %v2172_v63 = vpack.c.bf16 %v343_v57, %v342_v56  ;;  %v1792_v21 = vld [vmem:[%s2088_s9 + $0x7a] sm:$0xff] }
  0x20   : > { %v334_v60 = vld [vmem:[%s2088_s9 + $0x48] sm:$0xff]  ;;  %v335_v61 = vld [vmem:[%s2088_s9 + $0x50] sm:$0xff]  ;;  %v2174_v0 = vpack.c.bf16 %v360_v59, %v359_v58  ;;  %v1795_v37 = vld [vmem:[%s2088_s9 + $0x9a] sm:$0xff] }
  0x21   : > { %v2176_v1 = vpack.c.bf16 %v335_v61, %v334_v60  ;;  %v533_v4 = vld [vmem:[%s2088_s9 + $0x2] sm:$0xff]  ;;  %v534_v5 = vld [vmem:[%s2088_s9 + $0xa] sm:$0xff]  ;;  %v1786_v10 = vld [vmem:[%s2088_s9 + $0x32] sm:$0xff] }
  0x22   : > { %v1785_v7 = vld [vmem:[%s2088_s9 + $0x22] sm:$0xff]  ;;  %v549_v8 = vpack.c.bf16 %v534_v5, %v533_v4  ;;  %v2199_v12 = vpack.c.bf16 %v1787_v11, %v1786_v10  ;;  %v1788_v13 = vld [vmem:[%s2088_s9 + $0x4a] sm:$0xff]  ;;  %v1789_v14 = vld [vmem:[%s2088_s9 + $0x52] sm:$0xff] }
  0x23   : > { %v906_v9 = vpack.c.bf16 %v1785_v7, %v1784_v6  ;;  %v2210_v16 = vpack.c.bf16 %v1789_v14, %v1788_v13  ;;  %v1790_v17 = vld [vmem:[%s2088_s9 + $0x62] sm:$0xff]  ;;  %v1791_v18 = vld [vmem:[%s2088_s9 + $0x6a] sm:$0xff]  ;;  %v1794_v36 = vld [vmem:[%s2088_s9 + $0x92] sm:$0xff] }
  0x24   : > { %v2222_v20 = vpack.c.bf16 %v1791_v18, %v1790_v17  ;;  %v1793_v22 = vld [vmem:[%s2088_s9 + $0x82] sm:$0xff]  ;;  %v2254_v41 = vpack.c.bf16 %v1795_v37, %v1794_v36  ;;  %v1796_v55 = vld [vmem:[%s2088_s9 + $0xaa] sm:$0xff]  ;;  %v1797_v56 = vld [vmem:[%s2088_s9 + $0xb2] sm:$0xff] }
  0x25   : > { %v2234_v24 = vpack.c.bf16 %v1793_v22, %v1792_v21  ;;  %v2274_v60 = vpack.c.bf16 %v1797_v56, %v1796_v55  ;;  %v1749_v10 = vld [vmem:[%s2088_s9 + $0xc8] sm:$0xff] }
  0x26   : > { %v1773_v11 = vld [vmem:[%s2088_s9 + $0xc1] sm:$0xff]  ;;  %v1774_v13 = vld [vmem:[%s2088_s9 + $0xc9] sm:$0xff] }
  0x27   : > { %v1798_v17 = vld [vmem:[%s2088_s9 + $0xc2] sm:$0xff]  ;;  %v1799_v18 = vld [vmem:[%s2088_s9 + $0xca] sm:$0xff] }
  0x28   : > { %1712 = vmatmul.msk.bf16.gmra.mxu2 %vm379_vm1, %v2116_v32 }
  0x29   : > { %1720 = vmatmul.msk.bf16.gmra.mxu3 %vm379_vm1, %v2118_v33 }
  0x2a   : > { %1708 = vmatmul.msk.bf16.gmra.mxu0 %vm379_vm1, %v370_v34 }
  0x2b   : > { %1716 = vmatmul.msk.bf16.gmra.mxu1 %vm379_vm1, %v345_v35 }
  0x38   : > { %1713 = vmatmul.msk.bf16.gmra.mxu2 %vm379_vm1, %v2134_v44 }
  0x39   : > { %1721 = vmatmul.msk.bf16.gmra.mxu3 %vm379_vm1, %v2136_v45 }
  0x3a   : > { %1709 = vmatmul.msk.bf16.gmra.mxu0 %vm379_vm1, %v2138_v46 }
  0x3b   : > { %1717 = vmatmul.msk.bf16.gmra.mxu1 %vm379_vm1, %v2140_v47 }
  0x48   : > { %1714 = vmatmul.msk.bf16.gmra.mxu2 %vm379_vm1, %v2170_v62 }
  0x49   : > { %1722 = vmatmul.msk.bf16.gmra.mxu3 %vm379_vm1, %v2172_v63 }
  0x4a   : > { %1710 = vmatmul.msk.bf16.gmra.mxu0 %vm379_vm1, %v2174_v0 }
  0x4b   : > { %1718 = vmatmul.msk.bf16.gmra.mxu1 %vm379_vm1, %v2176_v1 }
  0x58   : > { %1724 = vmatmul.msk.bf16.vlgmr.msrb.gmra.mxu2 %vm379_vm1, %v549_v8 }
  0x59   : > { %1751 = vmatmul.msk.bf16.vlgmr.msrb.gmra.mxu3 %vm379_vm1, %v345_v35 }
  0x5a   : > { %1776 = vmatmul.msk.bf16.vlgmr.msrb.gmra.mxu0 %vm379_vm1, %v370_v34 }
  0x5b   : > { %1801 = vmatmul.msk.bf16.vlgmr.msrb.gmra.mxu1 %vm379_vm1, %v906_v9 }
  0x68   : > { %1725 = vmatmul.msk.bf16.gmra.mxu2 %vm379_vm1, %v906_v9  ;;  %v1748_v9 = vld [vmem:[%s2088_s9 + $0xc0] sm:$0xff] }
  0x69   : > { %1752 = vmatmul.msk.bf16.gmra.mxu3 %vm379_vm1, %v2140_v47 }
  0x6a   : > { %1777 = vmatmul.msk.bf16.gmra.mxu0 %vm379_vm1, %v2138_v46 }
  0x6b   : > { %1802 = vmatmul.msk.bf16.gmra.mxu1 %vm379_vm1, %v2199_v12 }
  0x78   : > { %1726 = vmatmul.msk.bf16.gmra.mxu2 %vm379_vm1, %v2199_v12 }
  0x79   : > { %1753 = vmatmul.msk.bf16.gmra.mxu3 %vm379_vm1, %v2176_v1 }
  0x7a   : > { %1778 = vmatmul.msk.bf16.gmra.mxu0 %vm379_vm1, %v2174_v0 }
  0x7b   : > { %1803 = vmatmul.msk.bf16.gmra.mxu1 %vm379_vm1, %v2210_v16 }
  0x88   : > { %1727 = vmatmul.msk.bf16.gmra.mxu2 %vm379_vm1, %v2210_v16 }
  0x89   : > { %1754 = vmatmul.msk.bf16.gmra.mxu3 %vm379_vm1, %v2098_v19 }
  0x8a   : > { %1779 = vmatmul.msk.bf16.gmra.mxu0 %vm379_vm1, %v2093_v15 }
  0x8b   : > { %1804 = vmatmul.msk.bf16.gmra.mxu1 %vm379_vm1, %v2222_v20 }
  0x97   : > { %v417_v23 = vpop.f32.mrf.mxu0 }
  0x98   : > { %v493_v25 = vpop.f32.mrf.mxu1  ;;  %1728 = vmatmul.msk.bf16.gmra.mxu2 %vm379_vm1, %v2222_v20 }
  0x99   : > { %v2236_v26 = vadd.f32 %v493_v25, %v417_v23  ;;  %1755 = vmatmul.msk.bf16.gmra.mxu3 %vm379_vm1, %v2118_v33  ;;  %v2298_v23 = vpack.c.bf16 %v1749_v10, %v1748_v9  ;;  %v2300_v25 = vpack.c.bf16 %v1774_v13, %v1773_v11  ;;  %v1406_v13 = vld [vmem:[%s2323_s23 + $0x18] sm:$0xff] }
  0x9a   : > { %1780 = vmatmul.msk.bf16.gmra.mxu0 %vm379_vm1, %v2116_v32 }
  0x9b   : > { %1805 = vmatmul.msk.bf16.gmra.mxu1 %vm379_vm1, %v2234_v24  ;;  %v437_v27 = vpop.f32.mrf.mxu2 }
  0x9c   : > { %v513_v28 = vpop.f32.mrf.mxu3 }
  0x9d   : > { %v2246_v29 = vadd.f32 %v513_v28, %v437_v27  ;;  %v2302_v28 = vpack.c.bf16 %v1799_v18, %v1798_v17 }
  0x9f   : > { %v419_v30 = vpop.f32.mrf.mxu0 }
  0xa0   : > { %v495_v31 = vpop.f32.mrf.mxu1 }
  0xa1   : > { %v2248_v34 = vadd.f32 %v495_v31, %v419_v30 }
  0xa3   : > { %v439_v35 = vpop.f32.mrf.mxu2 }
  0xa4   : > { %v515_v38 = vpop.f32.mrf.mxu3 }
  0xa5   : > { %v2252_v39 = vadd.f32 %v515_v38, %v439_v35 }
  0xa7   : > { %v422_v40 = vpop.f32.mrf.mxu0 }
  0xa8   : > { %v498_v42 = vpop.f32.mrf.mxu1  ;;  %1729 = vmatmul.msk.bf16.gmra.mxu2 %vm379_vm1, %v2234_v24 }
  0xa9   : > { %v2256_v43 = vadd.f32 %v498_v42, %v422_v40  ;;  %1756 = vmatmul.msk.bf16.gmra.mxu3 %vm379_vm1, %v2136_v45 }
  0xaa   : > { %1781 = vmatmul.msk.bf16.gmra.mxu0 %vm379_vm1, %v2134_v44 }
  0xab   : > { %1806 = vmatmul.msk.bf16.gmra.mxu1 %vm379_vm1, %v2254_v41  ;;  %v442_v48 = vpop.f32.mrf.mxu2 }
  0xac   : > { %v518_v49 = vpop.f32.mrf.mxu3 }
  0xad   : > { %v2266_v50 = vadd.f32 %v518_v49, %v442_v48  ;;  %v1403_v49 = vld [vmem:[%s2323_s23] sm:$0xff] }
  0xaf   : > { %v424_v51 = vpop.f32.mrf.mxu0 }
  0xb0   : > { %v500_v52 = vpop.f32.mrf.mxu1 }
  0xb1   : > { %v2268_v53 = vadd.f32 %v500_v52, %v424_v51  ;;  %v1404_v51 = vld [vmem:[%s2323_s23 + $0x8] sm:$0xff] }
  0xb2   : > { %v1419_v56 = vpack.c.bf16 %v1404_v51, %v1403_v49  ;;  %v1407_v51 = vld [vmem:[%s2323_s23 + $0x20] sm:$0xff] }
  0xb3   : > { %v444_v54 = vpop.f32.mrf.mxu2 }
  0xb4   : > { %v520_v57 = vpop.f32.mrf.mxu3 }
  0xb5   : > { %v2272_v58 = vadd.f32 %v520_v57, %v444_v54 }
  0xb7   : > { %v427_v59 = vpop.f32.mrf.mxu0 }
  0xb8   : > { %v503_v61 = vpop.f32.mrf.mxu1  ;;  %1730 = vmatmul.msk.bf16.gmra.mxu2 %vm379_vm1, %v2254_v41 }
  0xb9   : > { %v2276_v2 = vadd.f32 %v503_v61, %v427_v59  ;;  %1757 = vmatmul.msk.bf16.gmra.mxu3 %vm379_vm1, %v2172_v63 }
  0xba   : > { %1782 = vmatmul.msk.bf16.gmra.mxu0 %vm379_vm1, %v2170_v62 }
  0xbb   : > { %1807 = vmatmul.msk.bf16.gmra.mxu1 %vm379_vm1, %v2274_v60  ;;  %v447_v3 = vpop.f32.mrf.mxu2 }
  0xbc   : > { %v523_v4 = vpop.f32.mrf.mxu3 }
  0xbd   : > { %v2286_v5 = vadd.f32 %v523_v4, %v447_v3 }
  0xbf   : > { %v429_v6 = vpop.f32.mrf.mxu0 }
  0xc0   : > { %v505_v7 = vpop.f32.mrf.mxu1 }
  0xc1   : > { %v2288_v8 = vadd.f32 %v505_v7, %v429_v6 }
  0xc3   : > { %v449_v14 = vpop.f32.mrf.mxu2 }
  0xc4   : > { %v525_v21 = vpop.f32.mrf.mxu3 }
  0xc5   : > { %v2296_v22 = vadd.f32 %v525_v21, %v449_v14 }
  0xc7   : > { %v432_v27 = vpop.f32.mrf.mxu0 }
  0xc8   : > { %v508_v30 = vpop.f32.mrf.mxu1  ;;  %1731 = vmatmul.msk.bf16.gmra.mxu2 %vm379_vm1, %v2274_v60 }
  0xc9   : > { %v2304_v31 = vadd.f32 %v508_v30, %v432_v27  ;;  %1758 = vmatmul.msk.bf16.gmra.mxu3 %vm379_vm1, %v2298_v23 }
  0xca   : > { %1783 = vmatmul.msk.bf16.gmra.mxu0 %vm379_vm1, %v2300_v25 }
  0xcb   : > { %1808 = vmatmul.msk.bf16.gmra.mxu1 %vm379_vm1, %v2302_v28  ;;  %v452_v35 = vpop.f32.mrf.mxu2 }
  0xcc   : > { %v528_v36 = vpop.f32.mrf.mxu3 }
  0xcd   : > { %v2315_v37 = vadd.f32 %v528_v36, %v452_v35 }
  0xcf   : > { %v434_v38 = vpop.f32.mrf.mxu0 }
  0xd0   : > { %v510_v40 = vpop.f32.mrf.mxu1 }
  0xd1   : > { %v2321_v42 = vadd.f32 %v510_v40, %v434_v38 }
  0xd3   : > { %v454_v48 = vpop.f32.mrf.mxu2 }
  0xd4   : > { %v530_v52 = vpop.f32.mrf.mxu3 }
  0xd5   : > { %v2327_v54 = vadd.f32 %v530_v52, %v454_v48 }
  0xd7   : > { %v834_v55 = vpop.f32.mrf.mxu0 }
  0xd8   : > { %v952_v57 = vpop.f32.mrf.mxu1  ;;  %1828 = vmatmul.msk.bf16.vlgmr.msra.gmra.mxu2 %vm379_vm1, %v2140_v47  ;;  %v1405_v47 = vld [vmem:[%s2323_s23 + $0x10] sm:$0xff] }
  0xd9   : > { %1853 = vmatmul.msk.bf16.vlgmr.msra.gmra.mxu3 %vm379_vm1, %v2138_v46  ;;  %v1420_v18 = vpack.c.bf16 %v1406_v13, %v1405_v47  ;;  %v1409_v13 = vld [vmem:[%s2323_s23 + $0x30] sm:$0xff] }
  0xda   : > { %1878 = vmatmul.msk.bf16.vlgmr.msra.gmra.mxu0 %vm379_vm1, %v2199_v12 }
  0xdb   : > { %1887 = vmatmul.msk.bf16.vlgmr.msra.gmra.mxu1 %vm1428_vm3, %v1419_v56  ;;  %v595_v59 = vpop.f32.mrf.mxu2 }
  0xdc   : > { %v635_v61 = vadd.f32 %v595_v59, %v2236_v26  ;;  %v716_v3 = vpop.f32.mrf.mxu3 }
  0xde   : > { %v756_v4 = vadd.f32 %v716_v3, %v635_v61 }
  0xdf   : > { %v836_v6 = vpop.f32.mrf.mxu0 }
  0xe0   : > { %v954_v7 = vpop.f32.mrf.mxu1  ;;  %v874_v9 = vadd.f32 %v834_v55, %v756_v4 }
  0xe2   : > { %v2337_v10 = vadd.f32 %v952_v57, %v874_v9 }
  0xe3   : > { %v597_v11 = vpop.f32.mrf.mxu2 }
  0xe4   : > { %v636_v46 = vadd.f32 %v597_v11, %v2248_v34  ;;  %v718_v14 = vpop.f32.mrf.mxu3 }
  0xe6   : > { %v757_v17 = vadd.f32 %v718_v14, %v636_v46 }
  0xe7   : > { %v839_v12 = vpop.f32.mrf.mxu0 }
  0xe8   : > { %v957_v21 = vpop.f32.mrf.mxu1  ;;  %v875_v27 = vadd.f32 %v836_v6, %v757_v17  ;;  %1829 = vmatmul.msk.bf16.gmra.mxu2 %vm379_vm1, %v2176_v1 }
  0xe9   : > { %1854 = vmatmul.msk.bf16.gmra.mxu3 %vm379_vm1, %v2174_v0  ;;  %v1408_v0 = vld [vmem:[%s2323_s23 + $0x28] sm:$0xff] }
  0xea   : > { %1879 = vmatmul.msk.bf16.gmra.mxu0 %vm379_vm1, %v2210_v16  ;;  %v2348_v26 = vadd.f32 %v954_v7, %v875_v27  ;;  %v1421_v57 = vpack.c.bf16 %v1408_v0, %v1407_v51 }
  0xeb   : > { %1888 = vmatmul.msk.bf16.gmra.mxu1 %vm1428_vm3, %v1420_v18  ;;  %v600_v34 = vpop.f32.mrf.mxu2 }
  0xec   : > { %v637_v30 = vadd.f32 %v600_v34, %v2256_v43  ;;  %v721_v35 = vpop.f32.mrf.mxu3 }
  0xee   : > { %v758_v36 = vadd.f32 %v721_v35, %v637_v30 }
  0xef   : > { %v841_v38 = vpop.f32.mrf.mxu0 }
  0xf0   : > { %v959_v40 = vpop.f32.mrf.mxu1  ;;  %v876_v48 = vadd.f32 %v839_v12, %v758_v36 }
  0xf2   : > { %v2352_v49 = vadd.f32 %v957_v21, %v876_v48  ;;  %v1411_v48 = vld [vmem:[%s2323_s23 + $0x40] sm:$0xff] }
  0xf3   : > { %v602_v1 = vpop.f32.mrf.mxu2 }
  0xf4   : > { %v638_v52 = vadd.f32 %v602_v1, %v2268_v53  ;;  %v723_v16 = vpop.f32.mrf.mxu3 }
  0xf6   : > { %v759_v55 = vadd.f32 %v723_v16, %v638_v52 }
  0xf7   : > { %v844_v56 = vpop.f32.mrf.mxu0 }
  0xf8   : > { %v962_v59 = vpop.f32.mrf.mxu1  ;;  %v877_v61 = vadd.f32 %v841_v38, %v759_v55  ;;  %1830 = vmatmul.msk.bf16.gmra.mxu2 %vm379_vm1, %v2098_v19 }
  0xf9   : > { %1855 = vmatmul.msk.bf16.gmra.mxu3 %vm379_vm1, %v2093_v15  ;;  %v1410_v15 = vld [vmem:[%s2323_s23 + $0x38] sm:$0xff] }
  0xfa   : > { %1880 = vmatmul.msk.bf16.gmra.mxu0 %vm379_vm1, %v2222_v20  ;;  %v2363_v43 = vadd.f32 %v959_v40, %v877_v61  ;;  %v1422_v12 = vpack.c.bf16 %v1410_v15, %v1409_v13 }
  0xfb   : > { %1889 = vmatmul.msk.bf16.gmra.mxu1 %vm1428_vm3, %v1421_v57  ;;  %v605_v53 = vpop.f32.mrf.mxu2 }
  0xfc   : > { %v639_v3 = vadd.f32 %v605_v53, %v2276_v2  ;;  %v726_v4 = vpop.f32.mrf.mxu3 }
  0xfe   : > { %v760_v6 = vadd.f32 %v726_v4, %v639_v3 }
  0xff   : > { %v846_v7 = vpop.f32.mrf.mxu0 }
 0x100   : > { %v964_v9 = vpop.f32.mrf.mxu1  ;;  %v878_v11 = vadd.f32 %v844_v56, %v760_v6  ;;  %v1413_v6 = vld [vmem:[%s2323_s23 + $0x50] sm:$0xff] }
 0x102   : > { %v2367_v47 = vadd.f32 %v962_v59, %v878_v11 }
 0x103   : > { %v607_v19 = vpop.f32.mrf.mxu2 }
 0x104   : > { %v640_v46 = vadd.f32 %v607_v19, %v2288_v8  ;;  %v728_v20 = vpop.f32.mrf.mxu3 }
 0x106   : > { %v761_v14 = vadd.f32 %v728_v20, %v640_v46 }
 0x107   : > { %v849_v17 = vpop.f32.mrf.mxu0 }
 0x108   : > { %v967_v18 = vpop.f32.mrf.mxu1  ;;  %v879_v21 = vadd.f32 %v846_v7, %v761_v14  ;;  %1831 = vmatmul.msk.bf16.gmra.mxu2 %vm379_vm1, %v2118_v33 }
 0x109   : > { %1856 = vmatmul.msk.bf16.gmra.mxu3 %vm379_vm1, %v2116_v32  ;;  %v1412_v32 = vld [vmem:[%s2323_s23 + $0x48] sm:$0xff] }
 0x10a   : > { %1881 = vmatmul.msk.bf16.gmra.mxu0 %vm379_vm1, %v2234_v24  ;;  %v2378_v2 = vadd.f32 %v964_v9, %v879_v21  ;;  %v1423_v52 = vpack.c.bf16 %v1412_v32, %v1411_v48 }
 0x10b   : > { %1890 = vmatmul.msk.bf16.gmra.mxu1 %vm1428_vm3, %v1422_v12  ;;  %v610_v8 = vpop.f32.mrf.mxu2 }
 0x10c   : > { %v641_v27 = vadd.f32 %v610_v8, %v2304_v31  ;;  %v731_v34 = vpop.f32.mrf.mxu3  ;;  %v1415_v8 = vld [vmem:[%s2323_s23 + $0x60] sm:$0xff] }
 0x10e   : > { %v762_v30 = vadd.f32 %v731_v34, %v641_v27 }
 0x10f   : > { %v851_v35 = vpop.f32.mrf.mxu0 }
 0x110   : > { %v969_v36 = vpop.f32.mrf.mxu1  ;;  %v880_v38 = vadd.f32 %v849_v17, %v762_v30 }
 0x112   : > { %v2382_v40 = vadd.f32 %v967_v18, %v880_v38 }
 0x113   : > { %v612_v33 = vpop.f32.mrf.mxu2 }
 0x114   : > { %v642_v1 = vadd.f32 %v612_v33, %v2321_v42  ;;  %v733_v24 = vpop.f32.mrf.mxu3 }
 0x116   : > { %v763_v51 = vadd.f32 %v733_v24, %v642_v1 }
 0x117   : > { %v854_v0 = vpop.f32.mrf.mxu0 }
 0x118   : > { %v972_v16 = vpop.f32.mrf.mxu1  ;;  %v881_v55 = vadd.f32 %v851_v35, %v763_v51  ;;  %1832 = vmatmul.msk.bf16.gmra.mxu2 %vm379_vm1, %v2136_v45  ;;  %v1826_v51 = vld [vmem:[%s2088_s9 + $0xe0] sm:$0xff] }
 0x119   : > { %1857 = vmatmul.msk.bf16.gmra.mxu3 %vm379_vm1, %v2134_v44  ;;  %v1414_v44 = vld [vmem:[%s2323_s23 + $0x58] sm:$0xff] }
 0x11a   : > { %1882 = vmatmul.msk.bf16.gmra.mxu0 %vm379_vm1, %v2254_v41  ;;  %v2393_v31 = vadd.f32 %v969_v36, %v881_v55  ;;  %v1424_v19 = vpack.c.bf16 %v1414_v44, %v1413_v6  ;;  %v1876_v55 = vld [vmem:[%s2088_s9 + $0xe2] sm:$0xff] }
 0x11b   : > { %1891 = vmatmul.msk.bf16.gmra.mxu1 %vm1428_vm3, %v1423_v52  ;;  %v615_v42 = vpop.f32.mrf.mxu2 }
 0x11c   : > { %v643_v56 = vadd.f32 %v615_v42, %v2246_v29  ;;  %v736_v57 = vpop.f32.mrf.mxu3 }
 0x11e   : > { %v764_v59 = vadd.f32 %v736_v57, %v643_v56  ;;  %v1417_v56 = vld [vmem:[%s2323_s23 + $0x70] sm:$0xff]  ;;  %v1418_v57 = vld [vmem:[%s2323_s23 + $0x78] sm:$0xff] }
 0x11f   : > { %v856_v61 = vpop.f32.mrf.mxu0  ;;  %v1426_v44 = vpack.c.bf16 %v1418_v57, %v1417_v56 }
 0x120   : > { %v974_v53 = vpop.f32.mrf.mxu1  ;;  %v882_v3 = vadd.f32 %v854_v0, %v764_v59  ;;  %v1850_v0 = vld [vmem:[%s2088_s9 + $0xd9] sm:$0xff] }
 0x122   : > { %v2397_v4 = vadd.f32 %v972_v16, %v882_v3  ;;  %v1875_v16 = vld [vmem:[%s2088_s9 + $0xda] sm:$0xff] }
 0x123   : > { %v617_v45 = vpop.f32.mrf.mxu2  ;;  %v1270_v3 = vpack.c.bf16 %v1876_v55, %v1875_v16 }
 0x124   : > { %v644_v7 = vadd.f32 %v617_v45, %v2252_v39  ;;  %v738_v41 = vpop.f32.mrf.mxu3 }
 0x126   : > { %v765_v9 = vadd.f32 %v738_v41, %v644_v7 }
 0x127   : > { %v859_v11 = vpop.f32.mrf.mxu0 }
 0x128   : > { %v977_v13 = vpop.f32.mrf.mxu1  ;;  %v883_v15 = vadd.f32 %v856_v61, %v765_v9  ;;  %1833 = vmatmul.msk.bf16.gmra.mxu2 %vm379_vm1, %v2172_v63 }
 0x129   : > { %1858 = vmatmul.msk.bf16.gmra.mxu3 %vm379_vm1, %v2170_v62  ;;  %v1416_v62 = vld [vmem:[%s2323_s23 + $0x68] sm:$0xff] }
 0x12a   : > { %1883 = vmatmul.msk.bf16.gmra.mxu0 %vm379_vm1, %v2274_v60  ;;  %v2408_v29 = vadd.f32 %v974_v53, %v883_v15  ;;  %v1425_v35 = vpack.c.bf16 %v1416_v62, %v1415_v8 }
 0x12b   : > { %1892 = vmatmul.msk.bf16.gmra.mxu1 %vm1428_vm3, %v1424_v19  ;;  %v620_v39 = vpop.f32.mrf.mxu2 }
 0x12c   : > { %v645_v46 = vadd.f32 %v620_v39, %v2266_v50  ;;  %v741_v20 = vpop.f32.mrf.mxu3 }
 0x12e   : > { %v766_v14 = vadd.f32 %v741_v20, %v645_v46 }
 0x12f   : > { %v861_v17 = vpop.f32.mrf.mxu0 }
 0x130   : > { %v979_v12 = vpop.f32.mrf.mxu1  ;;  %v884_v18 = vadd.f32 %v859_v11, %v766_v14 }
 0x132   : > { %v2412_v21 = vadd.f32 %v977_v13, %v884_v18 }
 0x133   : > { %v622_v63 = vpop.f32.mrf.mxu2 }
 0x134   : > { %v646_v27 = vadd.f32 %v622_v63, %v2272_v58  ;;  %v743_v60 = vpop.f32.mrf.mxu3 }
 0x136   : > { %v767_v34 = vadd.f32 %v743_v60, %v646_v27 }
 0x137   : > { %v864_v30 = vpop.f32.mrf.mxu0 }
 0x138   : > { %v982_v36 = vpop.f32.mrf.mxu1  ;;  %v885_v50 = vadd.f32 %v861_v17, %v767_v34  ;;  %1834 = vmatmul.msk.bf16.gmra.mxu2 %vm379_vm1, %v2298_v23 }
 0x139   : > { %1859 = vmatmul.msk.bf16.gmra.mxu3 %vm379_vm1, %v2300_v25  ;;  %v1825_v25 = vld [vmem:[%s2088_s9 + $0xd8] sm:$0xff] }
 0x13a   : > { %1884 = vmatmul.msk.bf16.gmra.mxu0 %vm379_vm1, %v2302_v28  ;;  %v2423_v58 = vadd.f32 %v979_v12, %v885_v50  ;;  %v1851_v28 = vld [vmem:[%s2088_s9 + $0xe1] sm:$0xff] }
 0x13b   : > { %1893 = vmatmul.msk.bf16.gmra.mxu1 %vm1428_vm3, %v1425_v35  ;;  %v625_v38 = vpop.f32.mrf.mxu2  ;;  %v1152_v53 = vpack.c.bf16 %v1851_v28, %v1850_v0 }
 0x13c   : > { %v647_v33 = vadd.f32 %v625_v38, %v2286_v5  ;;  %v746_v48 = vpop.f32.mrf.mxu3  ;;  %v1034_v5 = vpack.c.bf16 %v1826_v51, %v1825_v25 }
 0x13e   : > { %v768_v23 = vadd.f32 %v746_v48, %v647_v33 }
 0x13f   : > { %v866_v32 = vpop.f32.mrf.mxu0 }
 0x140   : > { %v984_v1 = vpop.f32.mrf.mxu1  ;;  %v886_v24 = vadd.f32 %v864_v30, %v768_v23 }
 0x142   : > { %v2430_v52 = vadd.f32 %v982_v36, %v886_v24  ;;  %v2468_v24 = vld [vmem:[%s2589_s6] ss:$0 sm:$0xff] }
 0x143   : > { %v627_v42 = vpop.f32.mrf.mxu2 }
 0x144   : > { %v648_v59 = vadd.f32 %v627_v42, %v2296_v22  ;;  %v748_v61 = vpop.f32.mrf.mxu3 }
 0x146   : > { %v769_v45 = vadd.f32 %v748_v61, %v648_v59 }
 0x147   : > { %v869_v6 = vpop.f32.mrf.mxu0 }
 0x148   : > { %v987_v7 = vpop.f32.mrf.mxu1  ;;  %v887_v41 = vadd.f32 %v866_v32, %v769_v45  ;;  %1835 = vmatmul.msk.bf16.gmra.mxu2 %vm379_vm1, %v1034_v5 }
 0x149   : > { %1860 = vmatmul.msk.bf16.gmra.mxu3 %vm379_vm1, %v1152_v53 }
 0x14a   : > { %1885 = vmatmul.msk.bf16.gmra.mxu0 %vm379_vm1, %v1270_v3  ;;  %v2441_v9 = vadd.f32 %v984_v1, %v887_v41 }
 0x14b   : > { %1894 = vmatmul.msk.bf16.gmra.mxu1 %vm1428_vm3, %v1426_v44  ;;  %v630_v22 = vpop.f32.mrf.mxu2 }
 0x14c   : > { %v649_v11 = vadd.f32 %v630_v22, %v2315_v37  ;;  %v751_v19 = vpop.f32.mrf.mxu3 }
 0x14e   : > { %v770_v13 = vadd.f32 %v751_v19, %v649_v11 }
 0x14f   : > { %v871_v15 = vpop.f32.mrf.mxu0 }
 0x150   : > { %v989_v39 = vpop.f32.mrf.mxu1  ;;  %v888_v46 = vadd.f32 %v869_v6, %v770_v13 }
 0x152   : > { %v2445_v20 = vadd.f32 %v987_v7, %v888_v46 }
 0x153   : > { %v632_v14 = vpop.f32.mrf.mxu2 }
 0x154   : > { %v650_v17 = vadd.f32 %v632_v14, %v2327_v54  ;;  %v753_v12 = vpop.f32.mrf.mxu3  ;;  %v2455_v54 = vld [vmem:[%s2586_s3] ss:$0 sm:$0xff] }
 0x156   : > { %v771_v18 = vadd.f32 %v753_v12, %v650_v17 }
 0x157   : > { %v1309_v63 = vpop.f32.mrf.mxu0 }
 0x158   : > { %v1466_v8 = vpop.f32.mrf.mxu1  ;;  %v889_v62 = vadd.f32 %v871_v15, %v771_v18 }
 0x15a   : > { %v2449_v27 = vadd.f32 %v989_v39, %v889_v62 }
 0x15b   : > { %v1073_v37 = vpop.f32.mrf.mxu2 }
 0x15c   : > { %v1113_v60 = vadd.f32 %v1073_v37, %v2337_v10  ;;  %v1191_v34 = vpop.f32.mrf.mxu3  ;;  %v2462_v10 = vld [vmem:[%s2588_s5] ss:$0 sm:$0xff] }
 0x15e   : > { %v1231_v30 = vadd.f32 %v1191_v34, %v1113_v60 }
 0x15f   : > { %v1311_v35 = vpop.f32.mrf.mxu0 }
 0x160   : > { %v1468_v36 = vpop.f32.mrf.mxu1  ;;  %v1349_v50 = vadd.f32 %v1309_v63, %v1231_v30 }
 0x162   : > { %v1369_v38 = vadd.f32 %v2455_v54, %v1349_v50 }
 0x163   : > { %v1075_v33 = vpop.f32.mrf.mxu2 }
 0x164   : > { %v1385_v48 = vmax.f32 %v1369_v38, 0.0  ;;  %v1114_v23 = vadd.f32 %v1075_v33, %v2348_v26  ;;  %v1193_v32 = vpop.f32.mrf.mxu3 }
 0x166   : > { %v1467_v1 = vadd.f32 %v1466_v8, %v1385_v48  ;;  %v1232_v25 = vadd.f32 %v1193_v32, %v1114_v23 }
 0x167   : > { %v1314_v51 = vpop.f32.mrf.mxu0 }
 0x168   : > { %v1471_v0 = vpop.f32.mrf.mxu1  ;;  %v1510_v28 = vmul.f32 %v2462_v10, %v1467_v1  ;;  %v1350_v16 = vadd.f32 %v1311_v35, %v1232_v25 }
 0x16a   : > { %v1530_v55 = vadd.f32 %v2468_v24, %v1510_v28  ;;  %v1370_v42 = vadd.f32 %v2455_v54, %v1350_v16 }
 0x16b   : > { %v1078_v26 = vpop.f32.mrf.mxu2 }
 0x16c   : > { %v1546_v56 = vmax.f32 %v1530_v55, 0.0  ;;  %v1386_v57 = vmax.f32 %v1370_v42, 0.0  ;;  %v1115_v59 = vadd.f32 %v1078_v26, %v2352_v49  ;;  %v1196_v61 = vpop.f32.mrf.mxu3 }
 0x16e   : > { %1562 = vst.msk [vmem:[%s2476_s19] sm:$0xff] %vm379_vm1, %v1546_v56  ;;  %v1469_v5 = vadd.f32 %v1468_v36, %v1386_v57  ;;  %v1233_v53 = vadd.f32 %v1196_v61, %v1115_v59 }
 0x16f   : > { %v1316_v3 = vpop.f32.mrf.mxu0 }
 0x170   : > { %v1473_v45 = vpop.f32.mrf.mxu1  ;;  %v1511_v6 = vmul.f32 %v2462_v10, %v1469_v5  ;;  %v1351_v44 = vadd.f32 %v1314_v51, %v1233_v53 }
 0x172   : > { %v1531_v7 = vadd.f32 %v2468_v24, %v1511_v6  ;;  %v1371_v41 = vadd.f32 %v2455_v54, %v1351_v44 }
 0x173   : > { %v1080_v22 = vpop.f32.mrf.mxu2 }
 0x174   : > { %v1547_v11 = vmax.f32 %v1531_v7, 0.0  ;;  %v1387_v19 = vmax.f32 %v1371_v41, 0.0  ;;  %v1116_v49 = vadd.f32 %v1080_v22, %v2363_v43  ;;  %v1198_v13 = vpop.f32.mrf.mxu3 }
 0x176   : > { %1563 = vst.msk [vmem:[%s2476_s19 + $0x8] sm:$0xff] %vm379_vm1, %v1547_v11  ;;  %v1472_v15 = vadd.f32 %v1471_v0, %v1387_v19  ;;  %v1234_v39 = vadd.f32 %v1198_v13, %v1116_v49 }
 0x177   : > { %v1319_v46 = vpop.f32.mrf.mxu0 }
 0x178   : > { %v1476_v14 = vpop.f32.mrf.mxu1  ;;  %v1512_v17 = vmul.f32 %v2462_v10, %v1472_v15  ;;  %v1352_v12 = vadd.f32 %v1316_v3, %v1234_v39 }
 0x17a   : > { %v1532_v18 = vadd.f32 %v2468_v24, %v1512_v17  ;;  %v1372_v63 = vadd.f32 %v2455_v54, %v1352_v12 }
 0x17b   : > { %v1083_v8 = vpop.f32.mrf.mxu2 }
 0x17c   : > { %v1548_v62 = vmax.f32 %v1532_v18, 0.0  ;;  %v1388_v37 = vmax.f32 %v1372_v63, 0.0  ;;  %v1117_v43 = vadd.f32 %v1083_v8, %v2367_v47  ;;  %v1201_v60 = vpop.f32.mrf.mxu3 }
 0x17e   : > { %1564 = vst.msk [vmem:[%s2476_s19 + $0x10] sm:$0xff] %vm379_vm1, %v1548_v62  ;;  %v1474_v34 = vadd.f32 %v1473_v45, %v1388_v37  ;;  %v1235_v30 = vadd.f32 %v1201_v60, %v1117_v43 }
 0x17f   : > { %v1321_v35 = vpop.f32.mrf.mxu0 }
 0x180   : > { %v1478_v36 = vpop.f32.mrf.mxu1  ;;  %v1513_v50 = vmul.f32 %v2462_v10, %v1474_v34  ;;  %v1353_v38 = vadd.f32 %v1319_v46, %v1235_v30 }
 0x182   : > { %v1533_v33 = vadd.f32 %v2468_v24, %v1513_v50  ;;  %v1373_v48 = vadd.f32 %v2455_v54, %v1353_v38 }
 0x183   : > { %v1085_v23 = vpop.f32.mrf.mxu2 }
 0x184   : > { %v1549_v32 = vmax.f32 %v1533_v33, 0.0  ;;  %v1389_v1 = vmax.f32 %v1373_v48, 0.0  ;;  %v1118_v47 = vadd.f32 %v1085_v23, %v2378_v2  ;;  %v1203_v25 = vpop.f32.mrf.mxu3 }
 0x186   : > { %1565 = vst.msk [vmem:[%s2476_s19 + $0x18] sm:$0xff] %vm379_vm1, %v1549_v32  ;;  %v1477_v51 = vadd.f32 %v1476_v14, %v1389_v1  ;;  %v1236_v0 = vadd.f32 %v1203_v25, %v1118_v47 }
 0x187   : > { %v1324_v28 = vpop.f32.mrf.mxu0 }
 0x188   : > { %v1481_v16 = vpop.f32.mrf.mxu1  ;;  %v1514_v55 = vmul.f32 %v2462_v10, %v1477_v51  ;;  %v1354_v42 = vadd.f32 %v1321_v35, %v1236_v0 }
 0x18a   : > { %v1534_v26 = vadd.f32 %v2468_v24, %v1514_v55  ;;  %v1374_v56 = vadd.f32 %v2455_v54, %v1354_v42 }
 0x18b   : > { %v1088_v57 = vpop.f32.mrf.mxu2 }
 0x18c   : > { %v1550_v59 = vmax.f32 %v1534_v26, 0.0  ;;  %v1390_v61 = vmax.f32 %v1374_v56, 0.0  ;;  %v1119_v2 = vadd.f32 %v1088_v57, %v2382_v40  ;;  %v1206_v5 = vpop.f32.mrf.mxu3 }
 0x18e   : > { %1566 = vst.msk [vmem:[%s2476_s19 + $0x20] sm:$0xff] %vm379_vm1, %v1550_v59  ;;  %v1479_v53 = vadd.f32 %v1478_v36, %v1390_v61  ;;  %v1237_v3 = vadd.f32 %v1206_v5, %v1119_v2 }
 0x18f   : > { %v1326_v45 = vpop.f32.mrf.mxu0 }
 0x190   : > { %v1483_v6 = vpop.f32.mrf.mxu1  ;;  %v1515_v44 = vmul.f32 %v2462_v10, %v1479_v53  ;;  %v1355_v7 = vadd.f32 %v1324_v28, %v1237_v3 }
 0x192   : > { %v1535_v41 = vadd.f32 %v2468_v24, %v1515_v44  ;;  %v1375_v22 = vadd.f32 %v2455_v54, %v1355_v7 }
 0x193   : > { %v1090_v11 = vpop.f32.mrf.mxu2 }
 0x194   : > { %v1551_v19 = vmax.f32 %v1535_v41, 0.0  ;;  %v1391_v49 = vmax.f32 %v1375_v22, 0.0  ;;  %v1120_v40 = vadd.f32 %v1090_v11, %v2393_v31  ;;  %v1208_v13 = vpop.f32.mrf.mxu3 }
 0x196   : > { %1567 = vst.msk [vmem:[%s2476_s19 + $0x28] sm:$0xff] %vm379_vm1, %v1551_v19  ;;  %v1482_v15 = vadd.f32 %v1481_v16, %v1391_v49  ;;  %v1238_v39 = vadd.f32 %v1208_v13, %v1120_v40 }
 0x197   : > { %v1329_v46 = vpop.f32.mrf.mxu0 }
 0x198   : > { %v1486_v14 = vpop.f32.mrf.mxu1  ;;  %v1516_v17 = vmul.f32 %v2462_v10, %v1482_v15  ;;  %v1356_v12 = vadd.f32 %v1326_v45, %v1238_v39 }
 0x19a   : > { %v1536_v18 = vadd.f32 %v2468_v24, %v1516_v17  ;;  %v1376_v63 = vadd.f32 %v2455_v54, %v1356_v12 }
 0x19b   : > { %v1093_v8 = vpop.f32.mrf.mxu2 }
 0x19c   : > { %v1552_v62 = vmax.f32 %v1536_v18, 0.0  ;;  %v1392_v37 = vmax.f32 %v1376_v63, 0.0  ;;  %v1121_v31 = vadd.f32 %v1093_v8, %v2397_v4  ;;  %v1211_v43 = vpop.f32.mrf.mxu3 }
 0x19e   : > { %1568 = vst.msk [vmem:[%s2476_s19 + $0x30] sm:$0xff] %vm379_vm1, %v1552_v62  ;;  %v1484_v60 = vadd.f32 %v1483_v6, %v1392_v37  ;;  %v1239_v34 = vadd.f32 %v1211_v43, %v1121_v31 }
 0x19f   : > { %v1331_v30 = vpop.f32.mrf.mxu0 }
 0x1a0   : > { %v1517_v35 = vmul.f32 %v2462_v10, %v1484_v60  ;;  %v1357_v36 = vadd.f32 %v1329_v46, %v1239_v34  ;;  %v1488_v50 = vpop.f32.mrf.mxu1 }
 0x1a2   : > { %v1537_v38 = vadd.f32 %v2468_v24, %v1517_v35  ;;  %v1377_v33 = vadd.f32 %v2455_v54, %v1357_v36 }
 0x1a3   : > { %v1095_v48 = vpop.f32.mrf.mxu2 }
 0x1a4   : > { %v1553_v23 = vmax.f32 %v1537_v38, 0.0  ;;  %v1393_v32 = vmax.f32 %v1377_v33, 0.0  ;;  %v1122_v4 = vadd.f32 %v1095_v48, %v2408_v29  ;;  %v1213_v1 = vpop.f32.mrf.mxu3 }
 0x1a6   : > { %1569 = vst.msk [vmem:[%s2476_s19 + $0x38] sm:$0xff] %vm379_vm1, %v1553_v23  ;;  %v1487_v47 = vadd.f32 %v1486_v14, %v1393_v32  ;;  %v1240_v25 = vadd.f32 %v1213_v1, %v1122_v4 }
 0x1a7   : > { %v1334_v51 = vpop.f32.mrf.mxu0 }
 0x1a8   : > { %v1518_v0 = vmul.f32 %v2462_v10, %v1487_v47  ;;  %v1358_v28 = vadd.f32 %v1331_v30, %v1240_v25  ;;  %v1491_v26 = vpop.f32.mrf.mxu1 }
 0x1aa   : > { %v1538_v16 = vadd.f32 %v2468_v24, %v1518_v0  ;;  %v1378_v55 = vadd.f32 %v2455_v54, %v1358_v28 }
 0x1ab   : > { %v1098_v42 = vpop.f32.mrf.mxu2 }
 0x1ac   : > { %v1554_v56 = vmax.f32 %v1538_v16, 0.0  ;;  %v1394_v57 = vmax.f32 %v1378_v55, 0.0  ;;  %v1123_v29 = vadd.f32 %v1098_v42, %v2412_v21  ;;  %v1216_v59 = vpop.f32.mrf.mxu3 }
 0x1ae   : > { %1570 = vst.msk [vmem:[%s2476_s19 + $0x40] sm:$0xff] %vm379_vm1, %v1554_v56  ;;  %v1489_v61 = vadd.f32 %v1488_v50, %v1394_v57  ;;  %v1241_v2 = vadd.f32 %v1216_v59, %v1123_v29 }
 0x1af   : > { %v1336_v5 = vpop.f32.mrf.mxu0 }
 0x1b0   : > { %v1519_v53 = vmul.f32 %v2462_v10, %v1489_v61  ;;  %v1359_v3 = vadd.f32 %v1334_v51, %v1241_v2  ;;  %v1493_v11 = vpop.f32.mrf.mxu1 }
 0x1b2   : > { %v1539_v45 = vadd.f32 %v2468_v24, %v1519_v53  ;;  %v1379_v6 = vadd.f32 %v2455_v54, %v1359_v3 }
 0x1b3   : > { %v1100_v44 = vpop.f32.mrf.mxu2 }
 0x1b4   : > { %v1555_v7 = vmax.f32 %v1539_v45, 0.0  ;;  %v1395_v41 = vmax.f32 %v1379_v6, 0.0  ;;  %v1124_v22 = vadd.f32 %v1100_v44, %v2423_v58  ;;  %v1218_v21 = vpop.f32.mrf.mxu3 }
 0x1b6   : > { %1571 = vst.msk [vmem:[%s2476_s19 + $0x48] sm:$0xff] %vm379_vm1, %v1555_v7  ;;  %v1492_v19 = vadd.f32 %v1491_v26, %v1395_v41  ;;  %v1242_v49 = vadd.f32 %v1218_v21, %v1124_v22 }
 0x1b7   : > { %v1339_v15 = vpop.f32.mrf.mxu0 }
 0x1b8   : > { %v1520_v40 = vmul.f32 %v2462_v10, %v1492_v19  ;;  %v1360_v13 = vadd.f32 %v1336_v5, %v1242_v49  ;;  %v1496_v62 = vpop.f32.mrf.mxu1 }
 0x1ba   : > { %v1540_v39 = vadd.f32 %v2468_v24, %v1520_v40  ;;  %v1380_v46 = vadd.f32 %v2455_v54, %v1360_v13 }
 0x1bb   : > { %v1103_v14 = vpop.f32.mrf.mxu2 }
 0x1bc   : > { %v1556_v17 = vmax.f32 %v1540_v39, 0.0  ;;  %v1396_v12 = vmax.f32 %v1380_v46, 0.0  ;;  %v1125_v58 = vadd.f32 %v1103_v14, %v2430_v52  ;;  %v1221_v18 = vpop.f32.mrf.mxu3 }
 0x1be   : > { %1572 = vst.msk [vmem:[%s2476_s19 + $0x50] sm:$0xff] %vm379_vm1, %v1556_v17  ;;  %v1494_v63 = vadd.f32 %v1493_v11, %v1396_v12  ;;  %v1243_v8 = vadd.f32 %v1221_v18, %v1125_v58 }
 0x1bf   : > { %v1341_v34 = vpop.f32.mrf.mxu0 }
 0x1c0   : > { %v1521_v37 = vmul.f32 %v2462_v10, %v1494_v63  ;;  %v1361_v31 = vadd.f32 %v1339_v15, %v1243_v8  ;;  %v1498_v32 = vpop.f32.mrf.mxu1 }
 0x1c2   : > { %v1541_v43 = vadd.f32 %v2468_v24, %v1521_v37  ;;  %v1381_v60 = vadd.f32 %v2455_v54, %v1361_v31 }
 0x1c3   : > { %v1105_v30 = vpop.f32.mrf.mxu2 }
 0x1c4   : > { %v1557_v35 = vmax.f32 %v1541_v43, 0.0  ;;  %v1397_v36 = vmax.f32 %v1381_v60, 0.0  ;;  %v1126_v52 = vadd.f32 %v1105_v30, %v2441_v9  ;;  %v1223_v50 = vpop.f32.mrf.mxu3 }
 0x1c6   : > { %1573 = vst.msk [vmem:[%s2476_s19 + $0x58] sm:$0xff] %vm379_vm1, %v1557_v35  ;;  %v1497_v38 = vadd.f32 %v1496_v62, %v1397_v36  ;;  %v1244_v33 = vadd.f32 %v1223_v50, %v1126_v52 }
 0x1c7   : > { %v1344_v28 = vpop.f32.mrf.mxu0 }
 0x1c8   : > { %v1522_v48 = vmul.f32 %v2462_v10, %v1497_v38  ;;  %v1362_v23 = vadd.f32 %v1341_v34, %v1244_v33  ;;  %v1501_v29 = vpop.f32.mrf.mxu1 }
 0x1ca   : > { %v1542_v4 = vadd.f32 %v2468_v24, %v1522_v48  ;;  %v1382_v1 = vadd.f32 %v2455_v54, %v1362_v23 }
 0x1cb   : > { %v1108_v47 = vpop.f32.mrf.mxu2 }
 0x1cc   : > { %v1558_v25 = vmax.f32 %v1542_v4, 0.0  ;;  %v1398_v51 = vmax.f32 %v1382_v1, 0.0  ;;  %v1127_v0 = vadd.f32 %v1108_v47, %v2445_v20  ;;  %v1226_v9 = vpop.f32.mrf.mxu3 }
 0x1ce   : > { %1574 = vst.msk [vmem:[%s2476_s19 + $0x60] sm:$0xff] %vm379_vm1, %v1558_v25  ;;  %v1499_v16 = vadd.f32 %v1498_v32, %v1398_v51  ;;  %v1245_v55 = vadd.f32 %v1226_v9, %v1127_v0 }
 0x1cf   : > { %v1346_v45 = vpop.f32.mrf.mxu0 }
 0x1d0   : > { %v1523_v42 = vmul.f32 %v2462_v10, %v1499_v16  ;;  %v1363_v26 = vadd.f32 %v1344_v28, %v1245_v55  ;;  %v1503_v11 = vpop.f32.mrf.mxu1 }
 0x1d2   : > { %v1543_v56 = vadd.f32 %v2468_v24, %v1523_v42  ;;  %v1383_v57 = vadd.f32 %v2455_v54, %v1363_v26 }
 0x1d3   : > { %v1110_v59 = vpop.f32.mrf.mxu2 }
 0x1d4   : > { %v1559_v61 = vmax.f32 %v1543_v56, 0.0  ;;  %v1399_v2 = vmax.f32 %v1383_v57, 0.0  ;;  %v1128_v20 = vadd.f32 %v1110_v59, %v2449_v27  ;;  %v1228_v5 = vpop.f32.mrf.mxu3 }
 0x1d6   : > { %1575 = vst.msk [vmem:[%s2476_s19 + $0x68] sm:$0xff] %vm379_vm1, %v1559_v61  ;;  %v1502_v53 = vadd.f32 %v1501_v29, %v1399_v2  ;;  %v1246_v3 = vadd.f32 %v1228_v5, %v1128_v20 }
 0x1d8   : > { %v1524_v6 = vmul.f32 %v2462_v10, %v1502_v53  ;;  %v1364_v44 = vadd.f32 %v1346_v45, %v1246_v3 }
 0x1da   : > { %v1544_v7 = vadd.f32 %v2468_v24, %v1524_v6  ;;  %v1384_v41 = vadd.f32 %v2455_v54, %v1364_v44 }
 0x1dc   : > { %v1560_v22 = vmax.f32 %v1544_v7, 0.0  ;;  %v1400_v21 = vmax.f32 %v1384_v41, 0.0 }
 0x1de   : > { %1576 = vst.msk [vmem:[%s2476_s19 + $0x70] sm:$0xff] %vm379_vm1, %v1560_v22  ;;  %v1504_v27 = vadd.f32 %v1503_v11, %v1400_v21 }
 0x1e0   : > { %v1525_v19 = vmul.f32 %v2462_v10, %v1504_v27 }
 0x1e2   : > { %v1545_v49 = vadd.f32 %v2468_v24, %v1525_v19 }
 0x1e4   : > { %v1561_v40 = vmax.f32 %v1545_v49, 0.0 }
 0x1e6   : > { %1577 = vst.msk [vmem:[%s2476_s19 + $0x78] sm:$0xff] %vm379_vm1, %v1561_v40 }
 0x1e7 PF: > { %s17_s28 = sadd.s32 1, %s1983_s28   ;;  %s2591_s24 = smov %s1975_s26 }
 0x1e8   : > { %p14_p7 = scmp.ge.s32.totalorder %s17_s28, 6   ;;  %s2592_s25 = smov %s1979_s27 }
 0x1e9   : > { %s2593_s26 = smov %s2596_s29  ;;  %s2594_s27 = smov %s2600_s30 }
 0x1ea   :  { %16 = sbr.rel (!%p14_p7) target bundleno = 3 (0x3), region = 93 }

// kernel: _lambda_.35
= control target key start
LH: loop header
LB: loop body
LE: loop exit
PB: predicated region body
PF: predicated region fallthrough
CT: control target
= control target key end

     0   :  { %s1688_s12 = smov 0   ;;  %s1690_s13 = smov 0   ;;  %s2158_s0 = inlined_call_operand.vmem [shape: f32[2,18,18,8], index: 0, kind: input, shape index: {}]   ;;  %s2159_s1 = inlined_call_operand.vmem [shape: bf16[3,3,8,8], index: 1, kind: input, shape index: {}]   ;;  %s2160_s2 = inlined_call_operand.vmem [shape: f32[1,8], index: 2, kind: input, shape index: {}]   ;;  %s2161_s3 = inlined_call_operand.vmem [shape: f32[2,16,16,8], index: 3, kind: output, shape index: {}]  }
   0x1   :  { %s1692_s14 = smov 0   ;;  %s1694_s15 = smov 0  }
   0x2   :  { %s1696_s16 = smov 0  }
   0x3 LB: > { %s22_s17 = sadd.s32 1, %s1658_s14  ;;  %s25_s18 = sadd.s32 1, %s1662_s15  ;;  %s1666_s16 = sphi %s1696_s16, %s13_s16   ;;  %s1662_s15 = sphi %s1694_s15, %s2165_s15   ;;  %s1658_s14 = sphi %s1692_s14, %s2164_s14   ;;  %s1654_s13 = sphi %s1690_s13, %s2163_s13   ;;  %s1650_s12 = sphi %s1688_s12, %s2162_s12  }
   0x4   : > { %p23_p0 = scmp.ge.s32.totalorder %s22_s17, 2  ;;  %p1393_p1 = scmp.ge.s32.totalorder %s1666_s16, 1 }
   0x5   : > { %p151_p2 = scmp.lt.s32.totalorder %s1666_s16, 5 }
   0x6   : > { %s2167_s17 = smov (%p23_p0, %s22_s17), 0  ;;  %s2169_s18 = smov (!%p23_p0, %s25_s18), %s1662_s15 }
   0x7   : > { %p152_p3 = pnand %p1393_p1, %p151_p2  ;;  %p27_p4 = scmp.ge.s32.totalorder %s2169_s18, 2 }
   0x8   : > { %p180_p5 = scmp.lt.s32.totalorder (!%p152_p3), %s1654_s13, 1  ;;  %s1400_s27 = smul.u32 (!%p152_p3), 192, %s1650_s12 }
   0x9   : > { %s2171_s18 = smov (%p27_p4, %s2169_s18), 0  ;;  %155 = sbr.rel (%p152_p3) target bundleno = 447 (0x1bf), region = 32 }
   0xa   : > { %s1395_s23 = sshll.u32 (!%p152_p3), %s1650_s12, 3 }
   0xb   : > { %p188_p6 = scmp.lt.s32.totalorder (!%p152_p3), %s1395_s23, 15 }
   0xe   : > { %v1401_v0 = vld [vmem:[%s2159_s1 + $0x4] sm:$0xf]  ;;  %vm276_vm0 = vcmask 1043456   ;;  %v1418_v2 = vld [vmem:[%s2159_s1 + $0x8] sm:$0xf]  ;;  %s2173_s13 = smov (!%p180_p5, %s1654_s13), 1 }
   0xf   : > { %v278_v1 = vsel %vm276_vm0, %v1401_v0, 0  ;;  %v1445_v3 = vld [vmem:[%s2159_s1 + $0xc] sm:$0xf]  ;;  %v456_v4 = vsel %vm276_vm0, %v1418_v2, 0  ;;  %v224_v6 = vld [vmem:[%s2159_s1] sm:$0xf] }
  0x10   : > { %1583 = vmatpush.bf16.msra.mxu1 %v278_v1  ;;  %1584 = vmatpush.bf16.msra.mxu2 %v278_v1  ;;  %v577_v5 = vsel %vm276_vm0, %v1445_v3, 0  ;;  %v354_v7 = vsel %vm276_vm0, %v224_v6, 0  ;;  %v1470_v8 = vld [vmem:[%s2159_s1 + $0x10] sm:$0xf]  ;;  %s1586_s30 = smul.u32 432, %s2173_s13  ;;  %vm251_vm1 = vcmask 64512  }
  0x11   : > { %1585 = vmatpush.bf16.msra.mxu3 %v278_v1  ;;  %287 = vmatpush.bf16.msra.mxu0 %v278_v1  ;;  %v695_v9 = vsel %vm276_vm0, %v1470_v8, 0  ;;  %v1522_v22 = vld [vmem:[%s2159_s1 + $0x18] sm:$0xf]  ;;  %v1547_v23 = vld [vmem:[%s2159_s1 + $0x1c] sm:$0xf]  ;;  %s2175_s23 = smov (!%p188_p6, %s1395_s23), 15 }
  0x12   : > { %s184_s6 = scalar_lea.vmem %s2158_s0, %s1586_s30  ;;  %v934_v24 = vsel %vm276_vm0, %v1522_v22, 0  ;;  %v1052_v25 = vsel %vm276_vm0, %v1547_v23, 0  ;;  %v1495_v26 = vld [vmem:[%s2159_s1 + $0x14] sm:$0xf]  ;;  %v1572_v27 = vld [vmem:[%s2159_s1 + $0x20] sm:$0xf] }
  0x13   : > { %s1747_s7 = scalar_lea.vmem %s184_s6, %s1400_s27  ;;  %v813_v28 = vsel %vm276_vm0, %v1495_v26, 0  ;;  %v1170_v29 = vsel %vm276_vm0, %v1572_v27, 0  ;;  %s1396_s24 = sshll.u32 %s2175_s23, 1 }
  0x14   : > { %465 = vmatpush.bf16.msrb.mxu2 %v456_v4  ;;  %363 = vmatpush.bf16.msrb.mxu1 %v354_v7  ;;  %v229_v10 = vld [vmem:[%s1747_s7 + $0x31] sm:$0xff]  ;;  %v230_v11 = vld [vmem:[%s1747_s7 + $0x39] sm:$0xff]  ;;  %v233_v12 = vld [vmem:[%s1747_s7 + $0x61] sm:$0xff]  ;;  %s1397_s25 = sshll.u32 %s2173_s13, 5 }
  0x15   : > { %586 = vmatpush.bf16.msrb.mxu3 %v577_v5  ;;  %704 = vmatpush.bf16.msrb.mxu0 %v695_v9  ;;  %v1752_v13 = vpack.c.bf16 %v230_v11, %v229_v10  ;;  %v234_v14 = vld [vmem:[%s1747_s7 + $0x69] sm:$0xff]  ;;  %v237_v15 = vld [vmem:[%s1747_s7 + $0x91] sm:$0xff]  ;;  %v238_v16 = vld [vmem:[%s1747_s7 + $0x99] sm:$0xff]  ;;  %s192_s12 = sadd.s32 %s1397_s25, %s1396_s24 }
  0x16   : > { %v1757_v17 = vpack.c.bf16 %v234_v14, %v233_v12  ;;  %v1759_v18 = vpack.c.bf16 %v238_v16, %v237_v15  ;;  %v225_v19 = vld [vmem:[%s1747_s7 + $0x1] sm:$0xff]  ;;  %v226_v20 = vld [vmem:[%s1747_s7 + $0x9] sm:$0xff]  ;;  %v232_v31 = vld [vmem:[%s1747_s7 + $0x51] sm:$0xff]  ;;  %s1398_s28 = sshll.u32 %s192_s12, 3 }
  0x17   : > { %1404 = vmatmul.msk.bf16.vlgmr.msra.gmra.mxu1 %vm251_vm1, %v1752_v13  ;;  %v241_v21 = vpack.c.bf16 %v226_v20, %v225_v19  ;;  %v231_v30 = vld [vmem:[%s1747_s7 + $0x49] sm:$0xff]  ;;  %v235_v32 = vld [vmem:[%s1747_s7 + $0x79] sm:$0xff]  ;;  %v236_v33 = vld [vmem:[%s1747_s7 + $0x81] sm:$0xff]  ;;  %s2080_s30 = scalar_lea.vmem %s2161_s3, %s1398_s28 }
  0x18   : > { %1406 = vmatmul.msk.bf16.vlgmr.msra.gmra.mxu2 %vm251_vm1, %v1757_v17  ;;  %1408 = vmatmul.msk.bf16.vlgmr.msra.gmra.mxu3 %vm251_vm1, %v1759_v18  ;;  %v239_v34 = vld [vmem:[%s1747_s7 + $0xa9] sm:$0xff]  ;;  %v240_v35 = vld [vmem:[%s1747_s7 + $0xb1] sm:$0xff]  ;;  %v227_v36 = vld [vmem:[%s1747_s7 + $0x19] sm:$0xff]  ;;  %v1794_v38 = vpack.c.bf16 %v232_v31, %v231_v30  ;;  %v1796_v39 = vpack.c.bf16 %v236_v33, %v235_v32 }
  0x19   : > { %1402 = vmatmul.msk.bf16.vlgmr.msra.gmra.mxu0 %vm251_vm1, %v241_v21  ;;  %943 = vmatpush.bf16.msra.mxu2 %v934_v24  ;;  %v228_v37 = vld [vmem:[%s1747_s7 + $0x21] sm:$0xff]  ;;  %v1798_v40 = vpack.c.bf16 %v240_v35, %v239_v34  ;;  %v406_v45 = vld [vmem:[%s1747_s7 + $0xa] sm:$0xff]  ;;  %v1429_v46 = vld [vmem:[%s1747_s7 + $0x18] sm:$0xff] }
  0x1a   : > { %1061 = vmatpush.bf16.msra.mxu3 %v1052_v25  ;;  %822 = vmatpush.bf16.msra.mxu1 %v813_v28  ;;  %v242_v41 = vpack.c.bf16 %v228_v37, %v227_v36  ;;  %v200_v42 = vld [vmem:[%s1747_s7] sm:$0xff]  ;;  %v201_v43 = vld [vmem:[%s1747_s7 + $0x8] sm:$0xff]  ;;  %v1431_v53 = vld [vmem:[%s1747_s7 + $0x30] sm:$0xff] }
  0x1b   : > { %1179 = vmatpush.bf16.msra.mxu0 %v1170_v29  ;;  %v405_v44 = vld [vmem:[%s1747_s7 + $0x2] sm:$0xff]  ;;  %v216_v48 = vpack.c.bf16 %v201_v43, %v200_v42  ;;  %v407_v51 = vld [vmem:[%s1747_s7 + $0x1a] sm:$0xff]  ;;  %v409_v57 = vld [vmem:[%s1747_s7 + $0x32] sm:$0xff] }
  0x1c   : > { %v1430_v47 = vld [vmem:[%s1747_s7 + $0x20] sm:$0xff]  ;;  %v421_v49 = vpack.c.bf16 %v406_v45, %v405_v44  ;;  %v1432_v54 = vld [vmem:[%s1747_s7 + $0x38] sm:$0xff]  ;;  %v1433_v59 = vld [vmem:[%s1747_s7 + $0x48] sm:$0xff] }
  0x1d   : > { %v542_v50 = vpack.c.bf16 %v1430_v47, %v1429_v46  ;;  %v408_v52 = vld [vmem:[%s1747_s7 + $0x22] sm:$0xff]  ;;  %v1823_v56 = vpack.c.bf16 %v1432_v54, %v1431_v53  ;;  %v410_v58 = vld [vmem:[%s1747_s7 + $0x3a] sm:$0xff]  ;;  %v1434_v60 = vld [vmem:[%s1747_s7 + $0x50] sm:$0xff] }
  0x1e   : > { %v1821_v55 = vpack.c.bf16 %v408_v52, %v407_v51  ;;  %v1836_v61 = vpack.c.bf16 %v410_v58, %v409_v57  ;;  %v1838_v62 = vpack.c.bf16 %v1434_v60, %v1433_v59  ;;  %v411_v63 = vld [vmem:[%s1747_s7 + $0x4a] sm:$0xff]  ;;  %v412_v0 = vld [vmem:[%s1747_s7 + $0x52] sm:$0xff]  ;;  %v1435_v1 = vld [vmem:[%s1747_s7 + $0x60] sm:$0xff] }
  0x1f   : > { %v1436_v2 = vld [vmem:[%s1747_s7 + $0x68] sm:$0xff]  ;;  %v1852_v3 = vpack.c.bf16 %v412_v0, %v411_v63  ;;  %v1437_v7 = vld [vmem:[%s1747_s7 + $0x78] sm:$0xff]  ;;  %v1438_v8 = vld [vmem:[%s1747_s7 + $0x80] sm:$0xff] }
  0x20   : > { %v1854_v4 = vpack.c.bf16 %v1436_v2, %v1435_v1  ;;  %v413_v5 = vld [vmem:[%s1747_s7 + $0x62] sm:$0xff]  ;;  %v414_v6 = vld [vmem:[%s1747_s7 + $0x6a] sm:$0xff]  ;;  %v1870_v10 = vpack.c.bf16 %v1438_v8, %v1437_v7  ;;  %v415_v11 = vld [vmem:[%s1747_s7 + $0x7a] sm:$0xff] }
  0x21   : > { %v1868_v9 = vpack.c.bf16 %v414_v6, %v413_v5  ;;  %v416_v12 = vld [vmem:[%s1747_s7 + $0x82] sm:$0xff]  ;;  %v1439_v14 = vld [vmem:[%s1747_s7 + $0x90] sm:$0xff]  ;;  %v1440_v15 = vld [vmem:[%s1747_s7 + $0x98] sm:$0xff] }
  0x22   : > { %v1884_v16 = vpack.c.bf16 %v416_v12, %v415_v11  ;;  %v1886_v19 = vpack.c.bf16 %v1440_v15, %v1439_v14  ;;  %v417_v20 = vld [vmem:[%s1747_s7 + $0x92] sm:$0xff]  ;;  %v418_v21 = vld [vmem:[%s1747_s7 + $0x9a] sm:$0xff]  ;;  %v1441_v22 = vld [vmem:[%s1747_s7 + $0xa8] sm:$0xff] }
  0x23   : > { %v1442_v23 = vld [vmem:[%s1747_s7 + $0xb0] sm:$0xff]  ;;  %v1902_v25 = vpack.c.bf16 %v418_v21, %v417_v20  ;;  %v1443_v34 = vld [vmem:[%s1747_s7 + $0xc0] sm:$0xff]  ;;  %v1444_v35 = vld [vmem:[%s1747_s7 + $0xc8] sm:$0xff] }
  0x24   : > { %v1904_v26 = vpack.c.bf16 %v1442_v23, %v1441_v22  ;;  %v419_v32 = vld [vmem:[%s1747_s7 + $0xaa] sm:$0xff]  ;;  %v420_v33 = vld [vmem:[%s1747_s7 + $0xb2] sm:$0xff]  ;;  %v1468_v36 = vld [vmem:[%s1747_s7 + $0xc1] sm:$0xff]  ;;  %v1934_v45 = vpack.c.bf16 %v1444_v35, %v1443_v34 }
  0x25   : > { %v1469_v37 = vld [vmem:[%s1747_s7 + $0xc9] sm:$0xff]  ;;  %v1932_v44 = vpack.c.bf16 %v420_v33, %v419_v32 }
  0x26   : > { %v1936_v46 = vpack.c.bf16 %v1469_v37, %v1468_v36 }
  0x27   : > { %1405 = vmatmul.msk.bf16.gmra.mxu1 %vm251_vm1, %v1794_v38 }
  0x28   : > { %1407 = vmatmul.msk.bf16.gmra.mxu2 %vm251_vm1, %v1796_v39  ;;  %1409 = vmatmul.msk.bf16.gmra.mxu3 %vm251_vm1, %v1798_v40 }
  0x29   : > { %1403 = vmatmul.msk.bf16.gmra.mxu0 %vm251_vm1, %v242_v41 }
  0x37   : > { %1410 = vmatmul.msk.bf16.vlgmr.msrb.gmra.mxu1 %vm251_vm1, %v216_v48 }
  0x38   : > { %1419 = vmatmul.msk.bf16.vlgmr.msrb.gmra.mxu2 %vm251_vm1, %v421_v49  ;;  %1446 = vmatmul.msk.bf16.vlgmr.msrb.gmra.mxu3 %vm251_vm1, %v542_v50 }
  0x39   : > { %1471 = vmatmul.msk.bf16.vlgmr.msrb.gmra.mxu0 %vm251_vm1, %v242_v41 }
  0x47   : > { %1411 = vmatmul.msk.bf16.gmra.mxu1 %vm251_vm1, %v542_v50 }
  0x48   : > { %1420 = vmatmul.msk.bf16.gmra.mxu2 %vm251_vm1, %v1821_v55  ;;  %1447 = vmatmul.msk.bf16.gmra.mxu3 %vm251_vm1, %v1823_v56 }
  0x49   : > { %1472 = vmatmul.msk.bf16.gmra.mxu0 %vm251_vm1, %v1752_v13 }
  0x57   : > { %1412 = vmatmul.msk.bf16.gmra.mxu1 %vm251_vm1, %v1823_v56 }
  0x58   : > { %1421 = vmatmul.msk.bf16.gmra.mxu2 %vm251_vm1, %v1836_v61  ;;  %1448 = vmatmul.msk.bf16.gmra.mxu3 %vm251_vm1, %v1838_v62 }
  0x59   : > { %1473 = vmatmul.msk.bf16.gmra.mxu0 %vm251_vm1, %v1794_v38 }
  0x67   : > { %1413 = vmatmul.msk.bf16.gmra.mxu1 %vm251_vm1, %v1838_v62 }
  0x68   : > { %1422 = vmatmul.msk.bf16.gmra.mxu2 %vm251_vm1, %v1852_v3  ;;  %1449 = vmatmul.msk.bf16.gmra.mxu3 %vm251_vm1, %v1854_v4 }
  0x69   : > { %1474 = vmatmul.msk.bf16.gmra.mxu0 %vm251_vm1, %v1757_v17 }
  0x77   : > { %1414 = vmatmul.msk.bf16.gmra.mxu1 %vm251_vm1, %v1854_v4 }
  0x78   : > { %1423 = vmatmul.msk.bf16.gmra.mxu2 %vm251_vm1, %v1868_v9  ;;  %1450 = vmatmul.msk.bf16.gmra.mxu3 %vm251_vm1, %v1870_v10 }
  0x79   : > { %1475 = vmatmul.msk.bf16.gmra.mxu0 %vm251_vm1, %v1796_v39 }
  0x87   : > { %1415 = vmatmul.msk.bf16.gmra.mxu1 %vm251_vm1, %v1870_v10 }
  0x88   : > { %1424 = vmatmul.msk.bf16.gmra.mxu2 %vm251_vm1, %v1884_v16  ;;  %1451 = vmatmul.msk.bf16.gmra.mxu3 %vm251_vm1, %v1886_v19 }
  0x89   : > { %1476 = vmatmul.msk.bf16.gmra.mxu0 %vm251_vm1, %v1759_v18 }
  0x94   : > { %v1900_v24 = vpop.f32.mrf.mxu1 }
  0x96   : > { %v289_v27 = vpop.f32.mrf.mxu0 }
  0x97   : > { %1416 = vmatmul.msk.bf16.gmra.mxu1 %vm251_vm1, %v1886_v19 }
  0x98   : > { %1425 = vmatmul.msk.bf16.gmra.mxu2 %vm251_vm1, %v1902_v25  ;;  %1452 = vmatmul.msk.bf16.gmra.mxu3 %vm251_vm1, %v1904_v26 }
  0x99   : > { %1477 = vmatmul.msk.bf16.gmra.mxu0 %vm251_vm1, %v1798_v40 }
  0x9b   : > { %v1914_v28 = vpop.f32.mrf.mxu2  ;;  %v1916_v29 = vpop.f32.mrf.mxu3 }
  0x9c   : > { %v1918_v30 = vpop.f32.mrf.mxu1 }
  0x9e   : > { %v291_v31 = vpop.f32.mrf.mxu0 }
  0xa3   : > { %v1926_v41 = vpop.f32.mrf.mxu2  ;;  %v1928_v42 = vpop.f32.mrf.mxu3 }
  0xa4   : > { %v1930_v43 = vpop.f32.mrf.mxu1 }
  0xa6   : > { %v294_v47 = vpop.f32.mrf.mxu0 }
  0xa7   : > { %1417 = vmatmul.msk.bf16.gmra.mxu1 %vm251_vm1, %v1904_v26 }
  0xa8   : > { %1426 = vmatmul.msk.bf16.gmra.mxu2 %vm251_vm1, %v1932_v44  ;;  %1453 = vmatmul.msk.bf16.gmra.mxu3 %vm251_vm1, %v1934_v45 }
  0xa9   : > { %1478 = vmatmul.msk.bf16.gmra.mxu0 %vm251_vm1, %v1936_v46 }
  0xab   : > { %v1946_v48 = vpop.f32.mrf.mxu2  ;;  %v1948_v49 = vpop.f32.mrf.mxu3 }
  0xac   : > { %v1950_v50 = vpop.f32.mrf.mxu1 }
  0xae   : > { %v296_v51 = vpop.f32.mrf.mxu0 }
  0xb3   : > { %v1952_v52 = vpop.f32.mrf.mxu2  ;;  %v1954_v53 = vpop.f32.mrf.mxu3 }
  0xb4   : > { %v365_v54 = vpop.f32.mrf.mxu1 }
  0xb5   : > { %v366_v57 = vadd.f32 %v365_v54, %v289_v27 }
  0xb6   : > { %v706_v58 = vpop.f32.mrf.mxu0 }
  0xb7   : > { %1496 = vmatmul.msk.bf16.vlgmr.msra.gmra.mxu1 %vm251_vm1, %v1821_v55 }
  0xb8   : > { %1523 = vmatmul.msk.bf16.vlgmr.msra.gmra.mxu2 %vm251_vm1, %v1823_v56  ;;  %1548 = vmatmul.msk.bf16.vlgmr.msra.gmra.mxu3 %vm251_vm1, %v1752_v13 }
  0xb9   : > { %1573 = vmatmul.msk.bf16.vlgmr.msra.gmra.mxu0 %vm251_vm1, %v1836_v61 }
  0xbb   : > { %v467_v59 = vpop.f32.mrf.mxu2  ;;  %v588_v60 = vpop.f32.mrf.mxu3 }
  0xbc   : > { %v507_v63 = vadd.f32 %v467_v59, %v366_v57  ;;  %v367_v0 = vpop.f32.mrf.mxu1 }
  0xbd   : > { %v368_v1 = vadd.f32 %v367_v0, %v291_v31 }
  0xbe   : > { %v628_v2 = vadd.f32 %v588_v60, %v507_v63  ;;  %v708_v5 = vpop.f32.mrf.mxu0 }
  0xc0   : > { %v1964_v6 = vadd.f32 %v706_v58, %v628_v2 }
  0xc3   : > { %v469_v7 = vpop.f32.mrf.mxu2  ;;  %v590_v55 = vpop.f32.mrf.mxu3 }
  0xc4   : > { %v508_v8 = vadd.f32 %v469_v7, %v368_v1  ;;  %v370_v11 = vpop.f32.mrf.mxu1 }
  0xc5   : > { %v371_v56 = vadd.f32 %v370_v11, %v294_v47 }
  0xc6   : > { %v629_v12 = vadd.f32 %v590_v55, %v508_v8  ;;  %v711_v14 = vpop.f32.mrf.mxu0 }
  0xc7   : > { %1497 = vmatmul.msk.bf16.gmra.mxu1 %vm251_vm1, %v1836_v61 }
  0xc8   : > { %1524 = vmatmul.msk.bf16.gmra.mxu2 %vm251_vm1, %v1838_v62  ;;  %1549 = vmatmul.msk.bf16.gmra.mxu3 %vm251_vm1, %v1794_v38  ;;  %v1972_v13 = vadd.f32 %v708_v5, %v629_v12 }
  0xc9   : > { %1574 = vmatmul.msk.bf16.gmra.mxu0 %vm251_vm1, %v1852_v3 }
  0xcb   : > { %v472_v15 = vpop.f32.mrf.mxu2  ;;  %v593_v20 = vpop.f32.mrf.mxu3 }
  0xcc   : > { %v509_v21 = vadd.f32 %v472_v15, %v371_v56  ;;  %v372_v22 = vpop.f32.mrf.mxu1 }
  0xcd   : > { %v373_v23 = vadd.f32 %v372_v22, %v296_v51 }
  0xce   : > { %v630_v27 = vadd.f32 %v593_v20, %v509_v21  ;;  %v713_v31 = vpop.f32.mrf.mxu0 }
  0xd0   : > { %v1976_v32 = vadd.f32 %v711_v14, %v630_v27 }
  0xd3   : > { %v474_v61 = vpop.f32.mrf.mxu2  ;;  %v595_v33 = vpop.f32.mrf.mxu3 }
  0xd4   : > { %v510_v62 = vadd.f32 %v474_v61, %v373_v23  ;;  %v375_v34 = vpop.f32.mrf.mxu1 }
  0xd5   : > { %v376_v38 = vadd.f32 %v375_v34, %v1900_v24 }
  0xd6   : > { %v631_v35 = vadd.f32 %v595_v33, %v510_v62  ;;  %v716_v36 = vpop.f32.mrf.mxu0 }
  0xd7   : > { %1498 = vmatmul.msk.bf16.gmra.mxu1 %vm251_vm1, %v1852_v3 }
  0xd8   : > { %1525 = vmatmul.msk.bf16.gmra.mxu2 %vm251_vm1, %v1854_v4  ;;  %1550 = vmatmul.msk.bf16.gmra.mxu3 %vm251_vm1, %v1757_v17  ;;  %v1985_v37 = vadd.f32 %v713_v31, %v631_v35 }
  0xd9   : > { %1575 = vmatmul.msk.bf16.gmra.mxu0 %vm251_vm1, %v1868_v9 }
  0xdb   : > { %v477_v47 = vpop.f32.mrf.mxu2  ;;  %v598_v51 = vpop.f32.mrf.mxu3 }
  0xdc   : > { %v511_v54 = vadd.f32 %v477_v47, %v376_v38  ;;  %v377_v24 = vpop.f32.mrf.mxu1 }
  0xdd   : > { %v378_v57 = vadd.f32 %v377_v24, %v1918_v30 }
  0xde   : > { %v632_v58 = vadd.f32 %v598_v51, %v511_v54  ;;  %v718_v59 = vpop.f32.mrf.mxu0 }
  0xe0   : > { %v1990_v3 = vadd.f32 %v716_v36, %v632_v58 }
  0xe3   : > { %v479_v60 = vpop.f32.mrf.mxu2  ;;  %v600_v4 = vpop.f32.mrf.mxu3 }
  0xe4   : > { %v512_v63 = vadd.f32 %v479_v60, %v378_v57  ;;  %v380_v0 = vpop.f32.mrf.mxu1  ;;  %v1569_v60 = vld [vmem:[%s1747_s7 + $0xca] sm:$0xff] }
  0xe5   : > { %v381_v17 = vadd.f32 %v380_v0, %v1930_v43 }
  0xe6   : > { %v633_v1 = vadd.f32 %v600_v4, %v512_v63  ;;  %v721_v2 = vpop.f32.mrf.mxu0 }
  0xe7   : > { %1499 = vmatmul.msk.bf16.gmra.mxu1 %vm251_vm1, %v1868_v9 }
  0xe8   : > { %1526 = vmatmul.msk.bf16.gmra.mxu2 %vm251_vm1, %v1870_v10  ;;  %1551 = vmatmul.msk.bf16.gmra.mxu3 %vm251_vm1, %v1796_v39  ;;  %v1999_v30 = vadd.f32 %v718_v59, %v633_v1  ;;  %v1568_v59 = vld [vmem:[%s1747_s7 + $0xc2] sm:$0xff] }
  0xe9   : > { %1576 = vmatmul.msk.bf16.gmra.mxu0 %vm251_vm1, %v1884_v16 }
  0xeb   : > { %v482_v5 = vpop.f32.mrf.mxu2  ;;  %v603_v7 = vpop.f32.mrf.mxu3 }
  0xec   : > { %v513_v55 = vadd.f32 %v482_v5, %v381_v17  ;;  %v382_v43 = vpop.f32.mrf.mxu1  ;;  %v1141_v17 = vpack.c.bf16 %v1569_v60, %v1568_v59 }
  0xed   : > { %v383_v8 = vadd.f32 %v382_v43, %v1950_v50 }
  0xee   : > { %v634_v11 = vadd.f32 %v603_v7, %v513_v55  ;;  %v723_v56 = vpop.f32.mrf.mxu0 }
  0xf0   : > { %v2004_v9 = vadd.f32 %v721_v2, %v634_v11  ;;  %v1520_v11 = vld [vmem:[%s1747_s7 + $0xd8] sm:$0xff] }
  0xf3   : > { %v484_v12 = vpop.f32.mrf.mxu2  ;;  %v605_v10 = vpop.f32.mrf.mxu3 }
  0xf4   : > { %v514_v14 = vadd.f32 %v484_v12, %v383_v8  ;;  %v385_v15 = vpop.f32.mrf.mxu1  ;;  %v1545_v12 = vld [vmem:[%s1747_s7 + $0xd9] sm:$0xff] }
  0xf5   : > { %v386_v21 = vadd.f32 %v385_v15, %v1914_v28  ;;  %v1571_v15 = vld [vmem:[%s1747_s7 + $0xe2] sm:$0xff] }
  0xf6   : > { %v635_v39 = vadd.f32 %v605_v10, %v514_v14  ;;  %v726_v20 = vpop.f32.mrf.mxu0  ;;  %v1570_v14 = vld [vmem:[%s1747_s7 + $0xda] sm:$0xff] }
  0xf7   : > { %1500 = vmatmul.msk.bf16.gmra.mxu1 %vm251_vm1, %v1884_v16 }
  0xf8   : > { %1527 = vmatmul.msk.bf16.gmra.mxu2 %vm251_vm1, %v1886_v19  ;;  %1552 = vmatmul.msk.bf16.gmra.mxu3 %vm251_vm1, %v1759_v18  ;;  %v2012_v50 = vadd.f32 %v723_v56, %v635_v39 }
  0xf9   : > { %1577 = vmatmul.msk.bf16.gmra.mxu0 %vm251_vm1, %v1902_v25 }
  0xfb   : > { %v487_v22 = vpop.f32.mrf.mxu2  ;;  %v608_v23 = vpop.f32.mrf.mxu3 }
  0xfc   : > { %v515_v27 = vadd.f32 %v487_v22, %v386_v21  ;;  %v387_v31 = vpop.f32.mrf.mxu1 }
  0xfd   : > { %v388_v19 = vadd.f32 %v387_v31, %v1926_v41 }
  0xfe   : > { %v636_v61 = vadd.f32 %v608_v23, %v515_v27  ;;  %v728_v33 = vpop.f32.mrf.mxu0  ;;  %v1142_v27 = vpack.c.bf16 %v1571_v15, %v1570_v14 }
 0x100   : > { %v2017_v16 = vadd.f32 %v726_v20, %v636_v61 }
 0x103   : > { %v489_v62 = vpop.f32.mrf.mxu2  ;;  %v610_v34 = vpop.f32.mrf.mxu3 }
 0x104   : > { %v516_v18 = vadd.f32 %v489_v62, %v388_v19  ;;  %v390_v38 = vpop.f32.mrf.mxu1 }
 0x105   : > { %v391_v41 = vadd.f32 %v390_v38, %v1946_v48 }
 0x106   : > { %v637_v35 = vadd.f32 %v610_v34, %v516_v18  ;;  %v731_v36 = vpop.f32.mrf.mxu0 }
 0x107   : > { %1501 = vmatmul.msk.bf16.gmra.mxu1 %vm251_vm1, %v1902_v25 }
 0x108   : > { %1528 = vmatmul.msk.bf16.gmra.mxu2 %vm251_vm1, %v1904_v26  ;;  %1553 = vmatmul.msk.bf16.gmra.mxu3 %vm251_vm1, %v1798_v40  ;;  %v2026_v28 = vadd.f32 %v728_v33, %v637_v35 }
 0x109   : > { %1578 = vmatmul.msk.bf16.gmra.mxu0 %vm251_vm1, %v1932_v44 }
 0x10b   : > { %v492_v47 = vpop.f32.mrf.mxu2  ;;  %v613_v51 = vpop.f32.mrf.mxu3 }
 0x10c   : > { %v517_v54 = vadd.f32 %v492_v47, %v391_v41  ;;  %v392_v24 = vpop.f32.mrf.mxu1 }
 0x10d   : > { %v393_v26 = vadd.f32 %v392_v24, %v1952_v52 }
 0x10e   : > { %v638_v57 = vadd.f32 %v613_v51, %v517_v54  ;;  %v733_v58 = vpop.f32.mrf.mxu0 }
 0x110   : > { %v2031_v25 = vadd.f32 %v731_v36, %v638_v57 }
 0x113   : > { %v494_v40 = vpop.f32.mrf.mxu2  ;;  %v615_v4 = vpop.f32.mrf.mxu3 }
 0x114   : > { %v518_v63 = vadd.f32 %v494_v40, %v393_v26  ;;  %v395_v0 = vpop.f32.mrf.mxu1 }
 0x115   : > { %v396_v2 = vadd.f32 %v395_v0, %v1916_v29 }
 0x116   : > { %v639_v1 = vadd.f32 %v615_v4, %v518_v63  ;;  %v736_v48 = vpop.f32.mrf.mxu0  ;;  %v2073_v63 = vld [vmem:[%s2160_s2] ss:$0 sm:$0xff] }
 0x117   : > { %1502 = vmatmul.msk.bf16.gmra.mxu1 %vm251_vm1, %v1932_v44 }
 0x118   : > { %1529 = vmatmul.msk.bf16.gmra.mxu2 %vm251_vm1, %v1934_v45  ;;  %1554 = vmatmul.msk.bf16.gmra.mxu3 %vm251_vm1, %v1936_v46  ;;  %v2042_v52 = vadd.f32 %v733_v58, %v639_v1  ;;  %v1521_v45 = vld [vmem:[%s1747_s7 + $0xe0] sm:$0xff] }
 0x119   : > { %1579 = vmatmul.msk.bf16.gmra.mxu0 %vm251_vm1, %v1141_v17  ;;  %v1546_v46 = vld [vmem:[%s1747_s7 + $0xe1] sm:$0xff]  ;;  %v906_v22 = vpack.c.bf16 %v1521_v45, %v1520_v11 }
 0x11a   : > { %v1024_v23 = vpack.c.bf16 %v1546_v46, %v1545_v12 }
 0x11b   : > { %v497_v5 = vpop.f32.mrf.mxu2  ;;  %v618_v7 = vpop.f32.mrf.mxu3 }
 0x11c   : > { %v519_v55 = vadd.f32 %v497_v5, %v396_v2  ;;  %v397_v43 = vpop.f32.mrf.mxu1 }
 0x11d   : > { %v398_v10 = vadd.f32 %v397_v43, %v1928_v42 }
 0x11e   : > { %v640_v44 = vadd.f32 %v618_v7, %v519_v55  ;;  %v738_v8 = vpop.f32.mrf.mxu0 }
 0x120   : > { %v2047_v56 = vadd.f32 %v736_v48, %v640_v44 }
 0x123   : > { %v499_v39 = vpop.f32.mrf.mxu2  ;;  %v620_v20 = vpop.f32.mrf.mxu3 }
 0x124   : > { %v520_v21 = vadd.f32 %v499_v39, %v398_v10  ;;  %v400_v29 = vpop.f32.mrf.mxu1 }
 0x125   : > { %v401_v42 = vadd.f32 %v400_v29, %v1948_v49 }
 0x126   : > { %v641_v31 = vadd.f32 %v620_v20, %v520_v21  ;;  %v741_v61 = vpop.f32.mrf.mxu0 }
 0x127   : > { %1503 = vmatmul.msk.bf16.gmra.mxu1 %vm251_vm1, %v1141_v17 }
 0x128   : > { %1530 = vmatmul.msk.bf16.gmra.mxu2 %vm251_vm1, %v906_v22  ;;  %1555 = vmatmul.msk.bf16.gmra.mxu3 %vm251_vm1, %v1024_v23  ;;  %v2058_v33 = vadd.f32 %v738_v8, %v641_v31 }
 0x129   : > { %1580 = vmatmul.msk.bf16.gmra.mxu0 %vm251_vm1, %v1142_v27 }
 0x12b   : > { %v502_v19 = vpop.f32.mrf.mxu2  ;;  %v623_v62 = vpop.f32.mrf.mxu3 }
 0x12c   : > { %v521_v34 = vadd.f32 %v502_v19, %v401_v42  ;;  %v402_v18 = vpop.f32.mrf.mxu1 }
 0x12d   : > { %v403_v41 = vadd.f32 %v402_v18, %v1954_v53 }
 0x12e   : > { %v642_v38 = vadd.f32 %v623_v62, %v521_v34  ;;  %v743_v35 = vpop.f32.mrf.mxu0 }
 0x130   : > { %v2063_v36 = vadd.f32 %v741_v61, %v642_v38 }
 0x133   : > { %v504_v47 = vpop.f32.mrf.mxu2  ;;  %v625_v51 = vpop.f32.mrf.mxu3 }
 0x134   : > { %v522_v54 = vadd.f32 %v504_v47, %v403_v41  ;;  %v824_v24 = vpop.f32.mrf.mxu1 }
 0x135   : > { %v864_v26 = vadd.f32 %v824_v24, %v1964_v6 }
 0x136   : > { %v643_v57 = vadd.f32 %v625_v51, %v522_v54  ;;  %v1181_v58 = vpop.f32.mrf.mxu0 }
 0x138   : > { %v2066_v49 = vadd.f32 %v743_v35, %v643_v57 }
 0x13b   : > { %v945_v59 = vpop.f32.mrf.mxu2  ;;  %v1063_v60 = vpop.f32.mrf.mxu3 }
 0x13c   : > { %v985_v40 = vadd.f32 %v945_v59, %v864_v26  ;;  %v826_v4 = vpop.f32.mrf.mxu1 }
 0x13d   : > { %v865_v6 = vadd.f32 %v826_v4, %v1972_v13 }
 0x13e   : > { %v1103_v53 = vadd.f32 %v1063_v60, %v985_v40  ;;  %v1183_v0 = vpop.f32.mrf.mxu0 }
 0x140   : > { %v1221_v17 = vadd.f32 %v1181_v58, %v1103_v53 }
 0x142   : > { %v1241_v1 = vadd.f32 %v2073_v63, %v1221_v17 }
 0x143   : > { %v947_v48 = vpop.f32.mrf.mxu2  ;;  %v1065_v2 = vpop.f32.mrf.mxu3 }
 0x144   : > { %v1257_v5 = vmax.f32 %v1241_v1, 0.0  ;;  %v986_v7 = vadd.f32 %v947_v48, %v865_v6  ;;  %v829_v55 = vpop.f32.mrf.mxu1 }
 0x145   : > { %v866_v13 = vadd.f32 %v829_v55, %v1976_v32 }
 0x146   : > { %1273 = vst.msk [vmem:[%s2080_s30] sm:$0xff] %vm251_vm1, %v1257_v5  ;;  %v1104_v43 = vadd.f32 %v1065_v2, %v986_v7  ;;  %v1186_v44 = vpop.f32.mrf.mxu0 }
 0x148   : > { %v1222_v8 = vadd.f32 %v1183_v0, %v1104_v43 }
 0x14a   : > { %v1242_v11 = vadd.f32 %v2073_v63, %v1222_v8 }
 0x14b   : > { %v950_v45 = vpop.f32.mrf.mxu2  ;;  %v1068_v12 = vpop.f32.mrf.mxu3 }
 0x14c   : > { %v1258_v46 = vmax.f32 %v1242_v11, 0.0  ;;  %v987_v10 = vadd.f32 %v950_v45, %v866_v13  ;;  %v831_v14 = vpop.f32.mrf.mxu1 }
 0x14d   : > { %v867_v29 = vadd.f32 %v831_v14, %v1985_v37 }
 0x14e   : > { %1274 = vst.msk [vmem:[%s2080_s30 + $0x8] sm:$0xff] %vm251_vm1, %v1258_v46  ;;  %v1105_v15 = vadd.f32 %v1068_v12, %v987_v10  ;;  %v1188_v39 = vpop.f32.mrf.mxu0 }
 0x150   : > { %v1223_v20 = vadd.f32 %v1186_v44, %v1105_v15 }
 0x152   : > { %v1243_v21 = vadd.f32 %v2073_v63, %v1223_v20 }
 0x153   : > { %v952_v22 = vpop.f32.mrf.mxu2  ;;  %v1070_v23 = vpop.f32.mrf.mxu3 }
 0x154   : > { %v1259_v27 = vmax.f32 %v1243_v21, 0.0  ;;  %v988_v32 = vadd.f32 %v952_v22, %v867_v29  ;;  %v834_v31 = vpop.f32.mrf.mxu1 }
 0x155   : > { %v868_v34 = vadd.f32 %v834_v31, %v1990_v3 }
 0x156   : > { %1275 = vst.msk [vmem:[%s2080_s30 + $0x10] sm:$0xff] %vm251_vm1, %v1259_v27  ;;  %v1106_v61 = vadd.f32 %v1070_v23, %v988_v32  ;;  %v1191_v42 = vpop.f32.mrf.mxu0 }
 0x158   : > { %v1224_v19 = vadd.f32 %v1188_v39, %v1106_v61 }
 0x15a   : > { %v1244_v62 = vadd.f32 %v2073_v63, %v1224_v19 }
 0x15b   : > { %v955_v18 = vpop.f32.mrf.mxu2  ;;  %v1073_v38 = vpop.f32.mrf.mxu3 }
 0x15c   : > { %v1260_v35 = vmax.f32 %v1244_v62, 0.0  ;;  %v989_v37 = vadd.f32 %v955_v18, %v868_v34  ;;  %v836_v41 = vpop.f32.mrf.mxu1 }
 0x15d   : > { %v869_v57 = vadd.f32 %v836_v41, %v1999_v30 }
 0x15e   : > { %1276 = vst.msk [vmem:[%s2080_s30 + $0x18] sm:$0xff] %vm251_vm1, %v1260_v35  ;;  %v1107_v47 = vadd.f32 %v1073_v38, %v989_v37  ;;  %v1193_v51 = vpop.f32.mrf.mxu0 }
 0x160   : > { %v1225_v54 = vadd.f32 %v1191_v42, %v1107_v47 }
 0x162   : > { %v1245_v24 = vadd.f32 %v2073_v63, %v1225_v54 }
 0x163   : > { %v957_v58 = vpop.f32.mrf.mxu2  ;;  %v1075_v26 = vpop.f32.mrf.mxu3 }
 0x164   : > { %v1261_v59 = vmax.f32 %v1245_v24, 0.0  ;;  %v990_v3 = vadd.f32 %v957_v58, %v869_v57  ;;  %v839_v60 = vpop.f32.mrf.mxu1 }
 0x165   : > { %v870_v17 = vadd.f32 %v839_v60, %v2004_v9 }
 0x166   : > { %1277 = vst.msk [vmem:[%s2080_s30 + $0x20] sm:$0xff] %vm251_vm1, %v1261_v59  ;;  %v1108_v40 = vadd.f32 %v1075_v26, %v990_v3  ;;  %v1196_v4 = vpop.f32.mrf.mxu0 }
 0x168   : > { %v1226_v53 = vadd.f32 %v1193_v51, %v1108_v40 }
 0x16a   : > { %v1246_v0 = vadd.f32 %v2073_v63, %v1226_v53 }
 0x16b   : > { %v960_v1 = vpop.f32.mrf.mxu2  ;;  %v1078_v6 = vpop.f32.mrf.mxu3 }
 0x16c   : > { %v1262_v48 = vmax.f32 %v1246_v0, 0.0  ;;  %v991_v30 = vadd.f32 %v960_v1, %v870_v17  ;;  %v841_v2 = vpop.f32.mrf.mxu1 }
 0x16d   : > { %v871_v44 = vadd.f32 %v841_v2, %v2012_v50 }
 0x16e   : > { %1278 = vst.msk [vmem:[%s2080_s30 + $0x28] sm:$0xff] %vm251_vm1, %v1262_v48  ;;  %v1109_v5 = vadd.f32 %v1078_v6, %v991_v30  ;;  %v1198_v7 = vpop.f32.mrf.mxu0 }
 0x170   : > { %v1227_v55 = vadd.f32 %v1196_v4, %v1109_v5 }
 0x172   : > { %v1247_v43 = vadd.f32 %v2073_v63, %v1227_v55 }
 0x173   : > { %v962_v8 = vpop.f32.mrf.mxu2  ;;  %v1080_v11 = vpop.f32.mrf.mxu3 }
 0x174   : > { %v1263_v13 = vmax.f32 %v1247_v43, 0.0  ;;  %v992_v9 = vadd.f32 %v962_v8, %v871_v44  ;;  %v844_v45 = vpop.f32.mrf.mxu1 }
 0x175   : > { %v872_v15 = vadd.f32 %v844_v45, %v2017_v16 }
 0x176   : > { %1279 = vst.msk [vmem:[%s2080_s30 + $0x30] sm:$0xff] %vm251_vm1, %v1263_v13  ;;  %v1110_v12 = vadd.f32 %v1080_v11, %v992_v9  ;;  %v1201_v46 = vpop.f32.mrf.mxu0 }
 0x178   : > { %v1228_v10 = vadd.f32 %v1198_v7, %v1110_v12 }
 0x17a   : > { %v1248_v14 = vadd.f32 %v2073_v63, %v1228_v10 }
 0x17b   : > { %v965_v39 = vpop.f32.mrf.mxu2  ;;  %v1083_v20 = vpop.f32.mrf.mxu3 }
 0x17c   : > { %v1264_v21 = vmax.f32 %v1248_v14, 0.0  ;;  %v993_v50 = vadd.f32 %v965_v39, %v872_v15  ;;  %v846_v29 = vpop.f32.mrf.mxu1 }
 0x17d   : > { %v873_v31 = vadd.f32 %v846_v29, %v2026_v28 }
 0x17e   : > { %1280 = vst.msk [vmem:[%s2080_s30 + $0x38] sm:$0xff] %vm251_vm1, %v1264_v21  ;;  %v1111_v22 = vadd.f32 %v1083_v20, %v993_v50  ;;  %v1203_v23 = vpop.f32.mrf.mxu0 }
 0x180   : > { %v1229_v27 = vadd.f32 %v1201_v46, %v1111_v22 }
 0x182   : > { %v1249_v32 = vadd.f32 %v2073_v63, %v1229_v27 }
 0x183   : > { %v967_v61 = vpop.f32.mrf.mxu2  ;;  %v1085_v42 = vpop.f32.mrf.mxu3 }
 0x184   : > { %v1265_v19 = vmax.f32 %v1249_v32, 0.0  ;;  %v994_v16 = vadd.f32 %v967_v61, %v873_v31  ;;  %v849_v62 = vpop.f32.mrf.mxu1 }
 0x185   : > { %v874_v37 = vadd.f32 %v849_v62, %v2031_v25 }
 0x186   : > { %1281 = vst.msk [vmem:[%s2080_s30 + $0x40] sm:$0xff] %vm251_vm1, %v1265_v19  ;;  %v1112_v34 = vadd.f32 %v1085_v42, %v994_v16  ;;  %v1206_v18 = vpop.f32.mrf.mxu0 }
 0x188   : > { %v1230_v38 = vadd.f32 %v1203_v23, %v1112_v34 }
 0x18a   : > { %v1250_v35 = vadd.f32 %v2073_v63, %v1230_v38 }
 0x18b   : > { %v970_v41 = vpop.f32.mrf.mxu2  ;;  %v1088_v47 = vpop.f32.mrf.mxu3 }
 0x18c   : > { %v1266_v51 = vmax.f32 %v1250_v35, 0.0  ;;  %v995_v28 = vadd.f32 %v970_v41, %v874_v37  ;;  %v851_v54 = vpop.f32.mrf.mxu1 }
 0x18d   : > { %v875_v59 = vadd.f32 %v851_v54, %v2042_v52 }
 0x18e   : > { %1282 = vst.msk [vmem:[%s2080_s30 + $0x48] sm:$0xff] %vm251_vm1, %v1266_v51  ;;  %v1113_v24 = vadd.f32 %v1088_v47, %v995_v28  ;;  %v1208_v57 = vpop.f32.mrf.mxu0 }
 0x190   : > { %v1231_v58 = vadd.f32 %v1206_v18, %v1113_v24 }
 0x192   : > { %v1251_v26 = vadd.f32 %v2073_v63, %v1231_v58 }
 0x193   : > { %v972_v3 = vpop.f32.mrf.mxu2  ;;  %v1090_v60 = vpop.f32.mrf.mxu3 }
 0x194   : > { %v1267_v40 = vmax.f32 %v1251_v26, 0.0  ;;  %v996_v25 = vadd.f32 %v972_v3, %v875_v59  ;;  %v854_v4 = vpop.f32.mrf.mxu1 }
 0x195   : > { %v876_v6 = vadd.f32 %v854_v4, %v2047_v56 }
 0x196   : > { %1283 = vst.msk [vmem:[%s2080_s30 + $0x50] sm:$0xff] %vm251_vm1, %v1267_v40  ;;  %v1114_v53 = vadd.f32 %v1090_v60, %v996_v25  ;;  %v1211_v17 = vpop.f32.mrf.mxu0 }
 0x198   : > { %v1232_v0 = vadd.f32 %v1208_v57, %v1114_v53 }
 0x19a   : > { %v1252_v1 = vadd.f32 %v2073_v63, %v1232_v0 }
 0x19b   : > { %v975_v48 = vpop.f32.mrf.mxu2  ;;  %v1093_v30 = vpop.f32.mrf.mxu3 }
 0x19c   : > { %v1268_v2 = vmax.f32 %v1252_v1, 0.0  ;;  %v997_v52 = vadd.f32 %v975_v48, %v876_v6  ;;  %v856_v5 = vpop.f32.mrf.mxu1 }
 0x19d   : > { %v877_v44 = vadd.f32 %v856_v5, %v2058_v33 }
 0x19e   : > { %1284 = vst.msk [vmem:[%s2080_s30 + $0x58] sm:$0xff] %vm251_vm1, %v1268_v2  ;;  %v1115_v7 = vadd.f32 %v1093_v30, %v997_v52  ;;  %v1213_v8 = vpop.f32.mrf.mxu0 }
 0x1a0   : > { %v1233_v55 = vadd.f32 %v1211_v17, %v1115_v7 }
 0x1a2   : > { %v1253_v43 = vadd.f32 %v2073_v63, %v1233_v55 }
 0x1a3   : > { %v977_v11 = vpop.f32.mrf.mxu2  ;;  %v1095_v13 = vpop.f32.mrf.mxu3 }
 0x1a4   : > { %v1269_v9 = vmax.f32 %v1253_v43, 0.0  ;;  %v998_v56 = vadd.f32 %v977_v11, %v877_v44  ;;  %v859_v45 = vpop.f32.mrf.mxu1 }
 0x1a5   : > { %v878_v14 = vadd.f32 %v859_v45, %v2063_v36 }
 0x1a6   : > { %1285 = vst.msk [vmem:[%s2080_s30 + $0x60] sm:$0xff] %vm251_vm1, %v1269_v9  ;;  %v1116_v12 = vadd.f32 %v1095_v13, %v998_v56  ;;  %v1216_v21 = vpop.f32.mrf.mxu0 }
 0x1a8   : > { %v1234_v46 = vadd.f32 %v1213_v8, %v1116_v12 }
 0x1aa   : > { %v1254_v10 = vadd.f32 %v2073_v63, %v1234_v46 }
 0x1ab   : > { %v980_v15 = vpop.f32.mrf.mxu2  ;;  %v1098_v39 = vpop.f32.mrf.mxu3 }
 0x1ac   : > { %v1270_v20 = vmax.f32 %v1254_v10, 0.0  ;;  %v999_v33 = vadd.f32 %v980_v15, %v878_v14  ;;  %v861_v29 = vpop.f32.mrf.mxu1 }
 0x1ad   : > { %v879_v27 = vadd.f32 %v861_v29, %v2066_v49 }
 0x1ae   : > { %1286 = vst.msk [vmem:[%s2080_s30 + $0x68] sm:$0xff] %vm251_vm1, %v1270_v20  ;;  %v1117_v50 = vadd.f32 %v1098_v39, %v999_v33  ;;  %v1218_v19 = vpop.f32.mrf.mxu0 }
 0x1b0   : > { %v1235_v22 = vadd.f32 %v1216_v21, %v1117_v50 }
 0x1b2   : > { %v1255_v23 = vadd.f32 %v2073_v63, %v1235_v22 }
 0x1b3   : > { %v982_v32 = vpop.f32.mrf.mxu2  ;;  %v1100_v36 = vpop.f32.mrf.mxu3 }
 0x1b4   : > { %v1271_v31 = vmax.f32 %v1255_v23, 0.0  ;;  %v1000_v61 = vadd.f32 %v982_v32, %v879_v27 }
 0x1b6   : > { %1287 = vst.msk [vmem:[%s2080_s30 + $0x70] sm:$0xff] %vm251_vm1, %v1271_v31  ;;  %v1118_v42 = vadd.f32 %v1100_v36, %v1000_v61 }
 0x1b8   : > { %v1236_v16 = vadd.f32 %v1218_v19, %v1118_v42 }
 0x1ba   : > { %v1256_v62 = vadd.f32 %v2073_v63, %v1236_v16 }
 0x1bc   : > { %v1272_v34 = vmax.f32 %v1256_v62, 0.0 }
 0x1be   : > { %1288 = vst.msk [vmem:[%s2080_s30 + $0x78] sm:$0xff] %vm251_vm1, %v1272_v34 }
 0x1bf PF: > { %s13_s16 = sadd.s32 1, %s1666_s16   ;;  %s2162_s12 = smov %s1658_s14 }
 0x1c0   : > { %p10_p7 = scmp.ge.s32.totalorder %s13_s16, 6   ;;  %s2163_s13 = smov %s1662_s15 }
 0x1c1   : > { %s2164_s14 = smov %s2167_s17  ;;  %s2165_s15 = smov %s2171_s18 }
 0x1c2   :  { %12 = sbr.rel (!%p10_p7) target bundleno = 3 (0x3), region = 73 }

// kernel: _lambda_.36
= control target key start
LH: loop header
LB: loop body
LE: loop exit
PB: predicated region body
PF: predicated region fallthrough
CT: control target
= control target key end

     0   :  { %s2023_s24 = smov 0   ;;  %s2025_s25 = smov 0   ;;  %s2582_s0 = inlined_call_operand.vmem [shape: f32[2,18,18,8], index: 0, kind: input, shape index: {}]   ;;  %s2583_s1 = inlined_call_operand.vmem [shape: f32[2,16,16,8], index: 1, kind: input, shape index: {}]   ;;  %s2584_s2 = inlined_call_operand.vmem [shape: bf16[3,3,8,8], index: 2, kind: input, shape index: {}]   ;;  %s2585_s3 = inlined_call_operand.vmem [shape: f32[1,8], index: 3, kind: input, shape index: {}]   ;;  %s2586_s4 = inlined_call_operand.vmem [shape: bf16[8,8], index: 4, kind: input, shape index: {}]   ;;  %s2587_s5 = inlined_call_operand.vmem [shape: f32[1,8], index: 5, kind: input, shape index: {}]   ;;  %s2588_s6 = inlined_call_operand.vmem [shape: f32[1,8], index: 6, kind: input, shape index: {}]   ;;  %s2589_s7 = inlined_call_operand.vmem [shape: f32[2,16,16,8], index: 7, kind: output, shape index: {}]  }
   0x1   :  { %s2027_s26 = smov 0   ;;  %s2029_s27 = smov 0  }
   0x2   :  { %s2031_s28 = smov 0  }
   0x3 LB: > { %s26_s29 = sadd.s32 1, %s1973_s26  ;;  %s29_s30 = sadd.s32 1, %s1977_s27  ;;  %s1981_s28 = sphi %s2031_s28, %s17_s28   ;;  %s1977_s27 = sphi %s2029_s27, %s2593_s27   ;;  %s1973_s26 = sphi %s2027_s26, %s2592_s26   ;;  %s1969_s25 = sphi %s2025_s25, %s2591_s25   ;;  %s1965_s24 = sphi %s2023_s24, %s2590_s24  }
   0x4   : > { %p27_p0 = scmp.ge.s32.totalorder %s26_s29, 2  ;;  %p1694_p1 = scmp.ge.s32.totalorder %s1981_s28, 1 }
   0x5   : > { %p261_p2 = scmp.lt.s32.totalorder %s1981_s28, 5 }
   0x6   : > { %s2595_s29 = smov (%p27_p0, %s26_s29), 0  ;;  %s2597_s30 = smov (!%p27_p0, %s29_s30), %s1977_s27 }
   0x7   : > { %p262_p3 = pnand %p1694_p1, %p261_p2  ;;  %p31_p4 = scmp.ge.s32.totalorder %s2597_s30, 2 }
   0x8   : > { %p303_p5 = scmp.lt.s32.totalorder (!%p262_p3), %s1969_s25, 1  ;;  %s1703_s12 = smul.u32 (!%p262_p3), 192, %s1965_s24 }
   0x9   : > { %s2599_s30 = smov (%p31_p4, %s2597_s30), 0  ;;  %265 = sbr.rel (%p262_p3) target bundleno = 487 (0x1e7), region = 48 }
   0xa   : > { %s1896_s22 = sshll.u32 (!%p262_p3), %s1965_s24, 7 }
   0xe   : > { %v1704_v0 = vld [vmem:[%s2584_s2 + $0x4] sm:$0xf]  ;;  %vm404_vm0 = vcmask 1043456   ;;  %v352_v1 = vld [vmem:[%s2584_s2] sm:$0xf]  ;;  %s2601_s25 = smov (!%p303_p5, %s1969_s25), 1 }
   0xf   : > { %v406_v2 = vsel %vm404_vm0, %v1704_v0, 0  ;;  %v482_v3 = vsel %vm404_vm0, %v352_v1, 0  ;;  %v1721_v4 = vld [vmem:[%s2584_s2 + $0x8] sm:$0xf]  ;;  %v1748_v6 = vld [vmem:[%s2584_s2 + $0xc] sm:$0xf] }
  0x10   : > { %1897 = vmatpush.bf16.msra.mxu2 %v406_v2  ;;  %1898 = vmatpush.bf16.msra.mxu3 %v482_v3  ;;  %v584_v5 = vsel %vm404_vm0, %v1721_v4, 0  ;;  %v1773_v7 = vld [vmem:[%s2584_s2 + $0x10] sm:$0xf]  ;;  %v705_v8 = vsel %vm404_vm0, %v1748_v6, 0  ;;  %v1798_v10 = vld [vmem:[%s2584_s2 + $0x14] sm:$0xf] }
  0x11   : > { %415 = vmatpush.bf16.msra.mxu0 %v406_v2  ;;  %491 = vmatpush.bf16.msra.mxu1 %v482_v3  ;;  %v823_v9 = vsel %vm404_vm0, %v1773_v7, 0  ;;  %s1899_s21 = smul.u32 432, %s2601_s25  ;;  %v941_v11 = vsel %vm404_vm0, %v1798_v10, 0  ;;  %vm379_vm1 = vcmask 64512   ;;  %v1825_v48 = vld [vmem:[%s2584_s2 + $0x18] sm:$0xf] }
  0x12   : > { %v1850_v49 = vld [vmem:[%s2584_s2 + $0x1c] sm:$0xf]  ;;  %v1062_v50 = vsel %vm404_vm0, %v1825_v48, 0  ;;  %v1875_v52 = vld [vmem:[%s2584_s2 + $0x20] sm:$0xf]  ;;  %s1895_s18 = sshll.u32 %s2601_s25, 8 }
  0x13   : > { %s307_s8 = scalar_lea.vmem %s2582_s0, %s1899_s21  ;;  %v1180_v51 = vsel %vm404_vm0, %v1850_v49, 0  ;;  %v1298_v53 = vsel %vm404_vm0, %v1875_v52, 0  ;;  %v1427_v2 = vld [vmem:[%s2586_s4] sm:$0xf]  ;;  %s312_s21 = scalar_lea.vmem %s2583_s1, %s1895_s18 }
  0x14   : > { %593 = vmatpush.bf16.msrb.mxu2 %v584_v5  ;;  %714 = vmatpush.bf16.msrb.mxu3 %v705_v8  ;;  %s2086_s9 = scalar_lea.vmem %s307_s8, %s1703_s12  ;;  %v1453_v3 = vsel %vm404_vm0, %v1427_v2, 0  ;;  %s2322_s23 = scalar_lea.vmem %s312_s21, %s1896_s22 }
  0x15   : > { %832 = vmatpush.bf16.msrb.mxu0 %v823_v9  ;;  %950 = vmatpush.bf16.msrb.mxu1 %v941_v11  ;;  %v361_v12 = vld [vmem:[%s2086_s9 + $0x61] sm:$0xff]  ;;  %v362_v13 = vld [vmem:[%s2086_s9 + $0x69] sm:$0xff]  ;;  %v363_v24 = vld [vmem:[%s2086_s9 + $0x79] sm:$0xff]  ;;  %s1698_s8 = sshll.u32 %s1965_s24, 3  ;;  %s1700_s11 = sshll.u32 %s2601_s25, 5 }
  0x16   : > { %v336_v14 = vld [vmem:[%s2086_s9 + $0x60] sm:$0xff]  ;;  %v2091_v15 = vpack.c.bf16 %v362_v13, %v361_v12  ;;  %v337_v16 = vld [vmem:[%s2086_s9 + $0x68] sm:$0xff]  ;;  %v338_v26 = vld [vmem:[%s2086_s9 + $0x78] sm:$0xff]  ;;  %p316_p6 = scmp.lt.s32.totalorder %s1698_s8, 15 }
  0x17   : > { %v353_v17 = vld [vmem:[%s2086_s9 + $0x1] sm:$0xff]  ;;  %v354_v18 = vld [vmem:[%s2086_s9 + $0x9] sm:$0xff]  ;;  %v2096_v19 = vpack.c.bf16 %v337_v16, %v336_v14  ;;  %v355_v28 = vld [vmem:[%s2086_s9 + $0x19] sm:$0xff] }
  0x18   : > { %v369_v20 = vpack.c.bf16 %v354_v18, %v353_v17  ;;  %v328_v21 = vld [vmem:[%s2086_s9] sm:$0xff]  ;;  %v329_v22 = vld [vmem:[%s2086_s9 + $0x8] sm:$0xff]  ;;  %1709 = vmatmul.msk.bf16.vlgmr.msra.gmra.mxu2 %vm379_vm1, %v2091_v15  ;;  %v330_v30 = vld [vmem:[%s2086_s9 + $0x18] sm:$0xff]  ;;  %s2603_s8 = smov (!%p316_p6, %s1698_s8), 15 }
  0x19   : > { %v344_v23 = vpack.c.bf16 %v329_v22, %v328_v21  ;;  %1717 = vmatmul.msk.bf16.vlgmr.msra.gmra.mxu3 %vm379_vm1, %v2096_v19  ;;  %v364_v25 = vld [vmem:[%s2086_s9 + $0x81] sm:$0xff]  ;;  %v365_v36 = vld [vmem:[%s2086_s9 + $0x91] sm:$0xff]  ;;  %v366_v37 = vld [vmem:[%s2086_s9 + $0x99] sm:$0xff]  ;;  %1071 = vmatpush.bf16.msra.mxu2 %v1062_v50  ;;  %s1699_s24 = sshll.u32 %s2603_s8, 1 }
  0x1a   : > { %1705 = vmatmul.msk.bf16.vlgmr.msra.gmra.mxu0 %vm379_vm1, %v369_v20  ;;  %v339_v27 = vld [vmem:[%s2086_s9 + $0x80] sm:$0xff]  ;;  %v2114_v32 = vpack.c.bf16 %v364_v25, %v363_v24  ;;  %v340_v38 = vld [vmem:[%s2086_s9 + $0x90] sm:$0xff]  ;;  %v341_v39 = vld [vmem:[%s2086_s9 + $0x98] sm:$0xff]  ;;  %v2132_v44 = vpack.c.bf16 %v366_v37, %v365_v36  ;;  %1189 = vmatpush.bf16.msra.mxu3 %v1180_v51  ;;  %s320_s14 = sadd.s32 %s1700_s11, %s1699_s24 }
  0x1b   : > { %1713 = vmatmul.msk.bf16.vlgmr.msra.gmra.mxu1 %vm379_vm1, %v344_v23  ;;  %v356_v29 = vld [vmem:[%s2086_s9 + $0x21] sm:$0xff]  ;;  %v2116_v33 = vpack.c.bf16 %v339_v27, %v338_v26  ;;  %v357_v40 = vld [vmem:[%s2086_s9 + $0x31] sm:$0xff]  ;;  %v358_v41 = vld [vmem:[%s2086_s9 + $0x39] sm:$0xff]  ;;  %v2134_v45 = vpack.c.bf16 %v341_v39, %v340_v38  ;;  %1307 = vmatpush.bf16.msra.mxu0 %v1298_v53  ;;  %s1701_s25 = sshll.u32 %s320_s14, 3 }
  0x1c   : > { %v331_v31 = vld [vmem:[%s2086_s9 + $0x20] sm:$0xff]  ;;  %v370_v34 = vpack.c.bf16 %v356_v29, %v355_v28  ;;  %v332_v42 = vld [vmem:[%s2086_s9 + $0x30] sm:$0xff]  ;;  %v333_v43 = vld [vmem:[%s2086_s9 + $0x38] sm:$0xff]  ;;  %v2136_v46 = vpack.c.bf16 %v358_v41, %v357_v40  ;;  %1462 = vmatpush.bf16.msra.mxu1 %v1453_v3  ;;  %s2475_s19 = scalar_lea.vmem %s2589_s7, %s1701_s25 }
  0x1d   : > { %v345_v35 = vpack.c.bf16 %v331_v31, %v330_v30  ;;  %v2138_v47 = vpack.c.bf16 %v333_v43, %v332_v42  ;;  %v367_v54 = vld [vmem:[%s2086_s9 + $0xa9] sm:$0xff]  ;;  %v368_v55 = vld [vmem:[%s2086_s9 + $0xb1] sm:$0xff]  ;;  %v1782_v6 = vld [vmem:[%s2086_s9 + $0x1a] sm:$0xff] }
  0x1e   : > { %v342_v56 = vld [vmem:[%s2086_s9 + $0xa8] sm:$0xff]  ;;  %v343_v57 = vld [vmem:[%s2086_s9 + $0xb0] sm:$0xff]  ;;  %v2168_v62 = vpack.c.bf16 %v368_v55, %v367_v54  ;;  %v1785_v11 = vld [vmem:[%s2086_s9 + $0x3a] sm:$0xff] }
  0x1f   : > { %v359_v58 = vld [vmem:[%s2086_s9 + $0x49] sm:$0xff]  ;;  %v360_v59 = vld [vmem:[%s2086_s9 + $0x51] sm:$0xff]  ;;  %v2170_v63 = vpack.c.bf16 %v343_v57, %v342_v56  ;;  %v1790_v21 = vld [vmem:[%s2086_s9 + $0x7a] sm:$0xff] }
  0x20   : > { %v334_v60 = vld [vmem:[%s2086_s9 + $0x48] sm:$0xff]  ;;  %v335_v61 = vld [vmem:[%s2086_s9 + $0x50] sm:$0xff]  ;;  %v2172_v0 = vpack.c.bf16 %v360_v59, %v359_v58  ;;  %v1793_v37 = vld [vmem:[%s2086_s9 + $0x9a] sm:$0xff] }
  0x21   : > { %v2174_v1 = vpack.c.bf16 %v335_v61, %v334_v60  ;;  %v533_v4 = vld [vmem:[%s2086_s9 + $0x2] sm:$0xff]  ;;  %v534_v5 = vld [vmem:[%s2086_s9 + $0xa] sm:$0xff]  ;;  %v1784_v10 = vld [vmem:[%s2086_s9 + $0x32] sm:$0xff] }
  0x22   : > { %v1783_v7 = vld [vmem:[%s2086_s9 + $0x22] sm:$0xff]  ;;  %v549_v8 = vpack.c.bf16 %v534_v5, %v533_v4  ;;  %v2198_v12 = vpack.c.bf16 %v1785_v11, %v1784_v10  ;;  %v1786_v13 = vld [vmem:[%s2086_s9 + $0x4a] sm:$0xff]  ;;  %v1787_v14 = vld [vmem:[%s2086_s9 + $0x52] sm:$0xff] }
  0x23   : > { %v906_v9 = vpack.c.bf16 %v1783_v7, %v1782_v6  ;;  %v2209_v16 = vpack.c.bf16 %v1787_v14, %v1786_v13  ;;  %v1788_v17 = vld [vmem:[%s2086_s9 + $0x62] sm:$0xff]  ;;  %v1789_v18 = vld [vmem:[%s2086_s9 + $0x6a] sm:$0xff]  ;;  %v1792_v36 = vld [vmem:[%s2086_s9 + $0x92] sm:$0xff] }
  0x24   : > { %v2221_v20 = vpack.c.bf16 %v1789_v18, %v1788_v17  ;;  %v1791_v22 = vld [vmem:[%s2086_s9 + $0x82] sm:$0xff]  ;;  %v2253_v41 = vpack.c.bf16 %v1793_v37, %v1792_v36  ;;  %v1794_v55 = vld [vmem:[%s2086_s9 + $0xaa] sm:$0xff]  ;;  %v1795_v56 = vld [vmem:[%s2086_s9 + $0xb2] sm:$0xff] }
  0x25   : > { %v2233_v24 = vpack.c.bf16 %v1791_v22, %v1790_v21  ;;  %v2273_v60 = vpack.c.bf16 %v1795_v56, %v1794_v55  ;;  %v1747_v10 = vld [vmem:[%s2086_s9 + $0xc8] sm:$0xff] }
  0x26   : > { %v1771_v11 = vld [vmem:[%s2086_s9 + $0xc1] sm:$0xff]  ;;  %v1772_v13 = vld [vmem:[%s2086_s9 + $0xc9] sm:$0xff] }
  0x27   : > { %v1796_v17 = vld [vmem:[%s2086_s9 + $0xc2] sm:$0xff]  ;;  %v1797_v18 = vld [vmem:[%s2086_s9 + $0xca] sm:$0xff] }
  0x28   : > { %1710 = vmatmul.msk.bf16.gmra.mxu2 %vm379_vm1, %v2114_v32 }
  0x29   : > { %1718 = vmatmul.msk.bf16.gmra.mxu3 %vm379_vm1, %v2116_v33 }
  0x2a   : > { %1706 = vmatmul.msk.bf16.gmra.mxu0 %vm379_vm1, %v370_v34 }
  0x2b   : > { %1714 = vmatmul.msk.bf16.gmra.mxu1 %vm379_vm1, %v345_v35 }
  0x38   : > { %1711 = vmatmul.msk.bf16.gmra.mxu2 %vm379_vm1, %v2132_v44 }
  0x39   : > { %1719 = vmatmul.msk.bf16.gmra.mxu3 %vm379_vm1, %v2134_v45 }
  0x3a   : > { %1707 = vmatmul.msk.bf16.gmra.mxu0 %vm379_vm1, %v2136_v46 }
  0x3b   : > { %1715 = vmatmul.msk.bf16.gmra.mxu1 %vm379_vm1, %v2138_v47 }
  0x48   : > { %1712 = vmatmul.msk.bf16.gmra.mxu2 %vm379_vm1, %v2168_v62 }
  0x49   : > { %1720 = vmatmul.msk.bf16.gmra.mxu3 %vm379_vm1, %v2170_v63 }
  0x4a   : > { %1708 = vmatmul.msk.bf16.gmra.mxu0 %vm379_vm1, %v2172_v0 }
  0x4b   : > { %1716 = vmatmul.msk.bf16.gmra.mxu1 %vm379_vm1, %v2174_v1 }
  0x58   : > { %1722 = vmatmul.msk.bf16.vlgmr.msrb.gmra.mxu2 %vm379_vm1, %v549_v8 }
  0x59   : > { %1749 = vmatmul.msk.bf16.vlgmr.msrb.gmra.mxu3 %vm379_vm1, %v345_v35 }
  0x5a   : > { %1774 = vmatmul.msk.bf16.vlgmr.msrb.gmra.mxu0 %vm379_vm1, %v370_v34 }
  0x5b   : > { %1799 = vmatmul.msk.bf16.vlgmr.msrb.gmra.mxu1 %vm379_vm1, %v906_v9 }
  0x68   : > { %1723 = vmatmul.msk.bf16.gmra.mxu2 %vm379_vm1, %v906_v9  ;;  %v1746_v9 = vld [vmem:[%s2086_s9 + $0xc0] sm:$0xff] }
  0x69   : > { %1750 = vmatmul.msk.bf16.gmra.mxu3 %vm379_vm1, %v2138_v47 }
  0x6a   : > { %1775 = vmatmul.msk.bf16.gmra.mxu0 %vm379_vm1, %v2136_v46 }
  0x6b   : > { %1800 = vmatmul.msk.bf16.gmra.mxu1 %vm379_vm1, %v2198_v12 }
  0x78   : > { %1724 = vmatmul.msk.bf16.gmra.mxu2 %vm379_vm1, %v2198_v12 }
  0x79   : > { %1751 = vmatmul.msk.bf16.gmra.mxu3 %vm379_vm1, %v2174_v1 }
  0x7a   : > { %1776 = vmatmul.msk.bf16.gmra.mxu0 %vm379_vm1, %v2172_v0 }
  0x7b   : > { %1801 = vmatmul.msk.bf16.gmra.mxu1 %vm379_vm1, %v2209_v16 }
  0x88   : > { %1725 = vmatmul.msk.bf16.gmra.mxu2 %vm379_vm1, %v2209_v16 }
  0x89   : > { %1752 = vmatmul.msk.bf16.gmra.mxu3 %vm379_vm1, %v2096_v19 }
  0x8a   : > { %1777 = vmatmul.msk.bf16.gmra.mxu0 %vm379_vm1, %v2091_v15 }
  0x8b   : > { %1802 = vmatmul.msk.bf16.gmra.mxu1 %vm379_vm1, %v2221_v20 }
  0x97   : > { %v417_v23 = vpop.f32.mrf.mxu0 }
  0x98   : > { %v493_v25 = vpop.f32.mrf.mxu1  ;;  %1726 = vmatmul.msk.bf16.gmra.mxu2 %vm379_vm1, %v2221_v20 }
  0x99   : > { %v2235_v26 = vadd.f32 %v493_v25, %v417_v23  ;;  %1753 = vmatmul.msk.bf16.gmra.mxu3 %vm379_vm1, %v2116_v33  ;;  %v2297_v23 = vpack.c.bf16 %v1747_v10, %v1746_v9  ;;  %v2299_v25 = vpack.c.bf16 %v1772_v13, %v1771_v11  ;;  %v1406_v13 = vld [vmem:[%s2322_s23 + $0x18] sm:$0xff] }
  0x9a   : > { %1778 = vmatmul.msk.bf16.gmra.mxu0 %vm379_vm1, %v2114_v32 }
  0x9b   : > { %1803 = vmatmul.msk.bf16.gmra.mxu1 %vm379_vm1, %v2233_v24  ;;  %v437_v27 = vpop.f32.mrf.mxu2 }
  0x9c   : > { %v513_v28 = vpop.f32.mrf.mxu3 }
  0x9d   : > { %v2245_v29 = vadd.f32 %v513_v28, %v437_v27  ;;  %v2301_v28 = vpack.c.bf16 %v1797_v18, %v1796_v17 }
  0x9f   : > { %v419_v30 = vpop.f32.mrf.mxu0 }
  0xa0   : > { %v495_v31 = vpop.f32.mrf.mxu1 }
  0xa1   : > { %v2247_v34 = vadd.f32 %v495_v31, %v419_v30 }
  0xa3   : > { %v439_v35 = vpop.f32.mrf.mxu2 }
  0xa4   : > { %v515_v38 = vpop.f32.mrf.mxu3 }
  0xa5   : > { %v2251_v39 = vadd.f32 %v515_v38, %v439_v35 }
  0xa7   : > { %v422_v40 = vpop.f32.mrf.mxu0 }
  0xa8   : > { %v498_v42 = vpop.f32.mrf.mxu1  ;;  %1727 = vmatmul.msk.bf16.gmra.mxu2 %vm379_vm1, %v2233_v24 }
  0xa9   : > { %v2255_v43 = vadd.f32 %v498_v42, %v422_v40  ;;  %1754 = vmatmul.msk.bf16.gmra.mxu3 %vm379_vm1, %v2134_v45 }
  0xaa   : > { %1779 = vmatmul.msk.bf16.gmra.mxu0 %vm379_vm1, %v2132_v44 }
  0xab   : > { %1804 = vmatmul.msk.bf16.gmra.mxu1 %vm379_vm1, %v2253_v41  ;;  %v442_v48 = vpop.f32.mrf.mxu2 }
  0xac   : > { %v518_v49 = vpop.f32.mrf.mxu3 }
  0xad   : > { %v2265_v50 = vadd.f32 %v518_v49, %v442_v48  ;;  %v1403_v49 = vld [vmem:[%s2322_s23] sm:$0xff] }
  0xaf   : > { %v424_v51 = vpop.f32.mrf.mxu0 }
  0xb0   : > { %v500_v52 = vpop.f32.mrf.mxu1 }
  0xb1   : > { %v2267_v53 = vadd.f32 %v500_v52, %v424_v51  ;;  %v1404_v51 = vld [vmem:[%s2322_s23 + $0x8] sm:$0xff] }
  0xb2   : > { %v1419_v56 = vpack.c.bf16 %v1404_v51, %v1403_v49  ;;  %v1407_v51 = vld [vmem:[%s2322_s23 + $0x20] sm:$0xff] }
  0xb3   : > { %v444_v54 = vpop.f32.mrf.mxu2 }
  0xb4   : > { %v520_v57 = vpop.f32.mrf.mxu3 }
  0xb5   : > { %v2271_v58 = vadd.f32 %v520_v57, %v444_v54 }
  0xb7   : > { %v427_v59 = vpop.f32.mrf.mxu0 }
  0xb8   : > { %v503_v61 = vpop.f32.mrf.mxu1  ;;  %1728 = vmatmul.msk.bf16.gmra.mxu2 %vm379_vm1, %v2253_v41 }
  0xb9   : > { %v2275_v2 = vadd.f32 %v503_v61, %v427_v59  ;;  %1755 = vmatmul.msk.bf16.gmra.mxu3 %vm379_vm1, %v2170_v63 }
  0xba   : > { %1780 = vmatmul.msk.bf16.gmra.mxu0 %vm379_vm1, %v2168_v62 }
  0xbb   : > { %1805 = vmatmul.msk.bf16.gmra.mxu1 %vm379_vm1, %v2273_v60  ;;  %v447_v3 = vpop.f32.mrf.mxu2 }
  0xbc   : > { %v523_v4 = vpop.f32.mrf.mxu3 }
  0xbd   : > { %v2285_v5 = vadd.f32 %v523_v4, %v447_v3 }
  0xbf   : > { %v429_v6 = vpop.f32.mrf.mxu0 }
  0xc0   : > { %v505_v7 = vpop.f32.mrf.mxu1 }
  0xc1   : > { %v2287_v8 = vadd.f32 %v505_v7, %v429_v6 }
  0xc3   : > { %v449_v14 = vpop.f32.mrf.mxu2 }
  0xc4   : > { %v525_v21 = vpop.f32.mrf.mxu3 }
  0xc5   : > { %v2295_v22 = vadd.f32 %v525_v21, %v449_v14 }
  0xc7   : > { %v432_v27 = vpop.f32.mrf.mxu0 }
  0xc8   : > { %v508_v30 = vpop.f32.mrf.mxu1  ;;  %1729 = vmatmul.msk.bf16.gmra.mxu2 %vm379_vm1, %v2273_v60 }
  0xc9   : > { %v2303_v31 = vadd.f32 %v508_v30, %v432_v27  ;;  %1756 = vmatmul.msk.bf16.gmra.mxu3 %vm379_vm1, %v2297_v23 }
  0xca   : > { %1781 = vmatmul.msk.bf16.gmra.mxu0 %vm379_vm1, %v2299_v25 }
  0xcb   : > { %1806 = vmatmul.msk.bf16.gmra.mxu1 %vm379_vm1, %v2301_v28  ;;  %v452_v35 = vpop.f32.mrf.mxu2 }
  0xcc   : > { %v528_v36 = vpop.f32.mrf.mxu3 }
  0xcd   : > { %v2314_v37 = vadd.f32 %v528_v36, %v452_v35 }
  0xcf   : > { %v434_v38 = vpop.f32.mrf.mxu0 }
  0xd0   : > { %v510_v40 = vpop.f32.mrf.mxu1 }
  0xd1   : > { %v2320_v42 = vadd.f32 %v510_v40, %v434_v38 }
  0xd3   : > { %v454_v48 = vpop.f32.mrf.mxu2 }
  0xd4   : > { %v530_v52 = vpop.f32.mrf.mxu3 }
  0xd5   : > { %v2326_v54 = vadd.f32 %v530_v52, %v454_v48 }
  0xd7   : > { %v834_v55 = vpop.f32.mrf.mxu0 }
  0xd8   : > { %v952_v57 = vpop.f32.mrf.mxu1  ;;  %1826 = vmatmul.msk.bf16.vlgmr.msra.gmra.mxu2 %vm379_vm1, %v2138_v47  ;;  %v1405_v47 = vld [vmem:[%s2322_s23 + $0x10] sm:$0xff] }
  0xd9   : > { %1851 = vmatmul.msk.bf16.vlgmr.msra.gmra.mxu3 %vm379_vm1, %v2136_v46  ;;  %v1420_v18 = vpack.c.bf16 %v1406_v13, %v1405_v47  ;;  %v1409_v13 = vld [vmem:[%s2322_s23 + $0x30] sm:$0xff] }
  0xda   : > { %1876 = vmatmul.msk.bf16.vlgmr.msra.gmra.mxu0 %vm379_vm1, %v2198_v12 }
  0xdb   : > { %1885 = vmatmul.msk.bf16.vlgmr.msra.gmra.mxu1 %vm379_vm1, %v1419_v56  ;;  %v595_v59 = vpop.f32.mrf.mxu2 }
  0xdc   : > { %v635_v61 = vadd.f32 %v595_v59, %v2235_v26  ;;  %v716_v3 = vpop.f32.mrf.mxu3 }
  0xde   : > { %v756_v4 = vadd.f32 %v716_v3, %v635_v61 }
  0xdf   : > { %v836_v6 = vpop.f32.mrf.mxu0 }
  0xe0   : > { %v954_v7 = vpop.f32.mrf.mxu1  ;;  %v874_v9 = vadd.f32 %v834_v55, %v756_v4 }
  0xe2   : > { %v2336_v10 = vadd.f32 %v952_v57, %v874_v9 }
  0xe3   : > { %v597_v11 = vpop.f32.mrf.mxu2 }
  0xe4   : > { %v636_v46 = vadd.f32 %v597_v11, %v2247_v34  ;;  %v718_v14 = vpop.f32.mrf.mxu3 }
  0xe6   : > { %v757_v17 = vadd.f32 %v718_v14, %v636_v46 }
  0xe7   : > { %v839_v12 = vpop.f32.mrf.mxu0 }
  0xe8   : > { %v957_v21 = vpop.f32.mrf.mxu1  ;;  %v875_v27 = vadd.f32 %v836_v6, %v757_v17  ;;  %1827 = vmatmul.msk.bf16.gmra.mxu2 %vm379_vm1, %v2174_v1 }
  0xe9   : > { %1852 = vmatmul.msk.bf16.gmra.mxu3 %vm379_vm1, %v2172_v0  ;;  %v1408_v0 = vld [vmem:[%s2322_s23 + $0x28] sm:$0xff] }
  0xea   : > { %1877 = vmatmul.msk.bf16.gmra.mxu0 %vm379_vm1, %v2209_v16  ;;  %v2347_v26 = vadd.f32 %v954_v7, %v875_v27  ;;  %v1421_v57 = vpack.c.bf16 %v1408_v0, %v1407_v51 }
  0xeb   : > { %1886 = vmatmul.msk.bf16.gmra.mxu1 %vm379_vm1, %v1420_v18  ;;  %v600_v34 = vpop.f32.mrf.mxu2 }
  0xec   : > { %v637_v30 = vadd.f32 %v600_v34, %v2255_v43  ;;  %v721_v35 = vpop.f32.mrf.mxu3 }
  0xee   : > { %v758_v36 = vadd.f32 %v721_v35, %v637_v30 }
  0xef   : > { %v841_v38 = vpop.f32.mrf.mxu0 }
  0xf0   : > { %v959_v40 = vpop.f32.mrf.mxu1  ;;  %v876_v48 = vadd.f32 %v839_v12, %v758_v36 }
  0xf2   : > { %v2351_v49 = vadd.f32 %v957_v21, %v876_v48  ;;  %v1411_v48 = vld [vmem:[%s2322_s23 + $0x40] sm:$0xff] }
  0xf3   : > { %v602_v1 = vpop.f32.mrf.mxu2 }
  0xf4   : > { %v638_v52 = vadd.f32 %v602_v1, %v2267_v53  ;;  %v723_v16 = vpop.f32.mrf.mxu3 }
  0xf6   : > { %v759_v55 = vadd.f32 %v723_v16, %v638_v52 }
  0xf7   : > { %v844_v56 = vpop.f32.mrf.mxu0 }
  0xf8   : > { %v962_v59 = vpop.f32.mrf.mxu1  ;;  %v877_v61 = vadd.f32 %v841_v38, %v759_v55  ;;  %1828 = vmatmul.msk.bf16.gmra.mxu2 %vm379_vm1, %v2096_v19 }
  0xf9   : > { %1853 = vmatmul.msk.bf16.gmra.mxu3 %vm379_vm1, %v2091_v15  ;;  %v1410_v15 = vld [vmem:[%s2322_s23 + $0x38] sm:$0xff] }
  0xfa   : > { %1878 = vmatmul.msk.bf16.gmra.mxu0 %vm379_vm1, %v2221_v20  ;;  %v2362_v43 = vadd.f32 %v959_v40, %v877_v61  ;;  %v1422_v12 = vpack.c.bf16 %v1410_v15, %v1409_v13 }
  0xfb   : > { %1887 = vmatmul.msk.bf16.gmra.mxu1 %vm379_vm1, %v1421_v57  ;;  %v605_v53 = vpop.f32.mrf.mxu2 }
  0xfc   : > { %v639_v3 = vadd.f32 %v605_v53, %v2275_v2  ;;  %v726_v4 = vpop.f32.mrf.mxu3 }
  0xfe   : > { %v760_v6 = vadd.f32 %v726_v4, %v639_v3 }
  0xff   : > { %v846_v7 = vpop.f32.mrf.mxu0 }
 0x100   : > { %v964_v9 = vpop.f32.mrf.mxu1  ;;  %v878_v11 = vadd.f32 %v844_v56, %v760_v6  ;;  %v1413_v6 = vld [vmem:[%s2322_s23 + $0x50] sm:$0xff] }
 0x102   : > { %v2366_v47 = vadd.f32 %v962_v59, %v878_v11 }
 0x103   : > { %v607_v19 = vpop.f32.mrf.mxu2 }
 0x104   : > { %v640_v46 = vadd.f32 %v607_v19, %v2287_v8  ;;  %v728_v20 = vpop.f32.mrf.mxu3 }
 0x106   : > { %v761_v14 = vadd.f32 %v728_v20, %v640_v46 }
 0x107   : > { %v849_v17 = vpop.f32.mrf.mxu0 }
 0x108   : > { %v967_v18 = vpop.f32.mrf.mxu1  ;;  %v879_v21 = vadd.f32 %v846_v7, %v761_v14  ;;  %1829 = vmatmul.msk.bf16.gmra.mxu2 %vm379_vm1, %v2116_v33 }
 0x109   : > { %1854 = vmatmul.msk.bf16.gmra.mxu3 %vm379_vm1, %v2114_v32  ;;  %v1412_v32 = vld [vmem:[%s2322_s23 + $0x48] sm:$0xff] }
 0x10a   : > { %1879 = vmatmul.msk.bf16.gmra.mxu0 %vm379_vm1, %v2233_v24  ;;  %v2377_v2 = vadd.f32 %v964_v9, %v879_v21  ;;  %v1423_v52 = vpack.c.bf16 %v1412_v32, %v1411_v48 }
 0x10b   : > { %1888 = vmatmul.msk.bf16.gmra.mxu1 %vm379_vm1, %v1422_v12  ;;  %v610_v8 = vpop.f32.mrf.mxu2 }
 0x10c   : > { %v641_v27 = vadd.f32 %v610_v8, %v2303_v31  ;;  %v731_v34 = vpop.f32.mrf.mxu3  ;;  %v1415_v8 = vld [vmem:[%s2322_s23 + $0x60] sm:$0xff] }
 0x10e   : > { %v762_v30 = vadd.f32 %v731_v34, %v641_v27 }
 0x10f   : > { %v851_v35 = vpop.f32.mrf.mxu0 }
 0x110   : > { %v969_v36 = vpop.f32.mrf.mxu1  ;;  %v880_v38 = vadd.f32 %v849_v17, %v762_v30 }
 0x112   : > { %v2381_v40 = vadd.f32 %v967_v18, %v880_v38 }
 0x113   : > { %v612_v33 = vpop.f32.mrf.mxu2 }
 0x114   : > { %v642_v1 = vadd.f32 %v612_v33, %v2320_v42  ;;  %v733_v24 = vpop.f32.mrf.mxu3 }
 0x116   : > { %v763_v51 = vadd.f32 %v733_v24, %v642_v1 }
 0x117   : > { %v854_v0 = vpop.f32.mrf.mxu0 }
 0x118   : > { %v972_v16 = vpop.f32.mrf.mxu1  ;;  %v881_v55 = vadd.f32 %v851_v35, %v763_v51  ;;  %1830 = vmatmul.msk.bf16.gmra.mxu2 %vm379_vm1, %v2134_v45  ;;  %v1824_v51 = vld [vmem:[%s2086_s9 + $0xe0] sm:$0xff] }
 0x119   : > { %1855 = vmatmul.msk.bf16.gmra.mxu3 %vm379_vm1, %v2132_v44  ;;  %v1414_v44 = vld [vmem:[%s2322_s23 + $0x58] sm:$0xff] }
 0x11a   : > { %1880 = vmatmul.msk.bf16.gmra.mxu0 %vm379_vm1, %v2253_v41  ;;  %v2392_v31 = vadd.f32 %v969_v36, %v881_v55  ;;  %v1424_v19 = vpack.c.bf16 %v1414_v44, %v1413_v6  ;;  %v1874_v55 = vld [vmem:[%s2086_s9 + $0xe2] sm:$0xff] }
 0x11b   : > { %1889 = vmatmul.msk.bf16.gmra.mxu1 %vm379_vm1, %v1423_v52  ;;  %v615_v42 = vpop.f32.mrf.mxu2 }
 0x11c   : > { %v643_v56 = vadd.f32 %v615_v42, %v2245_v29  ;;  %v736_v57 = vpop.f32.mrf.mxu3 }
 0x11e   : > { %v764_v59 = vadd.f32 %v736_v57, %v643_v56  ;;  %v1417_v56 = vld [vmem:[%s2322_s23 + $0x70] sm:$0xff]  ;;  %v1418_v57 = vld [vmem:[%s2322_s23 + $0x78] sm:$0xff] }
 0x11f   : > { %v856_v61 = vpop.f32.mrf.mxu0  ;;  %v1426_v44 = vpack.c.bf16 %v1418_v57, %v1417_v56 }
 0x120   : > { %v974_v53 = vpop.f32.mrf.mxu1  ;;  %v882_v3 = vadd.f32 %v854_v0, %v764_v59  ;;  %v1848_v0 = vld [vmem:[%s2086_s9 + $0xd9] sm:$0xff] }
 0x122   : > { %v2396_v4 = vadd.f32 %v972_v16, %v882_v3  ;;  %v1873_v16 = vld [vmem:[%s2086_s9 + $0xda] sm:$0xff] }
 0x123   : > { %v617_v45 = vpop.f32.mrf.mxu2  ;;  %v1270_v3 = vpack.c.bf16 %v1874_v55, %v1873_v16 }
 0x124   : > { %v644_v7 = vadd.f32 %v617_v45, %v2251_v39  ;;  %v738_v41 = vpop.f32.mrf.mxu3 }
 0x126   : > { %v765_v9 = vadd.f32 %v738_v41, %v644_v7 }
 0x127   : > { %v859_v11 = vpop.f32.mrf.mxu0 }
 0x128   : > { %v977_v13 = vpop.f32.mrf.mxu1  ;;  %v883_v15 = vadd.f32 %v856_v61, %v765_v9  ;;  %1831 = vmatmul.msk.bf16.gmra.mxu2 %vm379_vm1, %v2170_v63 }
 0x129   : > { %1856 = vmatmul.msk.bf16.gmra.mxu3 %vm379_vm1, %v2168_v62  ;;  %v1416_v62 = vld [vmem:[%s2322_s23 + $0x68] sm:$0xff] }
 0x12a   : > { %1881 = vmatmul.msk.bf16.gmra.mxu0 %vm379_vm1, %v2273_v60  ;;  %v2407_v29 = vadd.f32 %v974_v53, %v883_v15  ;;  %v1425_v35 = vpack.c.bf16 %v1416_v62, %v1415_v8 }
 0x12b   : > { %1890 = vmatmul.msk.bf16.gmra.mxu1 %vm379_vm1, %v1424_v19  ;;  %v620_v39 = vpop.f32.mrf.mxu2 }
 0x12c   : > { %v645_v46 = vadd.f32 %v620_v39, %v2265_v50  ;;  %v741_v20 = vpop.f32.mrf.mxu3 }
 0x12e   : > { %v766_v14 = vadd.f32 %v741_v20, %v645_v46 }
 0x12f   : > { %v861_v17 = vpop.f32.mrf.mxu0 }
 0x130   : > { %v979_v12 = vpop.f32.mrf.mxu1  ;;  %v884_v18 = vadd.f32 %v859_v11, %v766_v14 }
 0x132   : > { %v2411_v21 = vadd.f32 %v977_v13, %v884_v18 }
 0x133   : > { %v622_v63 = vpop.f32.mrf.mxu2 }
 0x134   : > { %v646_v27 = vadd.f32 %v622_v63, %v2271_v58  ;;  %v743_v60 = vpop.f32.mrf.mxu3 }
 0x136   : > { %v767_v34 = vadd.f32 %v743_v60, %v646_v27 }
 0x137   : > { %v864_v30 = vpop.f32.mrf.mxu0 }
 0x138   : > { %v982_v36 = vpop.f32.mrf.mxu1  ;;  %v885_v50 = vadd.f32 %v861_v17, %v767_v34  ;;  %1832 = vmatmul.msk.bf16.gmra.mxu2 %vm379_vm1, %v2297_v23 }
 0x139   : > { %1857 = vmatmul.msk.bf16.gmra.mxu3 %vm379_vm1, %v2299_v25  ;;  %v1823_v25 = vld [vmem:[%s2086_s9 + $0xd8] sm:$0xff] }
 0x13a   : > { %1882 = vmatmul.msk.bf16.gmra.mxu0 %vm379_vm1, %v2301_v28  ;;  %v2422_v58 = vadd.f32 %v979_v12, %v885_v50  ;;  %v1849_v28 = vld [vmem:[%s2086_s9 + $0xe1] sm:$0xff] }
 0x13b   : > { %1891 = vmatmul.msk.bf16.gmra.mxu1 %vm379_vm1, %v1425_v35  ;;  %v625_v38 = vpop.f32.mrf.mxu2  ;;  %v1152_v53 = vpack.c.bf16 %v1849_v28, %v1848_v0 }
 0x13c   : > { %v647_v33 = vadd.f32 %v625_v38, %v2285_v5  ;;  %v746_v48 = vpop.f32.mrf.mxu3  ;;  %v1034_v5 = vpack.c.bf16 %v1824_v51, %v1823_v25 }
 0x13e   : > { %v768_v23 = vadd.f32 %v746_v48, %v647_v33 }
 0x13f   : > { %v866_v32 = vpop.f32.mrf.mxu0 }
 0x140   : > { %v984_v1 = vpop.f32.mrf.mxu1  ;;  %v886_v24 = vadd.f32 %v864_v30, %v768_v23 }
 0x142   : > { %v2429_v52 = vadd.f32 %v982_v36, %v886_v24  ;;  %v2467_v24 = vld [vmem:[%s2588_s6] ss:$0 sm:$0xff] }
 0x143   : > { %v627_v42 = vpop.f32.mrf.mxu2 }
 0x144   : > { %v648_v59 = vadd.f32 %v627_v42, %v2295_v22  ;;  %v748_v61 = vpop.f32.mrf.mxu3 }
 0x146   : > { %v769_v45 = vadd.f32 %v748_v61, %v648_v59 }
 0x147   : > { %v869_v6 = vpop.f32.mrf.mxu0 }
 0x148   : > { %v987_v7 = vpop.f32.mrf.mxu1  ;;  %v887_v41 = vadd.f32 %v866_v32, %v769_v45  ;;  %1833 = vmatmul.msk.bf16.gmra.mxu2 %vm379_vm1, %v1034_v5 }
 0x149   : > { %1858 = vmatmul.msk.bf16.gmra.mxu3 %vm379_vm1, %v1152_v53 }
 0x14a   : > { %1883 = vmatmul.msk.bf16.gmra.mxu0 %vm379_vm1, %v1270_v3  ;;  %v2440_v9 = vadd.f32 %v984_v1, %v887_v41 }
 0x14b   : > { %1892 = vmatmul.msk.bf16.gmra.mxu1 %vm379_vm1, %v1426_v44  ;;  %v630_v22 = vpop.f32.mrf.mxu2 }
 0x14c   : > { %v649_v11 = vadd.f32 %v630_v22, %v2314_v37  ;;  %v751_v19 = vpop.f32.mrf.mxu3 }
 0x14e   : > { %v770_v13 = vadd.f32 %v751_v19, %v649_v11 }
 0x14f   : > { %v871_v15 = vpop.f32.mrf.mxu0 }
 0x150   : > { %v989_v39 = vpop.f32.mrf.mxu1  ;;  %v888_v46 = vadd.f32 %v869_v6, %v770_v13 }
 0x152   : > { %v2444_v20 = vadd.f32 %v987_v7, %v888_v46 }
 0x153   : > { %v632_v14 = vpop.f32.mrf.mxu2 }
 0x154   : > { %v650_v17 = vadd.f32 %v632_v14, %v2326_v54  ;;  %v753_v12 = vpop.f32.mrf.mxu3  ;;  %v2454_v54 = vld [vmem:[%s2585_s3] ss:$0 sm:$0xff] }
 0x156   : > { %v771_v18 = vadd.f32 %v753_v12, %v650_v17 }
 0x157   : > { %v1309_v63 = vpop.f32.mrf.mxu0 }
 0x158   : > { %v1464_v8 = vpop.f32.mrf.mxu1  ;;  %v889_v62 = vadd.f32 %v871_v15, %v771_v18 }
 0x15a   : > { %v2448_v27 = vadd.f32 %v989_v39, %v889_v62 }
 0x15b   : > { %v1073_v37 = vpop.f32.mrf.mxu2 }
 0x15c   : > { %v1113_v60 = vadd.f32 %v1073_v37, %v2336_v10  ;;  %v1191_v34 = vpop.f32.mrf.mxu3  ;;  %v2461_v10 = vld [vmem:[%s2587_s5] ss:$0 sm:$0xff] }
 0x15e   : > { %v1231_v30 = vadd.f32 %v1191_v34, %v1113_v60 }
 0x15f   : > { %v1311_v35 = vpop.f32.mrf.mxu0 }
 0x160   : > { %v1466_v36 = vpop.f32.mrf.mxu1  ;;  %v1349_v50 = vadd.f32 %v1309_v63, %v1231_v30 }
 0x162   : > { %v1369_v38 = vadd.f32 %v2454_v54, %v1349_v50 }
 0x163   : > { %v1075_v33 = vpop.f32.mrf.mxu2 }
 0x164   : > { %v1385_v48 = vmax.f32 %v1369_v38, 0.0  ;;  %v1114_v23 = vadd.f32 %v1075_v33, %v2347_v26  ;;  %v1193_v32 = vpop.f32.mrf.mxu3 }
 0x166   : > { %v1465_v1 = vadd.f32 %v1464_v8, %v1385_v48  ;;  %v1232_v25 = vadd.f32 %v1193_v32, %v1114_v23 }
 0x167   : > { %v1314_v51 = vpop.f32.mrf.mxu0 }
 0x168   : > { %v1469_v0 = vpop.f32.mrf.mxu1  ;;  %v1508_v28 = vmul.f32 %v2461_v10, %v1465_v1  ;;  %v1350_v16 = vadd.f32 %v1311_v35, %v1232_v25 }
 0x16a   : > { %v1528_v55 = vadd.f32 %v2467_v24, %v1508_v28  ;;  %v1370_v42 = vadd.f32 %v2454_v54, %v1350_v16 }
 0x16b   : > { %v1078_v26 = vpop.f32.mrf.mxu2 }
 0x16c   : > { %v1544_v56 = vmax.f32 %v1528_v55, 0.0  ;;  %v1386_v57 = vmax.f32 %v1370_v42, 0.0  ;;  %v1115_v59 = vadd.f32 %v1078_v26, %v2351_v49  ;;  %v1196_v61 = vpop.f32.mrf.mxu3 }
 0x16e   : > { %1560 = vst.msk [vmem:[%s2475_s19] sm:$0xff] %vm379_vm1, %v1544_v56  ;;  %v1467_v5 = vadd.f32 %v1466_v36, %v1386_v57  ;;  %v1233_v53 = vadd.f32 %v1196_v61, %v1115_v59 }
 0x16f   : > { %v1316_v3 = vpop.f32.mrf.mxu0 }
 0x170   : > { %v1471_v45 = vpop.f32.mrf.mxu1  ;;  %v1509_v6 = vmul.f32 %v2461_v10, %v1467_v5  ;;  %v1351_v44 = vadd.f32 %v1314_v51, %v1233_v53 }
 0x172   : > { %v1529_v7 = vadd.f32 %v2467_v24, %v1509_v6  ;;  %v1371_v41 = vadd.f32 %v2454_v54, %v1351_v44 }
 0x173   : > { %v1080_v22 = vpop.f32.mrf.mxu2 }
 0x174   : > { %v1545_v11 = vmax.f32 %v1529_v7, 0.0  ;;  %v1387_v19 = vmax.f32 %v1371_v41, 0.0  ;;  %v1116_v49 = vadd.f32 %v1080_v22, %v2362_v43  ;;  %v1198_v13 = vpop.f32.mrf.mxu3 }
 0x176   : > { %1561 = vst.msk [vmem:[%s2475_s19 + $0x8] sm:$0xff] %vm379_vm1, %v1545_v11  ;;  %v1470_v15 = vadd.f32 %v1469_v0, %v1387_v19  ;;  %v1234_v39 = vadd.f32 %v1198_v13, %v1116_v49 }
 0x177   : > { %v1319_v46 = vpop.f32.mrf.mxu0 }
 0x178   : > { %v1474_v14 = vpop.f32.mrf.mxu1  ;;  %v1510_v17 = vmul.f32 %v2461_v10, %v1470_v15  ;;  %v1352_v12 = vadd.f32 %v1316_v3, %v1234_v39 }
 0x17a   : > { %v1530_v18 = vadd.f32 %v2467_v24, %v1510_v17  ;;  %v1372_v63 = vadd.f32 %v2454_v54, %v1352_v12 }
 0x17b   : > { %v1083_v8 = vpop.f32.mrf.mxu2 }
 0x17c   : > { %v1546_v62 = vmax.f32 %v1530_v18, 0.0  ;;  %v1388_v37 = vmax.f32 %v1372_v63, 0.0  ;;  %v1117_v43 = vadd.f32 %v1083_v8, %v2366_v47  ;;  %v1201_v60 = vpop.f32.mrf.mxu3 }
 0x17e   : > { %1562 = vst.msk [vmem:[%s2475_s19 + $0x10] sm:$0xff] %vm379_vm1, %v1546_v62  ;;  %v1472_v34 = vadd.f32 %v1471_v45, %v1388_v37  ;;  %v1235_v30 = vadd.f32 %v1201_v60, %v1117_v43 }
 0x17f   : > { %v1321_v35 = vpop.f32.mrf.mxu0 }
 0x180   : > { %v1476_v36 = vpop.f32.mrf.mxu1  ;;  %v1511_v50 = vmul.f32 %v2461_v10, %v1472_v34  ;;  %v1353_v38 = vadd.f32 %v1319_v46, %v1235_v30 }
 0x182   : > { %v1531_v33 = vadd.f32 %v2467_v24, %v1511_v50  ;;  %v1373_v48 = vadd.f32 %v2454_v54, %v1353_v38 }
 0x183   : > { %v1085_v23 = vpop.f32.mrf.mxu2 }
 0x184   : > { %v1547_v32 = vmax.f32 %v1531_v33, 0.0  ;;  %v1389_v1 = vmax.f32 %v1373_v48, 0.0  ;;  %v1118_v47 = vadd.f32 %v1085_v23, %v2377_v2  ;;  %v1203_v25 = vpop.f32.mrf.mxu3 }
 0x186   : > { %1563 = vst.msk [vmem:[%s2475_s19 + $0x18] sm:$0xff] %vm379_vm1, %v1547_v32  ;;  %v1475_v51 = vadd.f32 %v1474_v14, %v1389_v1  ;;  %v1236_v0 = vadd.f32 %v1203_v25, %v1118_v47 }
 0x187   : > { %v1324_v28 = vpop.f32.mrf.mxu0 }
 0x188   : > { %v1479_v16 = vpop.f32.mrf.mxu1  ;;  %v1512_v55 = vmul.f32 %v2461_v10, %v1475_v51  ;;  %v1354_v42 = vadd.f32 %v1321_v35, %v1236_v0 }
 0x18a   : > { %v1532_v26 = vadd.f32 %v2467_v24, %v1512_v55  ;;  %v1374_v56 = vadd.f32 %v2454_v54, %v1354_v42 }
 0x18b   : > { %v1088_v57 = vpop.f32.mrf.mxu2 }
 0x18c   : > { %v1548_v59 = vmax.f32 %v1532_v26, 0.0  ;;  %v1390_v61 = vmax.f32 %v1374_v56, 0.0  ;;  %v1119_v2 = vadd.f32 %v1088_v57, %v2381_v40  ;;  %v1206_v5 = vpop.f32.mrf.mxu3 }
 0x18e   : > { %1564 = vst.msk [vmem:[%s2475_s19 + $0x20] sm:$0xff] %vm379_vm1, %v1548_v59  ;;  %v1477_v53 = vadd.f32 %v1476_v36, %v1390_v61  ;;  %v1237_v3 = vadd.f32 %v1206_v5, %v1119_v2 }
 0x18f   : > { %v1326_v45 = vpop.f32.mrf.mxu0 }
 0x190   : > { %v1481_v6 = vpop.f32.mrf.mxu1  ;;  %v1513_v44 = vmul.f32 %v2461_v10, %v1477_v53  ;;  %v1355_v7 = vadd.f32 %v1324_v28, %v1237_v3 }
 0x192   : > { %v1533_v41 = vadd.f32 %v2467_v24, %v1513_v44  ;;  %v1375_v22 = vadd.f32 %v2454_v54, %v1355_v7 }
 0x193   : > { %v1090_v11 = vpop.f32.mrf.mxu2 }
 0x194   : > { %v1549_v19 = vmax.f32 %v1533_v41, 0.0  ;;  %v1391_v49 = vmax.f32 %v1375_v22, 0.0  ;;  %v1120_v40 = vadd.f32 %v1090_v11, %v2392_v31  ;;  %v1208_v13 = vpop.f32.mrf.mxu3 }
 0x196   : > { %1565 = vst.msk [vmem:[%s2475_s19 + $0x28] sm:$0xff] %vm379_vm1, %v1549_v19  ;;  %v1480_v15 = vadd.f32 %v1479_v16, %v1391_v49  ;;  %v1238_v39 = vadd.f32 %v1208_v13, %v1120_v40 }
 0x197   : > { %v1329_v46 = vpop.f32.mrf.mxu0 }
 0x198   : > { %v1484_v14 = vpop.f32.mrf.mxu1  ;;  %v1514_v17 = vmul.f32 %v2461_v10, %v1480_v15  ;;  %v1356_v12 = vadd.f32 %v1326_v45, %v1238_v39 }
 0x19a   : > { %v1534_v18 = vadd.f32 %v2467_v24, %v1514_v17  ;;  %v1376_v63 = vadd.f32 %v2454_v54, %v1356_v12 }
 0x19b   : > { %v1093_v8 = vpop.f32.mrf.mxu2 }
 0x19c   : > { %v1550_v62 = vmax.f32 %v1534_v18, 0.0  ;;  %v1392_v37 = vmax.f32 %v1376_v63, 0.0  ;;  %v1121_v31 = vadd.f32 %v1093_v8, %v2396_v4  ;;  %v1211_v43 = vpop.f32.mrf.mxu3 }
 0x19e   : > { %1566 = vst.msk [vmem:[%s2475_s19 + $0x30] sm:$0xff] %vm379_vm1, %v1550_v62  ;;  %v1482_v60 = vadd.f32 %v1481_v6, %v1392_v37  ;;  %v1239_v34 = vadd.f32 %v1211_v43, %v1121_v31 }
 0x19f   : > { %v1331_v30 = vpop.f32.mrf.mxu0 }
 0x1a0   : > { %v1515_v35 = vmul.f32 %v2461_v10, %v1482_v60  ;;  %v1357_v36 = vadd.f32 %v1329_v46, %v1239_v34  ;;  %v1486_v50 = vpop.f32.mrf.mxu1 }
 0x1a2   : > { %v1535_v38 = vadd.f32 %v2467_v24, %v1515_v35  ;;  %v1377_v33 = vadd.f32 %v2454_v54, %v1357_v36 }
 0x1a3   : > { %v1095_v48 = vpop.f32.mrf.mxu2 }
 0x1a4   : > { %v1551_v23 = vmax.f32 %v1535_v38, 0.0  ;;  %v1393_v32 = vmax.f32 %v1377_v33, 0.0  ;;  %v1122_v4 = vadd.f32 %v1095_v48, %v2407_v29  ;;  %v1213_v1 = vpop.f32.mrf.mxu3 }
 0x1a6   : > { %1567 = vst.msk [vmem:[%s2475_s19 + $0x38] sm:$0xff] %vm379_vm1, %v1551_v23  ;;  %v1485_v47 = vadd.f32 %v1484_v14, %v1393_v32  ;;  %v1240_v25 = vadd.f32 %v1213_v1, %v1122_v4 }
 0x1a7   : > { %v1334_v51 = vpop.f32.mrf.mxu0 }
 0x1a8   : > { %v1516_v0 = vmul.f32 %v2461_v10, %v1485_v47  ;;  %v1358_v28 = vadd.f32 %v1331_v30, %v1240_v25  ;;  %v1489_v26 = vpop.f32.mrf.mxu1 }
 0x1aa   : > { %v1536_v16 = vadd.f32 %v2467_v24, %v1516_v0  ;;  %v1378_v55 = vadd.f32 %v2454_v54, %v1358_v28 }
 0x1ab   : > { %v1098_v42 = vpop.f32.mrf.mxu2 }
 0x1ac   : > { %v1552_v56 = vmax.f32 %v1536_v16, 0.0  ;;  %v1394_v57 = vmax.f32 %v1378_v55, 0.0  ;;  %v1123_v29 = vadd.f32 %v1098_v42, %v2411_v21  ;;  %v1216_v59 = vpop.f32.mrf.mxu3 }
 0x1ae   : > { %1568 = vst.msk [vmem:[%s2475_s19 + $0x40] sm:$0xff] %vm379_vm1, %v1552_v56  ;;  %v1487_v61 = vadd.f32 %v1486_v50, %v1394_v57  ;;  %v1241_v2 = vadd.f32 %v1216_v59, %v1123_v29 }
 0x1af   : > { %v1336_v5 = vpop.f32.mrf.mxu0 }
 0x1b0   : > { %v1517_v53 = vmul.f32 %v2461_v10, %v1487_v61  ;;  %v1359_v3 = vadd.f32 %v1334_v51, %v1241_v2  ;;  %v1491_v11 = vpop.f32.mrf.mxu1 }
 0x1b2   : > { %v1537_v45 = vadd.f32 %v2467_v24, %v1517_v53  ;;  %v1379_v6 = vadd.f32 %v2454_v54, %v1359_v3 }
 0x1b3   : > { %v1100_v44 = vpop.f32.mrf.mxu2 }
 0x1b4   : > { %v1553_v7 = vmax.f32 %v1537_v45, 0.0  ;;  %v1395_v41 = vmax.f32 %v1379_v6, 0.0  ;;  %v1124_v22 = vadd.f32 %v1100_v44, %v2422_v58  ;;  %v1218_v21 = vpop.f32.mrf.mxu3 }
 0x1b6   : > { %1569 = vst.msk [vmem:[%s2475_s19 + $0x48] sm:$0xff] %vm379_vm1, %v1553_v7  ;;  %v1490_v19 = vadd.f32 %v1489_v26, %v1395_v41  ;;  %v1242_v49 = vadd.f32 %v1218_v21, %v1124_v22 }
 0x1b7   : > { %v1339_v15 = vpop.f32.mrf.mxu0 }
 0x1b8   : > { %v1518_v40 = vmul.f32 %v2461_v10, %v1490_v19  ;;  %v1360_v13 = vadd.f32 %v1336_v5, %v1242_v49  ;;  %v1494_v62 = vpop.f32.mrf.mxu1 }
 0x1ba   : > { %v1538_v39 = vadd.f32 %v2467_v24, %v1518_v40  ;;  %v1380_v46 = vadd.f32 %v2454_v54, %v1360_v13 }
 0x1bb   : > { %v1103_v14 = vpop.f32.mrf.mxu2 }
 0x1bc   : > { %v1554_v17 = vmax.f32 %v1538_v39, 0.0  ;;  %v1396_v12 = vmax.f32 %v1380_v46, 0.0  ;;  %v1125_v58 = vadd.f32 %v1103_v14, %v2429_v52  ;;  %v1221_v18 = vpop.f32.mrf.mxu3 }
 0x1be   : > { %1570 = vst.msk [vmem:[%s2475_s19 + $0x50] sm:$0xff] %vm379_vm1, %v1554_v17  ;;  %v1492_v63 = vadd.f32 %v1491_v11, %v1396_v12  ;;  %v1243_v8 = vadd.f32 %v1221_v18, %v1125_v58 }
 0x1bf   : > { %v1341_v34 = vpop.f32.mrf.mxu0 }
 0x1c0   : > { %v1519_v37 = vmul.f32 %v2461_v10, %v1492_v63  ;;  %v1361_v31 = vadd.f32 %v1339_v15, %v1243_v8  ;;  %v1496_v32 = vpop.f32.mrf.mxu1 }
 0x1c2   : > { %v1539_v43 = vadd.f32 %v2467_v24, %v1519_v37  ;;  %v1381_v60 = vadd.f32 %v2454_v54, %v1361_v31 }
 0x1c3   : > { %v1105_v30 = vpop.f32.mrf.mxu2 }
 0x1c4   : > { %v1555_v35 = vmax.f32 %v1539_v43, 0.0  ;;  %v1397_v36 = vmax.f32 %v1381_v60, 0.0  ;;  %v1126_v52 = vadd.f32 %v1105_v30, %v2440_v9  ;;  %v1223_v50 = vpop.f32.mrf.mxu3 }
 0x1c6   : > { %1571 = vst.msk [vmem:[%s2475_s19 + $0x58] sm:$0xff] %vm379_vm1, %v1555_v35  ;;  %v1495_v38 = vadd.f32 %v1494_v62, %v1397_v36  ;;  %v1244_v33 = vadd.f32 %v1223_v50, %v1126_v52 }
 0x1c7   : > { %v1344_v28 = vpop.f32.mrf.mxu0 }
 0x1c8   : > { %v1520_v48 = vmul.f32 %v2461_v10, %v1495_v38  ;;  %v1362_v23 = vadd.f32 %v1341_v34, %v1244_v33  ;;  %v1499_v29 = vpop.f32.mrf.mxu1 }
 0x1ca   : > { %v1540_v4 = vadd.f32 %v2467_v24, %v1520_v48  ;;  %v1382_v1 = vadd.f32 %v2454_v54, %v1362_v23 }
 0x1cb   : > { %v1108_v47 = vpop.f32.mrf.mxu2 }
 0x1cc   : > { %v1556_v25 = vmax.f32 %v1540_v4, 0.0  ;;  %v1398_v51 = vmax.f32 %v1382_v1, 0.0  ;;  %v1127_v0 = vadd.f32 %v1108_v47, %v2444_v20  ;;  %v1226_v9 = vpop.f32.mrf.mxu3 }
 0x1ce   : > { %1572 = vst.msk [vmem:[%s2475_s19 + $0x60] sm:$0xff] %vm379_vm1, %v1556_v25  ;;  %v1497_v16 = vadd.f32 %v1496_v32, %v1398_v51  ;;  %v1245_v55 = vadd.f32 %v1226_v9, %v1127_v0 }
 0x1cf   : > { %v1346_v45 = vpop.f32.mrf.mxu0 }
 0x1d0   : > { %v1521_v42 = vmul.f32 %v2461_v10, %v1497_v16  ;;  %v1363_v26 = vadd.f32 %v1344_v28, %v1245_v55  ;;  %v1501_v11 = vpop.f32.mrf.mxu1 }
 0x1d2   : > { %v1541_v56 = vadd.f32 %v2467_v24, %v1521_v42  ;;  %v1383_v57 = vadd.f32 %v2454_v54, %v1363_v26 }
 0x1d3   : > { %v1110_v59 = vpop.f32.mrf.mxu2 }
 0x1d4   : > { %v1557_v61 = vmax.f32 %v1541_v56, 0.0  ;;  %v1399_v2 = vmax.f32 %v1383_v57, 0.0  ;;  %v1128_v20 = vadd.f32 %v1110_v59, %v2448_v27  ;;  %v1228_v5 = vpop.f32.mrf.mxu3 }
 0x1d6   : > { %1573 = vst.msk [vmem:[%s2475_s19 + $0x68] sm:$0xff] %vm379_vm1, %v1557_v61  ;;  %v1500_v53 = vadd.f32 %v1499_v29, %v1399_v2  ;;  %v1246_v3 = vadd.f32 %v1228_v5, %v1128_v20 }
 0x1d8   : > { %v1522_v6 = vmul.f32 %v2461_v10, %v1500_v53  ;;  %v1364_v44 = vadd.f32 %v1346_v45, %v1246_v3 }
 0x1da   : > { %v1542_v7 = vadd.f32 %v2467_v24, %v1522_v6  ;;  %v1384_v41 = vadd.f32 %v2454_v54, %v1364_v44 }
 0x1dc   : > { %v1558_v22 = vmax.f32 %v1542_v7, 0.0  ;;  %v1400_v21 = vmax.f32 %v1384_v41, 0.0 }
 0x1de   : > { %1574 = vst.msk [vmem:[%s2475_s19 + $0x70] sm:$0xff] %vm379_vm1, %v1558_v22  ;;  %v1502_v27 = vadd.f32 %v1501_v11, %v1400_v21 }
 0x1e0   : > { %v1523_v19 = vmul.f32 %v2461_v10, %v1502_v27 }
 0x1e2   : > { %v1543_v49 = vadd.f32 %v2467_v24, %v1523_v19 }
 0x1e4   : > { %v1559_v40 = vmax.f32 %v1543_v49, 0.0 }
 0x1e6   : > { %1575 = vst.msk [vmem:[%s2475_s19 + $0x78] sm:$0xff] %vm379_vm1, %v1559_v40 }
 0x1e7 PF: > { %s17_s28 = sadd.s32 1, %s1981_s28   ;;  %s2590_s24 = smov %s1973_s26 }
 0x1e8   : > { %p14_p7 = scmp.ge.s32.totalorder %s17_s28, 6   ;;  %s2591_s25 = smov %s1977_s27 }
 0x1e9   : > { %s2592_s26 = smov %s2595_s29  ;;  %s2593_s27 = smov %s2599_s30 }
 0x1ea   :  { %16 = sbr.rel (!%p14_p7) target bundleno = 3 (0x3), region = 93 }

// kernel: _lambda_.23
= control target key start
LH: loop header
LB: loop body
LE: loop exit
PB: predicated region body
PF: predicated region fallthrough
CT: control target
= control target key end

     0   :  { %s1688_s12 = smov 0   ;;  %s1690_s13 = smov 0   ;;  %s2152_s0 = inlined_call_operand.vmem [shape: f32[2,20,20,8], index: 0, kind: input, shape index: {}]   ;;  %s2153_s1 = inlined_call_operand.vmem [shape: bf16[3,3,8,8], index: 1, kind: input, shape index: {}]   ;;  %s2154_s2 = inlined_call_operand.vmem [shape: f32[1,8], index: 2, kind: input, shape index: {}]   ;;  %s2155_s3 = inlined_call_operand.vmem [shape: f32[2,16,16,8], index: 3, kind: output, shape index: {}]  }
   0x1   :  { %s1692_s14 = smov 0   ;;  %s1694_s15 = smov 0  }
   0x2   :  { %s1696_s16 = smov 0  }
   0x3 LB: > { %s22_s17 = sadd.s32 1, %s1658_s14  ;;  %s25_s18 = sadd.s32 1, %s1662_s15  ;;  %s1666_s16 = sphi %s1696_s16, %s13_s16   ;;  %s1662_s15 = sphi %s1694_s15, %s2159_s15   ;;  %s1658_s14 = sphi %s1692_s14, %s2158_s14   ;;  %s1654_s13 = sphi %s1690_s13, %s2157_s13   ;;  %s1650_s12 = sphi %s1688_s12, %s2156_s12  }
   0x4   : > { %p23_p0 = scmp.ge.s32.totalorder %s22_s17, 2  ;;  %p1393_p1 = scmp.ge.s32.totalorder %s1666_s16, 1 }
   0x5   : > { %p151_p2 = scmp.lt.s32.totalorder %s1666_s16, 5 }
   0x6   : > { %s2161_s17 = smov (%p23_p0, %s22_s17), 0  ;;  %s2163_s18 = smov (!%p23_p0, %s25_s18), %s1662_s15 }
   0x7   : > { %p152_p3 = pnand %p1393_p1, %p151_p2  ;;  %p27_p4 = scmp.ge.s32.totalorder %s2163_s18, 2 }
   0x8   : > { %p180_p5 = scmp.lt.s32.totalorder (!%p152_p3), %s1654_s13, 1  ;;  %s1400_s27 = smul.u32 (!%p152_p3), 192, %s1650_s12 }
   0x9   : > { %s2165_s18 = smov (%p27_p4, %s2163_s18), 0  ;;  %155 = sbr.rel (%p152_p3) target bundleno = 447 (0x1bf), region = 32 }
   0xa   : > { %s1395_s23 = sshll.u32 (!%p152_p3), %s1650_s12, 3 }
   0xb   : > { %p188_p6 = scmp.lt.s32.totalorder (!%p152_p3), %s1395_s23, 15 }
   0xe   : > { %v1401_v0 = vld [vmem:[%s2153_s1 + $0x4] sm:$0xf]  ;;  %vm276_vm0 = vcmask 1043456   ;;  %v1418_v2 = vld [vmem:[%s2153_s1 + $0x8] sm:$0xf]  ;;  %s2167_s13 = smov (!%p180_p5, %s1654_s13), 1 }
   0xf   : > { %v278_v1 = vsel %vm276_vm0, %v1401_v0, 0  ;;  %v1445_v3 = vld [vmem:[%s2153_s1 + $0xc] sm:$0xf]  ;;  %v456_v4 = vsel %vm276_vm0, %v1418_v2, 0  ;;  %v224_v6 = vld [vmem:[%s2153_s1] sm:$0xf] }
  0x10   : > { %1583 = vmatpush.bf16.msra.mxu1 %v278_v1  ;;  %1584 = vmatpush.bf16.msra.mxu2 %v278_v1  ;;  %v577_v5 = vsel %vm276_vm0, %v1445_v3, 0  ;;  %v354_v7 = vsel %vm276_vm0, %v224_v6, 0  ;;  %v1470_v8 = vld [vmem:[%s2153_s1 + $0x10] sm:$0xf]  ;;  %s1586_s30 = smul.u32 480, %s2167_s13  ;;  %vm251_vm1 = vcmask 64512  }
  0x11   : > { %1585 = vmatpush.bf16.msra.mxu3 %v278_v1  ;;  %287 = vmatpush.bf16.msra.mxu0 %v278_v1  ;;  %v695_v9 = vsel %vm276_vm0, %v1470_v8, 0  ;;  %v1522_v22 = vld [vmem:[%s2153_s1 + $0x18] sm:$0xf]  ;;  %v1547_v23 = vld [vmem:[%s2153_s1 + $0x1c] sm:$0xf]  ;;  %s2169_s23 = smov (!%p188_p6, %s1395_s23), 15 }
  0x12   : > { %s184_s6 = scalar_lea.vmem %s2152_s0, %s1586_s30  ;;  %v934_v24 = vsel %vm276_vm0, %v1522_v22, 0  ;;  %v1052_v25 = vsel %vm276_vm0, %v1547_v23, 0  ;;  %v1495_v26 = vld [vmem:[%s2153_s1 + $0x14] sm:$0xf]  ;;  %v1572_v27 = vld [vmem:[%s2153_s1 + $0x20] sm:$0xf] }
  0x13   : > { %s1747_s7 = scalar_lea.vmem %s184_s6, %s1400_s27  ;;  %v813_v28 = vsel %vm276_vm0, %v1495_v26, 0  ;;  %v1170_v29 = vsel %vm276_vm0, %v1572_v27, 0  ;;  %s1396_s24 = sshll.u32 %s2169_s23, 1 }
  0x14   : > { %465 = vmatpush.bf16.msrb.mxu2 %v456_v4  ;;  %363 = vmatpush.bf16.msrb.mxu1 %v354_v7  ;;  %v229_v10 = vld [vmem:[%s1747_s7 + $0x32] sm:$0xff]  ;;  %v230_v11 = vld [vmem:[%s1747_s7 + $0x3a] sm:$0xff]  ;;  %v233_v12 = vld [vmem:[%s1747_s7 + $0x62] sm:$0xff]  ;;  %s1397_s25 = sshll.u32 %s2167_s13, 5 }
  0x15   : > { %586 = vmatpush.bf16.msrb.mxu3 %v577_v5  ;;  %704 = vmatpush.bf16.msrb.mxu0 %v695_v9  ;;  %v243_v13 = vpack.c.bf16 %v230_v11, %v229_v10  ;;  %v234_v14 = vld [vmem:[%s1747_s7 + $0x6a] sm:$0xff]  ;;  %v237_v15 = vld [vmem:[%s1747_s7 + $0x92] sm:$0xff]  ;;  %v238_v16 = vld [vmem:[%s1747_s7 + $0x9a] sm:$0xff]  ;;  %s192_s12 = sadd.s32 %s1397_s25, %s1396_s24 }
  0x16   : > { %v1755_v17 = vpack.c.bf16 %v234_v14, %v233_v12  ;;  %v1757_v18 = vpack.c.bf16 %v238_v16, %v237_v15  ;;  %v225_v19 = vld [vmem:[%s1747_s7 + $0x2] sm:$0xff]  ;;  %v226_v20 = vld [vmem:[%s1747_s7 + $0xa] sm:$0xff]  ;;  %v232_v31 = vld [vmem:[%s1747_s7 + $0x52] sm:$0xff]  ;;  %s1398_s28 = sshll.u32 %s192_s12, 3 }
  0x17   : > { %1404 = vmatmul.msk.bf16.vlgmr.msra.gmra.mxu1 %vm251_vm1, %v243_v13  ;;  %v241_v21 = vpack.c.bf16 %v226_v20, %v225_v19  ;;  %v231_v30 = vld [vmem:[%s1747_s7 + $0x4a] sm:$0xff]  ;;  %v235_v32 = vld [vmem:[%s1747_s7 + $0x7a] sm:$0xff]  ;;  %v236_v33 = vld [vmem:[%s1747_s7 + $0x82] sm:$0xff]  ;;  %s2074_s30 = scalar_lea.vmem %s2155_s3, %s1398_s28 }
  0x18   : > { %1406 = vmatmul.msk.bf16.vlgmr.msra.gmra.mxu2 %vm251_vm1, %v1755_v17  ;;  %1408 = vmatmul.msk.bf16.vlgmr.msra.gmra.mxu3 %vm251_vm1, %v1757_v18  ;;  %v239_v34 = vld [vmem:[%s1747_s7 + $0xaa] sm:$0xff]  ;;  %v240_v35 = vld [vmem:[%s1747_s7 + $0xb2] sm:$0xff]  ;;  %v227_v36 = vld [vmem:[%s1747_s7 + $0x1a] sm:$0xff]  ;;  %v244_v38 = vpack.c.bf16 %v232_v31, %v231_v30  ;;  %v1791_v39 = vpack.c.bf16 %v236_v33, %v235_v32 }
  0x19   : > { %1402 = vmatmul.msk.bf16.vlgmr.msra.gmra.mxu0 %vm251_vm1, %v241_v21  ;;  %943 = vmatpush.bf16.msra.mxu2 %v934_v24  ;;  %v228_v37 = vld [vmem:[%s1747_s7 + $0x22] sm:$0xff]  ;;  %v1793_v40 = vpack.c.bf16 %v240_v35, %v239_v34  ;;  %v406_v45 = vld [vmem:[%s1747_s7 + $0xc] sm:$0xff]  ;;  %v1430_v47 = vld [vmem:[%s1747_s7 + $0x38] sm:$0xff] }
  0x1a   : > { %1061 = vmatpush.bf16.msra.mxu3 %v1052_v25  ;;  %822 = vmatpush.bf16.msra.mxu1 %v813_v28  ;;  %v242_v41 = vpack.c.bf16 %v228_v37, %v227_v36  ;;  %v200_v42 = vld [vmem:[%s1747_s7] sm:$0xff]  ;;  %v201_v43 = vld [vmem:[%s1747_s7 + $0x8] sm:$0xff]  ;;  %v1429_v46 = vld [vmem:[%s1747_s7 + $0x30] sm:$0xff] }
  0x1b   : > { %1179 = vmatpush.bf16.msra.mxu0 %v1170_v29  ;;  %v405_v44 = vld [vmem:[%s1747_s7 + $0x4] sm:$0xff]  ;;  %v216_v48 = vpack.c.bf16 %v201_v43, %v200_v42  ;;  %v542_v50 = vpack.c.bf16 %v1430_v47, %v1429_v46  ;;  %v202_v51 = vld [vmem:[%s1747_s7 + $0x18] sm:$0xff]  ;;  %v1432_v56 = vld [vmem:[%s1747_s7 + $0x50] sm:$0xff] }
  0x1c   : > { %v421_v49 = vpack.c.bf16 %v406_v45, %v405_v44  ;;  %v203_v52 = vld [vmem:[%s1747_s7 + $0x20] sm:$0xff]  ;;  %v1431_v55 = vld [vmem:[%s1747_s7 + $0x48] sm:$0xff]  ;;  %v409_v60 = vld [vmem:[%s1747_s7 + $0x34] sm:$0xff] }
  0x1d   : > { %v407_v53 = vld [vmem:[%s1747_s7 + $0x1c] sm:$0xff]  ;;  %v408_v54 = vld [vmem:[%s1747_s7 + $0x24] sm:$0xff]  ;;  %v217_v57 = vpack.c.bf16 %v203_v52, %v202_v51  ;;  %v543_v59 = vpack.c.bf16 %v1432_v56, %v1431_v55  ;;  %v411_v2 = vld [vmem:[%s1747_s7 + $0x4c] sm:$0xff] }
  0x1e   : > { %v422_v58 = vpack.c.bf16 %v408_v54, %v407_v53  ;;  %v410_v61 = vld [vmem:[%s1747_s7 + $0x3c] sm:$0xff]  ;;  %v1434_v63 = vld [vmem:[%s1747_s7 + $0x68] sm:$0xff]  ;;  %v412_v3 = vld [vmem:[%s1747_s7 + $0x54] sm:$0xff] }
  0x1f   : > { %v1433_v62 = vld [vmem:[%s1747_s7 + $0x60] sm:$0xff]  ;;  %v1825_v0 = vpack.c.bf16 %v410_v61, %v409_v60  ;;  %v1435_v4 = vld [vmem:[%s1747_s7 + $0x78] sm:$0xff]  ;;  %v1840_v6 = vpack.c.bf16 %v412_v3, %v411_v2  ;;  %v414_v9 = vld [vmem:[%s1747_s7 + $0x6c] sm:$0xff] }
  0x20   : > { %v1827_v1 = vpack.c.bf16 %v1434_v63, %v1433_v62  ;;  %v1436_v5 = vld [vmem:[%s1747_s7 + $0x80] sm:$0xff]  ;;  %v1437_v10 = vld [vmem:[%s1747_s7 + $0x90] sm:$0xff]  ;;  %v1438_v11 = vld [vmem:[%s1747_s7 + $0x98] sm:$0xff] }
  0x21   : > { %v1842_v7 = vpack.c.bf16 %v1436_v5, %v1435_v4  ;;  %v413_v8 = vld [vmem:[%s1747_s7 + $0x64] sm:$0xff]  ;;  %v415_v14 = vld [vmem:[%s1747_s7 + $0x7c] sm:$0xff]  ;;  %v1440_v19 = vld [vmem:[%s1747_s7 + $0xb0] sm:$0xff] }
  0x22   : > { %v1855_v12 = vpack.c.bf16 %v414_v9, %v413_v8  ;;  %v416_v15 = vld [vmem:[%s1747_s7 + $0x84] sm:$0xff]  ;;  %v417_v22 = vld [vmem:[%s1747_s7 + $0x94] sm:$0xff]  ;;  %v418_v23 = vld [vmem:[%s1747_s7 + $0x9c] sm:$0xff] }
  0x23   : > { %v1439_v16 = vld [vmem:[%s1747_s7 + $0xa8] sm:$0xff]  ;;  %v1871_v20 = vpack.c.bf16 %v416_v15, %v415_v14  ;;  %v1441_v24 = vld [vmem:[%s1747_s7 + $0xc0] sm:$0xff]  ;;  %v1891_v29 = vpack.c.bf16 %v418_v23, %v417_v22 }
  0x24   : > { %v1873_v21 = vpack.c.bf16 %v1440_v19, %v1439_v16  ;;  %v1442_v25 = vld [vmem:[%s1747_s7 + $0xc8] sm:$0xff]  ;;  %v1444_v42 = vld [vmem:[%s1747_s7 + $0xe0] sm:$0xff] }
  0x25   : > { %v1466_v26 = vld [vmem:[%s1747_s7 + $0xc2] sm:$0xff]  ;;  %v1467_v27 = vld [vmem:[%s1747_s7 + $0xca] sm:$0xff]  ;;  %v1893_v30 = vpack.c.bf16 %v1442_v25, %v1441_v24  ;;  %v1468_v43 = vld [vmem:[%s1747_s7 + $0xda] sm:$0xff] }
  0x26   : > { %v1895_v31 = vpack.c.bf16 %v1467_v27, %v1466_v26  ;;  %v419_v37 = vld [vmem:[%s1747_s7 + $0xac] sm:$0xff]  ;;  %v1469_v44 = vld [vmem:[%s1747_s7 + $0xe2] sm:$0xff] }
  0x27   : > { %1405 = vmatmul.msk.bf16.gmra.mxu1 %vm251_vm1, %v244_v38 }
  0x28   : > { %1407 = vmatmul.msk.bf16.gmra.mxu2 %vm251_vm1, %v1791_v39  ;;  %1409 = vmatmul.msk.bf16.gmra.mxu3 %vm251_vm1, %v1793_v40 }
  0x29   : > { %1403 = vmatmul.msk.bf16.gmra.mxu0 %vm251_vm1, %v242_v41  ;;  %v1443_v41 = vld [vmem:[%s1747_s7 + $0xd8] sm:$0xff] }
  0x37   : > { %1410 = vmatmul.msk.bf16.vlgmr.msrb.gmra.mxu1 %vm251_vm1, %v216_v48 }
  0x38   : > { %1419 = vmatmul.msk.bf16.vlgmr.msrb.gmra.mxu2 %vm251_vm1, %v421_v49  ;;  %1446 = vmatmul.msk.bf16.vlgmr.msrb.gmra.mxu3 %vm251_vm1, %v542_v50  ;;  %v1925_v49 = vpack.c.bf16 %v1444_v42, %v1443_v41 }
  0x39   : > { %1471 = vmatmul.msk.bf16.vlgmr.msrb.gmra.mxu0 %vm251_vm1, %v243_v13  ;;  %v1857_v13 = vpack.c.bf16 %v1438_v11, %v1437_v10 }
  0x47   : > { %1411 = vmatmul.msk.bf16.gmra.mxu1 %vm251_vm1, %v217_v57 }
  0x48   : > { %1420 = vmatmul.msk.bf16.gmra.mxu2 %vm251_vm1, %v422_v58  ;;  %1447 = vmatmul.msk.bf16.gmra.mxu3 %vm251_vm1, %v543_v59 }
  0x49   : > { %1472 = vmatmul.msk.bf16.gmra.mxu0 %vm251_vm1, %v244_v38  ;;  %v420_v38 = vld [vmem:[%s1747_s7 + $0xb4] sm:$0xff] }
  0x4a   : > { %v1923_v48 = vpack.c.bf16 %v420_v38, %v419_v37 }
  0x57   : > { %1412 = vmatmul.msk.bf16.gmra.mxu1 %vm251_vm1, %v542_v50  ;;  %v1927_v50 = vpack.c.bf16 %v1469_v44, %v1468_v43 }
  0x58   : > { %1421 = vmatmul.msk.bf16.gmra.mxu2 %vm251_vm1, %v1825_v0  ;;  %1448 = vmatmul.msk.bf16.gmra.mxu3 %vm251_vm1, %v1827_v1 }
  0x59   : > { %1473 = vmatmul.msk.bf16.gmra.mxu0 %vm251_vm1, %v1755_v17 }
  0x67   : > { %1413 = vmatmul.msk.bf16.gmra.mxu1 %vm251_vm1, %v543_v59 }
  0x68   : > { %1422 = vmatmul.msk.bf16.gmra.mxu2 %vm251_vm1, %v1840_v6  ;;  %1449 = vmatmul.msk.bf16.gmra.mxu3 %vm251_vm1, %v1842_v7 }
  0x69   : > { %1474 = vmatmul.msk.bf16.gmra.mxu0 %vm251_vm1, %v1791_v39 }
  0x77   : > { %1414 = vmatmul.msk.bf16.gmra.mxu1 %vm251_vm1, %v1827_v1 }
  0x78   : > { %1423 = vmatmul.msk.bf16.gmra.mxu2 %vm251_vm1, %v1855_v12  ;;  %1450 = vmatmul.msk.bf16.gmra.mxu3 %vm251_vm1, %v1857_v13 }
  0x79   : > { %1475 = vmatmul.msk.bf16.gmra.mxu0 %vm251_vm1, %v1757_v18 }
  0x87   : > { %1415 = vmatmul.msk.bf16.gmra.mxu1 %vm251_vm1, %v1842_v7 }
  0x88   : > { %1424 = vmatmul.msk.bf16.gmra.mxu2 %vm251_vm1, %v1871_v20  ;;  %1451 = vmatmul.msk.bf16.gmra.mxu3 %vm251_vm1, %v1873_v21 }
  0x89   : > { %1476 = vmatmul.msk.bf16.gmra.mxu0 %vm251_vm1, %v1793_v40 }
  0x94   : > { %v1889_v28 = vpop.f32.mrf.mxu1 }
  0x96   : > { %v289_v32 = vpop.f32.mrf.mxu0 }
  0x97   : > { %1416 = vmatmul.msk.bf16.gmra.mxu1 %vm251_vm1, %v1857_v13 }
  0x98   : > { %1425 = vmatmul.msk.bf16.gmra.mxu2 %vm251_vm1, %v1891_v29  ;;  %1452 = vmatmul.msk.bf16.gmra.mxu3 %vm251_vm1, %v1893_v30 }
  0x99   : > { %1477 = vmatmul.msk.bf16.gmra.mxu0 %vm251_vm1, %v1895_v31 }
  0x9b   : > { %v1905_v33 = vpop.f32.mrf.mxu2  ;;  %v1907_v34 = vpop.f32.mrf.mxu3 }
  0x9c   : > { %v1909_v35 = vpop.f32.mrf.mxu1 }
  0x9e   : > { %v291_v36 = vpop.f32.mrf.mxu0 }
  0xa3   : > { %v1917_v45 = vpop.f32.mrf.mxu2  ;;  %v1919_v46 = vpop.f32.mrf.mxu3 }
  0xa4   : > { %v1921_v47 = vpop.f32.mrf.mxu1 }
  0xa6   : > { %v294_v51 = vpop.f32.mrf.mxu0 }
  0xa7   : > { %1417 = vmatmul.msk.bf16.gmra.mxu1 %vm251_vm1, %v1873_v21 }
  0xa8   : > { %1426 = vmatmul.msk.bf16.gmra.mxu2 %vm251_vm1, %v1923_v48  ;;  %1453 = vmatmul.msk.bf16.gmra.mxu3 %vm251_vm1, %v1925_v49 }
  0xa9   : > { %1478 = vmatmul.msk.bf16.gmra.mxu0 %vm251_vm1, %v1927_v50 }
  0xab   : > { %v1937_v52 = vpop.f32.mrf.mxu2  ;;  %v1939_v53 = vpop.f32.mrf.mxu3 }
  0xac   : > { %v1941_v54 = vpop.f32.mrf.mxu1 }
  0xae   : > { %v296_v55 = vpop.f32.mrf.mxu0 }
  0xb3   : > { %v1943_v56 = vpop.f32.mrf.mxu2  ;;  %v1945_v57 = vpop.f32.mrf.mxu3 }
  0xb4   : > { %v365_v58 = vpop.f32.mrf.mxu1 }
  0xb5   : > { %v366_v59 = vadd.f32 %v365_v58, %v289_v32 }
  0xb6   : > { %v706_v60 = vpop.f32.mrf.mxu0 }
  0xb7   : > { %1496 = vmatmul.msk.bf16.vlgmr.msra.gmra.mxu1 %vm251_vm1, %v1825_v0 }
  0xb8   : > { %1523 = vmatmul.msk.bf16.vlgmr.msra.gmra.mxu2 %vm251_vm1, %v1827_v1  ;;  %1548 = vmatmul.msk.bf16.vlgmr.msra.gmra.mxu3 %vm251_vm1, %v1755_v17 }
  0xb9   : > { %1573 = vmatmul.msk.bf16.vlgmr.msra.gmra.mxu0 %vm251_vm1, %v1855_v12 }
  0xbb   : > { %v467_v61 = vpop.f32.mrf.mxu2  ;;  %v588_v62 = vpop.f32.mrf.mxu3 }
  0xbc   : > { %v507_v63 = vadd.f32 %v467_v61, %v366_v59  ;;  %v367_v2 = vpop.f32.mrf.mxu1 }
  0xbd   : > { %v368_v3 = vadd.f32 %v367_v2, %v291_v36 }
  0xbe   : > { %v628_v4 = vadd.f32 %v588_v62, %v507_v63  ;;  %v708_v5 = vpop.f32.mrf.mxu0 }
  0xc0   : > { %v1955_v8 = vadd.f32 %v706_v60, %v628_v4 }
  0xc3   : > { %v469_v9 = vpop.f32.mrf.mxu2  ;;  %v590_v0 = vpop.f32.mrf.mxu3 }
  0xc4   : > { %v508_v10 = vadd.f32 %v469_v9, %v368_v3  ;;  %v370_v11 = vpop.f32.mrf.mxu1 }
  0xc5   : > { %v371_v1 = vadd.f32 %v370_v11, %v294_v51 }
  0xc6   : > { %v629_v14 = vadd.f32 %v590_v0, %v508_v10  ;;  %v711_v15 = vpop.f32.mrf.mxu0  ;;  %v1564_v10 = vld [vmem:[%s1747_s7 + $0xc4] sm:$0xff] }
  0xc7   : > { %1497 = vmatmul.msk.bf16.gmra.mxu1 %vm251_vm1, %v1840_v6 }
  0xc8   : > { %1524 = vmatmul.msk.bf16.gmra.mxu2 %vm251_vm1, %v1842_v7  ;;  %1549 = vmatmul.msk.bf16.gmra.mxu3 %vm251_vm1, %v1791_v39  ;;  %v1963_v17 = vadd.f32 %v708_v5, %v629_v14 }
  0xc9   : > { %1574 = vmatmul.msk.bf16.gmra.mxu0 %vm251_vm1, %v1871_v20 }
  0xcb   : > { %v472_v16 = vpop.f32.mrf.mxu2  ;;  %v593_v19 = vpop.f32.mrf.mxu3 }
  0xcc   : > { %v509_v22 = vadd.f32 %v472_v16, %v371_v1  ;;  %v372_v23 = vpop.f32.mrf.mxu1 }
  0xcd   : > { %v373_v24 = vadd.f32 %v372_v23, %v296_v55 }
  0xce   : > { %v630_v25 = vadd.f32 %v593_v19, %v509_v22  ;;  %v713_v26 = vpop.f32.mrf.mxu0 }
  0xd0   : > { %v1967_v27 = vadd.f32 %v711_v15, %v630_v25 }
  0xd3   : > { %v474_v6 = vpop.f32.mrf.mxu2  ;;  %v595_v32 = vpop.f32.mrf.mxu3 }
  0xd4   : > { %v510_v7 = vadd.f32 %v474_v6, %v373_v24  ;;  %v375_v36 = vpop.f32.mrf.mxu1 }
  0xd5   : > { %v376_v39 = vadd.f32 %v375_v36, %v1889_v28  ;;  %v1567_v36 = vld [vmem:[%s1747_s7 + $0xe4] sm:$0xff] }
  0xd6   : > { %v631_v37 = vadd.f32 %v595_v32, %v510_v7  ;;  %v716_v38 = vpop.f32.mrf.mxu0 }
  0xd7   : > { %1498 = vmatmul.msk.bf16.gmra.mxu1 %vm251_vm1, %v1855_v12 }
  0xd8   : > { %1525 = vmatmul.msk.bf16.gmra.mxu2 %vm251_vm1, %v1857_v13  ;;  %1550 = vmatmul.msk.bf16.gmra.mxu3 %vm251_vm1, %v1757_v18  ;;  %v1976_v41 = vadd.f32 %v713_v26, %v631_v37 }
  0xd9   : > { %1575 = vmatmul.msk.bf16.gmra.mxu0 %vm251_vm1, %v1891_v29 }
  0xdb   : > { %v477_v42 = vpop.f32.mrf.mxu2  ;;  %v598_v43 = vpop.f32.mrf.mxu3 }
  0xdc   : > { %v511_v44 = vadd.f32 %v477_v42, %v376_v39  ;;  %v377_v28 = vpop.f32.mrf.mxu1 }
  0xdd   : > { %v378_v51 = vadd.f32 %v377_v28, %v1909_v35 }
  0xde   : > { %v632_v55 = vadd.f32 %v598_v43, %v511_v44  ;;  %v718_v58 = vpop.f32.mrf.mxu0 }
  0xe0   : > { %v1981_v12 = vadd.f32 %v716_v38, %v632_v55 }
  0xe3   : > { %v479_v59 = vpop.f32.mrf.mxu2  ;;  %v600_v13 = vpop.f32.mrf.mxu3 }
  0xe4   : > { %v512_v60 = vadd.f32 %v479_v59, %v378_v51  ;;  %v380_v61 = vpop.f32.mrf.mxu1 }
  0xe5   : > { %v381_v18 = vadd.f32 %v380_v61, %v1921_v47  ;;  %v1543_v61 = vld [vmem:[%s1747_s7 + $0xf2] sm:$0xff] }
  0xe6   : > { %v633_v62 = vadd.f32 %v600_v13, %v512_v60  ;;  %v721_v63 = vpop.f32.mrf.mxu0  ;;  %v1518_v13 = vld [vmem:[%s1747_s7 + $0xf0] sm:$0xff] }
  0xe7   : > { %1499 = vmatmul.msk.bf16.gmra.mxu1 %vm251_vm1, %v1871_v20 }
  0xe8   : > { %1526 = vmatmul.msk.bf16.gmra.mxu2 %vm251_vm1, %v1873_v21  ;;  %1551 = vmatmul.msk.bf16.gmra.mxu3 %vm251_vm1, %v1793_v40  ;;  %v1990_v35 = vadd.f32 %v718_v58, %v633_v62  ;;  %v1565_v21 = vld [vmem:[%s1747_s7 + $0xcc] sm:$0xff]  ;;  %v1568_v62 = vld [vmem:[%s1747_s7 + $0xf4] sm:$0xff] }
  0xe9   : > { %1576 = vmatmul.msk.bf16.gmra.mxu0 %vm251_vm1, %v1923_v48  ;;  %v1139_v15 = vpack.c.bf16 %v1565_v21, %v1564_v10 }
  0xeb   : > { %v482_v2 = vpop.f32.mrf.mxu2  ;;  %v603_v47 = vpop.f32.mrf.mxu3 }
  0xec   : > { %v513_v3 = vadd.f32 %v482_v2, %v381_v18  ;;  %v382_v4 = vpop.f32.mrf.mxu1 }
  0xed   : > { %v383_v5 = vadd.f32 %v382_v4, %v1941_v54 }
  0xee   : > { %v634_v9 = vadd.f32 %v603_v47, %v513_v3  ;;  %v723_v0 = vpop.f32.mrf.mxu0 }
  0xf0   : > { %v1995_v20 = vadd.f32 %v721_v63, %v634_v9  ;;  %v1569_v63 = vld [vmem:[%s1747_s7 + $0xfc] sm:$0xff] }
  0xf1   : > { %v1141_v9 = vpack.c.bf16 %v1569_v63, %v1568_v62 }
  0xf3   : > { %v484_v11 = vpop.f32.mrf.mxu2  ;;  %v605_v1 = vpop.f32.mrf.mxu3 }
  0xf4   : > { %v514_v40 = vadd.f32 %v484_v11, %v383_v5  ;;  %v385_v14 = vpop.f32.mrf.mxu1 }
  0xf5   : > { %v386_v22 = vadd.f32 %v385_v14, %v1905_v33 }
  0xf6   : > { %v635_v16 = vadd.f32 %v605_v1, %v514_v40  ;;  %v726_v19 = vpop.f32.mrf.mxu0 }
  0xf7   : > { %1500 = vmatmul.msk.bf16.gmra.mxu1 %vm251_vm1, %v1891_v29 }
  0xf8   : > { %1527 = vmatmul.msk.bf16.gmra.mxu2 %vm251_vm1, %v1893_v30  ;;  %1552 = vmatmul.msk.bf16.gmra.mxu3 %vm251_vm1, %v1895_v31  ;;  %v2005_v54 = vadd.f32 %v723_v0, %v635_v16  ;;  %v1566_v30 = vld [vmem:[%s1747_s7 + $0xdc] sm:$0xff] }
  0xf9   : > { %1577 = vmatmul.msk.bf16.gmra.mxu0 %vm251_vm1, %v1139_v15  ;;  %v1140_v42 = vpack.c.bf16 %v1567_v36, %v1566_v30 }
  0xfb   : > { %v487_v23 = vpop.f32.mrf.mxu2  ;;  %v608_v24 = vpop.f32.mrf.mxu3 }
  0xfc   : > { %v515_v25 = vadd.f32 %v487_v23, %v386_v22  ;;  %v387_v26 = vpop.f32.mrf.mxu1  ;;  %v1521_v23 = vld [vmem:[%s1747_s7 + $0x110] sm:$0xff] }
  0xfd   : > { %v388_v29 = vadd.f32 %v387_v26, %v1917_v45 }
  0xfe   : > { %v636_v6 = vadd.f32 %v608_v24, %v515_v25  ;;  %v728_v32 = vpop.f32.mrf.mxu0  ;;  %v1545_v24 = vld [vmem:[%s1747_s7 + $0x10a] sm:$0xff]  ;;  %v1546_v25 = vld [vmem:[%s1747_s7 + $0x112] sm:$0xff] }
 0x100   : > { %v2009_v7 = vadd.f32 %v726_v19, %v636_v6  ;;  %v1570_v6 = vld [vmem:[%s1747_s7 + $0x10c] sm:$0xff] }
 0x103   : > { %v489_v39 = vpop.f32.mrf.mxu2  ;;  %v610_v31 = vpop.f32.mrf.mxu3 }
 0x104   : > { %v516_v37 = vadd.f32 %v489_v39, %v388_v29  ;;  %v390_v38 = vpop.f32.mrf.mxu1 }
 0x105   : > { %v391_v44 = vadd.f32 %v390_v38, %v1937_v52 }
 0x106   : > { %v637_v43 = vadd.f32 %v610_v31, %v516_v37  ;;  %v731_v33 = vpop.f32.mrf.mxu0  ;;  %v1024_v31 = vpack.c.bf16 %v1546_v25, %v1545_v24 }
 0x107   : > { %1501 = vmatmul.msk.bf16.gmra.mxu1 %vm251_vm1, %v1923_v48 }
 0x108   : > { %1528 = vmatmul.msk.bf16.gmra.mxu2 %vm251_vm1, %v1925_v49  ;;  %1553 = vmatmul.msk.bf16.gmra.mxu3 %vm251_vm1, %v1927_v50  ;;  %v2020_v45 = vadd.f32 %v728_v32, %v637_v43  ;;  %v1519_v49 = vld [vmem:[%s1747_s7 + $0xf8] sm:$0xff] }
 0x109   : > { %1578 = vmatmul.msk.bf16.gmra.mxu0 %vm251_vm1, %v1140_v42  ;;  %v1544_v50 = vld [vmem:[%s1747_s7 + $0xfa] sm:$0xff]  ;;  %v905_v4 = vpack.c.bf16 %v1519_v49, %v1518_v13 }
 0x10a   : > { %v1023_v5 = vpack.c.bf16 %v1544_v50, %v1543_v61  ;;  %v1571_v32 = vld [vmem:[%s1747_s7 + $0x114] sm:$0xff] }
 0x10b   : > { %v492_v28 = vpop.f32.mrf.mxu2  ;;  %v613_v51 = vpop.f32.mrf.mxu3  ;;  %v1142_v37 = vpack.c.bf16 %v1571_v32, %v1570_v6 }
 0x10c   : > { %v517_v55 = vadd.f32 %v492_v28, %v391_v44  ;;  %v392_v58 = vpop.f32.mrf.mxu1 }
 0x10d   : > { %v393_v18 = vadd.f32 %v392_v58, %v1943_v56 }
 0x10e   : > { %v638_v48 = vadd.f32 %v613_v51, %v517_v55  ;;  %v733_v59 = vpop.f32.mrf.mxu0 }
 0x110   : > { %v2025_v60 = vadd.f32 %v731_v33, %v638_v48 }
 0x113   : > { %v494_v2 = vpop.f32.mrf.mxu2  ;;  %v615_v47 = vpop.f32.mrf.mxu3 }
 0x114   : > { %v518_v3 = vadd.f32 %v494_v2, %v393_v18  ;;  %v395_v52 = vpop.f32.mrf.mxu1 }
 0x115   : > { %v396_v21 = vadd.f32 %v395_v52, %v1907_v34 }
 0x116   : > { %v639_v0 = vadd.f32 %v615_v47, %v518_v3  ;;  %v736_v10 = vpop.f32.mrf.mxu0 }
 0x117   : > { %1502 = vmatmul.msk.bf16.gmra.mxu1 %vm251_vm1, %v1139_v15  ;;  %v1520_v15 = vld [vmem:[%s1747_s7 + $0x108] sm:$0xff] }
 0x118   : > { %1529 = vmatmul.msk.bf16.gmra.mxu2 %vm251_vm1, %v905_v4  ;;  %1554 = vmatmul.msk.bf16.gmra.mxu3 %vm251_vm1, %v1023_v5  ;;  %v2036_v56 = vadd.f32 %v733_v59, %v639_v0  ;;  %v906_v39 = vpack.c.bf16 %v1521_v23, %v1520_v15  ;;  %v2067_v4 = vld [vmem:[%s2154_s2] ss:$0 sm:$0xff] }
 0x119   : > { %1579 = vmatmul.msk.bf16.gmra.mxu0 %vm251_vm1, %v1141_v9 }
 0x11b   : > { %v497_v11 = vpop.f32.mrf.mxu2  ;;  %v618_v1 = vpop.f32.mrf.mxu3 }
 0x11c   : > { %v519_v40 = vadd.f32 %v497_v11, %v396_v21  ;;  %v397_v14 = vpop.f32.mrf.mxu1 }
 0x11d   : > { %v398_v26 = vadd.f32 %v397_v14, %v1919_v46 }
 0x11e   : > { %v640_v16 = vadd.f32 %v618_v1, %v519_v40  ;;  %v738_v19 = vpop.f32.mrf.mxu0 }
 0x120   : > { %v2041_v22 = vadd.f32 %v736_v10, %v640_v16 }
 0x123   : > { %v499_v29 = vpop.f32.mrf.mxu2  ;;  %v620_v30 = vpop.f32.mrf.mxu3 }
 0x124   : > { %v520_v36 = vadd.f32 %v499_v29, %v398_v26  ;;  %v400_v34 = vpop.f32.mrf.mxu1 }
 0x125   : > { %v401_v46 = vadd.f32 %v400_v34, %v1939_v53 }
 0x126   : > { %v641_v38 = vadd.f32 %v620_v30, %v520_v36  ;;  %v741_v43 = vpop.f32.mrf.mxu0 }
 0x127   : > { %1503 = vmatmul.msk.bf16.gmra.mxu1 %vm251_vm1, %v1140_v42 }
 0x128   : > { %1530 = vmatmul.msk.bf16.gmra.mxu2 %vm251_vm1, %v906_v39  ;;  %1555 = vmatmul.msk.bf16.gmra.mxu3 %vm251_vm1, %v1024_v31  ;;  %v2052_v33 = vadd.f32 %v738_v19, %v641_v38 }
 0x129   : > { %1580 = vmatmul.msk.bf16.gmra.mxu0 %vm251_vm1, %v1142_v37 }
 0x12b   : > { %v502_v44 = vpop.f32.mrf.mxu2  ;;  %v623_v28 = vpop.f32.mrf.mxu3 }
 0x12c   : > { %v521_v51 = vadd.f32 %v502_v44, %v401_v46  ;;  %v402_v55 = vpop.f32.mrf.mxu1 }
 0x12d   : > { %v403_v42 = vadd.f32 %v402_v55, %v1945_v57 }
 0x12e   : > { %v642_v58 = vadd.f32 %v623_v28, %v521_v51  ;;  %v743_v48 = vpop.f32.mrf.mxu0 }
 0x130   : > { %v2057_v59 = vadd.f32 %v741_v43, %v642_v58 }
 0x133   : > { %v504_v13 = vpop.f32.mrf.mxu2  ;;  %v625_v49 = vpop.f32.mrf.mxu3 }
 0x134   : > { %v522_v61 = vadd.f32 %v504_v13, %v403_v42  ;;  %v824_v50 = vpop.f32.mrf.mxu1 }
 0x135   : > { %v864_v63 = vadd.f32 %v824_v50, %v1955_v8 }
 0x136   : > { %v643_v18 = vadd.f32 %v625_v49, %v522_v61  ;;  %v1181_v62 = vpop.f32.mrf.mxu0 }
 0x138   : > { %v2060_v53 = vadd.f32 %v743_v48, %v643_v18 }
 0x13b   : > { %v945_v2 = vpop.f32.mrf.mxu2  ;;  %v1063_v47 = vpop.f32.mrf.mxu3 }
 0x13c   : > { %v985_v3 = vadd.f32 %v945_v2, %v864_v63  ;;  %v826_v52 = vpop.f32.mrf.mxu1 }
 0x13d   : > { %v865_v8 = vadd.f32 %v826_v52, %v1963_v17 }
 0x13e   : > { %v1103_v57 = vadd.f32 %v1063_v47, %v985_v3  ;;  %v1183_v5 = vpop.f32.mrf.mxu0 }
 0x140   : > { %v1221_v9 = vadd.f32 %v1181_v62, %v1103_v57 }
 0x142   : > { %v1241_v0 = vadd.f32 %v2067_v4, %v1221_v9 }
 0x143   : > { %v947_v10 = vpop.f32.mrf.mxu2  ;;  %v1065_v21 = vpop.f32.mrf.mxu3 }
 0x144   : > { %v1257_v11 = vmax.f32 %v1241_v0, 0.0  ;;  %v986_v1 = vadd.f32 %v947_v10, %v865_v8  ;;  %v829_v40 = vpop.f32.mrf.mxu1 }
 0x145   : > { %v866_v17 = vadd.f32 %v829_v40, %v1967_v27 }
 0x146   : > { %1273 = vst.msk [vmem:[%s2074_s30] sm:$0xff] %vm251_vm1, %v1257_v11  ;;  %v1104_v14 = vadd.f32 %v1065_v21, %v986_v1  ;;  %v1186_v16 = vpop.f32.mrf.mxu0 }
 0x148   : > { %v1222_v19 = vadd.f32 %v1183_v5, %v1104_v14 }
 0x14a   : > { %v1242_v15 = vadd.f32 %v2067_v4, %v1222_v19 }
 0x14b   : > { %v950_v23 = vpop.f32.mrf.mxu2  ;;  %v1068_v24 = vpop.f32.mrf.mxu3 }
 0x14c   : > { %v1258_v25 = vmax.f32 %v1242_v15, 0.0  ;;  %v987_v26 = vadd.f32 %v950_v23, %v866_v17  ;;  %v831_v6 = vpop.f32.mrf.mxu1 }
 0x14d   : > { %v867_v34 = vadd.f32 %v831_v6, %v1976_v41 }
 0x14e   : > { %1274 = vst.msk [vmem:[%s2074_s30 + $0x8] sm:$0xff] %vm251_vm1, %v1258_v25  ;;  %v1105_v32 = vadd.f32 %v1068_v24, %v987_v26  ;;  %v1188_v29 = vpop.f32.mrf.mxu0 }
 0x150   : > { %v1223_v30 = vadd.f32 %v1186_v16, %v1105_v32 }
 0x152   : > { %v1243_v36 = vadd.f32 %v2067_v4, %v1223_v30 }
 0x153   : > { %v952_v39 = vpop.f32.mrf.mxu2  ;;  %v1070_v31 = vpop.f32.mrf.mxu3 }
 0x154   : > { %v1259_v37 = vmax.f32 %v1243_v36, 0.0  ;;  %v988_v27 = vadd.f32 %v952_v39, %v867_v34  ;;  %v834_v38 = vpop.f32.mrf.mxu1 }
 0x155   : > { %v868_v51 = vadd.f32 %v834_v38, %v1981_v12 }
 0x156   : > { %1275 = vst.msk [vmem:[%s2074_s30 + $0x10] sm:$0xff] %vm251_vm1, %v1259_v37  ;;  %v1106_v43 = vadd.f32 %v1070_v31, %v988_v27  ;;  %v1191_v46 = vpop.f32.mrf.mxu0 }
 0x158   : > { %v1224_v44 = vadd.f32 %v1188_v29, %v1106_v43 }
 0x15a   : > { %v1244_v28 = vadd.f32 %v2067_v4, %v1224_v44 }
 0x15b   : > { %v955_v55 = vpop.f32.mrf.mxu2  ;;  %v1073_v58 = vpop.f32.mrf.mxu3 }
 0x15c   : > { %v1260_v48 = vmax.f32 %v1244_v28, 0.0  ;;  %v989_v41 = vadd.f32 %v955_v55, %v868_v51  ;;  %v836_v42 = vpop.f32.mrf.mxu1 }
 0x15d   : > { %v869_v18 = vadd.f32 %v836_v42, %v1990_v35 }
 0x15e   : > { %1276 = vst.msk [vmem:[%s2074_s30 + $0x18] sm:$0xff] %vm251_vm1, %v1260_v48  ;;  %v1107_v13 = vadd.f32 %v1073_v58, %v989_v41  ;;  %v1193_v49 = vpop.f32.mrf.mxu0 }
 0x160   : > { %v1225_v61 = vadd.f32 %v1191_v46, %v1107_v13 }
 0x162   : > { %v1245_v50 = vadd.f32 %v2067_v4, %v1225_v61 }
 0x163   : > { %v957_v62 = vpop.f32.mrf.mxu2  ;;  %v1075_v63 = vpop.f32.mrf.mxu3 }
 0x164   : > { %v1261_v2 = vmax.f32 %v1245_v50, 0.0  ;;  %v990_v12 = vadd.f32 %v957_v62, %v869_v18  ;;  %v839_v47 = vpop.f32.mrf.mxu1 }
 0x165   : > { %v870_v9 = vadd.f32 %v839_v47, %v1995_v20 }
 0x166   : > { %1277 = vst.msk [vmem:[%s2074_s30 + $0x20] sm:$0xff] %vm251_vm1, %v1261_v2  ;;  %v1108_v3 = vadd.f32 %v1075_v63, %v990_v12  ;;  %v1196_v52 = vpop.f32.mrf.mxu0 }
 0x168   : > { %v1226_v57 = vadd.f32 %v1193_v49, %v1108_v3 }
 0x16a   : > { %v1246_v5 = vadd.f32 %v2067_v4, %v1226_v57 }
 0x16b   : > { %v960_v0 = vpop.f32.mrf.mxu2  ;;  %v1078_v8 = vpop.f32.mrf.mxu3 }
 0x16c   : > { %v1262_v10 = vmax.f32 %v1246_v5, 0.0  ;;  %v991_v35 = vadd.f32 %v960_v0, %v870_v9  ;;  %v841_v21 = vpop.f32.mrf.mxu1 }
 0x16d   : > { %v871_v16 = vadd.f32 %v841_v21, %v2005_v54 }
 0x16e   : > { %1278 = vst.msk [vmem:[%s2074_s30 + $0x28] sm:$0xff] %vm251_vm1, %v1262_v10  ;;  %v1109_v11 = vadd.f32 %v1078_v8, %v991_v35  ;;  %v1198_v1 = vpop.f32.mrf.mxu0 }
 0x170   : > { %v1227_v40 = vadd.f32 %v1196_v52, %v1109_v11 }
 0x172   : > { %v1247_v14 = vadd.f32 %v2067_v4, %v1227_v40 }
 0x173   : > { %v962_v19 = vpop.f32.mrf.mxu2  ;;  %v1080_v15 = vpop.f32.mrf.mxu3 }
 0x174   : > { %v1263_v17 = vmax.f32 %v1247_v14, 0.0  ;;  %v992_v20 = vadd.f32 %v962_v19, %v871_v16  ;;  %v844_v23 = vpop.f32.mrf.mxu1 }
 0x175   : > { %v872_v32 = vadd.f32 %v844_v23, %v2009_v7 }
 0x176   : > { %1279 = vst.msk [vmem:[%s2074_s30 + $0x30] sm:$0xff] %vm251_vm1, %v1263_v17  ;;  %v1110_v24 = vadd.f32 %v1080_v15, %v992_v20  ;;  %v1201_v25 = vpop.f32.mrf.mxu0 }
 0x178   : > { %v1228_v26 = vadd.f32 %v1198_v1, %v1110_v24 }
 0x17a   : > { %v1248_v6 = vadd.f32 %v2067_v4, %v1228_v26 }
 0x17b   : > { %v965_v29 = vpop.f32.mrf.mxu2  ;;  %v1083_v30 = vpop.f32.mrf.mxu3 }
 0x17c   : > { %v1264_v36 = vmax.f32 %v1248_v6, 0.0  ;;  %v993_v54 = vadd.f32 %v965_v29, %v872_v32  ;;  %v846_v34 = vpop.f32.mrf.mxu1 }
 0x17d   : > { %v873_v38 = vadd.f32 %v846_v34, %v2020_v45 }
 0x17e   : > { %1280 = vst.msk [vmem:[%s2074_s30 + $0x38] sm:$0xff] %vm251_vm1, %v1264_v36  ;;  %v1111_v39 = vadd.f32 %v1083_v30, %v993_v54  ;;  %v1203_v31 = vpop.f32.mrf.mxu0 }
 0x180   : > { %v1229_v37 = vadd.f32 %v1201_v25, %v1111_v39 }
 0x182   : > { %v1249_v27 = vadd.f32 %v2067_v4, %v1229_v37 }
 0x183   : > { %v967_v43 = vpop.f32.mrf.mxu2  ;;  %v1085_v46 = vpop.f32.mrf.mxu3 }
 0x184   : > { %v1265_v44 = vmax.f32 %v1249_v27, 0.0  ;;  %v994_v7 = vadd.f32 %v967_v43, %v873_v38  ;;  %v849_v28 = vpop.f32.mrf.mxu1 }
 0x185   : > { %v874_v41 = vadd.f32 %v849_v28, %v2025_v60 }
 0x186   : > { %1281 = vst.msk [vmem:[%s2074_s30 + $0x40] sm:$0xff] %vm251_vm1, %v1265_v44  ;;  %v1112_v51 = vadd.f32 %v1085_v46, %v994_v7  ;;  %v1206_v55 = vpop.f32.mrf.mxu0 }
 0x188   : > { %v1230_v58 = vadd.f32 %v1203_v31, %v1112_v51 }
 0x18a   : > { %v1250_v48 = vadd.f32 %v2067_v4, %v1230_v58 }
 0x18b   : > { %v970_v42 = vpop.f32.mrf.mxu2  ;;  %v1088_v13 = vpop.f32.mrf.mxu3 }
 0x18c   : > { %v1266_v49 = vmax.f32 %v1250_v48, 0.0  ;;  %v995_v45 = vadd.f32 %v970_v42, %v874_v41  ;;  %v851_v61 = vpop.f32.mrf.mxu1 }
 0x18d   : > { %v875_v2 = vadd.f32 %v851_v61, %v2036_v56 }
 0x18e   : > { %1282 = vst.msk [vmem:[%s2074_s30 + $0x48] sm:$0xff] %vm251_vm1, %v1266_v49  ;;  %v1113_v50 = vadd.f32 %v1088_v13, %v995_v45  ;;  %v1208_v18 = vpop.f32.mrf.mxu0 }
 0x190   : > { %v1231_v62 = vadd.f32 %v1206_v55, %v1113_v50 }
 0x192   : > { %v1251_v63 = vadd.f32 %v2067_v4, %v1231_v62 }
 0x193   : > { %v972_v12 = vpop.f32.mrf.mxu2  ;;  %v1090_v47 = vpop.f32.mrf.mxu3 }
 0x194   : > { %v1267_v3 = vmax.f32 %v1251_v63, 0.0  ;;  %v996_v60 = vadd.f32 %v972_v12, %v875_v2  ;;  %v854_v52 = vpop.f32.mrf.mxu1 }
 0x195   : > { %v876_v8 = vadd.f32 %v854_v52, %v2041_v22 }
 0x196   : > { %1283 = vst.msk [vmem:[%s2074_s30 + $0x50] sm:$0xff] %vm251_vm1, %v1267_v3  ;;  %v1114_v57 = vadd.f32 %v1090_v47, %v996_v60  ;;  %v1211_v9 = vpop.f32.mrf.mxu0 }
 0x198   : > { %v1232_v5 = vadd.f32 %v1208_v18, %v1114_v57 }
 0x19a   : > { %v1252_v0 = vadd.f32 %v2067_v4, %v1232_v5 }
 0x19b   : > { %v975_v10 = vpop.f32.mrf.mxu2  ;;  %v1093_v35 = vpop.f32.mrf.mxu3 }
 0x19c   : > { %v1268_v21 = vmax.f32 %v1252_v0, 0.0  ;;  %v997_v56 = vadd.f32 %v975_v10, %v876_v8  ;;  %v856_v11 = vpop.f32.mrf.mxu1 }
 0x19d   : > { %v877_v16 = vadd.f32 %v856_v11, %v2052_v33 }
 0x19e   : > { %1284 = vst.msk [vmem:[%s2074_s30 + $0x58] sm:$0xff] %vm251_vm1, %v1268_v21  ;;  %v1115_v1 = vadd.f32 %v1093_v35, %v997_v56  ;;  %v1213_v19 = vpop.f32.mrf.mxu0 }
 0x1a0   : > { %v1233_v40 = vadd.f32 %v1211_v9, %v1115_v1 }
 0x1a2   : > { %v1253_v14 = vadd.f32 %v2067_v4, %v1233_v40 }
 0x1a3   : > { %v977_v15 = vpop.f32.mrf.mxu2  ;;  %v1095_v17 = vpop.f32.mrf.mxu3 }
 0x1a4   : > { %v1269_v20 = vmax.f32 %v1253_v14, 0.0  ;;  %v998_v22 = vadd.f32 %v977_v15, %v877_v16  ;;  %v859_v23 = vpop.f32.mrf.mxu1 }
 0x1a5   : > { %v878_v6 = vadd.f32 %v859_v23, %v2057_v59 }
 0x1a6   : > { %1285 = vst.msk [vmem:[%s2074_s30 + $0x60] sm:$0xff] %vm251_vm1, %v1269_v20  ;;  %v1116_v24 = vadd.f32 %v1095_v17, %v998_v22  ;;  %v1216_v36 = vpop.f32.mrf.mxu0 }
 0x1a8   : > { %v1234_v25 = vadd.f32 %v1213_v19, %v1116_v24 }
 0x1aa   : > { %v1254_v26 = vadd.f32 %v2067_v4, %v1234_v25 }
 0x1ab   : > { %v980_v32 = vpop.f32.mrf.mxu2  ;;  %v1098_v29 = vpop.f32.mrf.mxu3 }
 0x1ac   : > { %v1270_v30 = vmax.f32 %v1254_v26, 0.0  ;;  %v999_v33 = vadd.f32 %v980_v32, %v878_v6  ;;  %v861_v34 = vpop.f32.mrf.mxu1 }
 0x1ad   : > { %v879_v37 = vadd.f32 %v861_v34, %v2060_v53 }
 0x1ae   : > { %1286 = vst.msk [vmem:[%s2074_s30 + $0x68] sm:$0xff] %vm251_vm1, %v1270_v30  ;;  %v1117_v54 = vadd.f32 %v1098_v29, %v999_v33  ;;  %v1218_v44 = vpop.f32.mrf.mxu0 }
 0x1b0   : > { %v1235_v39 = vadd.f32 %v1216_v36, %v1117_v54 }
 0x1b2   : > { %v1255_v31 = vadd.f32 %v2067_v4, %v1235_v39 }
 0x1b3   : > { %v982_v27 = vpop.f32.mrf.mxu2  ;;  %v1100_v59 = vpop.f32.mrf.mxu3 }
 0x1b4   : > { %v1271_v38 = vmax.f32 %v1255_v31, 0.0  ;;  %v1000_v43 = vadd.f32 %v982_v27, %v879_v37 }
 0x1b6   : > { %1287 = vst.msk [vmem:[%s2074_s30 + $0x70] sm:$0xff] %vm251_vm1, %v1271_v38  ;;  %v1118_v46 = vadd.f32 %v1100_v59, %v1000_v43 }
 0x1b8   : > { %v1236_v7 = vadd.f32 %v1218_v44, %v1118_v46 }
 0x1ba   : > { %v1256_v28 = vadd.f32 %v2067_v4, %v1236_v7 }
 0x1bc   : > { %v1272_v51 = vmax.f32 %v1256_v28, 0.0 }
 0x1be   : > { %1288 = vst.msk [vmem:[%s2074_s30 + $0x78] sm:$0xff] %vm251_vm1, %v1272_v51 }
 0x1bf PF: > { %s13_s16 = sadd.s32 1, %s1666_s16   ;;  %s2156_s12 = smov %s1658_s14 }
 0x1c0   : > { %p10_p7 = scmp.ge.s32.totalorder %s13_s16, 6   ;;  %s2157_s13 = smov %s1662_s15 }
 0x1c1   : > { %s2158_s14 = smov %s2161_s17  ;;  %s2159_s15 = smov %s2165_s18 }
 0x1c2   :  { %12 = sbr.rel (!%p10_p7) target bundleno = 3 (0x3), region = 73 }

// kernel: _lambda_.24
= control target key start
LH: loop header
LB: loop body
LE: loop exit
PB: predicated region body
PF: predicated region fallthrough
CT: control target
= control target key end

     0   :  { %s1688_s12 = smov 0   ;;  %s1690_s13 = smov 0   ;;  %s2158_s0 = inlined_call_operand.vmem [shape: f32[2,22,22,8], index: 0, kind: input, shape index: {}]   ;;  %s2159_s1 = inlined_call_operand.vmem [shape: bf16[3,3,8,8], index: 1, kind: input, shape index: {}]   ;;  %s2160_s2 = inlined_call_operand.vmem [shape: f32[1,8], index: 2, kind: input, shape index: {}]   ;;  %s2161_s3 = inlined_call_operand.vmem [shape: f32[2,16,16,8], index: 3, kind: output, shape index: {}]  }
   0x1   :  { %s1692_s14 = smov 0   ;;  %s1694_s15 = smov 0  }
   0x2   :  { %s1696_s16 = smov 0  }
   0x3 LB: > { %s22_s17 = sadd.s32 1, %s1658_s14  ;;  %s25_s18 = sadd.s32 1, %s1662_s15  ;;  %s1666_s16 = sphi %s1696_s16, %s13_s16   ;;  %s1662_s15 = sphi %s1694_s15, %s2165_s15   ;;  %s1658_s14 = sphi %s1692_s14, %s2164_s14   ;;  %s1654_s13 = sphi %s1690_s13, %s2163_s13   ;;  %s1650_s12 = sphi %s1688_s12, %s2162_s12  }
   0x4   : > { %p23_p0 = scmp.ge.s32.totalorder %s22_s17, 2  ;;  %p1393_p1 = scmp.ge.s32.totalorder %s1666_s16, 1 }
   0x5   : > { %p151_p2 = scmp.lt.s32.totalorder %s1666_s16, 5 }
   0x6   : > { %s2167_s17 = smov (%p23_p0, %s22_s17), 0  ;;  %s2169_s18 = smov (!%p23_p0, %s25_s18), %s1662_s15 }
   0x7   : > { %p152_p3 = pnand %p1393_p1, %p151_p2  ;;  %p27_p4 = scmp.ge.s32.totalorder %s2169_s18, 2 }
   0x8   : > { %p180_p5 = scmp.lt.s32.totalorder (!%p152_p3), %s1654_s13, 1  ;;  %s1400_s27 = smul.u32 (!%p152_p3), 192, %s1650_s12 }
   0x9   : > { %s2171_s18 = smov (%p27_p4, %s2169_s18), 0  ;;  %155 = sbr.rel (%p152_p3) target bundleno = 447 (0x1bf), region = 32 }
   0xa   : > { %s1395_s23 = sshll.u32 (!%p152_p3), %s1650_s12, 3 }
   0xb   : > { %p188_p6 = scmp.lt.s32.totalorder (!%p152_p3), %s1395_s23, 15 }
   0xe   : > { %v1401_v0 = vld [vmem:[%s2159_s1 + $0x4] sm:$0xf]  ;;  %vm276_vm0 = vcmask 1043456   ;;  %v1418_v2 = vld [vmem:[%s2159_s1 + $0x8] sm:$0xf]  ;;  %s2173_s13 = smov (!%p180_p5, %s1654_s13), 1 }
   0xf   : > { %v278_v1 = vsel %vm276_vm0, %v1401_v0, 0  ;;  %v1445_v3 = vld [vmem:[%s2159_s1 + $0xc] sm:$0xf]  ;;  %v456_v4 = vsel %vm276_vm0, %v1418_v2, 0  ;;  %v224_v6 = vld [vmem:[%s2159_s1] sm:$0xf] }
  0x10   : > { %1583 = vmatpush.bf16.msra.mxu1 %v278_v1  ;;  %1584 = vmatpush.bf16.msra.mxu2 %v278_v1  ;;  %v577_v5 = vsel %vm276_vm0, %v1445_v3, 0  ;;  %v354_v7 = vsel %vm276_vm0, %v224_v6, 0  ;;  %v1470_v8 = vld [vmem:[%s2159_s1 + $0x10] sm:$0xf]  ;;  %s1586_s30 = smul.u32 528, %s2173_s13  ;;  %vm251_vm1 = vcmask 64512  }
  0x11   : > { %1585 = vmatpush.bf16.msra.mxu3 %v278_v1  ;;  %287 = vmatpush.bf16.msra.mxu0 %v278_v1  ;;  %v695_v9 = vsel %vm276_vm0, %v1470_v8, 0  ;;  %v1522_v22 = vld [vmem:[%s2159_s1 + $0x18] sm:$0xf]  ;;  %v1547_v23 = vld [vmem:[%s2159_s1 + $0x1c] sm:$0xf]  ;;  %s2175_s23 = smov (!%p188_p6, %s1395_s23), 15 }
  0x12   : > { %s184_s6 = scalar_lea.vmem %s2158_s0, %s1586_s30  ;;  %v934_v24 = vsel %vm276_vm0, %v1522_v22, 0  ;;  %v1052_v25 = vsel %vm276_vm0, %v1547_v23, 0  ;;  %v1495_v26 = vld [vmem:[%s2159_s1 + $0x14] sm:$0xf]  ;;  %v1572_v27 = vld [vmem:[%s2159_s1 + $0x20] sm:$0xf] }
  0x13   : > { %s1747_s7 = scalar_lea.vmem %s184_s6, %s1400_s27  ;;  %v813_v28 = vsel %vm276_vm0, %v1495_v26, 0  ;;  %v1170_v29 = vsel %vm276_vm0, %v1572_v27, 0  ;;  %s1396_s24 = sshll.u32 %s2175_s23, 1 }
  0x14   : > { %465 = vmatpush.bf16.msrb.mxu2 %v456_v4  ;;  %363 = vmatpush.bf16.msrb.mxu1 %v354_v7  ;;  %v229_v10 = vld [vmem:[%s1747_s7 + $0x33] sm:$0xff]  ;;  %v230_v11 = vld [vmem:[%s1747_s7 + $0x3b] sm:$0xff]  ;;  %v233_v12 = vld [vmem:[%s1747_s7 + $0x63] sm:$0xff]  ;;  %s1397_s25 = sshll.u32 %s2173_s13, 5 }
  0x15   : > { %586 = vmatpush.bf16.msrb.mxu3 %v577_v5  ;;  %704 = vmatpush.bf16.msrb.mxu0 %v695_v9  ;;  %v243_v13 = vpack.c.bf16 %v230_v11, %v229_v10  ;;  %v234_v14 = vld [vmem:[%s1747_s7 + $0x6b] sm:$0xff]  ;;  %v237_v15 = vld [vmem:[%s1747_s7 + $0x93] sm:$0xff]  ;;  %v238_v16 = vld [vmem:[%s1747_s7 + $0x9b] sm:$0xff]  ;;  %s192_s12 = sadd.s32 %s1397_s25, %s1396_s24 }
  0x16   : > { %v245_v17 = vpack.c.bf16 %v234_v14, %v233_v12  ;;  %v1755_v18 = vpack.c.bf16 %v238_v16, %v237_v15  ;;  %v225_v19 = vld [vmem:[%s1747_s7 + $0x3] sm:$0xff]  ;;  %v226_v20 = vld [vmem:[%s1747_s7 + $0xb] sm:$0xff]  ;;  %v232_v31 = vld [vmem:[%s1747_s7 + $0x53] sm:$0xff]  ;;  %s1398_s28 = sshll.u32 %s192_s12, 3 }
  0x17   : > { %1404 = vmatmul.msk.bf16.vlgmr.msra.gmra.mxu1 %vm251_vm1, %v243_v13  ;;  %v241_v21 = vpack.c.bf16 %v226_v20, %v225_v19  ;;  %v231_v30 = vld [vmem:[%s1747_s7 + $0x4b] sm:$0xff]  ;;  %v235_v32 = vld [vmem:[%s1747_s7 + $0x7b] sm:$0xff]  ;;  %v236_v33 = vld [vmem:[%s1747_s7 + $0x83] sm:$0xff]  ;;  %s2080_s30 = scalar_lea.vmem %s2161_s3, %s1398_s28 }
  0x18   : > { %1406 = vmatmul.msk.bf16.vlgmr.msra.gmra.mxu2 %vm251_vm1, %v245_v17  ;;  %1408 = vmatmul.msk.bf16.vlgmr.msra.gmra.mxu3 %vm251_vm1, %v1755_v18  ;;  %v239_v34 = vld [vmem:[%s1747_s7 + $0xab] sm:$0xff]  ;;  %v240_v35 = vld [vmem:[%s1747_s7 + $0xb3] sm:$0xff]  ;;  %v227_v36 = vld [vmem:[%s1747_s7 + $0x1b] sm:$0xff]  ;;  %v244_v38 = vpack.c.bf16 %v232_v31, %v231_v30  ;;  %v246_v39 = vpack.c.bf16 %v236_v33, %v235_v32 }
  0x19   : > { %1402 = vmatmul.msk.bf16.vlgmr.msra.gmra.mxu0 %vm251_vm1, %v241_v21  ;;  %943 = vmatpush.bf16.msra.mxu2 %v934_v24  ;;  %v228_v37 = vld [vmem:[%s1747_s7 + $0x23] sm:$0xff]  ;;  %v1788_v40 = vpack.c.bf16 %v240_v35, %v239_v34  ;;  %v406_v45 = vld [vmem:[%s1747_s7 + $0xe] sm:$0xff]  ;;  %v202_v51 = vld [vmem:[%s1747_s7 + $0x18] sm:$0xff] }
  0x1a   : > { %1061 = vmatpush.bf16.msra.mxu3 %v1052_v25  ;;  %822 = vmatpush.bf16.msra.mxu1 %v813_v28  ;;  %v242_v41 = vpack.c.bf16 %v228_v37, %v227_v36  ;;  %v200_v42 = vld [vmem:[%s1747_s7] sm:$0xff]  ;;  %v201_v43 = vld [vmem:[%s1747_s7 + $0x8] sm:$0xff]  ;;  %v1430_v47 = vld [vmem:[%s1747_s7 + $0x50] sm:$0xff] }
  0x1b   : > { %1179 = vmatpush.bf16.msra.mxu0 %v1170_v29  ;;  %v405_v44 = vld [vmem:[%s1747_s7 + $0x6] sm:$0xff]  ;;  %v216_v48 = vpack.c.bf16 %v201_v43, %v200_v42  ;;  %v407_v53 = vld [vmem:[%s1747_s7 + $0x1e] sm:$0xff]  ;;  %v204_v60 = vld [vmem:[%s1747_s7 + $0x30] sm:$0xff] }
  0x1c   : > { %v1429_v46 = vld [vmem:[%s1747_s7 + $0x48] sm:$0xff]  ;;  %v421_v49 = vpack.c.bf16 %v406_v45, %v405_v44  ;;  %v203_v52 = vld [vmem:[%s1747_s7 + $0x20] sm:$0xff]  ;;  %v205_v61 = vld [vmem:[%s1747_s7 + $0x38] sm:$0xff] }
  0x1d   : > { %v542_v50 = vpack.c.bf16 %v1430_v47, %v1429_v46  ;;  %v408_v54 = vld [vmem:[%s1747_s7 + $0x26] sm:$0xff]  ;;  %v217_v57 = vpack.c.bf16 %v203_v52, %v202_v51  ;;  %v409_v62 = vld [vmem:[%s1747_s7 + $0x36] sm:$0xff]  ;;  %v410_v63 = vld [vmem:[%s1747_s7 + $0x3e] sm:$0xff]  ;;  %v218_v2 = vpack.c.bf16 %v205_v61, %v204_v60 }
  0x1e   : > { %v1431_v55 = vld [vmem:[%s1747_s7 + $0x60] sm:$0xff]  ;;  %v1432_v56 = vld [vmem:[%s1747_s7 + $0x68] sm:$0xff]  ;;  %v422_v58 = vpack.c.bf16 %v408_v54, %v407_v53  ;;  %v1433_v0 = vld [vmem:[%s1747_s7 + $0x78] sm:$0xff]  ;;  %v423_v3 = vpack.c.bf16 %v410_v63, %v409_v62 }
  0x1f   : > { %v543_v59 = vpack.c.bf16 %v1432_v56, %v1431_v55  ;;  %v1434_v1 = vld [vmem:[%s1747_s7 + $0x80] sm:$0xff]  ;;  %v411_v5 = vld [vmem:[%s1747_s7 + $0x4e] sm:$0xff]  ;;  %v412_v6 = vld [vmem:[%s1747_s7 + $0x56] sm:$0xff] }
  0x20   : > { %v544_v4 = vpack.c.bf16 %v1434_v1, %v1433_v0  ;;  %v1435_v7 = vld [vmem:[%s1747_s7 + $0x90] sm:$0xff]  ;;  %v1436_v8 = vld [vmem:[%s1747_s7 + $0x98] sm:$0xff]  ;;  %v1829_v9 = vpack.c.bf16 %v412_v6, %v411_v5  ;;  %v413_v11 = vld [vmem:[%s1747_s7 + $0x66] sm:$0xff] }
  0x21   : > { %v1831_v10 = vpack.c.bf16 %v1436_v8, %v1435_v7  ;;  %v414_v12 = vld [vmem:[%s1747_s7 + $0x6e] sm:$0xff]  ;;  %v416_v19 = vld [vmem:[%s1747_s7 + $0x86] sm:$0xff]  ;;  %v417_v27 = vld [vmem:[%s1747_s7 + $0x96] sm:$0xff] }
  0x22   : > { %v1437_v13 = vld [vmem:[%s1747_s7 + $0xa8] sm:$0xff]  ;;  %v1438_v14 = vld [vmem:[%s1747_s7 + $0xb0] sm:$0xff]  ;;  %v1844_v15 = vpack.c.bf16 %v414_v12, %v413_v11  ;;  %v1439_v20 = vld [vmem:[%s1747_s7 + $0xc0] sm:$0xff] }
  0x23   : > { %v1846_v16 = vpack.c.bf16 %v1438_v14, %v1437_v13  ;;  %v1440_v21 = vld [vmem:[%s1747_s7 + $0xc8] sm:$0xff]  ;;  %v418_v28 = vld [vmem:[%s1747_s7 + $0x9e] sm:$0xff]  ;;  %v420_v44 = vld [vmem:[%s1747_s7 + $0xb6] sm:$0xff] }
  0x24   : > { %v1464_v22 = vld [vmem:[%s1747_s7 + $0xc3] sm:$0xff]  ;;  %v1465_v23 = vld [vmem:[%s1747_s7 + $0xcb] sm:$0xff]  ;;  %v1863_v25 = vpack.c.bf16 %v1440_v21, %v1439_v20  ;;  %v1441_v29 = vld [vmem:[%s1747_s7 + $0xd8] sm:$0xff]  ;;  %v1882_v34 = vpack.c.bf16 %v418_v28, %v417_v27 }
  0x25   : > { %v1865_v26 = vpack.c.bf16 %v1465_v23, %v1464_v22  ;;  %v1442_v30 = vld [vmem:[%s1747_s7 + $0xe0] sm:$0xff]  ;;  %v419_v43 = vld [vmem:[%s1747_s7 + $0xae] sm:$0xff]  ;;  %v1444_v46 = vld [vmem:[%s1747_s7 + $0xf8] sm:$0xff] }
  0x26   : > { %v1466_v31 = vld [vmem:[%s1747_s7 + $0xdb] sm:$0xff]  ;;  %v1467_v32 = vld [vmem:[%s1747_s7 + $0xe3] sm:$0xff]  ;;  %v1884_v35 = vpack.c.bf16 %v1442_v30, %v1441_v29  ;;  %v1443_v45 = vld [vmem:[%s1747_s7 + $0xf0] sm:$0xff]  ;;  %v1914_v52 = vpack.c.bf16 %v420_v44, %v419_v43 }
  0x27   : > { %1405 = vmatmul.msk.bf16.gmra.mxu1 %vm251_vm1, %v244_v38  ;;  %v1886_v36 = vpack.c.bf16 %v1467_v32, %v1466_v31  ;;  %v1468_v47 = vld [vmem:[%s1747_s7 + $0xf3] sm:$0xff]  ;;  %v1916_v53 = vpack.c.bf16 %v1444_v46, %v1443_v45 }
  0x28   : > { %1407 = vmatmul.msk.bf16.gmra.mxu2 %vm251_vm1, %v246_v39  ;;  %1409 = vmatmul.msk.bf16.gmra.mxu3 %vm251_vm1, %v1788_v40  ;;  %v1561_v30 = vld [vmem:[%s1747_s7 + $0xce] sm:$0xff] }
  0x29   : > { %1403 = vmatmul.msk.bf16.gmra.mxu0 %vm251_vm1, %v242_v41 }
  0x37   : > { %1410 = vmatmul.msk.bf16.vlgmr.msrb.gmra.mxu1 %vm251_vm1, %v216_v48  ;;  %v1469_v48 = vld [vmem:[%s1747_s7 + $0xfb] sm:$0xff] }
  0x38   : > { %1419 = vmatmul.msk.bf16.vlgmr.msrb.gmra.mxu2 %vm251_vm1, %v421_v49  ;;  %1446 = vmatmul.msk.bf16.vlgmr.msrb.gmra.mxu3 %vm251_vm1, %v542_v50  ;;  %v1918_v54 = vpack.c.bf16 %v1469_v48, %v1468_v47 }
  0x39   : > { %1471 = vmatmul.msk.bf16.vlgmr.msrb.gmra.mxu0 %vm251_vm1, %v244_v38 }
  0x47   : > { %1411 = vmatmul.msk.bf16.gmra.mxu1 %vm251_vm1, %v217_v57 }
  0x48   : > { %1420 = vmatmul.msk.bf16.gmra.mxu2 %vm251_vm1, %v422_v58  ;;  %1447 = vmatmul.msk.bf16.gmra.mxu3 %vm251_vm1, %v543_v59 }
  0x49   : > { %1472 = vmatmul.msk.bf16.gmra.mxu0 %vm251_vm1, %v245_v17  ;;  %v415_v17 = vld [vmem:[%s1747_s7 + $0x7e] sm:$0xff] }
  0x4a   : > { %v1861_v24 = vpack.c.bf16 %v416_v19, %v415_v17 }
  0x57   : > { %1412 = vmatmul.msk.bf16.gmra.mxu1 %vm251_vm1, %v218_v2 }
  0x58   : > { %1421 = vmatmul.msk.bf16.gmra.mxu2 %vm251_vm1, %v423_v3  ;;  %1448 = vmatmul.msk.bf16.gmra.mxu3 %vm251_vm1, %v544_v4 }
  0x59   : > { %1473 = vmatmul.msk.bf16.gmra.mxu0 %vm251_vm1, %v246_v39 }
  0x67   : > { %1413 = vmatmul.msk.bf16.gmra.mxu1 %vm251_vm1, %v542_v50 }
  0x68   : > { %1422 = vmatmul.msk.bf16.gmra.mxu2 %vm251_vm1, %v1829_v9  ;;  %1449 = vmatmul.msk.bf16.gmra.mxu3 %vm251_vm1, %v1831_v10 }
  0x69   : > { %1474 = vmatmul.msk.bf16.gmra.mxu0 %vm251_vm1, %v1755_v18 }
  0x77   : > { %1414 = vmatmul.msk.bf16.gmra.mxu1 %vm251_vm1, %v543_v59 }
  0x78   : > { %1423 = vmatmul.msk.bf16.gmra.mxu2 %vm251_vm1, %v1844_v15  ;;  %1450 = vmatmul.msk.bf16.gmra.mxu3 %vm251_vm1, %v1846_v16 }
  0x79   : > { %1475 = vmatmul.msk.bf16.gmra.mxu0 %vm251_vm1, %v1788_v40 }
  0x87   : > { %1415 = vmatmul.msk.bf16.gmra.mxu1 %vm251_vm1, %v544_v4 }
  0x88   : > { %1424 = vmatmul.msk.bf16.gmra.mxu2 %vm251_vm1, %v1861_v24  ;;  %1451 = vmatmul.msk.bf16.gmra.mxu3 %vm251_vm1, %v1863_v25 }
  0x89   : > { %1476 = vmatmul.msk.bf16.gmra.mxu0 %vm251_vm1, %v1865_v26 }
  0x94   : > { %v1880_v33 = vpop.f32.mrf.mxu1 }
  0x96   : > { %v289_v37 = vpop.f32.mrf.mxu0 }
  0x97   : > { %1416 = vmatmul.msk.bf16.gmra.mxu1 %vm251_vm1, %v1831_v10 }
  0x98   : > { %1425 = vmatmul.msk.bf16.gmra.mxu2 %vm251_vm1, %v1882_v34  ;;  %1452 = vmatmul.msk.bf16.gmra.mxu3 %vm251_vm1, %v1884_v35 }
  0x99   : > { %1477 = vmatmul.msk.bf16.gmra.mxu0 %vm251_vm1, %v1886_v36 }
  0x9b   : > { %v1896_v38 = vpop.f32.mrf.mxu2  ;;  %v1898_v39 = vpop.f32.mrf.mxu3 }
  0x9c   : > { %v1900_v41 = vpop.f32.mrf.mxu1 }
  0x9e   : > { %v291_v42 = vpop.f32.mrf.mxu0 }
  0xa3   : > { %v1908_v49 = vpop.f32.mrf.mxu2  ;;  %v1910_v50 = vpop.f32.mrf.mxu3 }
  0xa4   : > { %v1912_v51 = vpop.f32.mrf.mxu1 }
  0xa6   : > { %v294_v55 = vpop.f32.mrf.mxu0 }
  0xa7   : > { %1417 = vmatmul.msk.bf16.gmra.mxu1 %vm251_vm1, %v1846_v16 }
  0xa8   : > { %1426 = vmatmul.msk.bf16.gmra.mxu2 %vm251_vm1, %v1914_v52  ;;  %1453 = vmatmul.msk.bf16.gmra.mxu3 %vm251_vm1, %v1916_v53 }
  0xa9   : > { %1478 = vmatmul.msk.bf16.gmra.mxu0 %vm251_vm1, %v1918_v54 }
  0xab   : > { %v1928_v56 = vpop.f32.mrf.mxu2  ;;  %v1930_v57 = vpop.f32.mrf.mxu3 }
  0xac   : > { %v1932_v58 = vpop.f32.mrf.mxu1 }
  0xae   : > { %v296_v59 = vpop.f32.mrf.mxu0 }
  0xb3   : > { %v1934_v60 = vpop.f32.mrf.mxu2  ;;  %v1936_v61 = vpop.f32.mrf.mxu3 }
  0xb4   : > { %v365_v62 = vpop.f32.mrf.mxu1 }
  0xb5   : > { %v366_v63 = vadd.f32 %v365_v62, %v289_v37 }
  0xb6   : > { %v706_v0 = vpop.f32.mrf.mxu0 }
  0xb7   : > { %1496 = vmatmul.msk.bf16.vlgmr.msra.gmra.mxu1 %vm251_vm1, %v1829_v9 }
  0xb8   : > { %1523 = vmatmul.msk.bf16.vlgmr.msra.gmra.mxu2 %vm251_vm1, %v1831_v10  ;;  %1548 = vmatmul.msk.bf16.vlgmr.msra.gmra.mxu3 %vm251_vm1, %v1755_v18 }
  0xb9   : > { %1573 = vmatmul.msk.bf16.vlgmr.msra.gmra.mxu0 %vm251_vm1, %v1882_v34 }
  0xbb   : > { %v467_v1 = vpop.f32.mrf.mxu2  ;;  %v588_v2 = vpop.f32.mrf.mxu3 }
  0xbc   : > { %v507_v3 = vadd.f32 %v467_v1, %v366_v63  ;;  %v367_v4 = vpop.f32.mrf.mxu1  ;;  %v1562_v63 = vld [vmem:[%s1747_s7 + $0xde] sm:$0xff] }
  0xbd   : > { %v368_v5 = vadd.f32 %v367_v4, %v291_v42 }
  0xbe   : > { %v628_v6 = vadd.f32 %v588_v2, %v507_v3  ;;  %v708_v7 = vpop.f32.mrf.mxu0 }
  0xc0   : > { %v1946_v8 = vadd.f32 %v706_v0, %v628_v6 }
  0xc3   : > { %v469_v11 = vpop.f32.mrf.mxu2  ;;  %v590_v9 = vpop.f32.mrf.mxu3 }
  0xc4   : > { %v508_v12 = vadd.f32 %v469_v11, %v368_v5  ;;  %v370_v13 = vpop.f32.mrf.mxu1 }
  0xc5   : > { %v371_v10 = vadd.f32 %v370_v13, %v294_v55 }
  0xc6   : > { %v629_v14 = vadd.f32 %v590_v9, %v508_v12  ;;  %v711_v18 = vpop.f32.mrf.mxu0 }
  0xc7   : > { %1497 = vmatmul.msk.bf16.gmra.mxu1 %vm251_vm1, %v1844_v15  ;;  %v1560_v15 = vld [vmem:[%s1747_s7 + $0xc6] sm:$0xff] }
  0xc8   : > { %1524 = vmatmul.msk.bf16.gmra.mxu2 %vm251_vm1, %v1846_v16  ;;  %1549 = vmatmul.msk.bf16.gmra.mxu3 %vm251_vm1, %v1788_v40  ;;  %v1954_v17 = vadd.f32 %v708_v7, %v629_v14  ;;  %v1963_v42 = vpack.c.bf16 %v1561_v30, %v1560_v15  ;;  %v1564_v14 = vld [vmem:[%s1747_s7 + $0xf6] sm:$0xff] }
  0xc9   : > { %1574 = vmatmul.msk.bf16.gmra.mxu0 %vm251_vm1, %v1914_v52 }
  0xcb   : > { %v472_v19 = vpop.f32.mrf.mxu2  ;;  %v593_v20 = vpop.f32.mrf.mxu3 }
  0xcc   : > { %v509_v21 = vadd.f32 %v472_v19, %v371_v10  ;;  %v372_v22 = vpop.f32.mrf.mxu1 }
  0xcd   : > { %v373_v23 = vadd.f32 %v372_v22, %v296_v59 }
  0xce   : > { %v630_v27 = vadd.f32 %v593_v20, %v509_v21  ;;  %v713_v28 = vpop.f32.mrf.mxu0 }
  0xd0   : > { %v1958_v29 = vadd.f32 %v711_v18, %v630_v27 }
  0xd3   : > { %v474_v16 = vpop.f32.mrf.mxu2  ;;  %v595_v31 = vpop.f32.mrf.mxu3 }
  0xd4   : > { %v510_v32 = vadd.f32 %v474_v16, %v373_v23  ;;  %v375_v40 = vpop.f32.mrf.mxu1 }
  0xd5   : > { %v376_v37 = vadd.f32 %v375_v40, %v1880_v33  ;;  %v1517_v40 = vld [vmem:[%s1747_s7 + $0x110] sm:$0xff] }
  0xd6   : > { %v631_v43 = vadd.f32 %v595_v31, %v510_v32  ;;  %v716_v44 = vpop.f32.mrf.mxu0  ;;  %v1516_v32 = vld [vmem:[%s1747_s7 + $0x108] sm:$0xff] }
  0xd7   : > { %1498 = vmatmul.msk.bf16.gmra.mxu1 %vm251_vm1, %v1861_v24 }
  0xd8   : > { %1525 = vmatmul.msk.bf16.gmra.mxu2 %vm251_vm1, %v1863_v25  ;;  %1550 = vmatmul.msk.bf16.gmra.mxu3 %vm251_vm1, %v1865_v26  ;;  %v1971_v45 = vadd.f32 %v713_v28, %v631_v43  ;;  %v1563_v25 = vld [vmem:[%s1747_s7 + $0xe6] sm:$0xff] }
  0xd9   : > { %1575 = vmatmul.msk.bf16.gmra.mxu0 %vm251_vm1, %v1963_v42  ;;  %v1981_v4 = vpack.c.bf16 %v1563_v25, %v1562_v63 }
  0xdb   : > { %v477_v33 = vpop.f32.mrf.mxu2  ;;  %v598_v46 = vpop.f32.mrf.mxu3 }
  0xdc   : > { %v511_v47 = vadd.f32 %v477_v33, %v376_v37  ;;  %v377_v48 = vpop.f32.mrf.mxu1  ;;  %v1542_v37 = vld [vmem:[%s1747_s7 + $0x113] sm:$0xff] }
  0xdd   : > { %v378_v55 = vadd.f32 %v377_v48, %v1900_v41  ;;  %v1567_v33 = vld [vmem:[%s1747_s7 + $0x116] sm:$0xff] }
  0xde   : > { %v632_v59 = vadd.f32 %v598_v46, %v511_v47  ;;  %v718_v62 = vpop.f32.mrf.mxu0 }
  0xe0   : > { %v1976_v24 = vadd.f32 %v716_v44, %v632_v59  ;;  %v1566_v44 = vld [vmem:[%s1747_s7 + $0x10e] sm:$0xff] }
  0xe3   : > { %v479_v0 = vpop.f32.mrf.mxu2  ;;  %v600_v1 = vpop.f32.mrf.mxu3 }
  0xe4   : > { %v512_v26 = vadd.f32 %v479_v0, %v378_v55  ;;  %v380_v2 = vpop.f32.mrf.mxu1  ;;  %v904_v55 = vpack.c.bf16 %v1517_v40, %v1516_v32  ;;  %v1521_v40 = vld [vmem:[%s1747_s7 + $0x140] sm:$0xff] }
  0xe5   : > { %v381_v3 = vadd.f32 %v380_v2, %v1912_v51 }
  0xe6   : > { %v633_v5 = vadd.f32 %v600_v1, %v512_v26  ;;  %v721_v6 = vpop.f32.mrf.mxu0 }
  0xe7   : > { %1499 = vmatmul.msk.bf16.gmra.mxu1 %vm251_vm1, %v1882_v34 }
  0xe8   : > { %1526 = vmatmul.msk.bf16.gmra.mxu2 %vm251_vm1, %v1884_v35  ;;  %1551 = vmatmul.msk.bf16.gmra.mxu3 %vm251_vm1, %v1886_v36  ;;  %v1989_v41 = vadd.f32 %v718_v62, %v633_v5  ;;  %v1565_v35 = vld [vmem:[%s1747_s7 + $0xfe] sm:$0xff]  ;;  %v1140_v62 = vpack.c.bf16 %v1567_v33, %v1566_v44  ;;  %v1571_v33 = vld [vmem:[%s1747_s7 + $0x146] sm:$0xff] }
  0xe9   : > { %1576 = vmatmul.msk.bf16.gmra.mxu0 %vm251_vm1, %v1981_v4  ;;  %v1998_v21 = vpack.c.bf16 %v1565_v35, %v1564_v14  ;;  %v1570_v44 = vld [vmem:[%s1747_s7 + $0x13e] sm:$0xff] }
  0xeb   : > { %v482_v51 = vpop.f32.mrf.mxu2  ;;  %v603_v7 = vpop.f32.mrf.mxu3 }
  0xec   : > { %v513_v11 = vadd.f32 %v482_v51, %v381_v3  ;;  %v382_v9 = vpop.f32.mrf.mxu1 }
  0xed   : > { %v383_v12 = vadd.f32 %v382_v9, %v1932_v58  ;;  %v1544_v9 = vld [vmem:[%s1747_s7 + $0x12b] sm:$0xff] }
  0xee   : > { %v634_v13 = vadd.f32 %v603_v7, %v513_v11  ;;  %v723_v10 = vpop.f32.mrf.mxu0  ;;  %v1519_v7 = vld [vmem:[%s1747_s7 + $0x128] sm:$0xff] }
  0xef   : > { %v1543_v11 = vld [vmem:[%s1747_s7 + $0x123] sm:$0xff] }
  0xf0   : > { %v1994_v34 = vadd.f32 %v721_v6, %v634_v13  ;;  %v1568_v13 = vld [vmem:[%s1747_s7 + $0x126] sm:$0xff] }
  0xf3   : > { %v484_v18 = vpop.f32.mrf.mxu2  ;;  %v605_v19 = vpop.f32.mrf.mxu3 }
  0xf4   : > { %v514_v36 = vadd.f32 %v484_v18, %v383_v12  ;;  %v385_v20 = vpop.f32.mrf.mxu1 }
  0xf5   : > { %v386_v27 = vadd.f32 %v385_v20, %v1896_v38 }
  0xf6   : > { %v635_v22 = vadd.f32 %v605_v19, %v514_v36  ;;  %v726_v23 = vpop.f32.mrf.mxu0  ;;  %v1023_v36 = vpack.c.bf16 %v1544_v9, %v1543_v11 }
  0xf7   : > { %1500 = vmatmul.msk.bf16.gmra.mxu1 %vm251_vm1, %v1914_v52 }
  0xf8   : > { %1527 = vmatmul.msk.bf16.gmra.mxu2 %vm251_vm1, %v1916_v53  ;;  %1552 = vmatmul.msk.bf16.gmra.mxu3 %vm251_vm1, %v1918_v54  ;;  %v2006_v58 = vadd.f32 %v723_v10, %v635_v22  ;;  %v1541_v54 = vld [vmem:[%s1747_s7 + $0x10b] sm:$0xff] }
  0xf9   : > { %1577 = vmatmul.msk.bf16.gmra.mxu0 %vm251_vm1, %v1998_v21  ;;  %v1022_v59 = vpack.c.bf16 %v1542_v37, %v1541_v54  ;;  %v1569_v10 = vld [vmem:[%s1747_s7 + $0x12e] sm:$0xff]  ;;  %v1545_v54 = vld [vmem:[%s1747_s7 + $0x13b] sm:$0xff]  ;;  %v1546_v37 = vld [vmem:[%s1747_s7 + $0x143] sm:$0xff] }
  0xfa   : > { %v1141_v20 = vpack.c.bf16 %v1569_v10, %v1568_v13 }
  0xfb   : > { %v487_v28 = vpop.f32.mrf.mxu2  ;;  %v608_v15 = vpop.f32.mrf.mxu3 }
  0xfc   : > { %v515_v30 = vadd.f32 %v487_v28, %v386_v27  ;;  %v387_v52 = vpop.f32.mrf.mxu1 }
  0xfd   : > { %v388_v43 = vadd.f32 %v387_v52, %v1908_v49 }
  0xfe   : > { %v636_v16 = vadd.f32 %v608_v15, %v515_v30  ;;  %v728_v31 = vpop.f32.mrf.mxu0 }
 0x100   : > { %v2012_v53 = vadd.f32 %v726_v23, %v636_v16 }
 0x103   : > { %v489_v46 = vpop.f32.mrf.mxu2  ;;  %v610_v47 = vpop.f32.mrf.mxu3 }
 0x104   : > { %v516_v48 = vadd.f32 %v489_v46, %v388_v43  ;;  %v390_v38 = vpop.f32.mrf.mxu1 }
 0x105   : > { %v391_v0 = vadd.f32 %v390_v38, %v1928_v56 }
 0x106   : > { %v637_v63 = vadd.f32 %v610_v47, %v516_v48  ;;  %v731_v25 = vpop.f32.mrf.mxu0 }
 0x107   : > { %1501 = vmatmul.msk.bf16.gmra.mxu1 %vm251_vm1, %v1963_v42  ;;  %v1518_v42 = vld [vmem:[%s1747_s7 + $0x120] sm:$0xff] }
 0x108   : > { %1528 = vmatmul.msk.bf16.gmra.mxu2 %vm251_vm1, %v904_v55  ;;  %1553 = vmatmul.msk.bf16.gmra.mxu3 %vm251_vm1, %v1022_v59  ;;  %v2024_v49 = vadd.f32 %v728_v31, %v637_v63  ;;  %v905_v19 = vpack.c.bf16 %v1519_v7, %v1518_v42  ;;  %v1024_v55 = vpack.c.bf16 %v1546_v37, %v1545_v54 }
 0x109   : > { %1578 = vmatmul.msk.bf16.gmra.mxu0 %vm251_vm1, %v1140_v62  ;;  %v1142_v59 = vpack.c.bf16 %v1571_v33, %v1570_v44 }
 0x10b   : > { %v492_v1 = vpop.f32.mrf.mxu2  ;;  %v613_v26 = vpop.f32.mrf.mxu3 }
 0x10c   : > { %v517_v2 = vadd.f32 %v492_v1, %v391_v0  ;;  %v392_v3 = vpop.f32.mrf.mxu1 }
 0x10d   : > { %v393_v12 = vadd.f32 %v392_v3, %v1934_v60 }
 0x10e   : > { %v638_v5 = vadd.f32 %v613_v26, %v517_v2  ;;  %v733_v6 = vpop.f32.mrf.mxu0 }
 0x110   : > { %v2029_v51 = vadd.f32 %v731_v25, %v638_v5 }
 0x113   : > { %v494_v14 = vpop.f32.mrf.mxu2  ;;  %v615_v35 = vpop.f32.mrf.mxu3 }
 0x114   : > { %v518_v18 = vadd.f32 %v494_v14, %v393_v12  ;;  %v395_v56 = vpop.f32.mrf.mxu1 }
 0x115   : > { %v396_v27 = vadd.f32 %v395_v56, %v1898_v39 }
 0x116   : > { %v639_v22 = vadd.f32 %v615_v35, %v518_v18  ;;  %v736_v23 = vpop.f32.mrf.mxu0 }
 0x117   : > { %1502 = vmatmul.msk.bf16.gmra.mxu1 %vm251_vm1, %v1981_v4  ;;  %v1520_v4 = vld [vmem:[%s1747_s7 + $0x138] sm:$0xff] }
 0x118   : > { %1529 = vmatmul.msk.bf16.gmra.mxu2 %vm251_vm1, %v905_v19  ;;  %1554 = vmatmul.msk.bf16.gmra.mxu3 %vm251_vm1, %v1023_v36  ;;  %v2041_v60 = vadd.f32 %v733_v6, %v639_v22  ;;  %v906_v38 = vpack.c.bf16 %v1521_v40, %v1520_v4  ;;  %v2073_v19 = vld [vmem:[%s2160_s2] ss:$0 sm:$0xff] }
 0x119   : > { %1579 = vmatmul.msk.bf16.gmra.mxu0 %vm251_vm1, %v1141_v20 }
 0x11b   : > { %v497_v28 = vpop.f32.mrf.mxu2  ;;  %v618_v15 = vpop.f32.mrf.mxu3 }
 0x11c   : > { %v519_v30 = vadd.f32 %v497_v28, %v396_v27  ;;  %v397_v52 = vpop.f32.mrf.mxu1 }
 0x11d   : > { %v398_v43 = vadd.f32 %v397_v52, %v1910_v50 }
 0x11e   : > { %v640_v16 = vadd.f32 %v618_v15, %v519_v30  ;;  %v738_v31 = vpop.f32.mrf.mxu0 }
 0x120   : > { %v2046_v32 = vadd.f32 %v736_v23, %v640_v16 }
 0x123   : > { %v499_v46 = vpop.f32.mrf.mxu2  ;;  %v620_v47 = vpop.f32.mrf.mxu3 }
 0x124   : > { %v520_v48 = vadd.f32 %v499_v46, %v398_v43  ;;  %v400_v39 = vpop.f32.mrf.mxu1 }
 0x125   : > { %v401_v25 = vadd.f32 %v400_v39, %v1930_v57 }
 0x126   : > { %v641_v62 = vadd.f32 %v620_v47, %v520_v48  ;;  %v741_v63 = vpop.f32.mrf.mxu0 }
 0x127   : > { %1503 = vmatmul.msk.bf16.gmra.mxu1 %vm251_vm1, %v1998_v21 }
 0x128   : > { %1530 = vmatmul.msk.bf16.gmra.mxu2 %vm251_vm1, %v906_v38  ;;  %1555 = vmatmul.msk.bf16.gmra.mxu3 %vm251_vm1, %v1024_v55  ;;  %v2058_v50 = vadd.f32 %v738_v31, %v641_v62 }
 0x129   : > { %1580 = vmatmul.msk.bf16.gmra.mxu0 %vm251_vm1, %v1142_v59 }
 0x12b   : > { %v502_v0 = vpop.f32.mrf.mxu2  ;;  %v623_v1 = vpop.f32.mrf.mxu3 }
 0x12c   : > { %v521_v26 = vadd.f32 %v502_v0, %v401_v25  ;;  %v402_v2 = vpop.f32.mrf.mxu1 }
 0x12d   : > { %v403_v21 = vadd.f32 %v402_v2, %v1936_v61 }
 0x12e   : > { %v642_v3 = vadd.f32 %v623_v1, %v521_v26  ;;  %v743_v5 = vpop.f32.mrf.mxu0 }
 0x130   : > { %v2063_v6 = vadd.f32 %v741_v63, %v642_v3 }
 0x133   : > { %v504_v42 = vpop.f32.mrf.mxu2  ;;  %v625_v7 = vpop.f32.mrf.mxu3 }
 0x134   : > { %v522_v11 = vadd.f32 %v504_v42, %v403_v21  ;;  %v824_v9 = vpop.f32.mrf.mxu1 }
 0x135   : > { %v864_v10 = vadd.f32 %v824_v9, %v1946_v8 }
 0x136   : > { %v643_v12 = vadd.f32 %v625_v7, %v522_v11  ;;  %v1181_v13 = vpop.f32.mrf.mxu0 }
 0x138   : > { %v2066_v57 = vadd.f32 %v743_v5, %v643_v12 }
 0x13b   : > { %v945_v14 = vpop.f32.mrf.mxu2  ;;  %v1063_v35 = vpop.f32.mrf.mxu3 }
 0x13c   : > { %v985_v18 = vadd.f32 %v945_v14, %v864_v10  ;;  %v826_v56 = vpop.f32.mrf.mxu1 }
 0x13d   : > { %v865_v8 = vadd.f32 %v826_v56, %v1954_v17 }
 0x13e   : > { %v1103_v61 = vadd.f32 %v1063_v35, %v985_v18  ;;  %v1183_v36 = vpop.f32.mrf.mxu0 }
 0x140   : > { %v1221_v20 = vadd.f32 %v1181_v13, %v1103_v61 }
 0x142   : > { %v1241_v22 = vadd.f32 %v2073_v19, %v1221_v20 }
 0x143   : > { %v947_v23 = vpop.f32.mrf.mxu2  ;;  %v1065_v27 = vpop.f32.mrf.mxu3 }
 0x144   : > { %v1257_v28 = vmax.f32 %v1241_v22, 0.0  ;;  %v986_v15 = vadd.f32 %v947_v23, %v865_v8  ;;  %v829_v30 = vpop.f32.mrf.mxu1 }
 0x145   : > { %v866_v17 = vadd.f32 %v829_v30, %v1958_v29 }
 0x146   : > { %1273 = vst.msk [vmem:[%s2080_s30] sm:$0xff] %vm251_vm1, %v1257_v28  ;;  %v1104_v52 = vadd.f32 %v1065_v27, %v986_v15  ;;  %v1186_v16 = vpop.f32.mrf.mxu0 }
 0x148   : > { %v1222_v31 = vadd.f32 %v1183_v36, %v1104_v52 }
 0x14a   : > { %v1242_v4 = vadd.f32 %v2073_v19, %v1222_v31 }
 0x14b   : > { %v950_v40 = vpop.f32.mrf.mxu2  ;;  %v1068_v54 = vpop.f32.mrf.mxu3 }
 0x14c   : > { %v1258_v37 = vmax.f32 %v1242_v4, 0.0  ;;  %v987_v43 = vadd.f32 %v950_v40, %v866_v17  ;;  %v831_v44 = vpop.f32.mrf.mxu1 }
 0x14d   : > { %v867_v39 = vadd.f32 %v831_v44, %v1971_v45 }
 0x14e   : > { %1274 = vst.msk [vmem:[%s2080_s30 + $0x8] sm:$0xff] %vm251_vm1, %v1258_v37  ;;  %v1105_v33 = vadd.f32 %v1068_v54, %v987_v43  ;;  %v1188_v46 = vpop.f32.mrf.mxu0 }
 0x150   : > { %v1223_v47 = vadd.f32 %v1186_v16, %v1105_v33 }
 0x152   : > { %v1243_v48 = vadd.f32 %v2073_v19, %v1223_v47 }
 0x153   : > { %v952_v38 = vpop.f32.mrf.mxu2  ;;  %v1070_v55 = vpop.f32.mrf.mxu3 }
 0x154   : > { %v1259_v59 = vmax.f32 %v1243_v48, 0.0  ;;  %v988_v29 = vadd.f32 %v952_v38, %v867_v39  ;;  %v834_v62 = vpop.f32.mrf.mxu1 }
 0x155   : > { %v868_v26 = vadd.f32 %v834_v62, %v1976_v24 }
 0x156   : > { %1275 = vst.msk [vmem:[%s2080_s30 + $0x10] sm:$0xff] %vm251_vm1, %v1259_v59  ;;  %v1106_v63 = vadd.f32 %v1070_v55, %v988_v29  ;;  %v1191_v25 = vpop.f32.mrf.mxu0 }
 0x158   : > { %v1224_v0 = vadd.f32 %v1188_v46, %v1106_v63 }
 0x15a   : > { %v1244_v1 = vadd.f32 %v2073_v19, %v1224_v0 }
 0x15b   : > { %v955_v2 = vpop.f32.mrf.mxu2  ;;  %v1073_v3 = vpop.f32.mrf.mxu3 }
 0x15c   : > { %v1260_v5 = vmax.f32 %v1244_v1, 0.0  ;;  %v989_v45 = vadd.f32 %v955_v2, %v868_v26  ;;  %v836_v21 = vpop.f32.mrf.mxu1 }
 0x15d   : > { %v869_v12 = vadd.f32 %v836_v21, %v1989_v41 }
 0x15e   : > { %1276 = vst.msk [vmem:[%s2080_s30 + $0x18] sm:$0xff] %vm251_vm1, %v1260_v5  ;;  %v1107_v42 = vadd.f32 %v1073_v3, %v989_v45  ;;  %v1193_v7 = vpop.f32.mrf.mxu0 }
 0x160   : > { %v1225_v11 = vadd.f32 %v1191_v25, %v1107_v42 }
 0x162   : > { %v1245_v9 = vadd.f32 %v2073_v19, %v1225_v11 }
 0x163   : > { %v957_v13 = vpop.f32.mrf.mxu2  ;;  %v1075_v10 = vpop.f32.mrf.mxu3 }
 0x164   : > { %v1261_v14 = vmax.f32 %v1245_v9, 0.0  ;;  %v990_v24 = vadd.f32 %v957_v13, %v869_v12  ;;  %v839_v35 = vpop.f32.mrf.mxu1 }
 0x165   : > { %v870_v20 = vadd.f32 %v839_v35, %v1994_v34 }
 0x166   : > { %1277 = vst.msk [vmem:[%s2080_s30 + $0x20] sm:$0xff] %vm251_vm1, %v1261_v14  ;;  %v1108_v18 = vadd.f32 %v1075_v10, %v990_v24  ;;  %v1196_v56 = vpop.f32.mrf.mxu0 }
 0x168   : > { %v1226_v61 = vadd.f32 %v1193_v7, %v1108_v18 }
 0x16a   : > { %v1246_v36 = vadd.f32 %v2073_v19, %v1226_v61 }
 0x16b   : > { %v960_v22 = vpop.f32.mrf.mxu2  ;;  %v1078_v8 = vpop.f32.mrf.mxu3 }
 0x16c   : > { %v1262_v23 = vmax.f32 %v1246_v36, 0.0  ;;  %v991_v41 = vadd.f32 %v960_v22, %v870_v20  ;;  %v841_v27 = vpop.f32.mrf.mxu1 }
 0x16d   : > { %v871_v16 = vadd.f32 %v841_v27, %v2006_v58 }
 0x16e   : > { %1278 = vst.msk [vmem:[%s2080_s30 + $0x28] sm:$0xff] %vm251_vm1, %v1262_v23  ;;  %v1109_v28 = vadd.f32 %v1078_v8, %v991_v41  ;;  %v1198_v15 = vpop.f32.mrf.mxu0 }
 0x170   : > { %v1227_v30 = vadd.f32 %v1196_v56, %v1109_v28 }
 0x172   : > { %v1247_v52 = vadd.f32 %v2073_v19, %v1227_v30 }
 0x173   : > { %v962_v31 = vpop.f32.mrf.mxu2  ;;  %v1080_v4 = vpop.f32.mrf.mxu3 }
 0x174   : > { %v1263_v17 = vmax.f32 %v1247_v52, 0.0  ;;  %v992_v34 = vadd.f32 %v962_v31, %v871_v16  ;;  %v844_v40 = vpop.f32.mrf.mxu1 }
 0x175   : > { %v872_v33 = vadd.f32 %v844_v40, %v2012_v53 }
 0x176   : > { %1279 = vst.msk [vmem:[%s2080_s30 + $0x30] sm:$0xff] %vm251_vm1, %v1263_v17  ;;  %v1110_v54 = vadd.f32 %v1080_v4, %v992_v34  ;;  %v1201_v37 = vpop.f32.mrf.mxu0 }
 0x178   : > { %v1228_v43 = vadd.f32 %v1198_v15, %v1110_v54 }
 0x17a   : > { %v1248_v44 = vadd.f32 %v2073_v19, %v1228_v43 }
 0x17b   : > { %v965_v46 = vpop.f32.mrf.mxu2  ;;  %v1083_v47 = vpop.f32.mrf.mxu3 }
 0x17c   : > { %v1264_v48 = vmax.f32 %v1248_v44, 0.0  ;;  %v993_v58 = vadd.f32 %v965_v46, %v872_v33  ;;  %v846_v39 = vpop.f32.mrf.mxu1 }
 0x17d   : > { %v873_v62 = vadd.f32 %v846_v39, %v2024_v49 }
 0x17e   : > { %1280 = vst.msk [vmem:[%s2080_s30 + $0x38] sm:$0xff] %vm251_vm1, %v1264_v48  ;;  %v1111_v38 = vadd.f32 %v1083_v47, %v993_v58  ;;  %v1203_v55 = vpop.f32.mrf.mxu0 }
 0x180   : > { %v1229_v59 = vadd.f32 %v1201_v37, %v1111_v38 }
 0x182   : > { %v1249_v29 = vadd.f32 %v2073_v19, %v1229_v59 }
 0x183   : > { %v967_v63 = vpop.f32.mrf.mxu2  ;;  %v1085_v25 = vpop.f32.mrf.mxu3 }
 0x184   : > { %v1265_v0 = vmax.f32 %v1249_v29, 0.0  ;;  %v994_v53 = vadd.f32 %v967_v63, %v873_v62  ;;  %v849_v1 = vpop.f32.mrf.mxu1 }
 0x185   : > { %v874_v45 = vadd.f32 %v849_v1, %v2029_v51 }
 0x186   : > { %1281 = vst.msk [vmem:[%s2080_s30 + $0x40] sm:$0xff] %vm251_vm1, %v1265_v0  ;;  %v1112_v26 = vadd.f32 %v1085_v25, %v994_v53  ;;  %v1206_v2 = vpop.f32.mrf.mxu0 }
 0x188   : > { %v1230_v3 = vadd.f32 %v1203_v55, %v1112_v26 }
 0x18a   : > { %v1250_v5 = vadd.f32 %v2073_v19, %v1230_v3 }
 0x18b   : > { %v970_v21 = vpop.f32.mrf.mxu2  ;;  %v1088_v42 = vpop.f32.mrf.mxu3 }
 0x18c   : > { %v1266_v7 = vmax.f32 %v1250_v5, 0.0  ;;  %v995_v49 = vadd.f32 %v970_v21, %v874_v45  ;;  %v851_v11 = vpop.f32.mrf.mxu1 }
 0x18d   : > { %v875_v14 = vadd.f32 %v851_v11, %v2041_v60 }
 0x18e   : > { %1282 = vst.msk [vmem:[%s2080_s30 + $0x48] sm:$0xff] %vm251_vm1, %v1266_v7  ;;  %v1113_v9 = vadd.f32 %v1088_v42, %v995_v49  ;;  %v1208_v12 = vpop.f32.mrf.mxu0 }
 0x190   : > { %v1231_v13 = vadd.f32 %v1206_v2, %v1113_v9 }
 0x192   : > { %v1251_v10 = vadd.f32 %v2073_v19, %v1231_v13 }
 0x193   : > { %v972_v24 = vpop.f32.mrf.mxu2  ;;  %v1090_v35 = vpop.f32.mrf.mxu3 }
 0x194   : > { %v1267_v18 = vmax.f32 %v1251_v10, 0.0  ;;  %v996_v51 = vadd.f32 %v972_v24, %v875_v14  ;;  %v854_v56 = vpop.f32.mrf.mxu1 }
 0x195   : > { %v876_v8 = vadd.f32 %v854_v56, %v2046_v32 }
 0x196   : > { %1283 = vst.msk [vmem:[%s2080_s30 + $0x50] sm:$0xff] %vm251_vm1, %v1267_v18  ;;  %v1114_v61 = vadd.f32 %v1090_v35, %v996_v51  ;;  %v1211_v20 = vpop.f32.mrf.mxu0 }
 0x198   : > { %v1232_v36 = vadd.f32 %v1208_v12, %v1114_v61 }
 0x19a   : > { %v1252_v22 = vadd.f32 %v2073_v19, %v1232_v36 }
 0x19b   : > { %v975_v23 = vpop.f32.mrf.mxu2  ;;  %v1093_v41 = vpop.f32.mrf.mxu3 }
 0x19c   : > { %v1268_v27 = vmax.f32 %v1252_v22, 0.0  ;;  %v997_v60 = vadd.f32 %v975_v23, %v876_v8  ;;  %v856_v28 = vpop.f32.mrf.mxu1 }
 0x19d   : > { %v877_v16 = vadd.f32 %v856_v28, %v2058_v50 }
 0x19e   : > { %1284 = vst.msk [vmem:[%s2080_s30 + $0x58] sm:$0xff] %vm251_vm1, %v1268_v27  ;;  %v1115_v15 = vadd.f32 %v1093_v41, %v997_v60  ;;  %v1213_v31 = vpop.f32.mrf.mxu0 }
 0x1a0   : > { %v1233_v30 = vadd.f32 %v1211_v20, %v1115_v15 }
 0x1a2   : > { %v1253_v52 = vadd.f32 %v2073_v19, %v1233_v30 }
 0x1a3   : > { %v977_v4 = vpop.f32.mrf.mxu2  ;;  %v1095_v17 = vpop.f32.mrf.mxu3 }
 0x1a4   : > { %v1269_v34 = vmax.f32 %v1253_v52, 0.0  ;;  %v998_v32 = vadd.f32 %v977_v4, %v877_v16  ;;  %v859_v40 = vpop.f32.mrf.mxu1 }
 0x1a5   : > { %v878_v44 = vadd.f32 %v859_v40, %v2063_v6 }
 0x1a6   : > { %1285 = vst.msk [vmem:[%s2080_s30 + $0x60] sm:$0xff] %vm251_vm1, %v1269_v34  ;;  %v1116_v54 = vadd.f32 %v1095_v17, %v998_v32  ;;  %v1216_v48 = vpop.f32.mrf.mxu0 }
 0x1a8   : > { %v1234_v37 = vadd.f32 %v1213_v31, %v1116_v54 }
 0x1aa   : > { %v1254_v43 = vadd.f32 %v2073_v19, %v1234_v37 }
 0x1ab   : > { %v980_v33 = vpop.f32.mrf.mxu2  ;;  %v1098_v46 = vpop.f32.mrf.mxu3 }
 0x1ac   : > { %v1270_v47 = vmax.f32 %v1254_v43, 0.0  ;;  %v999_v50 = vadd.f32 %v980_v33, %v878_v44  ;;  %v861_v39 = vpop.f32.mrf.mxu1 }
 0x1ad   : > { %v879_v59 = vadd.f32 %v861_v39, %v2066_v57 }
 0x1ae   : > { %1286 = vst.msk [vmem:[%s2080_s30 + $0x68] sm:$0xff] %vm251_vm1, %v1270_v47  ;;  %v1117_v58 = vadd.f32 %v1098_v46, %v999_v50  ;;  %v1218_v0 = vpop.f32.mrf.mxu0 }
 0x1b0   : > { %v1235_v38 = vadd.f32 %v1216_v48, %v1117_v58 }
 0x1b2   : > { %v1255_v55 = vadd.f32 %v2073_v19, %v1235_v38 }
 0x1b3   : > { %v982_v29 = vpop.f32.mrf.mxu2  ;;  %v1100_v6 = vpop.f32.mrf.mxu3 }
 0x1b4   : > { %v1271_v62 = vmax.f32 %v1255_v55, 0.0  ;;  %v1000_v63 = vadd.f32 %v982_v29, %v879_v59 }
 0x1b6   : > { %1287 = vst.msk [vmem:[%s2080_s30 + $0x70] sm:$0xff] %vm251_vm1, %v1271_v62  ;;  %v1118_v25 = vadd.f32 %v1100_v6, %v1000_v63 }
 0x1b8   : > { %v1236_v53 = vadd.f32 %v1218_v0, %v1118_v25 }
 0x1ba   : > { %v1256_v1 = vadd.f32 %v2073_v19, %v1236_v53 }
 0x1bc   : > { %v1272_v26 = vmax.f32 %v1256_v1, 0.0 }
 0x1be   : > { %1288 = vst.msk [vmem:[%s2080_s30 + $0x78] sm:$0xff] %vm251_vm1, %v1272_v26 }
 0x1bf PF: > { %s13_s16 = sadd.s32 1, %s1666_s16   ;;  %s2162_s12 = smov %s1658_s14 }
 0x1c0   : > { %p10_p7 = scmp.ge.s32.totalorder %s13_s16, 6   ;;  %s2163_s13 = smov %s1662_s15 }
 0x1c1   : > { %s2164_s14 = smov %s2167_s17  ;;  %s2165_s15 = smov %s2171_s18 }
 0x1c2   :  { %12 = sbr.rel (!%p10_p7) target bundleno = 3 (0x3), region = 73 }

// kernel: tile.33
= control target key start
LH: loop header
LB: loop body
LE: loop exit
PB: predicated region body
PF: predicated region fallthrough
CT: control target
= control target key end

     0   :  { %s28_s0 = inlined_call_operand.vmem [shape: f32[8], index: 0, kind: input, shape index: {}]   ;;  %s29_s1 = inlined_call_operand.vmem [shape: f32[16,8], index: 1, kind: output, shape index: {}]  }
   0x1   :  { %v4_v0 = vld [vmem:[%s28_s0] ss:$0 sm:$0xff] }
   0x2   :  { %5 = vst [vmem:[%s29_s1] sm:$0xff] %v4_v0 }
   0x3   :  { %8 = vst [vmem:[%s29_s1 + $0x8] sm:$0xff] %v4_v0 }

// kernel: tile.34
= control target key start
LH: loop header
LB: loop body
LE: loop exit
PB: predicated region body
PF: predicated region fallthrough
CT: control target
= control target key end

     0   :  { %s131_s10 = smov 120   ;;  %s132_s11 = smov 104   ;;  %vm3_vm0 = vcmask 64512   ;;  %vm9_vm1 = vcmask 1048512   ;;  %vm15_vm2 = vcmask 982912   ;;  %vm21_vm3 = vcmask 917312   ;;  %s207_s0 = inlined_call_operand.vmem [shape: f32[16,8], index: 0, kind: input, shape index: {}]   ;;  %s208_s1 = inlined_call_operand.vmem [shape: f32[1,1,128], index: 1, kind: output, shape index: {}]  }
   0x1   :  { %v101_v0 = vld [vmem:[%s207_s0 + $0xf] sm:$0x1]   ;;  %v103_v1 = vld [vmem:[%s207_s0 + $0xd] sm:$0x1]   ;;  %v105_v2 = vld [vmem:[%s207_s0 + $0xb] sm:$0x1]  }
   0x2   :  { %7 = vrot.lane.b32.xlu0 %v101_v0, %s131_s10  ;;  %19 = vrot.lane.b32.xlu1 %v103_v1, %s132_s11  ;;  %s133_s14 = smov 88   ;;  %v102_v3 = vld [vmem:[%s207_s0 + $0xe] sm:$0x1]   ;;  %v104_v4 = vld [vmem:[%s207_s0 + $0xc] sm:$0x1]   ;;  %s134_s19 = smov 112  }
   0x3   :  { %31 = vrot.lane.b32.xlu2 %v105_v2, %s133_s14  ;;  %s135_s20 = smov 96   ;;  %v106_v5 = vld [vmem:[%s207_s0 + $0xa] sm:$0x1]   ;;  %s136_s23 = smov 80   ;;  %v107_v6 = vld [vmem:[%s207_s0 + $0x9] sm:$0x1]  }
   0x4   :  { %v108_v7 = vld [vmem:[%s207_s0 + $0x8] sm:$0x1]   ;;  %s137_s28 = smov 72   ;;  %s138_s29 = smov 64   ;;  %v109_v8 = vld [vmem:[%s207_s0 + $0x7] sm:$0x1]  }
   0x5   :  { %s139_s3 = smov 56   ;;  %v110_v9 = vld [vmem:[%s207_s0 + $0x6] sm:$0x1]   ;;  %v111_v10 = vld [vmem:[%s207_s0 + $0x5] sm:$0x1]   ;;  %s140_s8 = smov 48  }
   0x6   :  { %s141_s9 = smov 40   ;;  %v112_v11 = vld [vmem:[%s207_s0 + $0x4] sm:$0x1]   ;;  %s142_s12 = smov 32   ;;  %v113_v12 = vld [vmem:[%s207_s0 + $0x3] sm:$0x1]  }
   0x7   :  { %v114_v13 = vld [vmem:[%s207_s0 + $0x2] sm:$0x1]   ;;  %s143_s17 = smov 24   ;;  %s144_s18 = smov 16   ;;  %v115_v14 = vld [vmem:[%s207_s0 + $0x1] sm:$0x1]  }
   0x8   :  { %s145_s21 = smov 8   ;;  %v2_v15 = vld [vmem:[%s207_s0] sm:$0x1]   ;;  %vm27_vm4 = vcmask 851712   ;;  %vm33_vm5 = vcmask 786112   ;;  %vm39_vm6 = vcmask 720512  }
   0x9   :  { %4 = vst.msk [vmem:[#allocation0] sm:$0x1] %vm3_vm0, %v2_v15   ;;  %vm45_vm7 = vcmask 654912   ;;  %vm51_vm8 = vcmask 589312   ;;  %vm57_vm9 = vcmask 523712   ;;  %vm63_vm10 = vcmask 458112  }
   0xa   :  { %13 = vrot.lane.b32.xlu0 %v102_v3, %s134_s19  ;;  %25 = vrot.lane.b32.xlu1 %v104_v4, %s135_s20  ;;  %vm69_vm11 = vcmask 392512   ;;  %vm75_vm12 = vcmask 326912   ;;  %vm81_vm13 = vcmask 261312   ;;  %vm87_vm14 = vcmask 195712  }
   0xb   :  { %37 = vrot.lane.b32.xlu2 %v106_v5, %s136_s23  ;;  %vm93_vm15 = vcmask 130112  }
  0x12   :  { %43 = vrot.lane.b32.xlu0 %v107_v6, %s137_s28  ;;  %49 = vrot.lane.b32.xlu1 %v108_v7, %s138_s29 }
  0x13   :  { %55 = vrot.lane.b32.xlu2 %v109_v8, %s139_s3 }
  0x1a   :  { %61 = vrot.lane.b32.xlu0 %v110_v9, %s140_s8  ;;  %67 = vrot.lane.b32.xlu1 %v111_v10, %s141_s9 }
  0x1b   :  { %73 = vrot.lane.b32.xlu2 %v112_v11, %s142_s12 }
  0x22   :  { %79 = vrot.lane.b32.xlu0 %v113_v12, %s143_s17  ;;  %85 = vrot.lane.b32.xlu1 %v114_v13, %s144_s18 }
  0x23   :  { %91 = vrot.lane.b32.xlu2 %v115_v14, %s145_s21 }
  0x5d   :  { %v32_v16 = vpop.permute.xlu2 %31  }
  0x65   :  { %v38_v17 = vpop.permute.xlu2 %37  }
  0x6d   :  { %v56_v18 = vpop.permute.xlu2 %55  }
  0x74   :  { %v8_v19 = vpop.permute.xlu0 %7   ;;  %v20_v20 = vpop.permute.xlu1 %19  }
  0x75   :  { %10 = vst.msk [vmem:[#allocation0] sm:$0x1] %vm9_vm1, %v8_v19   ;;  %v74_v21 = vpop.permute.xlu2 %73  }
  0x7c   :  { %v14_v22 = vpop.permute.xlu0 %13   ;;  %v26_v23 = vpop.permute.xlu1 %25  }
  0x7d   :  { %16 = vst.msk [vmem:[#allocation0] sm:$0x1] %vm15_vm2, %v14_v22   ;;  %v92_v24 = vpop.permute.xlu2 %91  }
  0x7e   :  { %22 = vst.msk [vmem:[#allocation0] sm:$0x1] %vm21_vm3, %v20_v20  }
  0x7f   :  { %28 = vst.msk [vmem:[#allocation0] sm:$0x1] %vm27_vm4, %v26_v23  }
  0x80   :  { %34 = vst.msk [vmem:[#allocation0] sm:$0x1] %vm33_vm5, %v32_v16  }
  0x81   :  { %40 = vst.msk [vmem:[#allocation0] sm:$0x1] %vm39_vm6, %v38_v17  }
  0x84   :  { %v44_v25 = vpop.permute.xlu0 %43   ;;  %v50_v26 = vpop.permute.xlu1 %49  }
  0x85   :  { %46 = vst.msk [vmem:[#allocation0] sm:$0x1] %vm45_vm7, %v44_v25  }
  0x86   :  { %52 = vst.msk [vmem:[#allocation0] sm:$0x1] %vm51_vm8, %v50_v26  }
  0x87   :  { %58 = vst.msk [vmem:[#allocation0] sm:$0x1] %vm57_vm9, %v56_v18  }
  0x8c   :  { %v62_v27 = vpop.permute.xlu0 %61   ;;  %v68_v28 = vpop.permute.xlu1 %67  }
  0x8d   :  { %64 = vst.msk [vmem:[#allocation0] sm:$0x1] %vm63_vm10, %v62_v27  }
  0x8e   :  { %70 = vst.msk [vmem:[#allocation0] sm:$0x1] %vm69_vm11, %v68_v28  }
  0x8f   :  { %76 = vst.msk [vmem:[#allocation0] sm:$0x1] %vm75_vm12, %v74_v21  }
  0x94   :  { %v80_v29 = vpop.permute.xlu0 %79   ;;  %v86_v30 = vpop.permute.xlu1 %85  }
  0x95   :  { %82 = vst.msk [vmem:[#allocation0] sm:$0x1] %vm81_vm13, %v80_v29  }
  0x96   :  { %88 = vst.msk [vmem:[#allocation0] sm:$0x1] %vm87_vm14, %v86_v30  }
  0x97   :  { %94 = vst.msk [vmem:[#allocation0] sm:$0x1] %vm93_vm15, %v92_v24  }
  0x9e   :  { %v97_v31 = vld [vmem:[#allocation0] sm:$0x1] }
  0x9f   :  { %100 = vst [vmem:[%s208_s1] sm:$0x1] %v97_v31 }

// kernel: _lambda_.39
= control target key start
LH: loop header
LB: loop body
LE: loop exit
PB: predicated region body
PF: predicated region fallthrough
CT: control target
= control target key end

     0   :  { %s1321_s12 = smov 0   ;;  %s1323_s13 = smov 0   ;;  %s1681_s0 = inlined_call_operand.vmem [shape: f32[2,16,22,4], index: 0, kind: input, shape index: {}]   ;;  %s1682_s1 = inlined_call_operand.vmem [shape: bf16[1,7,4,8], index: 1, kind: input, shape index: {}]   ;;  %s1683_s2 = inlined_call_operand.vmem [shape: f32[1,8], index: 2, kind: input, shape index: {}]   ;;  %s1684_s3 = inlined_call_operand.vmem [shape: f32[2,16,16,8], index: 3, kind: output, shape index: {}]  }
   0x1   :  { %s1325_s14 = smov 0   ;;  %s1327_s15 = smov 0  }
   0x2   :  { %s1329_s16 = smov 0  }
   0x3 LB: > { %s22_s17 = sadd.s32 1, %s1291_s14  ;;  %s25_s18 = sadd.s32 1, %s1295_s15  ;;  %s1299_s16 = sphi %s1329_s16, %s13_s16   ;;  %s1295_s15 = sphi %s1327_s15, %s1688_s15   ;;  %s1291_s14 = sphi %s1325_s14, %s1687_s14   ;;  %s1287_s13 = sphi %s1323_s13, %s1686_s13   ;;  %s1283_s12 = sphi %s1321_s12, %s1685_s12  }
   0x4   : > { %p23_p0 = scmp.ge.s32.totalorder %s22_s17, 2  ;;  %p1144_p1 = scmp.ge.s32.totalorder %s1299_s16, 1 }
   0x5   : > { %p151_p2 = scmp.lt.s32.totalorder %s1299_s16, 5 }
   0x6   : > { %s1690_s17 = smov (%p23_p0, %s22_s17), 0  ;;  %s1692_s18 = smov (!%p23_p0, %s25_s18), %s1295_s15 }
   0x7   : > { %p152_p3 = pnand %p1144_p1, %p151_p2  ;;  %p27_p4 = scmp.ge.s32.totalorder %s1692_s18, 2 }
   0x8   : > { %p180_p5 = scmp.lt.s32.totalorder (!%p152_p3), %s1287_s13, 1  ;;  %s1151_s25 = smul.u32 (!%p152_p3), 192, %s1283_s12 }
   0x9   : > { %s1694_s18 = smov (%p27_p4, %s1692_s18), 0  ;;  %155 = sbr.rel (%p152_p3) target bundleno = 386 (0x182), region = 32 }
   0xa   : > { %s1146_s19 = sshll.u32 (!%p152_p3), %s1283_s12, 3 }
   0xb   : > { %p188_p6 = scmp.lt.s32.totalorder (!%p152_p3), %s1146_s19, 15 }
   0xe   : > { %v1152_v0 = vld [vmem:[%s1682_s1 + $0x2] sm:$0x3]  ;;  %vm276_vm0 = vcmask 1041408   ;;  %v224_v1 = vld [vmem:[%s1682_s1] sm:$0x3]  ;;  %s1696_s13 = smov (!%p180_p5, %s1287_s13), 1 }
   0xf   : > { %v278_v2 = vsel %vm276_vm0, %v1152_v0, 0  ;;  %v354_v3 = vsel %vm276_vm0, %v224_v1, 0  ;;  %v1169_v4 = vld [vmem:[%s1682_s1 + $0x4] sm:$0x3]  ;;  %v1205_v6 = vld [vmem:[%s1682_s1 + $0xc] sm:$0x3] }
  0x10   : > { %287 = vmatpush.bf16.msra.mxu0 %v278_v2  ;;  %1216 = vmatpush.bf16.msra.mxu3 %v278_v2  ;;  %v456_v5 = vsel %vm276_vm0, %v1169_v4, 0  ;;  %v1187_v7 = vld [vmem:[%s1682_s1 + $0x8] sm:$0x3]  ;;  %v928_v8 = vsel %vm276_vm0, %v1205_v6, 0  ;;  %v1196_v10 = vld [vmem:[%s1682_s1 + $0xa] sm:$0x3] }
  0x11   : > { %363 = vmatpush.bf16.msra.mxu1 %v354_v3  ;;  %465 = vmatpush.bf16.msra.mxu2 %v456_v5  ;;  %v692_v9 = vsel %vm276_vm0, %v1187_v7, 0  ;;  %s1219_s5 = smul.u32 384, %s1696_s13  ;;  %v810_v11 = vsel %vm276_vm0, %v1196_v10, 0  ;;  %vm251_vm1 = vcmask 31744   ;;  %v1178_v48 = vld [vmem:[%s1682_s1 + $0x6] sm:$0x3] }
  0x12   : > { %v574_v49 = vsel %vm276_vm0, %v1178_v48, 0  ;;  %s1698_s19 = smov (!%p188_p6, %s1146_s19), 15  ;;  %s1148_s21 = sshll.u32 %s1696_s13, 5  ;;  %vm1031_vm2 = vcmask 64512  }
  0x13   : > { %s184_s8 = scalar_lea.vmem %s1681_s0, %s1219_s5  ;;  %s1147_s20 = sshll.u32 %s1698_s19, 1 }
  0x14   : > { %1217 = vmatpush.bf16.msrb.mxu3 %v354_v3  ;;  %701 = vmatpush.bf16.msrb.mxu0 %v692_v9  ;;  %s1384_s9 = scalar_lea.vmem %s184_s8, %s1151_s25  ;;  %s192_s12 = sadd.s32 %s1148_s21, %s1147_s20 }
  0x15   : > { %937 = vmatpush.bf16.msrb.mxu2 %v928_v8  ;;  %819 = vmatpush.bf16.msrb.mxu1 %v810_v11  ;;  %v225_v12 = vld [vmem:[%s1384_s9 + $0x1] sm:$0xff]  ;;  %v226_v13 = vld [vmem:[%s1384_s9 + $0x9] sm:$0xff]  ;;  %v237_v14 = vld [vmem:[%s1384_s9 + $0x91] sm:$0xff]  ;;  %s1149_s24 = sshll.u32 %s192_s12, 3 }
  0x16   : > { %v241_v15 = vpack.c.bf16 %v226_v13, %v225_v12  ;;  %v238_v16 = vld [vmem:[%s1384_s9 + $0x99] sm:$0xff]  ;;  %v201_v18 = vld [vmem:[%s1384_s9 + $0x8] sm:$0xff]  ;;  %v240_v27 = vld [vmem:[%s1384_s9 + $0xb1] sm:$0xff]  ;;  %s1603_s26 = scalar_lea.vmem %s1684_s3, %s1149_s24 }
  0x17   : > { %v200_v17 = vld [vmem:[%s1384_s9] sm:$0xff]  ;;  %v247_v19 = vpack.c.bf16 %v238_v16, %v237_v14  ;;  %v406_v22 = vld [vmem:[%s1384_s9 + $0xa] sm:$0xff]  ;;  %v202_v28 = vld [vmem:[%s1384_s9 + $0x18] sm:$0xff] }
  0x18   : > { %v216_v20 = vpack.c.bf16 %v201_v18, %v200_v17  ;;  %v405_v21 = vld [vmem:[%s1384_s9 + $0x2] sm:$0xff]  ;;  %1153 = vmatmul.msk.bf16.vlgmr.msra.gmra.mxu0 %vm251_vm1, %v241_v15  ;;  %v227_v24 = vld [vmem:[%s1384_s9 + $0x19] sm:$0xff]  ;;  %v229_v36 = vld [vmem:[%s1384_s9 + $0x31] sm:$0xff] }
  0x19   : > { %v421_v23 = vpack.c.bf16 %v406_v22, %v405_v21  ;;  %1159 = vmatmul.msk.bf16.vlgmr.msra.gmra.mxu3 %vm251_vm1, %v247_v19  ;;  %v228_v25 = vld [vmem:[%s1384_s9 + $0x21] sm:$0xff]  ;;  %v239_v26 = vld [vmem:[%s1384_s9 + $0xa9] sm:$0xff]  ;;  %v230_v37 = vld [vmem:[%s1384_s9 + $0x39] sm:$0xff] }
  0x1a   : > { %1161 = vmatmul.msk.bf16.vlgmr.msra.gmra.mxu1 %vm251_vm1, %v216_v20  ;;  %1218 = vmatpush.bf16.msra.mxu3 %v456_v5  ;;  %v203_v29 = vld [vmem:[%s1384_s9 + $0x20] sm:$0xff]  ;;  %v242_v32 = vpack.c.bf16 %v228_v25, %v227_v24  ;;  %v248_v33 = vpack.c.bf16 %v240_v27, %v239_v26  ;;  %v204_v38 = vld [vmem:[%s1384_s9 + $0x30] sm:$0xff]  ;;  %v205_v39 = vld [vmem:[%s1384_s9 + $0x38] sm:$0xff]  ;;  %v243_v44 = vpack.c.bf16 %v230_v37, %v229_v36 }
  0x1b   : > { %1170 = vmatmul.msk.bf16.vlgmr.msra.gmra.mxu2 %vm251_vm1, %v421_v23  ;;  %v407_v30 = vld [vmem:[%s1384_s9 + $0x1a] sm:$0xff]  ;;  %v408_v31 = vld [vmem:[%s1384_s9 + $0x22] sm:$0xff]  ;;  %v217_v34 = vpack.c.bf16 %v203_v29, %v202_v28  ;;  %v212_v40 = vld [vmem:[%s1384_s9 + $0x90] sm:$0xff]  ;;  %v218_v45 = vpack.c.bf16 %v205_v39, %v204_v38 }
  0x1c   : > { %v422_v35 = vpack.c.bf16 %v408_v31, %v407_v30  ;;  %v213_v41 = vld [vmem:[%s1384_s9 + $0x98] sm:$0xff]  ;;  %v231_v50 = vld [vmem:[%s1384_s9 + $0x49] sm:$0xff]  ;;  %v233_v62 = vld [vmem:[%s1384_s9 + $0x61] sm:$0xff] }
  0x1d   : > { %v409_v42 = vld [vmem:[%s1384_s9 + $0x32] sm:$0xff]  ;;  %v410_v43 = vld [vmem:[%s1384_s9 + $0x3a] sm:$0xff]  ;;  %v222_v46 = vpack.c.bf16 %v213_v41, %v212_v40  ;;  %v206_v52 = vld [vmem:[%s1384_s9 + $0x48] sm:$0xff] }
  0x1e   : > { %v423_v47 = vpack.c.bf16 %v410_v43, %v409_v42  ;;  %v232_v51 = vld [vmem:[%s1384_s9 + $0x51] sm:$0xff]  ;;  %v214_v54 = vld [vmem:[%s1384_s9 + $0xa8] sm:$0xff]  ;;  %v208_v0 = vld [vmem:[%s1384_s9 + $0x60] sm:$0xff] }
  0x1f   : > { %v207_v53 = vld [vmem:[%s1384_s9 + $0x50] sm:$0xff]  ;;  %v244_v58 = vpack.c.bf16 %v232_v51, %v231_v50  ;;  %v209_v1 = vld [vmem:[%s1384_s9 + $0x68] sm:$0xff]  ;;  %v418_v3 = vld [vmem:[%s1384_s9 + $0x9a] sm:$0xff] }
  0x20   : > { %v215_v55 = vld [vmem:[%s1384_s9 + $0xb0] sm:$0xff]  ;;  %v219_v59 = vpack.c.bf16 %v207_v53, %v206_v52  ;;  %v413_v4 = vld [vmem:[%s1384_s9 + $0x62] sm:$0xff]  ;;  %v220_v7 = vpack.c.bf16 %v209_v1, %v208_v0  ;;  %v235_v10 = vld [vmem:[%s1384_s9 + $0x79] sm:$0xff] }
  0x21   : > { %v411_v56 = vld [vmem:[%s1384_s9 + $0x4a] sm:$0xff]  ;;  %v412_v57 = vld [vmem:[%s1384_s9 + $0x52] sm:$0xff]  ;;  %v223_v60 = vpack.c.bf16 %v215_v55, %v214_v54  ;;  %v236_v11 = vld [vmem:[%s1384_s9 + $0x81] sm:$0xff] }
  0x22   : > { %v424_v61 = vpack.c.bf16 %v412_v57, %v411_v56  ;;  %v234_v63 = vld [vmem:[%s1384_s9 + $0x69] sm:$0xff]  ;;  %v417_v2 = vld [vmem:[%s1384_s9 + $0x92] sm:$0xff]  ;;  %v211_v13 = vld [vmem:[%s1384_s9 + $0x80] sm:$0xff]  ;;  %v246_v18 = vpack.c.bf16 %v236_v11, %v235_v10 }
  0x23   : > { %v414_v5 = vld [vmem:[%s1384_s9 + $0x6a] sm:$0xff]  ;;  %v245_v6 = vpack.c.bf16 %v234_v63, %v233_v62  ;;  %v427_v8 = vpack.c.bf16 %v418_v3, %v417_v2  ;;  %v210_v12 = vld [vmem:[%s1384_s9 + $0x78] sm:$0xff]  ;;  %v416_v17 = vld [vmem:[%s1384_s9 + $0x82] sm:$0xff] }
  0x24   : > { %v425_v9 = vpack.c.bf16 %v414_v5, %v413_v4  ;;  %v419_v14 = vld [vmem:[%s1384_s9 + $0xaa] sm:$0xff]  ;;  %v420_v15 = vld [vmem:[%s1384_s9 + $0xb2] sm:$0xff]  ;;  %v415_v16 = vld [vmem:[%s1384_s9 + $0x7a] sm:$0xff]  ;;  %v221_v19 = vpack.c.bf16 %v211_v13, %v210_v12 }
  0x25   : > { %v428_v20 = vpack.c.bf16 %v420_v15, %v419_v14  ;;  %v426_v21 = vpack.c.bf16 %v416_v17, %v415_v16  ;;  %v523_v22 = vld [vmem:[%s1384_s9 + $0x3] sm:$0xff]  ;;  %v642_v24 = vld [vmem:[%s1384_s9 + $0xc] sm:$0xff]  ;;  %v763_v50 = vld [vmem:[%s1384_s9 + $0x35] sm:$0xff] }
  0x26   : > { %v641_v23 = vld [vmem:[%s1384_s9 + $0x4] sm:$0xff]  ;;  %v760_v27 = vld [vmem:[%s1384_s9 + $0xd] sm:$0xff]  ;;  %v646_v48 = vld [vmem:[%s1384_s9 + $0x3c] sm:$0xff] }
  0x27   : > { %v524_v25 = vld [vmem:[%s1384_s9 + $0xb] sm:$0xff]  ;;  %v657_v30 = vpack.c.bf16 %v642_v24, %v641_v23  ;;  %v526_v37 = vld [vmem:[%s1384_s9 + $0x23] sm:$0xff]  ;;  %v881_v52 = vld [vmem:[%s1384_s9 + $0x36] sm:$0xff] }
  0x28   : > { %1154 = vmatmul.msk.bf16.gmra.mxu0 %vm251_vm1, %v242_v32  ;;  %v759_v26 = vld [vmem:[%s1384_s9 + $0x5] sm:$0xff]  ;;  %v878_v29 = vld [vmem:[%s1384_s9 + $0xe] sm:$0xff]  ;;  %v539_v31 = vpack.c.bf16 %v524_v25, %v523_v22  ;;  %v761_v38 = vld [vmem:[%s1384_s9 + $0x1d] sm:$0xff] }
  0x29   : > { %1160 = vmatmul.msk.bf16.gmra.mxu3 %vm251_vm1, %v248_v33  ;;  %v877_v28 = vld [vmem:[%s1384_s9 + $0x6] sm:$0xff]  ;;  %v775_v32 = vpack.c.bf16 %v760_v27, %v759_v26  ;;  %v879_v40 = vld [vmem:[%s1384_s9 + $0x1e] sm:$0xff]  ;;  %v648_v5 = vld [vmem:[%s1384_s9 + $0x54] sm:$0xff] }
  0x2a   : > { %1162 = vmatmul.msk.bf16.gmra.mxu1 %vm251_vm1, %v217_v34  ;;  %v893_v33 = vpack.c.bf16 %v878_v29, %v877_v28  ;;  %v525_v34 = vld [vmem:[%s1384_s9 + $0x1b] sm:$0xff]  ;;  %v644_v36 = vld [vmem:[%s1384_s9 + $0x24] sm:$0xff]  ;;  %v647_v4 = vld [vmem:[%s1384_s9 + $0x4c] sm:$0xff] }
  0x2b   : > { %1171 = vmatmul.msk.bf16.gmra.mxu2 %vm251_vm1, %v422_v35  ;;  %v643_v35 = vld [vmem:[%s1384_s9 + $0x1c] sm:$0xff]  ;;  %v762_v39 = vld [vmem:[%s1384_s9 + $0x25] sm:$0xff]  ;;  %v540_v43 = vpack.c.bf16 %v526_v37, %v525_v34  ;;  %v660_v12 = vpack.c.bf16 %v648_v5, %v647_v4  ;;  %v886_v34 = vld [vmem:[%s1384_s9 + $0x6e] sm:$0xff] }
  0x2c   : > { %v880_v41 = vld [vmem:[%s1384_s9 + $0x26] sm:$0xff]  ;;  %v658_v42 = vpack.c.bf16 %v644_v36, %v643_v35  ;;  %v764_v51 = vld [vmem:[%s1384_s9 + $0x3d] sm:$0xff] }
  0x2d   : > { %v882_v53 = vld [vmem:[%s1384_s9 + $0x3e] sm:$0xff]  ;;  %v777_v57 = vpack.c.bf16 %v764_v51, %v763_v50  ;;  %v529_v3 = vld [vmem:[%s1384_s9 + $0x4b] sm:$0xff]  ;;  %v884_v10 = vld [vmem:[%s1384_s9 + $0x56] sm:$0xff] }
  0x2e   : > { %v531_v27 = vld [vmem:[%s1384_s9 + $0x63] sm:$0xff]  ;;  %v650_v29 = vld [vmem:[%s1384_s9 + $0x6c] sm:$0xff] }
  0x2f   : > { %v649_v28 = vld [vmem:[%s1384_s9 + $0x64] sm:$0xff] }
  0x30   : > { %v661_v36 = vpack.c.bf16 %v650_v29, %v649_v28 }
  0x38   : > { %1155 = vmatmul.msk.bf16.gmra.mxu0 %vm251_vm1, %v243_v44  ;;  %v776_v44 = vpack.c.bf16 %v762_v39, %v761_v38 }
  0x39   : > { %1167 = vmatmul.msk.bf16.vlgmr.msrb.gmra.mxu3 %vm251_vm1, %v222_v46  ;;  %v527_v46 = vld [vmem:[%s1384_s9 + $0x33] sm:$0xff] }
  0x3a   : > { %1163 = vmatmul.msk.bf16.gmra.mxu1 %vm251_vm1, %v218_v45  ;;  %583 = vmatpush.bf16.msrb.mxu3 %v574_v49  ;;  %v894_v45 = vpack.c.bf16 %v880_v41, %v879_v40  ;;  %v528_v49 = vld [vmem:[%s1384_s9 + $0x3b] sm:$0xff] }
  0x3b   : > { %1172 = vmatmul.msk.bf16.gmra.mxu2 %vm251_vm1, %v423_v47  ;;  %v645_v47 = vld [vmem:[%s1384_s9 + $0x34] sm:$0xff]  ;;  %v541_v56 = vpack.c.bf16 %v528_v49, %v527_v46 }
  0x3c   : > { %v659_v54 = vpack.c.bf16 %v646_v48, %v645_v47 }
  0x48   : > { %1156 = vmatmul.msk.bf16.gmra.mxu0 %vm251_vm1, %v244_v58 }
  0x49   : > { %1168 = vmatmul.msk.bf16.gmra.mxu3 %vm251_vm1, %v223_v60 }
  0x4a   : > { %1164 = vmatmul.msk.bf16.gmra.mxu1 %vm251_vm1, %v219_v59  ;;  %v895_v59 = vpack.c.bf16 %v882_v53, %v881_v52  ;;  %v533_v52 = vld [vmem:[%s1384_s9 + $0x7b] sm:$0xff] }
  0x4b   : > { %1173 = vmatmul.msk.bf16.gmra.mxu2 %vm251_vm1, %v424_v61  ;;  %v651_v53 = vld [vmem:[%s1384_s9 + $0x7c] sm:$0xff] }
  0x58   : > { %1157 = vmatmul.msk.bf16.gmra.mxu0 %vm251_vm1, %v245_v6  ;;  %v530_v6 = vld [vmem:[%s1384_s9 + $0x53] sm:$0xff] }
  0x59   : > { %1176 = vmatmul.msk.bf16.vlgmr.msra.gmra.mxu3 %vm251_vm1, %v427_v8  ;;  %v766_v8 = vld [vmem:[%s1384_s9 + $0x55] sm:$0xff]  ;;  %v542_v15 = vpack.c.bf16 %v530_v6, %v529_v3 }
  0x5a   : > { %1165 = vmatmul.msk.bf16.gmra.mxu1 %vm251_vm1, %v220_v7  ;;  %v765_v7 = vld [vmem:[%s1384_s9 + $0x4d] sm:$0xff] }
  0x5b   : > { %1174 = vmatmul.msk.bf16.gmra.mxu2 %vm251_vm1, %v425_v9  ;;  %v883_v9 = vld [vmem:[%s1384_s9 + $0x4e] sm:$0xff]  ;;  %v778_v16 = vpack.c.bf16 %v766_v8, %v765_v7 }
  0x68   : > { %1158 = vmatmul.msk.bf16.gmra.mxu0 %vm251_vm1, %v246_v18 }
  0x69   : > { %1177 = vmatmul.msk.bf16.gmra.mxu3 %vm251_vm1, %v428_v20 }
  0x6a   : > { %1166 = vmatmul.msk.bf16.gmra.mxu1 %vm251_vm1, %v221_v19  ;;  %v896_v19 = vpack.c.bf16 %v884_v10, %v883_v9 }
  0x6b   : > { %1175 = vmatmul.msk.bf16.gmra.mxu2 %vm251_vm1, %v426_v21 }
  0x78   : > { %1188 = vmatmul.msk.bf16.vlgmr.msrb.gmra.mxu0 %vm251_vm1, %v657_v30  ;;  %v532_v30 = vld [vmem:[%s1384_s9 + $0x6b] sm:$0xff] }
  0x79   : > { %1179 = vmatmul.msk.bf16.vlgmr.msrb.gmra.mxu3 %vm251_vm1, %v539_v31  ;;  %v767_v31 = vld [vmem:[%s1384_s9 + $0x65] sm:$0xff]  ;;  %v543_v39 = vpack.c.bf16 %v532_v30, %v531_v27 }
  0x7a   : > { %1197 = vmatmul.msk.bf16.vlgmr.msrb.gmra.mxu1 %vm251_vm1, %v775_v32  ;;  %v768_v32 = vld [vmem:[%s1384_s9 + $0x6d] sm:$0xff] }
  0x7b   : > { %1206 = vmatmul.msk.bf16.vlgmr.msrb.gmra.mxu2 %vm251_vm1, %v893_v33  ;;  %v885_v33 = vld [vmem:[%s1384_s9 + $0x66] sm:$0xff]  ;;  %v779_v40 = vpack.c.bf16 %v768_v32, %v767_v31 }
  0x88   : > { %1189 = vmatmul.msk.bf16.gmra.mxu0 %vm251_vm1, %v658_v42 }
  0x89   : > { %1180 = vmatmul.msk.bf16.gmra.mxu3 %vm251_vm1, %v540_v43  ;;  %v897_v43 = vpack.c.bf16 %v886_v34, %v885_v33 }
  0x8a   : > { %1198 = vmatmul.msk.bf16.gmra.mxu1 %vm251_vm1, %v776_v44 }
  0x8b   : > { %1207 = vmatmul.msk.bf16.gmra.mxu2 %vm251_vm1, %v894_v45 }
  0x95   : > { %v289_v55 = vpop.f32.mrf.mxu0 }
  0x97   : > { %v365_v58 = vpop.f32.mrf.mxu1 }
  0x98   : > { %v366_v60 = vadd.f32 %v365_v58, %v289_v55  ;;  %1190 = vmatmul.msk.bf16.gmra.mxu0 %vm251_vm1, %v659_v54  ;;  %v652_v54 = vld [vmem:[%s1384_s9 + $0x84] sm:$0xff] }
  0x99   : > { %1181 = vmatmul.msk.bf16.gmra.mxu3 %vm251_vm1, %v541_v56  ;;  %v534_v55 = vld [vmem:[%s1384_s9 + $0x83] sm:$0xff] }
  0x9a   : > { %1199 = vmatmul.msk.bf16.gmra.mxu1 %vm251_vm1, %v777_v57  ;;  %v769_v56 = vld [vmem:[%s1384_s9 + $0x7d] sm:$0xff]  ;;  %v770_v57 = vld [vmem:[%s1384_s9 + $0x85] sm:$0xff] }
  0x9b   : > { %1208 = vmatmul.msk.bf16.gmra.mxu2 %vm251_vm1, %v895_v59  ;;  %v887_v58 = vld [vmem:[%s1384_s9 + $0x7e] sm:$0xff]  ;;  %v888_v59 = vld [vmem:[%s1384_s9 + $0x86] sm:$0xff]  ;;  %v780_v3 = vpack.c.bf16 %v770_v57, %v769_v56 }
  0x9c   : > { %v319_v61 = vpop.f32.mrf.mxu3  ;;  %v898_v6 = vpack.c.bf16 %v888_v59, %v887_v58 }
  0x9d   : > { %v291_v63 = vpop.f32.mrf.mxu0 }
  0x9e   : > { %v467_v62 = vpop.f32.mrf.mxu2 }
  0x9f   : > { %v1498_v0 = vadd.f32 %v467_v62, %v366_v60  ;;  %v367_v1 = vpop.f32.mrf.mxu1  ;;  %v662_v62 = vpack.c.bf16 %v652_v54, %v651_v53  ;;  %v892_v53 = vld [vmem:[%s1384_s9 + $0xb6] sm:$0xff] }
  0xa0   : > { %v368_v2 = vadd.f32 %v367_v1, %v291_v63 }
  0xa4   : > { %v321_v11 = vpop.f32.mrf.mxu3 }
  0xa5   : > { %v294_v14 = vpop.f32.mrf.mxu0 }
  0xa6   : > { %v469_v13 = vpop.f32.mrf.mxu2 }
  0xa7   : > { %v1508_v17 = vadd.f32 %v469_v13, %v368_v2  ;;  %v370_v18 = vpop.f32.mrf.mxu1 }
  0xa8   : > { %v371_v20 = vadd.f32 %v370_v18, %v294_v14  ;;  %1191 = vmatmul.msk.bf16.gmra.mxu0 %vm251_vm1, %v660_v12  ;;  %v654_v18 = vld [vmem:[%s1384_s9 + $0x9c] sm:$0xff] }
  0xa9   : > { %1182 = vmatmul.msk.bf16.gmra.mxu3 %vm251_vm1, %v542_v15  ;;  %v535_v15 = vld [vmem:[%s1384_s9 + $0x93] sm:$0xff] }
  0xaa   : > { %1200 = vmatmul.msk.bf16.gmra.mxu1 %vm251_vm1, %v778_v16  ;;  %v653_v16 = vld [vmem:[%s1384_s9 + $0x94] sm:$0xff] }
  0xab   : > { %1209 = vmatmul.msk.bf16.gmra.mxu2 %vm251_vm1, %v896_v19  ;;  %v536_v19 = vld [vmem:[%s1384_s9 + $0x9b] sm:$0xff]  ;;  %v663_v27 = vpack.c.bf16 %v654_v18, %v653_v16 }
  0xac   : > { %v324_v21 = vpop.f32.mrf.mxu3 }
  0xad   : > { %v296_v23 = vpop.f32.mrf.mxu0 }
  0xae   : > { %v472_v22 = vpop.f32.mrf.mxu2 }
  0xaf   : > { %v1514_v24 = vadd.f32 %v472_v22, %v371_v20  ;;  %v372_v25 = vpop.f32.mrf.mxu1  ;;  %v771_v20 = vld [vmem:[%s1384_s9 + $0x95] sm:$0xff]  ;;  %v772_v22 = vld [vmem:[%s1384_s9 + $0x9d] sm:$0xff] }
  0xb0   : > { %v373_v26 = vadd.f32 %v372_v25, %v296_v23  ;;  %v889_v23 = vld [vmem:[%s1384_s9 + $0x96] sm:$0xff]  ;;  %v890_v25 = vld [vmem:[%s1384_s9 + $0x9e] sm:$0xff]  ;;  %v781_v31 = vpack.c.bf16 %v772_v22, %v771_v20 }
  0xb1   : > { %v899_v34 = vpack.c.bf16 %v890_v25, %v889_v23 }
  0xb4   : > { %v326_v35 = vpop.f32.mrf.mxu3 }
  0xb5   : > { %v299_v38 = vpop.f32.mrf.mxu0 }
  0xb6   : > { %v474_v37 = vpop.f32.mrf.mxu2 }
  0xb7   : > { %v1524_v41 = vadd.f32 %v474_v37, %v373_v26  ;;  %v375_v42 = vpop.f32.mrf.mxu1 }
  0xb8   : > { %v376_v44 = vadd.f32 %v375_v42, %v299_v38  ;;  %1192 = vmatmul.msk.bf16.gmra.mxu0 %vm251_vm1, %v661_v36 }
  0xb9   : > { %1183 = vmatmul.msk.bf16.gmra.mxu3 %vm251_vm1, %v543_v39 }
  0xba   : > { %1201 = vmatmul.msk.bf16.gmra.mxu1 %vm251_vm1, %v779_v40 }
  0xbb   : > { %1210 = vmatmul.msk.bf16.gmra.mxu2 %vm251_vm1, %v897_v43 }
  0xbc   : > { %v395_v45 = vpop.f32.mrf.mxu3 }
  0xbd   : > { %v396_v46 = vadd.f32 %v395_v45, %v319_v61  ;;  %v301_v48 = vpop.f32.mrf.mxu0  ;;  %v544_v61 = vpack.c.bf16 %v534_v55, %v533_v52  ;;  %v655_v45 = vld [vmem:[%s1384_s9 + $0xac] sm:$0xff] }
  0xbe   : > { %v477_v47 = vpop.f32.mrf.mxu2  ;;  %v891_v52 = vld [vmem:[%s1384_s9 + $0xae] sm:$0xff] }
  0xbf   : > { %v1530_v49 = vadd.f32 %v477_v47, %v376_v44  ;;  %v377_v50 = vpop.f32.mrf.mxu1  ;;  %v537_v44 = vld [vmem:[%s1384_s9 + $0xab] sm:$0xff]  ;;  %v656_v47 = vld [vmem:[%s1384_s9 + $0xb4] sm:$0xff] }
  0xc0   : > { %v378_v51 = vadd.f32 %v377_v50, %v301_v48  ;;  %v538_v48 = vld [vmem:[%s1384_s9 + $0xb3] sm:$0xff]  ;;  %v664_v55 = vpack.c.bf16 %v656_v47, %v655_v45 }
  0xc1   : > { %v773_v50 = vld [vmem:[%s1384_s9 + $0xad] sm:$0xff]  ;;  %v546_v58 = vpack.c.bf16 %v538_v48, %v537_v44 }
  0xc4   : > { %v397_v60 = vpop.f32.mrf.mxu3 }
  0xc5   : > { %v398_v63 = vadd.f32 %v397_v60, %v321_v11  ;;  %v304_v2 = vpop.f32.mrf.mxu0 }
  0xc6   : > { %v479_v1 = vpop.f32.mrf.mxu2 }
  0xc7   : > { %v1540_v4 = vadd.f32 %v479_v1, %v378_v51  ;;  %v380_v5 = vpop.f32.mrf.mxu1  ;;  %v774_v51 = vld [vmem:[%s1384_s9 + $0xb5] sm:$0xff]  ;;  %v900_v1 = vpack.c.bf16 %v892_v53, %v891_v52 }
  0xc8   : > { %v381_v7 = vadd.f32 %v380_v5, %v304_v2  ;;  %1193 = vmatmul.msk.bf16.gmra.mxu0 %vm251_vm1, %v662_v62  ;;  %v782_v59 = vpack.c.bf16 %v774_v51, %v773_v50 }
  0xc9   : > { %1184 = vmatmul.msk.bf16.gmra.mxu3 %vm251_vm1, %v544_v61 }
  0xca   : > { %1202 = vmatmul.msk.bf16.gmra.mxu1 %vm251_vm1, %v780_v3 }
  0xcb   : > { %1211 = vmatmul.msk.bf16.gmra.mxu2 %vm251_vm1, %v898_v6 }
  0xcc   : > { %v400_v8 = vpop.f32.mrf.mxu3 }
  0xcd   : > { %v401_v9 = vadd.f32 %v400_v8, %v324_v21  ;;  %v306_v11 = vpop.f32.mrf.mxu0  ;;  %v545_v21 = vpack.c.bf16 %v536_v19, %v535_v15 }
  0xce   : > { %v482_v10 = vpop.f32.mrf.mxu2 }
  0xcf   : > { %v1546_v12 = vadd.f32 %v482_v10, %v381_v7  ;;  %v382_v13 = vpop.f32.mrf.mxu1 }
  0xd0   : > { %v383_v14 = vadd.f32 %v382_v13, %v306_v11 }
  0xd4   : > { %v402_v26 = vpop.f32.mrf.mxu3 }
  0xd5   : > { %v403_v28 = vadd.f32 %v402_v26, %v326_v35  ;;  %v309_v30 = vpop.f32.mrf.mxu0  ;;  %v1596_v26 = vld [vmem:[%s1683_s2] ss:$0 sm:$0xff] }
  0xd6   : > { %v484_v29 = vpop.f32.mrf.mxu2 }
  0xd7   : > { %v1556_v32 = vadd.f32 %v484_v29, %v383_v14  ;;  %v385_v33 = vpop.f32.mrf.mxu1 }
  0xd8   : > { %v386_v36 = vadd.f32 %v385_v33, %v309_v30  ;;  %1194 = vmatmul.msk.bf16.gmra.mxu0 %vm251_vm1, %v663_v27 }
  0xd9   : > { %1185 = vmatmul.msk.bf16.gmra.mxu3 %vm251_vm1, %v545_v21 }
  0xda   : > { %1203 = vmatmul.msk.bf16.gmra.mxu1 %vm251_vm1, %v781_v31 }
  0xdb   : > { %1212 = vmatmul.msk.bf16.gmra.mxu2 %vm251_vm1, %v899_v34 }
  0xdc   : > { %v497_v35 = vpop.f32.mrf.mxu3 }
  0xdd   : > { %v1562_v38 = vadd.f32 %v497_v35, %v396_v46  ;;  %v311_v39 = vpop.f32.mrf.mxu0 }
  0xde   : > { %v487_v37 = vpop.f32.mrf.mxu2 }
  0xdf   : > { %v1564_v40 = vadd.f32 %v487_v37, %v386_v36  ;;  %v387_v42 = vpop.f32.mrf.mxu1 }
  0xe0   : > { %v388_v43 = vadd.f32 %v387_v42, %v311_v39 }
  0xe4   : > { %v499_v54 = vpop.f32.mrf.mxu3 }
  0xe5   : > { %v1574_v57 = vadd.f32 %v499_v54, %v398_v63  ;;  %v314_v46 = vpop.f32.mrf.mxu0 }
  0xe6   : > { %v489_v56 = vpop.f32.mrf.mxu2 }
  0xe7   : > { %v1576_v60 = vadd.f32 %v489_v56, %v388_v43  ;;  %v390_v62 = vpop.f32.mrf.mxu1 }
  0xe8   : > { %v391_v2 = vadd.f32 %v390_v62, %v314_v46  ;;  %1195 = vmatmul.msk.bf16.gmra.mxu0 %vm251_vm1, %v664_v55 }
  0xe9   : > { %1186 = vmatmul.msk.bf16.gmra.mxu3 %vm251_vm1, %v546_v58 }
  0xea   : > { %1204 = vmatmul.msk.bf16.gmra.mxu1 %vm251_vm1, %v782_v59 }
  0xeb   : > { %1213 = vmatmul.msk.bf16.gmra.mxu2 %vm251_vm1, %v900_v1 }
  0xec   : > { %v502_v61 = vpop.f32.mrf.mxu3 }
  0xed   : > { %v1582_v3 = vadd.f32 %v502_v61, %v401_v9  ;;  %v316_v5 = vpop.f32.mrf.mxu0 }
  0xee   : > { %v492_v63 = vpop.f32.mrf.mxu2 }
  0xef   : > { %v1584_v6 = vadd.f32 %v492_v63, %v391_v2  ;;  %v392_v7 = vpop.f32.mrf.mxu1 }
  0xf0   : > { %v393_v8 = vadd.f32 %v392_v7, %v316_v5 }
  0xf4   : > { %v504_v10 = vpop.f32.mrf.mxu3 }
  0xf5   : > { %v1587_v13 = vadd.f32 %v504_v10, %v403_v28  ;;  %v703_v14 = vpop.f32.mrf.mxu0 }
  0xf6   : > { %v494_v11 = vpop.f32.mrf.mxu2 }
  0xf7   : > { %v1589_v15 = vadd.f32 %v494_v11, %v393_v8  ;;  %v821_v16 = vpop.f32.mrf.mxu1 }
  0xfc   : > { %v585_v18 = vpop.f32.mrf.mxu3 }
  0xfd   : > { %v625_v9 = vadd.f32 %v585_v18, %v1498_v0  ;;  %v705_v20 = vpop.f32.mrf.mxu0 }
  0xfe   : > { %v939_v19 = vpop.f32.mrf.mxu2 }
  0xff   : > { %v823_v22 = vpop.f32.mrf.mxu1  ;;  %v743_v23 = vadd.f32 %v703_v14, %v625_v9 }
 0x101   : > { %v861_v25 = vadd.f32 %v821_v16, %v743_v23 }
 0x103   : > { %v979_v27 = vadd.f32 %v939_v19, %v861_v25 }
 0x104   : > { %v587_v28 = vpop.f32.mrf.mxu3 }
 0x105   : > { %v999_v29 = vadd.f32 %v1596_v26, %v979_v27  ;;  %v626_v0 = vadd.f32 %v587_v28, %v1508_v17  ;;  %v708_v21 = vpop.f32.mrf.mxu0 }
 0x106   : > { %v941_v30 = vpop.f32.mrf.mxu2 }
 0x107   : > { %v826_v31 = vpop.f32.mrf.mxu1  ;;  %v1015_v33 = vmax.f32 %v999_v29, 0.0  ;;  %v744_v34 = vadd.f32 %v705_v20, %v626_v0 }
 0x109   : > { %1032 = vst.msk [vmem:[%s1603_s26] sm:$0xff] %vm1031_vm2, %v1015_v33  ;;  %v862_v36 = vadd.f32 %v823_v22, %v744_v34 }
 0x10b   : > { %v980_v35 = vadd.f32 %v941_v30, %v862_v36 }
 0x10c   : > { %v590_v37 = vpop.f32.mrf.mxu3 }
 0x10d   : > { %v1000_v17 = vadd.f32 %v1596_v26, %v980_v35  ;;  %v627_v39 = vadd.f32 %v590_v37, %v1514_v24  ;;  %v710_v43 = vpop.f32.mrf.mxu0 }
 0x10e   : > { %v944_v42 = vpop.f32.mrf.mxu2 }
 0x10f   : > { %v828_v44 = vpop.f32.mrf.mxu1  ;;  %v1016_v45 = vmax.f32 %v1000_v17, 0.0  ;;  %v745_v47 = vadd.f32 %v708_v21, %v627_v39 }
 0x111   : > { %1033 = vst.msk [vmem:[%s1603_s26 + $0x8] sm:$0xff] %vm1031_vm2, %v1016_v45  ;;  %v863_v48 = vadd.f32 %v826_v31, %v745_v47 }
 0x113   : > { %v981_v50 = vadd.f32 %v944_v42, %v863_v48 }
 0x114   : > { %v592_v51 = vpop.f32.mrf.mxu3 }
 0x115   : > { %v1001_v52 = vadd.f32 %v1596_v26, %v981_v50  ;;  %v628_v53 = vadd.f32 %v592_v51, %v1524_v41  ;;  %v713_v55 = vpop.f32.mrf.mxu0 }
 0x116   : > { %v946_v54 = vpop.f32.mrf.mxu2 }
 0x117   : > { %v831_v56 = vpop.f32.mrf.mxu1  ;;  %v1017_v24 = vmax.f32 %v1001_v52, 0.0  ;;  %v746_v46 = vadd.f32 %v710_v43, %v628_v53 }
 0x119   : > { %1034 = vst.msk [vmem:[%s1603_s26 + $0x10] sm:$0xff] %vm1031_vm2, %v1017_v24  ;;  %v864_v58 = vadd.f32 %v828_v44, %v746_v46 }
 0x11b   : > { %v982_v59 = vadd.f32 %v946_v54, %v864_v58 }
 0x11c   : > { %v595_v62 = vpop.f32.mrf.mxu3 }
 0x11d   : > { %v1002_v1 = vadd.f32 %v1596_v26, %v982_v59  ;;  %v629_v2 = vadd.f32 %v595_v62, %v1530_v49  ;;  %v715_v63 = vpop.f32.mrf.mxu0 }
 0x11e   : > { %v949_v61 = vpop.f32.mrf.mxu2 }
 0x11f   : > { %v833_v5 = vpop.f32.mrf.mxu1  ;;  %v1018_v41 = vmax.f32 %v1002_v1, 0.0  ;;  %v747_v7 = vadd.f32 %v713_v55, %v629_v2 }
 0x121   : > { %1035 = vst.msk [vmem:[%s1603_s26 + $0x18] sm:$0xff] %vm1031_vm2, %v1018_v41  ;;  %v865_v8 = vadd.f32 %v831_v56, %v747_v7 }
 0x123   : > { %v983_v10 = vadd.f32 %v949_v61, %v865_v8 }
 0x124   : > { %v597_v11 = vpop.f32.mrf.mxu3 }
 0x125   : > { %v1003_v14 = vadd.f32 %v1596_v26, %v983_v10  ;;  %v630_v16 = vadd.f32 %v597_v11, %v1540_v4  ;;  %v718_v9 = vpop.f32.mrf.mxu0 }
 0x126   : > { %v951_v18 = vpop.f32.mrf.mxu2 }
 0x127   : > { %v836_v19 = vpop.f32.mrf.mxu1  ;;  %v1019_v49 = vmax.f32 %v1003_v14, 0.0  ;;  %v748_v20 = vadd.f32 %v715_v63, %v630_v16 }
 0x129   : > { %1036 = vst.msk [vmem:[%s1603_s26 + $0x20] sm:$0xff] %vm1031_vm2, %v1019_v49  ;;  %v866_v22 = vadd.f32 %v833_v5, %v748_v20 }
 0x12b   : > { %v984_v23 = vadd.f32 %v951_v18, %v866_v22 }
 0x12c   : > { %v600_v25 = vpop.f32.mrf.mxu3 }
 0x12d   : > { %v1004_v27 = vadd.f32 %v1596_v26, %v984_v23  ;;  %v631_v28 = vadd.f32 %v600_v25, %v1546_v12  ;;  %v720_v0 = vpop.f32.mrf.mxu0 }
 0x12e   : > { %v954_v29 = vpop.f32.mrf.mxu2 }
 0x12f   : > { %v838_v30 = vpop.f32.mrf.mxu1  ;;  %v1020_v4 = vmax.f32 %v1004_v27, 0.0  ;;  %v749_v21 = vadd.f32 %v718_v9, %v631_v28 }
 0x131   : > { %1037 = vst.msk [vmem:[%s1603_s26 + $0x28] sm:$0xff] %vm1031_vm2, %v1020_v4  ;;  %v867_v31 = vadd.f32 %v836_v19, %v749_v21 }
 0x133   : > { %v985_v33 = vadd.f32 %v954_v29, %v867_v31 }
 0x134   : > { %v602_v34 = vpop.f32.mrf.mxu3 }
 0x135   : > { %v1005_v36 = vadd.f32 %v1596_v26, %v985_v33  ;;  %v632_v35 = vadd.f32 %v602_v34, %v1556_v32  ;;  %v723_v17 = vpop.f32.mrf.mxu0 }
 0x136   : > { %v956_v37 = vpop.f32.mrf.mxu2 }
 0x137   : > { %v841_v39 = vpop.f32.mrf.mxu1  ;;  %v1021_v12 = vmax.f32 %v1005_v36, 0.0  ;;  %v750_v42 = vadd.f32 %v720_v0, %v632_v35 }
 0x139   : > { %1038 = vst.msk [vmem:[%s1603_s26 + $0x30] sm:$0xff] %vm1031_vm2, %v1021_v12  ;;  %v868_v43 = vadd.f32 %v838_v30, %v750_v42 }
 0x13b   : > { %v986_v44 = vadd.f32 %v956_v37, %v868_v43 }
 0x13c   : > { %v605_v45 = vpop.f32.mrf.mxu3 }
 0x13d   : > { %v1006_v47 = vadd.f32 %v1596_v26, %v986_v44  ;;  %v633_v48 = vadd.f32 %v605_v45, %v1564_v40  ;;  %v725_v51 = vpop.f32.mrf.mxu0 }
 0x13e   : > { %v959_v50 = vpop.f32.mrf.mxu2 }
 0x13f   : > { %v843_v52 = vpop.f32.mrf.mxu1  ;;  %v1022_v32 = vmax.f32 %v1006_v47, 0.0  ;;  %v751_v53 = vadd.f32 %v723_v17, %v633_v48 }
 0x141   : > { %1039 = vst.msk [vmem:[%s1603_s26 + $0x38] sm:$0xff] %vm1031_vm2, %v1022_v32  ;;  %v869_v54 = vadd.f32 %v841_v39, %v751_v53 }
 0x143   : > { %v987_v55 = vadd.f32 %v959_v50, %v869_v54 }
 0x144   : > { %v607_v56 = vpop.f32.mrf.mxu3 }
 0x145   : > { %v1007_v24 = vadd.f32 %v1596_v26, %v987_v55  ;;  %v634_v46 = vadd.f32 %v607_v56, %v1576_v60  ;;  %v728_v59 = vpop.f32.mrf.mxu0 }
 0x146   : > { %v961_v58 = vpop.f32.mrf.mxu2 }
 0x147   : > { %v846_v62 = vpop.f32.mrf.mxu1  ;;  %v1023_v40 = vmax.f32 %v1007_v24, 0.0  ;;  %v752_v1 = vadd.f32 %v725_v51, %v634_v46 }
 0x149   : > { %1040 = vst.msk [vmem:[%s1603_s26 + $0x40] sm:$0xff] %vm1031_vm2, %v1023_v40  ;;  %v870_v2 = vadd.f32 %v843_v52, %v752_v1 }
 0x14b   : > { %v988_v61 = vadd.f32 %v961_v58, %v870_v2 }
 0x14c   : > { %v610_v63 = vpop.f32.mrf.mxu3 }
 0x14d   : > { %v1008_v5 = vadd.f32 %v1596_v26, %v988_v61  ;;  %v635_v41 = vadd.f32 %v610_v63, %v1584_v6  ;;  %v730_v8 = vpop.f32.mrf.mxu0 }
 0x14e   : > { %v964_v7 = vpop.f32.mrf.mxu2 }
 0x14f   : > { %v1024_v10 = vmax.f32 %v1008_v5, 0.0  ;;  %v753_v60 = vadd.f32 %v728_v59, %v635_v41  ;;  %v848_v11 = vpop.f32.mrf.mxu1 }
 0x151   : > { %1041 = vst.msk [vmem:[%s1603_s26 + $0x48] sm:$0xff] %vm1031_vm2, %v1024_v10  ;;  %v871_v14 = vadd.f32 %v846_v62, %v753_v60 }
 0x153   : > { %v989_v16 = vadd.f32 %v964_v7, %v871_v14 }
 0x154   : > { %v612_v18 = vpop.f32.mrf.mxu3 }
 0x155   : > { %v1009_v9 = vadd.f32 %v1596_v26, %v989_v16  ;;  %v636_v19 = vadd.f32 %v612_v18, %v1589_v15  ;;  %v733_v6 = vpop.f32.mrf.mxu0 }
 0x156   : > { %v966_v49 = vpop.f32.mrf.mxu2 }
 0x157   : > { %v1025_v20 = vmax.f32 %v1009_v9, 0.0  ;;  %v754_v22 = vadd.f32 %v730_v8, %v636_v19  ;;  %v851_v25 = vpop.f32.mrf.mxu1 }
 0x159   : > { %1042 = vst.msk [vmem:[%s1603_s26 + $0x50] sm:$0xff] %vm1031_vm2, %v1025_v20  ;;  %v872_v23 = vadd.f32 %v848_v11, %v754_v22 }
 0x15b   : > { %v990_v27 = vadd.f32 %v966_v49, %v872_v23 }
 0x15c   : > { %v615_v28 = vpop.f32.mrf.mxu3 }
 0x15d   : > { %v1010_v29 = vadd.f32 %v1596_v26, %v990_v27  ;;  %v637_v0 = vadd.f32 %v615_v28, %v1562_v38  ;;  %v735_v31 = vpop.f32.mrf.mxu0 }
 0x15e   : > { %v969_v30 = vpop.f32.mrf.mxu2 }
 0x15f   : > { %v1026_v4 = vmax.f32 %v1010_v29, 0.0  ;;  %v755_v21 = vadd.f32 %v733_v6, %v637_v0  ;;  %v853_v34 = vpop.f32.mrf.mxu1 }
 0x161   : > { %1043 = vst.msk [vmem:[%s1603_s26 + $0x58] sm:$0xff] %vm1031_vm2, %v1026_v4  ;;  %v873_v15 = vadd.f32 %v851_v25, %v755_v21 }
 0x163   : > { %v991_v33 = vadd.f32 %v969_v30, %v873_v15 }
 0x164   : > { %v617_v36 = vpop.f32.mrf.mxu3 }
 0x165   : > { %v1011_v35 = vadd.f32 %v1596_v26, %v991_v33  ;;  %v638_v37 = vadd.f32 %v617_v36, %v1574_v57  ;;  %v738_v43 = vpop.f32.mrf.mxu0 }
 0x166   : > { %v971_v17 = vpop.f32.mrf.mxu2 }
 0x167   : > { %v1027_v39 = vmax.f32 %v1011_v35, 0.0  ;;  %v756_v12 = vadd.f32 %v735_v31, %v638_v37  ;;  %v856_v48 = vpop.f32.mrf.mxu1 }
 0x169   : > { %1044 = vst.msk [vmem:[%s1603_s26 + $0x60] sm:$0xff] %vm1031_vm2, %v1027_v39  ;;  %v874_v38 = vadd.f32 %v853_v34, %v756_v12 }
 0x16b   : > { %v992_v42 = vadd.f32 %v971_v17, %v874_v38 }
 0x16c   : > { %v620_v44 = vpop.f32.mrf.mxu3 }
 0x16d   : > { %v1012_v45 = vadd.f32 %v1596_v26, %v992_v42  ;;  %v639_v47 = vadd.f32 %v620_v44, %v1582_v3  ;;  %v740_v56 = vpop.f32.mrf.mxu0 }
 0x16e   : > { %v974_v52 = vpop.f32.mrf.mxu2 }
 0x16f   : > { %v1028_v50 = vmax.f32 %v1012_v45, 0.0  ;;  %v757_v51 = vadd.f32 %v738_v43, %v639_v47  ;;  %v858_v58 = vpop.f32.mrf.mxu1 }
 0x171   : > { %1045 = vst.msk [vmem:[%s1603_s26 + $0x68] sm:$0xff] %vm1031_vm2, %v1028_v50  ;;  %v875_v57 = vadd.f32 %v856_v48, %v757_v51 }
 0x173   : > { %v993_v32 = vadd.f32 %v974_v52, %v875_v57 }
 0x174   : > { %v622_v53 = vpop.f32.mrf.mxu3 }
 0x175   : > { %v1013_v54 = vadd.f32 %v1596_v26, %v993_v32  ;;  %v640_v55 = vadd.f32 %v622_v53, %v1587_v13 }
 0x176   : > { %v976_v59 = vpop.f32.mrf.mxu2 }
 0x177   : > { %v1029_v24 = vmax.f32 %v1013_v54, 0.0  ;;  %v758_v46 = vadd.f32 %v740_v56, %v640_v55 }
 0x179   : > { %1046 = vst.msk [vmem:[%s1603_s26 + $0x70] sm:$0xff] %vm1031_vm2, %v1029_v24  ;;  %v876_v3 = vadd.f32 %v858_v58, %v758_v46 }
 0x17b   : > { %v994_v62 = vadd.f32 %v976_v59, %v876_v3 }
 0x17d   : > { %v1014_v40 = vadd.f32 %v1596_v26, %v994_v62 }
 0x17f   : > { %v1030_v1 = vmax.f32 %v1014_v40, 0.0 }
 0x181   : > { %1047 = vst.msk [vmem:[%s1603_s26 + $0x78] sm:$0xff] %vm1031_vm2, %v1030_v1 }
 0x182 PF: > { %s13_s16 = sadd.s32 1, %s1299_s16   ;;  %s1685_s12 = smov %s1291_s14 }
 0x183   : > { %p10_p7 = scmp.ge.s32.totalorder %s13_s16, 6   ;;  %s1686_s13 = smov %s1295_s15 }
 0x184   : > { %s1687_s14 = smov %s1690_s17  ;;  %s1688_s15 = smov %s1694_s18 }
 0x185   :  { %12 = sbr.rel (!%p10_p7) target bundleno = 3 (0x3), region = 69 }

// kernel: _lambda_.40
= control target key start
LH: loop header
LB: loop body
LE: loop exit
PB: predicated region body
PF: predicated region fallthrough
CT: control target
= control target key end

     0   :  { %s1477_s12 = smov 0   ;;  %s1479_s13 = smov 0   ;;  %s1783_s0 = inlined_call_operand.vmem [shape: f32[2,22,16,8], index: 0, kind: input, shape index: {}]   ;;  %s1784_s1 = inlined_call_operand.vmem [shape: bf16[7,1,8,8], index: 1, kind: input, shape index: {}]   ;;  %s1785_s2 = inlined_call_operand.vmem [shape: f32[1,8], index: 2, kind: input, shape index: {}]   ;;  %s1786_s3 = inlined_call_operand.vmem [shape: f32[2,16,16,8], index: 3, kind: output, shape index: {}]  }
   0x1   :  { %s1481_s14 = smov 0   ;;  %s1483_s15 = smov 0  }
   0x2   :  { %s1485_s16 = smov 0  }
   0x3 LB: > { %s22_s17 = sadd.s32 1, %s1447_s14  ;;  %s25_s18 = sadd.s32 1, %s1451_s15  ;;  %s1455_s16 = sphi %s1485_s16, %s13_s16   ;;  %s1451_s15 = sphi %s1483_s15, %s1790_s15   ;;  %s1447_s14 = sphi %s1481_s14, %s1789_s14   ;;  %s1443_s13 = sphi %s1479_s13, %s1788_s13   ;;  %s1439_s12 = sphi %s1477_s12, %s1787_s12  }
   0x4   : > { %p23_p0 = scmp.ge.s32.totalorder %s22_s17, 2  ;;  %p1185_p1 = scmp.ge.s32.totalorder %s1455_s16, 1 }
   0x5   : > { %p151_p2 = scmp.lt.s32.totalorder %s1455_s16, 5 }
   0x6   : > { %s1792_s17 = smov (%p23_p0, %s22_s17), 0  ;;  %s1794_s18 = smov (!%p23_p0, %s25_s18), %s1451_s15 }
   0x7   : > { %p152_p3 = pnand %p1185_p1, %p151_p2  ;;  %p27_p4 = scmp.ge.s32.totalorder %s1794_s18, 2 }
   0x8   : > { %p180_p5 = scmp.lt.s32.totalorder (!%p152_p3), %s1443_s13, 1  ;;  %s1365_s5 = sshll.u32 (!%p152_p3), %s1439_s12, 7 }
   0x9   : > { %s1796_s18 = smov (%p27_p4, %s1794_s18), 0  ;;  %155 = sbr.rel (%p152_p3) target bundleno = 386 (0x182), region = 32 }
   0xa   : > { %s1187_s19 = sshll.u32 (!%p152_p3), %s1439_s12, 3 }
   0xb   : > { %p188_p6 = scmp.lt.s32.totalorder (!%p152_p3), %s1187_s19, 15 }
   0xe   : > { %v1211_v0 = vld [vmem:[%s1784_s1 + $0x4] sm:$0xf]  ;;  %vm279_vm0 = vcmask 1043456   ;;  %v224_v1 = vld [vmem:[%s1784_s1] sm:$0xf]  ;;  %s1798_s13 = smov (!%p180_p5, %s1443_s13), 1 }
   0xf   : > { %v281_v2 = vsel %vm279_vm0, %v1211_v0, 0  ;;  %v357_v3 = vsel %vm279_vm0, %v224_v1, 0  ;;  %v1246_v4 = vld [vmem:[%s1784_s1 + $0x8] sm:$0xf]  ;;  %v1354_v6 = vld [vmem:[%s1784_s1 + $0x18] sm:$0xf] }
  0x10   : > { %290 = vmatpush.bf16.msra.mxu0 %v281_v2  ;;  %1372 = vmatpush.bf16.msra.mxu3 %v281_v2  ;;  %v462_v5 = vsel %vm279_vm0, %v1246_v4, 0  ;;  %v1300_v7 = vld [vmem:[%s1784_s1 + $0x10] sm:$0xf]  ;;  %v946_v8 = vsel %vm279_vm0, %v1354_v6, 0  ;;  %v1327_v10 = vld [vmem:[%s1784_s1 + $0x14] sm:$0xf] }
  0x11   : > { %366 = vmatpush.bf16.msra.mxu1 %v357_v3  ;;  %471 = vmatpush.bf16.msra.mxu2 %v462_v5  ;;  %v704_v9 = vsel %vm279_vm0, %v1300_v7, 0  ;;  %s1375_s4 = smul.u32 352, %s1798_s13  ;;  %v825_v11 = vsel %vm279_vm0, %v1327_v10, 0  ;;  %vm254_vm1 = vcmask 64512   ;;  %v1273_v36 = vld [vmem:[%s1784_s1 + $0xc] sm:$0xf] }
  0x12   : > { %v583_v37 = vsel %vm279_vm0, %v1273_v36, 0  ;;  %s1800_s19 = smov (!%p188_p6, %s1187_s19), 15  ;;  %s1189_s21 = sshll.u32 %s1798_s13, 5 }
  0x13   : > { %s184_s8 = scalar_lea.vmem %s1783_s0, %s1375_s4  ;;  %s1188_s20 = sshll.u32 %s1800_s19, 1 }
  0x14   : > { %1373 = vmatpush.bf16.msrb.mxu3 %v357_v3  ;;  %713 = vmatpush.bf16.msrb.mxu0 %v704_v9  ;;  %s1540_s9 = scalar_lea.vmem %s184_s8, %s1365_s5  ;;  %s192_s12 = sadd.s32 %s1189_s21, %s1188_s20 }
  0x15   : > { %955 = vmatpush.bf16.msrb.mxu2 %v946_v8  ;;  %834 = vmatpush.bf16.msrb.mxu1 %v825_v11  ;;  %v1195_v12 = vld [vmem:[%s1540_s9 + $0x10] sm:$0xff]  ;;  %v1196_v13 = vld [vmem:[%s1540_s9 + $0x18] sm:$0xff]  ;;  %v200_v17 = vld [vmem:[%s1540_s9] sm:$0xff]  ;;  %s1190_s24 = sshll.u32 %s192_s12, 3 }
  0x16   : > { %v1207_v14 = vld [vmem:[%s1540_s9 + $0x70] sm:$0xff]  ;;  %v244_v15 = vpack.c.bf16 %v1196_v13, %v1195_v12  ;;  %v1208_v16 = vld [vmem:[%s1540_s9 + $0x78] sm:$0xff]  ;;  %v201_v18 = vld [vmem:[%s1540_s9 + $0x8] sm:$0xff]  ;;  %s1705_s26 = scalar_lea.vmem %s1786_s3, %s1190_s24 }
  0x17   : > { %v1548_v19 = vpack.c.bf16 %v1208_v16, %v1207_v14  ;;  %v216_v20 = vpack.c.bf16 %v201_v18, %v200_v17  ;;  %v1230_v21 = vld [vmem:[%s1540_s9 + $0x20] sm:$0xff]  ;;  %v1231_v22 = vld [vmem:[%s1540_s9 + $0x28] sm:$0xff]  ;;  %v1232_v26 = vld [vmem:[%s1540_s9 + $0x30] sm:$0xff] }
  0x18   : > { %1212 = vmatmul.msk.bf16.vlgmr.msra.gmra.mxu0 %vm254_vm1, %v244_v15  ;;  %v427_v23 = vpack.c.bf16 %v1231_v22, %v1230_v21  ;;  %v1209_v24 = vld [vmem:[%s1540_s9 + $0x80] sm:$0xff]  ;;  %v1210_v25 = vld [vmem:[%s1540_s9 + $0x88] sm:$0xff]  ;;  %v1233_v27 = vld [vmem:[%s1540_s9 + $0x38] sm:$0xff] }
  0x19   : > { %1218 = vmatmul.msk.bf16.vlgmr.msra.gmra.mxu3 %vm254_vm1, %v1548_v19  ;;  %1220 = vmatmul.msk.bf16.vlgmr.msra.gmra.mxu1 %vm254_vm1, %v216_v20  ;;  %v1561_v28 = vpack.c.bf16 %v1210_v25, %v1209_v24  ;;  %v428_v29 = vpack.c.bf16 %v1233_v27, %v1232_v26  ;;  %v212_v30 = vld [vmem:[%s1540_s9 + $0x60] sm:$0xff]  ;;  %v213_v31 = vld [vmem:[%s1540_s9 + $0x68] sm:$0xff]  ;;  %v1236_v38 = vld [vmem:[%s1540_s9 + $0x50] sm:$0xff] }
  0x1a   : > { %1247 = vmatmul.msk.bf16.vlgmr.msra.gmra.mxu2 %vm254_vm1, %v427_v23  ;;  %1374 = vmatpush.bf16.msra.mxu3 %v462_v5  ;;  %v1234_v32 = vld [vmem:[%s1540_s9 + $0x40] sm:$0xff]  ;;  %v1235_v33 = vld [vmem:[%s1540_s9 + $0x48] sm:$0xff]  ;;  %v222_v34 = vpack.c.bf16 %v213_v31, %v212_v30  ;;  %v1237_v39 = vld [vmem:[%s1540_s9 + $0x58] sm:$0xff] }
  0x1b   : > { %v429_v35 = vpack.c.bf16 %v1235_v33, %v1234_v32  ;;  %v430_v40 = vpack.c.bf16 %v1237_v39, %v1236_v38  ;;  %v1244_v41 = vld [vmem:[%s1540_s9 + $0x90] sm:$0xff]  ;;  %v1245_v42 = vld [vmem:[%s1540_s9 + $0x98] sm:$0xff]  ;;  %v1346_v1 = vld [vmem:[%s1540_s9 + $0xa0] sm:$0xff] }
  0x1c   : > { %v1594_v43 = vpack.c.bf16 %v1245_v42, %v1244_v41  ;;  %v1347_v2 = vld [vmem:[%s1540_s9 + $0xa8] sm:$0xff]  ;;  %v1348_v17 = vld [vmem:[%s1540_s9 + $0xb0] sm:$0xff]  ;;  %v1349_v18 = vld [vmem:[%s1540_s9 + $0xb8] sm:$0xff] }
  0x1d   : > { %v1634_v8 = vpack.c.bf16 %v1347_v2, %v1346_v1  ;;  %v916_v25 = vpack.c.bf16 %v1349_v18, %v1348_v17  ;;  %v1351_v36 = vld [vmem:[%s1540_s9 + $0xc8] sm:$0xff] }
  0x28   : > { %1213 = vmatmul.msk.bf16.gmra.mxu0 %vm254_vm1, %v427_v23 }
  0x29   : > { %1219 = vmatmul.msk.bf16.gmra.mxu3 %vm254_vm1, %v1561_v28  ;;  %1221 = vmatmul.msk.bf16.gmra.mxu1 %vm254_vm1, %v244_v15 }
  0x2a   : > { %1248 = vmatmul.msk.bf16.gmra.mxu2 %vm254_vm1, %v428_v29 }
  0x38   : > { %1214 = vmatmul.msk.bf16.gmra.mxu0 %vm254_vm1, %v428_v29 }
  0x39   : > { %1222 = vmatmul.msk.bf16.gmra.mxu1 %vm254_vm1, %v427_v23  ;;  %1226 = vmatmul.msk.bf16.vlgmr.msrb.gmra.mxu3 %vm254_vm1, %v222_v34 }
  0x3a   : > { %1249 = vmatmul.msk.bf16.gmra.mxu2 %vm254_vm1, %v429_v35  ;;  %592 = vmatpush.bf16.msrb.mxu3 %v583_v37 }
  0x48   : > { %1215 = vmatmul.msk.bf16.gmra.mxu0 %vm254_vm1, %v429_v35 }
  0x49   : > { %1223 = vmatmul.msk.bf16.gmra.mxu1 %vm254_vm1, %v428_v29  ;;  %1227 = vmatmul.msk.bf16.gmra.mxu3 %vm254_vm1, %v1548_v19 }
  0x4a   : > { %1250 = vmatmul.msk.bf16.gmra.mxu2 %vm254_vm1, %v430_v40 }
  0x58   : > { %1216 = vmatmul.msk.bf16.gmra.mxu0 %vm254_vm1, %v430_v40 }
  0x59   : > { %1224 = vmatmul.msk.bf16.gmra.mxu1 %vm254_vm1, %v429_v35  ;;  %1253 = vmatmul.msk.bf16.vlgmr.msra.gmra.mxu3 %vm254_vm1, %v1561_v28 }
  0x5a   : > { %1251 = vmatmul.msk.bf16.gmra.mxu2 %vm254_vm1, %v222_v34 }
  0x68   : > { %1217 = vmatmul.msk.bf16.gmra.mxu0 %vm254_vm1, %v222_v34 }
  0x69   : > { %1225 = vmatmul.msk.bf16.gmra.mxu1 %vm254_vm1, %v430_v40  ;;  %1254 = vmatmul.msk.bf16.gmra.mxu3 %vm254_vm1, %v1594_v43 }
  0x6a   : > { %1252 = vmatmul.msk.bf16.gmra.mxu2 %vm254_vm1, %v1548_v19 }
  0x78   : > { %1301 = vmatmul.msk.bf16.vlgmr.msrb.gmra.mxu0 %vm254_vm1, %v429_v35 }
  0x79   : > { %1274 = vmatmul.msk.bf16.vlgmr.msrb.gmra.mxu3 %vm254_vm1, %v428_v29  ;;  %1328 = vmatmul.msk.bf16.vlgmr.msrb.gmra.mxu1 %vm254_vm1, %v430_v40 }
  0x7a   : > { %1355 = vmatmul.msk.bf16.vlgmr.msrb.gmra.mxu2 %vm254_vm1, %v222_v34 }
  0x88   : > { %1302 = vmatmul.msk.bf16.gmra.mxu0 %vm254_vm1, %v430_v40 }
  0x89   : > { %1275 = vmatmul.msk.bf16.gmra.mxu3 %vm254_vm1, %v429_v35  ;;  %1329 = vmatmul.msk.bf16.gmra.mxu1 %vm254_vm1, %v222_v34  ;;  %v1350_v35 = vld [vmem:[%s1540_s9 + $0xc0] sm:$0xff] }
  0x8a   : > { %1356 = vmatmul.msk.bf16.gmra.mxu2 %vm254_vm1, %v1548_v19  ;;  %v917_v42 = vpack.c.bf16 %v1351_v36, %v1350_v35 }
  0x95   : > { %v292_v44 = vpop.f32.mrf.mxu0 }
  0x96   : > { %v368_v45 = vpop.f32.mrf.mxu1 }
  0x97   : > { %v369_v46 = vadd.f32 %v368_v45, %v292_v44 }
  0x98   : > { %1303 = vmatmul.msk.bf16.gmra.mxu0 %vm254_vm1, %v222_v34 }
  0x99   : > { %1276 = vmatmul.msk.bf16.gmra.mxu3 %vm254_vm1, %v430_v40  ;;  %1330 = vmatmul.msk.bf16.gmra.mxu1 %vm254_vm1, %v1548_v19 }
  0x9a   : > { %1357 = vmatmul.msk.bf16.gmra.mxu2 %vm254_vm1, %v1561_v28 }
  0x9c   : > { %v322_v47 = vpop.f32.mrf.mxu3 }
  0x9d   : > { %v473_v48 = vpop.f32.mrf.mxu2  ;;  %v294_v49 = vpop.f32.mrf.mxu0 }
  0x9e   : > { %v1617_v50 = vadd.f32 %v473_v48, %v369_v46  ;;  %v370_v51 = vpop.f32.mrf.mxu1 }
  0x9f   : > { %v371_v52 = vadd.f32 %v370_v51, %v294_v49 }
  0xa4   : > { %v324_v53 = vpop.f32.mrf.mxu3 }
  0xa5   : > { %v475_v54 = vpop.f32.mrf.mxu2  ;;  %v297_v55 = vpop.f32.mrf.mxu0 }
  0xa6   : > { %v1619_v56 = vadd.f32 %v475_v54, %v371_v52  ;;  %v373_v57 = vpop.f32.mrf.mxu1  ;;  %v1353_v54 = vld [vmem:[%s1540_s9 + $0xd8] sm:$0xff] }
  0xa7   : > { %v374_v58 = vadd.f32 %v373_v57, %v297_v55 }
  0xa8   : > { %1304 = vmatmul.msk.bf16.gmra.mxu0 %vm254_vm1, %v1548_v19 }
  0xa9   : > { %1277 = vmatmul.msk.bf16.gmra.mxu3 %vm254_vm1, %v222_v34  ;;  %1331 = vmatmul.msk.bf16.gmra.mxu1 %vm254_vm1, %v1561_v28 }
  0xaa   : > { %1358 = vmatmul.msk.bf16.gmra.mxu2 %vm254_vm1, %v1594_v43 }
  0xac   : > { %v327_v59 = vpop.f32.mrf.mxu3 }
  0xad   : > { %v478_v60 = vpop.f32.mrf.mxu2  ;;  %v299_v61 = vpop.f32.mrf.mxu0 }
  0xae   : > { %v1628_v62 = vadd.f32 %v478_v60, %v374_v58  ;;  %v375_v63 = vpop.f32.mrf.mxu1 }
  0xaf   : > { %v376_v0 = vadd.f32 %v375_v63, %v299_v61 }
  0xb4   : > { %v329_v3 = vpop.f32.mrf.mxu3 }
  0xb5   : > { %v480_v4 = vpop.f32.mrf.mxu2  ;;  %v302_v5 = vpop.f32.mrf.mxu0 }
  0xb6   : > { %v1632_v6 = vadd.f32 %v480_v4, %v376_v0  ;;  %v378_v7 = vpop.f32.mrf.mxu1 }
  0xb7   : > { %v379_v9 = vadd.f32 %v378_v7, %v302_v5 }
  0xb8   : > { %1305 = vmatmul.msk.bf16.gmra.mxu0 %vm254_vm1, %v1561_v28 }
  0xb9   : > { %1278 = vmatmul.msk.bf16.gmra.mxu3 %vm254_vm1, %v1548_v19  ;;  %1332 = vmatmul.msk.bf16.gmra.mxu1 %vm254_vm1, %v1594_v43 }
  0xba   : > { %1359 = vmatmul.msk.bf16.gmra.mxu2 %vm254_vm1, %v1634_v8 }
  0xbc   : > { %v398_v10 = vpop.f32.mrf.mxu3 }
  0xbd   : > { %v399_v11 = vadd.f32 %v398_v10, %v322_v47  ;;  %v483_v12 = vpop.f32.mrf.mxu2  ;;  %v304_v13 = vpop.f32.mrf.mxu0 }
  0xbe   : > { %v1644_v14 = vadd.f32 %v483_v12, %v379_v9  ;;  %v380_v15 = vpop.f32.mrf.mxu1 }
  0xbf   : > { %v381_v16 = vadd.f32 %v380_v15, %v304_v13 }
  0xc4   : > { %v400_v20 = vpop.f32.mrf.mxu3 }
  0xc5   : > { %v401_v21 = vadd.f32 %v400_v20, %v324_v53  ;;  %v485_v22 = vpop.f32.mrf.mxu2  ;;  %v307_v19 = vpop.f32.mrf.mxu0  ;;  %v1352_v53 = vld [vmem:[%s1540_s9 + $0xd0] sm:$0xff] }
  0xc6   : > { %v1648_v23 = vadd.f32 %v485_v22, %v381_v16  ;;  %v383_v24 = vpop.f32.mrf.mxu1  ;;  %v918_v61 = vpack.c.bf16 %v1353_v54, %v1352_v53 }
  0xc7   : > { %v384_v26 = vadd.f32 %v383_v24, %v307_v19  ;;  %v1698_v19 = vld [vmem:[%s1785_s2] ss:$0 sm:$0xff] }
  0xc8   : > { %1306 = vmatmul.msk.bf16.gmra.mxu0 %vm254_vm1, %v1594_v43 }
  0xc9   : > { %1279 = vmatmul.msk.bf16.gmra.mxu3 %vm254_vm1, %v1561_v28  ;;  %1333 = vmatmul.msk.bf16.gmra.mxu1 %vm254_vm1, %v1634_v8 }
  0xca   : > { %1360 = vmatmul.msk.bf16.gmra.mxu2 %vm254_vm1, %v916_v25 }
  0xcc   : > { %v403_v27 = vpop.f32.mrf.mxu3 }
  0xcd   : > { %v404_v29 = vadd.f32 %v403_v27, %v327_v59  ;;  %v488_v30 = vpop.f32.mrf.mxu2  ;;  %v309_v31 = vpop.f32.mrf.mxu0 }
  0xce   : > { %v1657_v32 = vadd.f32 %v488_v30, %v384_v26  ;;  %v385_v33 = vpop.f32.mrf.mxu1 }
  0xcf   : > { %v386_v34 = vadd.f32 %v385_v33, %v309_v31 }
  0xd4   : > { %v405_v37 = vpop.f32.mrf.mxu3 }
  0xd5   : > { %v406_v38 = vadd.f32 %v405_v37, %v329_v3  ;;  %v490_v39 = vpop.f32.mrf.mxu2  ;;  %v312_v40 = vpop.f32.mrf.mxu0 }
  0xd6   : > { %v1661_v28 = vadd.f32 %v490_v39, %v386_v34  ;;  %v388_v41 = vpop.f32.mrf.mxu1 }
  0xd7   : > { %v389_v44 = vadd.f32 %v388_v41, %v312_v40 }
  0xd8   : > { %1307 = vmatmul.msk.bf16.gmra.mxu0 %vm254_vm1, %v1634_v8 }
  0xd9   : > { %1280 = vmatmul.msk.bf16.gmra.mxu3 %vm254_vm1, %v1594_v43  ;;  %1334 = vmatmul.msk.bf16.gmra.mxu1 %vm254_vm1, %v916_v25 }
  0xda   : > { %1361 = vmatmul.msk.bf16.gmra.mxu2 %vm254_vm1, %v917_v42 }
  0xdc   : > { %v503_v45 = vpop.f32.mrf.mxu3 }
  0xdd   : > { %v493_v46 = vpop.f32.mrf.mxu2  ;;  %v1669_v47 = vadd.f32 %v503_v45, %v399_v11  ;;  %v314_v48 = vpop.f32.mrf.mxu0 }
  0xde   : > { %v1671_v49 = vadd.f32 %v493_v46, %v389_v44  ;;  %v390_v51 = vpop.f32.mrf.mxu1 }
  0xdf   : > { %v391_v52 = vadd.f32 %v390_v51, %v314_v48 }
  0xe4   : > { %v505_v55 = vpop.f32.mrf.mxu3 }
  0xe5   : > { %v495_v57 = vpop.f32.mrf.mxu2  ;;  %v1675_v58 = vadd.f32 %v505_v55, %v401_v21  ;;  %v317_v43 = vpop.f32.mrf.mxu0 }
  0xe6   : > { %v1677_v59 = vadd.f32 %v495_v57, %v391_v52  ;;  %v393_v60 = vpop.f32.mrf.mxu1 }
  0xe7   : > { %v394_v63 = vadd.f32 %v393_v60, %v317_v43 }
  0xe8   : > { %1308 = vmatmul.msk.bf16.gmra.mxu0 %vm254_vm1, %v916_v25 }
  0xe9   : > { %1281 = vmatmul.msk.bf16.gmra.mxu3 %vm254_vm1, %v1634_v8  ;;  %1335 = vmatmul.msk.bf16.gmra.mxu1 %vm254_vm1, %v917_v42 }
  0xea   : > { %1362 = vmatmul.msk.bf16.gmra.mxu2 %vm254_vm1, %v918_v61 }
  0xec   : > { %v508_v0 = vpop.f32.mrf.mxu3 }
  0xed   : > { %v498_v1 = vpop.f32.mrf.mxu2  ;;  %v1684_v2 = vadd.f32 %v508_v0, %v404_v29  ;;  %v319_v3 = vpop.f32.mrf.mxu0 }
  0xee   : > { %v1686_v4 = vadd.f32 %v498_v1, %v394_v63  ;;  %v395_v5 = vpop.f32.mrf.mxu1 }
  0xef   : > { %v396_v7 = vadd.f32 %v395_v5, %v319_v3 }
  0xf4   : > { %v510_v9 = vpop.f32.mrf.mxu3 }
  0xf5   : > { %v500_v10 = vpop.f32.mrf.mxu2  ;;  %v1689_v11 = vadd.f32 %v510_v9, %v406_v38  ;;  %v715_v8 = vpop.f32.mrf.mxu0 }
  0xf6   : > { %v1691_v12 = vadd.f32 %v500_v10, %v396_v7  ;;  %v836_v13 = vpop.f32.mrf.mxu1 }
  0xfc   : > { %v594_v15 = vpop.f32.mrf.mxu3 }
  0xfd   : > { %v634_v16 = vadd.f32 %v594_v15, %v1617_v50  ;;  %v957_v17 = vpop.f32.mrf.mxu2  ;;  %v717_v18 = vpop.f32.mrf.mxu0 }
  0xfe   : > { %v838_v20 = vpop.f32.mrf.mxu1 }
  0xff   : > { %v755_v21 = vadd.f32 %v715_v8, %v634_v16 }
 0x101   : > { %v876_v22 = vadd.f32 %v836_v13, %v755_v21 }
 0x103   : > { %v997_v24 = vadd.f32 %v957_v17, %v876_v22 }
 0x104   : > { %v596_v25 = vpop.f32.mrf.mxu3 }
 0x105   : > { %v1017_v26 = vadd.f32 %v1698_v19, %v997_v24  ;;  %v635_v50 = vadd.f32 %v596_v25, %v1619_v56  ;;  %v959_v27 = vpop.f32.mrf.mxu2  ;;  %v720_v29 = vpop.f32.mrf.mxu0 }
 0x106   : > { %v841_v30 = vpop.f32.mrf.mxu1 }
 0x107   : > { %v1033_v31 = vmax.f32 %v1017_v26, 0.0  ;;  %v756_v33 = vadd.f32 %v717_v18, %v635_v50 }
 0x109   : > { %1049 = vst.msk [vmem:[%s1705_s26] sm:$0xff] %vm254_vm1, %v1033_v31  ;;  %v877_v34 = vadd.f32 %v838_v20, %v756_v33 }
 0x10b   : > { %v998_v35 = vadd.f32 %v959_v27, %v877_v34 }
 0x10c   : > { %v599_v36 = vpop.f32.mrf.mxu3 }
 0x10d   : > { %v1018_v37 = vadd.f32 %v1698_v19, %v998_v35  ;;  %v636_v56 = vadd.f32 %v599_v36, %v1628_v62  ;;  %v962_v38 = vpop.f32.mrf.mxu2  ;;  %v722_v39 = vpop.f32.mrf.mxu0 }
 0x10e   : > { %v843_v40 = vpop.f32.mrf.mxu1 }
 0x10f   : > { %v1034_v41 = vmax.f32 %v1018_v37, 0.0  ;;  %v757_v42 = vadd.f32 %v720_v29, %v636_v56 }
 0x111   : > { %1050 = vst.msk [vmem:[%s1705_s26 + $0x8] sm:$0xff] %vm254_vm1, %v1034_v41  ;;  %v878_v44 = vadd.f32 %v841_v30, %v757_v42 }
 0x113   : > { %v999_v45 = vadd.f32 %v962_v38, %v878_v44 }
 0x114   : > { %v601_v46 = vpop.f32.mrf.mxu3 }
 0x115   : > { %v1019_v48 = vadd.f32 %v1698_v19, %v999_v45  ;;  %v637_v51 = vadd.f32 %v601_v46, %v1632_v6  ;;  %v964_v52 = vpop.f32.mrf.mxu2  ;;  %v725_v53 = vpop.f32.mrf.mxu0 }
 0x116   : > { %v846_v54 = vpop.f32.mrf.mxu1 }
 0x117   : > { %v1035_v62 = vmax.f32 %v1019_v48, 0.0  ;;  %v758_v55 = vadd.f32 %v722_v39, %v637_v51 }
 0x119   : > { %1051 = vst.msk [vmem:[%s1705_s26 + $0x10] sm:$0xff] %vm254_vm1, %v1035_v62  ;;  %v879_v57 = vadd.f32 %v843_v40, %v758_v55 }
 0x11b   : > { %v1000_v43 = vadd.f32 %v964_v52, %v879_v57 }
 0x11c   : > { %v604_v60 = vpop.f32.mrf.mxu3 }
 0x11d   : > { %v1020_v61 = vadd.f32 %v1698_v19, %v1000_v43  ;;  %v638_v63 = vadd.f32 %v604_v60, %v1644_v14  ;;  %v967_v0 = vpop.f32.mrf.mxu2  ;;  %v727_v1 = vpop.f32.mrf.mxu0 }
 0x11e   : > { %v848_v3 = vpop.f32.mrf.mxu1 }
 0x11f   : > { %v1036_v6 = vmax.f32 %v1020_v61, 0.0  ;;  %v759_v5 = vadd.f32 %v725_v53, %v638_v63 }
 0x121   : > { %1052 = vst.msk [vmem:[%s1705_s26 + $0x18] sm:$0xff] %vm254_vm1, %v1036_v6  ;;  %v880_v7 = vadd.f32 %v846_v54, %v759_v5 }
 0x123   : > { %v1001_v9 = vadd.f32 %v967_v0, %v880_v7 }
 0x124   : > { %v606_v10 = vpop.f32.mrf.mxu3 }
 0x125   : > { %v1021_v8 = vadd.f32 %v1698_v19, %v1001_v9  ;;  %v639_v13 = vadd.f32 %v606_v10, %v1648_v23  ;;  %v969_v15 = vpop.f32.mrf.mxu2  ;;  %v730_v16 = vpop.f32.mrf.mxu0 }
 0x126   : > { %v851_v17 = vpop.f32.mrf.mxu1 }
 0x127   : > { %v1037_v14 = vmax.f32 %v1021_v8, 0.0  ;;  %v760_v18 = vadd.f32 %v727_v1, %v639_v13 }
 0x129   : > { %1053 = vst.msk [vmem:[%s1705_s26 + $0x20] sm:$0xff] %vm254_vm1, %v1037_v14  ;;  %v881_v20 = vadd.f32 %v848_v3, %v760_v18 }
 0x12b   : > { %v1002_v21 = vadd.f32 %v969_v15, %v881_v20 }
 0x12c   : > { %v609_v22 = vpop.f32.mrf.mxu3 }
 0x12d   : > { %v1022_v24 = vadd.f32 %v1698_v19, %v1002_v21  ;;  %v640_v25 = vadd.f32 %v609_v22, %v1657_v32  ;;  %v972_v26 = vpop.f32.mrf.mxu2  ;;  %v732_v50 = vpop.f32.mrf.mxu0 }
 0x12e   : > { %v853_v27 = vpop.f32.mrf.mxu1 }
 0x12f   : > { %v1038_v23 = vmax.f32 %v1022_v24, 0.0  ;;  %v761_v29 = vadd.f32 %v730_v16, %v640_v25 }
 0x131   : > { %1054 = vst.msk [vmem:[%s1705_s26 + $0x28] sm:$0xff] %vm254_vm1, %v1038_v23  ;;  %v882_v30 = vadd.f32 %v851_v17, %v761_v29 }
 0x133   : > { %v1003_v31 = vadd.f32 %v972_v26, %v882_v30 }
 0x134   : > { %v611_v33 = vpop.f32.mrf.mxu3 }
 0x135   : > { %v1023_v34 = vadd.f32 %v1698_v19, %v1003_v31  ;;  %v641_v35 = vadd.f32 %v611_v33, %v1661_v28  ;;  %v974_v36 = vpop.f32.mrf.mxu2  ;;  %v735_v37 = vpop.f32.mrf.mxu0 }
 0x136   : > { %v856_v56 = vpop.f32.mrf.mxu1 }
 0x137   : > { %v1039_v32 = vmax.f32 %v1023_v34, 0.0  ;;  %v762_v38 = vadd.f32 %v732_v50, %v641_v35 }
 0x139   : > { %1055 = vst.msk [vmem:[%s1705_s26 + $0x30] sm:$0xff] %vm254_vm1, %v1039_v32  ;;  %v883_v39 = vadd.f32 %v853_v27, %v762_v38 }
 0x13b   : > { %v1004_v40 = vadd.f32 %v974_v36, %v883_v39 }
 0x13c   : > { %v614_v41 = vpop.f32.mrf.mxu3 }
 0x13d   : > { %v1024_v42 = vadd.f32 %v1698_v19, %v1004_v40  ;;  %v642_v44 = vadd.f32 %v614_v41, %v1671_v49  ;;  %v977_v45 = vpop.f32.mrf.mxu2  ;;  %v737_v46 = vpop.f32.mrf.mxu0 }
 0x13e   : > { %v858_v48 = vpop.f32.mrf.mxu1 }
 0x13f   : > { %v1040_v28 = vmax.f32 %v1024_v42, 0.0  ;;  %v763_v51 = vadd.f32 %v735_v37, %v642_v44 }
 0x141   : > { %1056 = vst.msk [vmem:[%s1705_s26 + $0x38] sm:$0xff] %vm254_vm1, %v1040_v28  ;;  %v884_v52 = vadd.f32 %v856_v56, %v763_v51 }
 0x143   : > { %v1005_v53 = vadd.f32 %v977_v45, %v884_v52 }
 0x144   : > { %v616_v54 = vpop.f32.mrf.mxu3 }
 0x145   : > { %v1025_v62 = vadd.f32 %v1698_v19, %v1005_v53  ;;  %v643_v55 = vadd.f32 %v616_v54, %v1677_v59  ;;  %v979_v57 = vpop.f32.mrf.mxu2  ;;  %v740_v43 = vpop.f32.mrf.mxu0 }
 0x146   : > { %v861_v60 = vpop.f32.mrf.mxu1 }
 0x147   : > { %v1041_v49 = vmax.f32 %v1025_v62, 0.0  ;;  %v764_v61 = vadd.f32 %v737_v46, %v643_v55 }
 0x149   : > { %1057 = vst.msk [vmem:[%s1705_s26 + $0x40] sm:$0xff] %vm254_vm1, %v1041_v49  ;;  %v885_v63 = vadd.f32 %v858_v48, %v764_v61 }
 0x14b   : > { %v1006_v0 = vadd.f32 %v979_v57, %v885_v63 }
 0x14c   : > { %v619_v1 = vpop.f32.mrf.mxu3 }
 0x14d   : > { %v1026_v3 = vadd.f32 %v1698_v19, %v1006_v0  ;;  %v644_v6 = vadd.f32 %v619_v1, %v1686_v4  ;;  %v982_v5 = vpop.f32.mrf.mxu2  ;;  %v742_v7 = vpop.f32.mrf.mxu0 }
 0x14e   : > { %v863_v10 = vpop.f32.mrf.mxu1 }
 0x14f   : > { %v1042_v9 = vmax.f32 %v1026_v3, 0.0  ;;  %v765_v59 = vadd.f32 %v740_v43, %v644_v6 }
 0x151   : > { %1058 = vst.msk [vmem:[%s1705_s26 + $0x48] sm:$0xff] %vm254_vm1, %v1042_v9  ;;  %v886_v8 = vadd.f32 %v861_v60, %v765_v59 }
 0x153   : > { %v1007_v13 = vadd.f32 %v982_v5, %v886_v8 }
 0x154   : > { %v621_v15 = vpop.f32.mrf.mxu3 }
 0x155   : > { %v1027_v16 = vadd.f32 %v1698_v19, %v1007_v13  ;;  %v645_v17 = vadd.f32 %v621_v15, %v1691_v12  ;;  %v984_v14 = vpop.f32.mrf.mxu2  ;;  %v745_v4 = vpop.f32.mrf.mxu0 }
 0x156   : > { %v866_v22 = vpop.f32.mrf.mxu1 }
 0x157   : > { %v1043_v18 = vmax.f32 %v1027_v16, 0.0  ;;  %v766_v20 = vadd.f32 %v742_v7, %v645_v17 }
 0x159   : > { %1059 = vst.msk [vmem:[%s1705_s26 + $0x50] sm:$0xff] %vm254_vm1, %v1043_v18  ;;  %v887_v21 = vadd.f32 %v863_v10, %v766_v20 }
 0x15b   : > { %v1008_v24 = vadd.f32 %v984_v14, %v887_v21 }
 0x15c   : > { %v624_v25 = vpop.f32.mrf.mxu3 }
 0x15d   : > { %v1028_v26 = vadd.f32 %v1698_v19, %v1008_v24  ;;  %v646_v50 = vadd.f32 %v624_v25, %v1669_v47  ;;  %v987_v27 = vpop.f32.mrf.mxu2  ;;  %v747_v30 = vpop.f32.mrf.mxu0 }
 0x15e   : > { %v868_v33 = vpop.f32.mrf.mxu1 }
 0x15f   : > { %v1044_v23 = vmax.f32 %v1028_v26, 0.0  ;;  %v767_v29 = vadd.f32 %v745_v4, %v646_v50 }
 0x161   : > { %1060 = vst.msk [vmem:[%s1705_s26 + $0x58] sm:$0xff] %vm254_vm1, %v1044_v23  ;;  %v888_v12 = vadd.f32 %v866_v22, %v767_v29 }
 0x163   : > { %v1009_v31 = vadd.f32 %v987_v27, %v888_v12 }
 0x164   : > { %v626_v34 = vpop.f32.mrf.mxu3 }
 0x165   : > { %v1029_v35 = vadd.f32 %v1698_v19, %v1009_v31  ;;  %v647_v36 = vadd.f32 %v626_v34, %v1675_v58  ;;  %v989_v37 = vpop.f32.mrf.mxu2  ;;  %v750_v39 = vpop.f32.mrf.mxu0 }
 0x166   : > { %v871_v44 = vpop.f32.mrf.mxu1 }
 0x167   : > { %v1045_v56 = vmax.f32 %v1029_v35, 0.0  ;;  %v768_v32 = vadd.f32 %v747_v30, %v647_v36 }
 0x169   : > { %1061 = vst.msk [vmem:[%s1705_s26 + $0x60] sm:$0xff] %vm254_vm1, %v1045_v56  ;;  %v889_v47 = vadd.f32 %v868_v33, %v768_v32 }
 0x16b   : > { %v1010_v38 = vadd.f32 %v989_v37, %v889_v47 }
 0x16c   : > { %v629_v40 = vpop.f32.mrf.mxu3 }
 0x16d   : > { %v1030_v41 = vadd.f32 %v1698_v19, %v1010_v38  ;;  %v648_v42 = vadd.f32 %v629_v40, %v1684_v2  ;;  %v992_v48 = vpop.f32.mrf.mxu2  ;;  %v752_v54 = vpop.f32.mrf.mxu0 }
 0x16e   : > { %v873_v57 = vpop.f32.mrf.mxu1 }
 0x16f   : > { %v1046_v45 = vmax.f32 %v1030_v41, 0.0  ;;  %v769_v46 = vadd.f32 %v750_v39, %v648_v42 }
 0x171   : > { %1062 = vst.msk [vmem:[%s1705_s26 + $0x68] sm:$0xff] %vm254_vm1, %v1046_v45  ;;  %v890_v58 = vadd.f32 %v871_v44, %v769_v46 }
 0x173   : > { %v1011_v28 = vadd.f32 %v992_v48, %v890_v58 }
 0x174   : > { %v631_v51 = vpop.f32.mrf.mxu3 }
 0x175   : > { %v1031_v52 = vadd.f32 %v1698_v19, %v1011_v28  ;;  %v649_v53 = vadd.f32 %v631_v51, %v1689_v11  ;;  %v994_v43 = vpop.f32.mrf.mxu2 }
 0x177   : > { %v1047_v62 = vmax.f32 %v1031_v52, 0.0  ;;  %v770_v55 = vadd.f32 %v752_v54, %v649_v53 }
 0x179   : > { %1063 = vst.msk [vmem:[%s1705_s26 + $0x70] sm:$0xff] %vm254_vm1, %v1047_v62  ;;  %v891_v2 = vadd.f32 %v873_v57, %v770_v55 }
 0x17b   : > { %v1012_v60 = vadd.f32 %v994_v43, %v891_v2 }
 0x17d   : > { %v1032_v49 = vadd.f32 %v1698_v19, %v1012_v60 }
 0x17f   : > { %v1048_v61 = vmax.f32 %v1032_v49, 0.0 }
 0x181   : > { %1064 = vst.msk [vmem:[%s1705_s26 + $0x78] sm:$0xff] %vm254_vm1, %v1048_v61 }
 0x182 PF: > { %s13_s16 = sadd.s32 1, %s1455_s16   ;;  %s1787_s12 = smov %s1447_s14 }
 0x183   : > { %p10_p7 = scmp.ge.s32.totalorder %s13_s16, 6   ;;  %s1788_s13 = smov %s1451_s15 }
 0x184   : > { %s1789_s14 = smov %s1792_s17  ;;  %s1790_s15 = smov %s1796_s18 }
 0x185   :  { %12 = sbr.rel (!%p10_p7) target bundleno = 3 (0x3), region = 75 }

// kernel: _lambda_.41
= control target key start
LH: loop header
LB: loop body
LE: loop exit
PB: predicated region body
PF: predicated region fallthrough
CT: control target
= control target key end

     0   :  { %s839_s27 = smov 0   ;;  %s841_s28 = smov 0   ;;  %s911_s0 = inlined_call_operand.vmem [shape: f32[2,16,128], index: 0, kind: input, shape index: {}]   ;;  %s912_s1 = inlined_call_operand.vmem [shape: f32[2,16,128], index: 1, kind: input, shape index: {}]   ;;  %s913_s2 = inlined_call_operand.vmem [shape: f32[2,16,128], index: 2, kind: input, shape index: {}]   ;;  %s914_s3 = inlined_call_operand.vmem [shape: f32[2,16,128], index: 3, kind: input, shape index: {}]   ;;  %s915_s4 = inlined_call_operand.vmem [shape: f32[2,16,128], index: 4, kind: input, shape index: {}]   ;;  %s916_s5 = inlined_call_operand.vmem [shape: f32[2,16,128], index: 5, kind: input, shape index: {}]   ;;  %s917_s6 = inlined_call_operand.vmem [shape: f32[1,1,128], index: 6, kind: input, shape index: {}]   ;;  %s918_s7 = inlined_call_operand.vmem [shape: f32[1,1,128], index: 7, kind: input, shape index: {}]   ;;  %s919_s8 = inlined_call_operand.vmem [shape: f32[2,16,128], index: 8, kind: output, shape index: {}]  }
   0x1   :  { %s843_s29 = smov 0   ;;  %s845_s30 = smov 0  }
   0x2   :  { %s847_s9 = smov 0  }
   0x3 LB: > { %s27_s10 = sadd.s32 1, %s784_s29  ;;  %s30_s11 = sadd.s32 1, %s788_s30  ;;  %s792_s9 = sphi %s847_s9, %s18_s9   ;;  %s788_s30 = sphi %s845_s30, %s923_s30   ;;  %s784_s29 = sphi %s843_s29, %s922_s29   ;;  %s780_s28 = sphi %s841_s28, %s921_s28   ;;  %s776_s27 = sphi %s839_s27, %s920_s27  }
   0x4   : > { %p28_p0 = scmp.ge.s32.totalorder %s27_s10, 2  ;;  %p695_p1 = scmp.ge.s32.totalorder %s792_s9, 1 }
   0x5   : > { %p356_p2 = scmp.lt.s32.totalorder %s792_s9, 5 }
   0x6   : > { %s925_s10 = smov (%p28_p0, %s27_s10), 0  ;;  %s927_s11 = smov (!%p28_p0, %s30_s11), %s788_s30 }
   0x7   : > { %p357_p3 = pnand %p695_p1, %p356_p2  ;;  %p32_p4 = scmp.ge.s32.totalorder %s927_s11, 2 }
   0x8   : > { %p436_p5 = scmp.lt.s32.totalorder (!%p357_p3), %s780_s28, 1  ;;  %p438_p6 = scmp.lt.s32.totalorder (!%p357_p3), %s776_s27, 1 }
   0x9   : > { %s929_s11 = smov (%p32_p4, %s927_s11), 0  ;;  %360 = sbr.rel (%p357_p3) target bundleno = 36 (0x24), region = 52 }
   0xe   : > { %s931_s28 = smov (!%p436_p5, %s780_s28), 1  ;;  %s933_s27 = smov (!%p438_p6, %s776_s27), 1  ;;  %v752_v10 = vld [vmem:[%s917_s6] ss:$0 sm:$0xff] }
   0xf   : > { %s696_s12 = sshll.u32 %s931_s28, 1  ;;  %v753_v12 = vld [vmem:[%s918_s7] ss:$0 sm:$0xff] }
  0x10   : > { %s441_s13 = sadd.s32 %s696_s12, %s933_s27 }
  0x11   : > { %s697_s14 = sshll.u32 %s441_s13, 3 }
  0x12   : > { %s443_s17 = scalar_lea.vmem %s911_s0, %s697_s14  ;;  %s451_s20 = scalar_lea.vmem %s912_s1, %s697_s14 }
  0x13   : > { %s459_s23 = scalar_lea.vmem %s913_s2, %s697_s14  ;;  %s467_s26 = scalar_lea.vmem %s914_s3, %s697_s14  ;;  %v492_v0 = vld [vmem:[%s443_s17] sm:$0xff] }
  0x14   : > { %v493_v1 = vld [vmem:[%s451_s20] sm:$0xff]  ;;  %s475_s12 = scalar_lea.vmem %s915_s4, %s697_s14  ;;  %s483_s16 = scalar_lea.vmem %s916_s5, %s697_s14 }
  0x15   : > { %v494_v2 = vadd.f32 %v493_v1, %v492_v0  ;;  %v495_v3 = vld [vmem:[%s459_s23] sm:$0xff]  ;;  %s491_s23 = scalar_lea.vmem %s919_s8, %s697_s14 }
  0x16   : > { %v496_v4 = vld [vmem:[%s467_s26] sm:$0xff] }
  0x17   : > { %v497_v5 = vadd.f32 %v496_v4, %v495_v3  ;;  %v499_v6 = vld [vmem:[%s475_s12] sm:$0xff] }
  0x18   : > { %v500_v7 = vld [vmem:[%s483_s16] sm:$0xff] }
  0x19   : > { %v501_v8 = vadd.f32 %v500_v7, %v499_v6  ;;  %v498_v9 = vadd.f32 %v497_v5, %v494_v2 }
  0x1b   : > { %v502_v11 = vadd.f32 %v501_v8, %v498_v9 }
  0x1d   : > { %v507_v13 = vmul.f32 %v752_v10, %v502_v11 }
  0x1f   : > { %v512_v14 = vadd.f32 %v753_v12, %v507_v13 }
  0x21   : > { %v513_v15 = vmax.f32 %v512_v14, 0.0 }
  0x23   : > { %514 = vst [vmem:[%s491_s23] sm:$0xff] %v513_v15 }
  0x24 PF: > { %s18_s9 = sadd.s32 1, %s792_s9   ;;  %s920_s27 = smov %s784_s29 }
  0x25   : > { %p15_p7 = scmp.ge.s32.totalorder %s18_s9, 6   ;;  %s921_s28 = smov %s788_s30 }
  0x26   : > { %s922_s29 = smov %s925_s10  ;;  %s923_s30 = smov %s929_s11 }
  0x27   :  { %17 = sbr.rel (!%p15_p7) target bundleno = 3 (0x3), region = 97 }

</bundles_post_ra>
